<compile_context>
chip_gen: v6e
topology: v6e:2x2x1
jax: 0.10.0
libtpu: 0.0.40
codegen_flags: <defaults>
</compile_context>

<pallas_src>
import functools

import jax
import jax.numpy as jnp
from jax import lax
from jax.experimental import pallas as pl
from jax.experimental.pallas import tpu as pltpu


# ----------------------------------------------------------------------------
# Kernel: one grid step = one tile of the folded (batch * stream) point clouds.
# ----------------------------------------------------------------------------
def _resnet_pointnet_kernel(
    x_ref,                 # (rows, T, D)   point clouds of the current tile
    wpos_ref, bpos_ref,    # (D, 2H), (1, 2H)
    w0_ref, b0_ref,        # (5, 2H, H), (5, 1, H)   fc_0 of each ResnetBlockFC
    w1_ref, b1_ref,        # (5, H, H),  (5, 1, H)   fc_1 of each ResnetBlockFC
    ws_ref,                # (5, 2H, H)              shortcut (no bias)
    wc_ref, bc_ref,        # (H, c_half), (1, c_half)
    out_ref,               # (rows, c_half)
    *, hidden_dim):
  H = hidden_dim
  f32 = jnp.float32
  cdt = wpos_ref.dtype                      # MXU compute dtype (bf16 in prod)
  Nb, T, D = x_ref.shape
  M = Nb * T
  relu = lambda v: jnp.maximum(v, 0.0)
  mm = lambda a, w: jnp.dot(a, w, preferred_element_type=f32)  # MXU, f32 acc

  # ---- fc_pos: K = D (=3) would use ~2% of the MXU; do D broadcast FMAs on
  # the VPU instead (free filler under MXU slack).  x is rounded through the
  # compute dtype so it matches the reference's bf16 matmul inputs.
  xc = x_ref[...].astype(cdt).astype(f32).reshape(M, D)
  wp = wpos_ref[...].astype(f32)                         # (D, 2H)
  net = bpos_ref[...].astype(f32)                        # (1, 2H), broadcasts
  for d in range(D):
    net = net + xc[:, d:d + 1] * wp[d][None, :]          # -> (M, 2H)

  # ---- block 0: genuine (.., 2H) input --------------------------------------
  h = mm(relu(net).astype(cdt), w0_ref[0]) + b0_ref[0]   # (M, H)
  dx = mm(relu(h).astype(cdt), w1_ref[0]) + b1_ref[0]    # (M, H)
  net = mm(net.astype(cdt), ws_ref[0]) + dx              # shortcut + residual

  # ---- blocks 1..4: input is cat([net, pooled], -1).  Use
  #   cat([a, b], -1) @ W == a @ W[:H] + b @ W[H:]
  # so the pooled branch is a tiny (Nb, H) matmul broadcast once per block.
  def block_body(i, net_flat):
    pooled = jnp.max(net_flat.reshape(Nb, T, H), axis=1)      # (Nb, H)
    # Slice the halves straight off the resident weight refs (no full-slab
    # load-then-slice temporaries -> less vld traffic and loop-body VMEM).
    w0_lo = w0_ref[i, pl.ds(0, H), :]                         # (H, H)
    w0_hi = w0_ref[i, pl.ds(H, H), :]                         # (H, H)
    ws_lo = ws_ref[i, pl.ds(0, H), :]                         # (H, H)
    ws_hi = ws_ref[i, pl.ds(H, H), :]                         # (H, H)
    # Pooled contributions + bias, combined before the single broadcast add.
    ph = mm(relu(pooled).astype(cdt), w0_hi) + b0_ref[i]      # (Nb, H)
    ps = mm(pooled.astype(cdt), ws_hi)                        # (Nb, H)
    h3 = (mm(relu(net_flat).astype(cdt), w0_lo).reshape(Nb, T, H)
          + ph[:, None, :])
    dx = mm(relu(h3).reshape(M, H).astype(cdt), w1_ref[i]) + b1_ref[i]
    xs = mm(net_flat.astype(cdt), ws_lo)
    out3 = (xs + dx).reshape(Nb, T, H) + ps[:, None, :]
    return out3.reshape(M, H)

  # Unrolled: lets the LLO scheduler hide each block's small pooled matmuls,
  # max-pool (VPU/XLU) and residual adds under the big MXU matmuls.
  net = lax.fori_loop(1, 5, block_body, net, unroll=True)     # (M, H) f32

  # ---- final pool over points + fc_c ----------------------------------------
  feat = jnp.max(net.reshape(Nb, T, H), axis=1)               # (Nb, H)
  c = mm(relu(feat).astype(cdt), wc_ref[...]) + bc_ref[...]
  out_ref[...] = c.astype(out_ref.dtype)


# ----------------------------------------------------------------------------
# Tiling helpers
# ----------------------------------------------------------------------------
def _round_up(v, m):
  return ((v + m - 1) // m) * m


def _padded_bytes(arr):
  """VMEM footprint of a full-array block, incl. (8,128) tile padding."""
  shape = arr.shape
  if len(shape) == 1:
    lead, rows, cols = 1, 1, int(shape[0])
  else:
    lead = 1
    for s in shape[:-2]:
      lead *= int(s)
    rows, cols = int(shape[-2]), int(shape[-1])
  return lead * _round_up(rows, 8) * _round_up(cols, 128) * arr.dtype.itemsize


def _vmem_capacity_bytes():
  try:
    cap = getattr(pltpu.get_tpu_info(), "vmem_capacity_bytes", None)
    if cap:
      return int(cap)
  except Exception:
    pass
  return 64 * 1024 * 1024        # conservative default == v7x per-core VMEM


def _largest_divisor_at_most(n, cap):
  cap = max(1, min(int(cap), n))
  for r in range(cap, 0, -1):
    if n % r == 0:
      return r
  return 1


def _choose_rows_per_tile(B, Tp, D, hidden_dim, x_itemsize, weight_bytes,
                          weight_buffers, vmem_limit_bytes):
  H2 = 2 * hidden_dim
  # ~3 live f32 (M, 2H)-equivalent activation slabs + ~2 bf16 MXU-input temps.
  act_row = Tp * H2 * (4 * 3 + 2 * 2)
  # Lane-padded (rows, Tp, D->128) x tile, double-buffered by the pipeline.
  x_row = 2 * Tp * _round_up(D, 128) * x_itemsize
  fixed = weight_buffers * weight_bytes + (2 << 20)   # weights + misc scratch
  avail = vmem_limit_bytes - fixed
  cap = max(1, avail // (act_row + x_row)) if avail > 0 else 1
  # rows_per_tile must divide B so num_tiles = 2B / rows is even and >= 2:
  # the "parallel" grid axis then always splits across v7x's 2 TensorCores.
  return _largest_divisor_at_most(B, cap)


# ----------------------------------------------------------------------------
# Wrapper
# ----------------------------------------------------------------------------
def resnet_pointnet_2stream(x, params, *, hidden_dim, rows_per_tile=None):
  """x: (B, 2, T, D) -> (B, 2 * c_half).  Shared-weight two-stream PointNet."""
  B, S, T, D = x.shape
  assert S == 2
  c_half = params[7].shape[1]
  total_rows = 2 * B
  # Fold the 2 streams into the batch: every (b, s) point cloud is independent,
  # so folding just doubles M per matmul (better MXU fill, no serial stream
  # loop) and keeps the output a pure reshape away from torch.cat([c1,c2],-1).
  x_folded = x.reshape(total_rows, T, D)

  # Pad T to a multiple of 8 by duplicating an existing point: exact under the
  # max-pool, and keeps every in-kernel (M, .) <-> (rows, T, .) reshape a free
  # sublane merge (no per-block relayout copies when T % 8 != 0, e.g. T=300).
  Tp = _round_up(T, 8)
  if Tp != T:
    pad = jnp.broadcast_to(x_folded[:, :1, :], (total_rows, Tp - T, D))
    x_folded = jnp.concatenate([x_folded, pad], axis=1)

  # Generation-aware VMEM budget: ~82% of physical (~52 MiB on v7x's 64 MiB,
  # ~105 MiB on v5e/v6e's 128 MiB) so single-TC chips get fewer, larger tiles.
  vmem_limit = int(_vmem_capacity_bytes() * 0.82)
  weight_bytes = sum(_padded_bytes(p) for p in params)

  kernel = functools.partial(_resnet_pointnet_kernel, hidden_dim=hidden_dim)

  def build_and_run(weight_buffers):
    if rows_per_tile is None:
      rows = _choose_rows_per_tile(B, Tp, D, hidden_dim, x.dtype.itemsize,
                                   weight_bytes, weight_buffers, vmem_limit)
    else:
      rows = rows_per_tile
      assert total_rows % rows == 0
    num_tiles = total_rows // rows

    def weight_spec(arr):
      n = arr.ndim
      idx = lambda g, _n=n: (0,) * _n
      if weight_buffers == 1:
        # Grid-invariant operand: a second pipeline buffer buys nothing;
        # Buffered(1) hands its VMEM back (~13 MiB at production H=512 bf16).
        return pl.BlockSpec(arr.shape, idx, pipeline_mode=pl.Buffered(1))
      return pl.BlockSpec(arr.shape, idx)

    out = pl.pallas_call(
        kernel,
        out_shape=jax.ShapeDtypeStruct((num_tiles, rows, c_half), x.dtype),
        grid_spec=pltpu.PrefetchScalarGridSpec(
            num_scalar_prefetch=0,
            grid=(num_tiles,),  # independent batch tiles (streams folded in)
            in_specs=[pl.BlockSpec((rows, Tp, D), lambda g: (g, 0, 0))]
                     + [weight_spec(a) for a in params],
            out_specs=pl.BlockSpec((None, rows, c_half),
                                   lambda g: (g, 0, 0)),
        ),
        compiler_params=pltpu.CompilerParams(
            dimension_semantics=("parallel",),
            vmem_limit_bytes=vmem_limit),
    )(x_folded, *params)
    # out[g, r] = code of folded row g*rows + r; rows are ordered (b, s), so a
    # pure reshape yields torch.cat([c_1, c_2], dim=-1).
    return out.reshape(B, 2 * c_half)

  if hasattr(pl, "Buffered"):
    try:
      return build_and_run(1)
    except Exception:
      # Buffered(1) not supported by this build: fall back to the default
      # double-buffered weight specs (tiling re-derived with 2x weight bytes).
      pass
  return build_and_run(2)


# ----------------------------------------------------------------------------
# Deterministic parameter init (shapes from ResnetPointnet.__init__).
# ----------------------------------------------------------------------------
def init_params(key, *, c_dim, dim, hidden_dim, dtype=jnp.float32):
  H = hidden_dim
  c_half = c_dim // 2
  ks = jax.random.split(key, 9)

  def lin(k, fan_in, shape, scale=1.0):
    v = scale * jax.random.normal(k, shape, jnp.float32) / jnp.sqrt(
        jnp.asarray(fan_in, jnp.float32))
    return v.astype(dtype)

  wpos = lin(ks[0], dim, (dim, 2 * H))
  bpos = lin(ks[1], 1, (1, 2 * H), 0.1)
  w0 = lin(ks[2], 2 * H, (5, 2 * H, H))
  b0 = lin(ks[3], 1, (5, 1, H), 0.1)
  # NOTE: the original ResnetBlockFC zero-inits fc_1.weight; we use small
  # deterministic random values so the full path is numerically exercised.
  w1 = lin(ks[4], H, (5, H, H))
  b1 = lin(ks[5], 1, (5, 1, H), 0.1)
  ws = lin(ks[6], 2 * H, (5, 2 * H, H))
  wc = lin(ks[7], H, (H, c_half))
  bc = lin(ks[8], 1, (1, c_half), 0.1)
  return (wpos, bpos, w0, b0, w1, b1, ws, wc, bc)


# ----------------------------------------------------------------------------
# Plain-JAX reference (mirrors the PyTorch forward incl. concat + maxpool;
# matmul inputs are cast to the weight dtype, accumulation is f32, so it uses
# the same precision policy as the kernel).
# ----------------------------------------------------------------------------
def reference(x, params):
  wpos, bpos, w0, b0, w1, b1, ws, wc, bc = params
  cdt = wpos.dtype
  f32 = jnp.float32
  relu = lambda v: jnp.maximum(v, 0.0)
  mm = lambda a, w: jnp.dot(a.astype(cdt), w, preferred_element_type=f32)

  def block(v, i):
    h = mm(relu(v), w0[i]) + b0[i]
    dx = mm(relu(h), w1[i]) + b1[i]
    return mm(v, ws[i]) + dx

  def pointnet(p):
    net = mm(p, wpos) + bpos
    net = block(net, 0)
    for i in range(1, 5):
      pooled = jnp.max(net, axis=1, keepdims=True)
      net = jnp.concatenate([net, jnp.broadcast_to(pooled, net.shape)], axis=-1)
      net = block(net, i)
    feat = jnp.max(net, axis=1)
    return mm(relu(feat), wc) + bc

  c1 = pointnet(x[:, 0].astype(f32))
  c2 = pointnet(x[:, 1].astype(f32))
  return jnp.concatenate([c1, c2], axis=-1)


if __name__ == "__main__":
  key = jax.random.PRNGKey(0)
  kx, kp = jax.random.split(key)

  # Small shapes; T=60 deliberately exercises the pad-T-to-multiple-of-8 path.
  B, T, D, H, C = 2, 60, 3, 32, 16   # C is the 2-stream c_dim
  x = jax.random.normal(kx, (B, 2, T, D), jnp.float32)

  # --- f32 weights: exact-math check against the reference ------------------
  params_f32 = init_params(kp, c_dim=C, dim=D, hidden_dim=H, dtype=jnp.float32)
  out_f32 = jax.block_until_ready(
      resnet_pointnet_2stream(x, params_f32, hidden_dim=H))
  ref_f32 = reference(x, params_f32)
  assert out_f32.shape == (B, C), out_f32.shape
  assert jnp.allclose(out_f32, ref_f32, atol=1e-4, rtol=1e-4)

  # --- bf16 weights (production config): MXU-native rate, f32 accumulation --
  params_bf16 = jax.tree_util.tree_map(lambda a: a.astype(jnp.bfloat16),
                                       params_f32)
  out_bf16 = jax.block_until_ready(
      resnet_pointnet_2stream(x, params_bf16, hidden_dim=H))
  ref_bf16 = reference(x, params_bf16)
  assert out_bf16.shape == (B, C), out_bf16.shape
  assert jnp.allclose(out_bf16, ref_bf16, atol=3e-2, rtol=3e-2)

  print("KERNEL_OK")
</pallas_src>

<mosaic_0001>
module attributes {stable_mosaic.version = 11 : i64} {
  func.func @_resnet_pointnet_kernel(%arg0: i32, %arg1: memref<2x64x3xf32, #tpu.memory_space<vmem>>, %arg2: memref<3x64xf32, #tpu.memory_space<vmem>>, %arg3: memref<1x64xf32, #tpu.memory_space<vmem>>, %arg4: memref<5x64x32xf32, #tpu.memory_space<vmem>>, %arg5: memref<5x1x32xf32, #tpu.memory_space<vmem>>, %arg6: memref<5x32x32xf32, #tpu.memory_space<vmem>>, %arg7: memref<5x1x32xf32, #tpu.memory_space<vmem>>, %arg8: memref<5x64x32xf32, #tpu.memory_space<vmem>>, %arg9: memref<32x8xf32, #tpu.memory_space<vmem>>, %arg10: memref<1x8xf32, #tpu.memory_space<vmem>>, %arg11: memref<1x2x8xf32, #tpu.memory_space<vmem>>) attributes {dimension_semantics = [#tpu.dimension_semantics<parallel>], iteration_bounds = array<i64: 2>, scalar_prefetch = 0 : i64, scratch_operands = 0 : i64, tpu.core_type = #tpu.core_type<tc>, window_params = [{transform_indices = @transform_0, window_bounds = array<i64: 2, 64, 3>}, {pipeline_mode = #tpu.pipeline_mode<synchronous>, transform_indices = @transform_1, window_bounds = array<i64: 3, 64>}, {pipeline_mode = #tpu.pipeline_mode<synchronous>, transform_indices = @transform_2, window_bounds = array<i64: 1, 64>}, {pipeline_mode = #tpu.pipeline_mode<synchronous>, transform_indices = @transform_3, window_bounds = array<i64: 5, 64, 32>}, {pipeline_mode = #tpu.pipeline_mode<synchronous>, transform_indices = @transform_4, window_bounds = array<i64: 5, 1, 32>}, {pipeline_mode = #tpu.pipeline_mode<synchronous>, transform_indices = @transform_5, window_bounds = array<i64: 5, 32, 32>}, {pipeline_mode = #tpu.pipeline_mode<synchronous>, transform_indices = @transform_6, window_bounds = array<i64: 5, 1, 32>}, {pipeline_mode = #tpu.pipeline_mode<synchronous>, transform_indices = @transform_7, window_bounds = array<i64: 5, 64, 32>}, {pipeline_mode = #tpu.pipeline_mode<synchronous>, transform_indices = @transform_8, window_bounds = array<i64: 32, 8>}, {pipeline_mode = #tpu.pipeline_mode<synchronous>, transform_indices = @transform_9, window_bounds = array<i64: 1, 8>}, {transform_indices = @transform_10, window_bounds = array<i64: 1, 2, 8>}]} {
    %c0 = arith.constant 0 : index
    %c0_0 = arith.constant 0 : index
    %c0_1 = arith.constant 0 : index
    %0 = vector.load %arg1[%c0, %c0_0, %c0_1] : memref<2x64x3xf32, #tpu.memory_space<vmem>>, vector<2x64x3xf32>
    %1 = vector.shape_cast %0 : vector<2x64x3xf32> to vector<128x3xf32>
    %c0_2 = arith.constant 0 : index
    %c0_3 = arith.constant 0 : index
    %2 = vector.load %arg2[%c0_2, %c0_3] : memref<3x64xf32, #tpu.memory_space<vmem>>, vector<3x64xf32>
    %c0_4 = arith.constant 0 : index
    %c0_5 = arith.constant 0 : index
    %3 = vector.load %arg3[%c0_4, %c0_5] : memref<1x64xf32, #tpu.memory_space<vmem>>, vector<1x64xf32>
    %4 = vector.extract_strided_slice %1 {offsets = [0, 0], sizes = [128, 1], strides = [1, 1]} : vector<128x3xf32> to vector<128x1xf32>
    %5 = vector.extract_strided_slice %2 {offsets = [0, 0], sizes = [1, 64], strides = [1, 1]} : vector<3x64xf32> to vector<1x64xf32>
    %6 = vector.shape_cast %5 : vector<1x64xf32> to vector<64xf32>
    %7 = vector.shape_cast %6 : vector<64xf32> to vector<1x64xf32>
    %8 = vector.broadcast %4 : vector<128x1xf32> to vector<128x64xf32>
    %9 = vector.broadcast %7 : vector<1x64xf32> to vector<128x64xf32>
    %10 = arith.mulf %8, %9 : vector<128x64xf32>
    %11 = vector.broadcast %3 : vector<1x64xf32> to vector<128x64xf32>
    %12 = arith.addf %11, %10 : vector<128x64xf32>
    %13 = vector.extract_strided_slice %1 {offsets = [0, 1], sizes = [128, 1], strides = [1, 1]} : vector<128x3xf32> to vector<128x1xf32>
    %14 = vector.extract_strided_slice %2 {offsets = [1, 0], sizes = [1, 64], strides = [1, 1]} : vector<3x64xf32> to vector<1x64xf32>
    %15 = vector.shape_cast %14 : vector<1x64xf32> to vector<64xf32>
    %16 = vector.shape_cast %15 : vector<64xf32> to vector<1x64xf32>
    %17 = vector.broadcast %13 : vector<128x1xf32> to vector<128x64xf32>
    %18 = vector.broadcast %16 : vector<1x64xf32> to vector<128x64xf32>
    %19 = arith.mulf %17, %18 : vector<128x64xf32>
    %20 = arith.addf %12, %19 : vector<128x64xf32>
    %21 = vector.extract_strided_slice %1 {offsets = [0, 2], sizes = [128, 1], strides = [1, 1]} : vector<128x3xf32> to vector<128x1xf32>
    %22 = vector.extract_strided_slice %2 {offsets = [2, 0], sizes = [1, 64], strides = [1, 1]} : vector<3x64xf32> to vector<1x64xf32>
    %23 = vector.shape_cast %22 : vector<1x64xf32> to vector<64xf32>
    %24 = vector.shape_cast %23 : vector<64xf32> to vector<1x64xf32>
    %25 = vector.broadcast %21 : vector<128x1xf32> to vector<128x64xf32>
    %26 = vector.broadcast %24 : vector<1x64xf32> to vector<128x64xf32>
    %27 = arith.mulf %25, %26 : vector<128x64xf32>
    %28 = arith.addf %20, %27 : vector<128x64xf32>
    %cst = arith.constant 0.000000e+00 : f32
    %29 = vector.broadcast %cst : f32 to vector<128x64xf32>
    %30 = arith.maximumf %28, %29 : vector<128x64xf32>
    %c0_6 = arith.constant 0 : index
    %c0_7 = arith.constant 0 : index
    %c0_8 = arith.constant 0 : index
    %31 = vector.load %arg4[%c0_6, %c0_7, %c0_8] : memref<5x64x32xf32, #tpu.memory_space<vmem>>, vector<1x64x32xf32>
    %32 = vector.shape_cast %31 : vector<1x64x32xf32> to vector<64x32xf32>
    %cst_9 = arith.constant dense<0.000000e+00> : vector<128x32xf32>
    %33 = tpu.matmul %30, %32, %cst_9 {dimension_numbers = #tpu.dot_dimension_numbers<[1], [0], [0], [1], [0, 0, 1, 1], [], []>} : vector<128x64xf32>, vector<64x32xf32>, vector<128x32xf32> -> vector<128x32xf32>
    %c0_10 = arith.constant 0 : index
    %c0_11 = arith.constant 0 : index
    %c0_12 = arith.constant 0 : index
    %34 = vector.load %arg5[%c0_10, %c0_11, %c0_12] : memref<5x1x32xf32, #tpu.memory_space<vmem>>, vector<1x1x32xf32>
    %35 = vector.shape_cast %34 : vector<1x1x32xf32> to vector<1x32xf32>
    %36 = vector.broadcast %35 : vector<1x32xf32> to vector<128x32xf32>
    %37 = arith.addf %33, %36 : vector<128x32xf32>
    %cst_13 = arith.constant 0.000000e+00 : f32
    %38 = vector.broadcast %cst_13 : f32 to vector<128x32xf32>
    %39 = arith.maximumf %37, %38 : vector<128x32xf32>
    %c0_14 = arith.constant 0 : index
    %c0_15 = arith.constant 0 : index
    %c0_16 = arith.constant 0 : index
    %40 = vector.load %arg6[%c0_14, %c0_15, %c0_16] : memref<5x32x32xf32, #tpu.memory_space<vmem>>, vector<1x32x32xf32>
    %41 = vector.shape_cast %40 : vector<1x32x32xf32> to vector<32x32xf32>
    %cst_17 = arith.constant dense<0.000000e+00> : vector<128x32xf32>
    %42 = tpu.matmul %39, %41, %cst_17 {dimension_numbers = #tpu.dot_dimension_numbers<[1], [0], [0], [1], [0, 0, 1, 1], [], []>} : vector<128x32xf32>, vector<32x32xf32>, vector<128x32xf32> -> vector<128x32xf32>
    %c0_18 = arith.constant 0 : index
    %c0_19 = arith.constant 0 : index
    %c0_20 = arith.constant 0 : index
    %43 = vector.load %arg7[%c0_18, %c0_19, %c0_20] : memref<5x1x32xf32, #tpu.memory_space<vmem>>, vector<1x1x32xf32>
    %44 = vector.shape_cast %43 : vector<1x1x32xf32> to vector<1x32xf32>
    %45 = vector.broadcast %44 : vector<1x32xf32> to vector<128x32xf32>
    %46 = arith.addf %42, %45 : vector<128x32xf32>
    %c0_21 = arith.constant 0 : index
    %c0_22 = arith.constant 0 : index
    %c0_23 = arith.constant 0 : index
    %47 = vector.load %arg8[%c0_21, %c0_22, %c0_23] : memref<5x64x32xf32, #tpu.memory_space<vmem>>, vector<1x64x32xf32>
    %48 = vector.shape_cast %47 : vector<1x64x32xf32> to vector<64x32xf32>
    %cst_24 = arith.constant dense<0.000000e+00> : vector<128x32xf32>
    %49 = tpu.matmul %28, %48, %cst_24 {dimension_numbers = #tpu.dot_dimension_numbers<[1], [0], [0], [1], [0, 0, 1, 1], [], []>} : vector<128x64xf32>, vector<64x32xf32>, vector<128x32xf32> -> vector<128x32xf32>
    %50 = arith.addf %49, %46 : vector<128x32xf32>
    %c1_i32 = arith.constant 1 : i32
    %51 = vector.shape_cast %50 : vector<128x32xf32> to vector<2x64x32xf32>
    %cst_25 = arith.constant dense<0xFF800000> : vector<2x32xf32>
    %52 = vector.multi_reduction <maximumf>, %51, %cst_25 [1] : vector<2x64x32xf32> to vector<2x32xf32>
    %53 = arith.index_cast %c1_i32 : i32 to index
    %c0_26 = arith.constant 0 : index
    %c0_27 = arith.constant 0 : index
    %54 = vector.load %arg4[%53, %c0_26, %c0_27] : memref<5x64x32xf32, #tpu.memory_space<vmem>>, vector<1x32x32xf32>
    %55 = vector.shape_cast %54 : vector<1x32x32xf32> to vector<32x32xf32>
    %56 = arith.index_cast %c1_i32 : i32 to index
    %c32 = arith.constant 32 : index
    %c0_28 = arith.constant 0 : index
    %57 = vector.load %arg4[%56, %c32, %c0_28] : memref<5x64x32xf32, #tpu.memory_space<vmem>>, vector<1x32x32xf32>
    %58 = vector.shape_cast %57 : vector<1x32x32xf32> to vector<32x32xf32>
    %59 = arith.index_cast %c1_i32 : i32 to index
    %c0_29 = arith.constant 0 : index
    %c0_30 = arith.constant 0 : index
    %60 = vector.load %arg8[%59, %c0_29, %c0_30] : memref<5x64x32xf32, #tpu.memory_space<vmem>>, vector<1x32x32xf32>
    %61 = vector.shape_cast %60 : vector<1x32x32xf32> to vector<32x32xf32>
    %62 = arith.index_cast %c1_i32 : i32 to index
    %c32_31 = arith.constant 32 : index
    %c0_32 = arith.constant 0 : index
    %63 = vector.load %arg8[%62, %c32_31, %c0_32] : memref<5x64x32xf32, #tpu.memory_space<vmem>>, vector<1x32x32xf32>
    %64 = vector.shape_cast %63 : vector<1x32x32xf32> to vector<32x32xf32>
    %cst_33 = arith.constant 0.000000e+00 : f32
    %65 = vector.broadcast %cst_33 : f32 to vector<2x32xf32>
    %66 = arith.maximumf %52, %65 : vector<2x32xf32>
    %cst_34 = arith.constant dense<0.000000e+00> : vector<2x32xf32>
    %67 = tpu.matmul %66, %58, %cst_34 {dimension_numbers = #tpu.dot_dimension_numbers<[1], [0], [0], [1], [0, 0, 1, 1], [], []>} : vector<2x32xf32>, vector<32x32xf32>, vector<2x32xf32> -> vector<2x32xf32>
    %68 = arith.index_cast %c1_i32 : i32 to index
    %c0_35 = arith.constant 0 : index
    %c0_36 = arith.constant 0 : index
    %69 = vector.load %arg5[%68, %c0_35, %c0_36] : memref<5x1x32xf32, #tpu.memory_space<vmem>>, vector<1x1x32xf32>
    %70 = vector.shape_cast %69 : vector<1x1x32xf32> to vector<1x32xf32>
    %71 = vector.broadcast %70 : vector<1x32xf32> to vector<2x32xf32>
    %72 = arith.addf %67, %71 : vector<2x32xf32>
    %cst_37 = arith.constant dense<0.000000e+00> : vector<2x32xf32>
    %73 = tpu.matmul %52, %64, %cst_37 {dimension_numbers = #tpu.dot_dimension_numbers<[1], [0], [0], [1], [0, 0, 1, 1], [], []>} : vector<2x32xf32>, vector<32x32xf32>, vector<2x32xf32> -> vector<2x32xf32>
    %cst_38 = arith.constant 0.000000e+00 : f32
    %74 = vector.broadcast %cst_38 : f32 to vector<128x32xf32>
    %75 = arith.maximumf %50, %74 : vector<128x32xf32>
    %cst_39 = arith.constant dense<0.000000e+00> : vector<128x32xf32>
    %76 = tpu.matmul %75, %55, %cst_39 {dimension_numbers = #tpu.dot_dimension_numbers<[1], [0], [0], [1], [0, 0, 1, 1], [], []>} : vector<128x32xf32>, vector<32x32xf32>, vector<128x32xf32> -> vector<128x32xf32>
    %77 = vector.shape_cast %76 : vector<128x32xf32> to vector<2x64x32xf32>
    %78 = vector.shape_cast %72 : vector<2x32xf32> to vector<2x1x32xf32>
    %79 = vector.broadcast %78 : vector<2x1x32xf32> to vector<2x64x32xf32>
    %80 = arith.addf %77, %79 : vector<2x64x32xf32>
    %cst_40 = arith.constant 0.000000e+00 : f32
    %81 = vector.broadcast %cst_40 : f32 to vector<2x64x32xf32>
    %82 = arith.maximumf %80, %81 : vector<2x64x32xf32>
    %83 = vector.shape_cast %82 : vector<2x64x32xf32> to vector<128x32xf32>
    %84 = arith.index_cast %c1_i32 : i32 to index
    %c0_41 = arith.constant 0 : index
    %c0_42 = arith.constant 0 : index
    %85 = vector.load %arg6[%84, %c0_41, %c0_42] : memref<5x32x32xf32, #tpu.memory_space<vmem>>, vector<1x32x32xf32>
    %86 = vector.shape_cast %85 : vector<1x32x32xf32> to vector<32x32xf32>
    %cst_43 = arith.constant dense<0.000000e+00> : vector<128x32xf32>
    %87 = tpu.matmul %83, %86, %cst_43 {dimension_numbers = #tpu.dot_dimension_numbers<[1], [0], [0], [1], [0, 0, 1, 1], [], []>} : vector<128x32xf32>, vector<32x32xf32>, vector<128x32xf32> -> vector<128x32xf32>
    %88 = arith.index_cast %c1_i32 : i32 to index
    %c0_44 = arith.constant 0 : index
    %c0_45 = arith.constant 0 : index
    %89 = vector.load %arg7[%88, %c0_44, %c0_45] : memref<5x1x32xf32, #tpu.memory_space<vmem>>, vector<1x1x32xf32>
    %90 = vector.shape_cast %89 : vector<1x1x32xf32> to vector<1x32xf32>
    %91 = vector.broadcast %90 : vector<1x32xf32> to vector<128x32xf32>
    %92 = arith.addf %87, %91 : vector<128x32xf32>
    %cst_46 = arith.constant dense<0.000000e+00> : vector<128x32xf32>
    %93 = tpu.matmul %50, %61, %cst_46 {dimension_numbers = #tpu.dot_dimension_numbers<[1], [0], [0], [1], [0, 0, 1, 1], [], []>} : vector<128x32xf32>, vector<32x32xf32>, vector<128x32xf32> -> vector<128x32xf32>
    %94 = arith.addf %93, %92 : vector<128x32xf32>
    %95 = vector.shape_cast %94 : vector<128x32xf32> to vector<2x64x32xf32>
    %96 = vector.shape_cast %73 : vector<2x32xf32> to vector<2x1x32xf32>
    %97 = vector.broadcast %96 : vector<2x1x32xf32> to vector<2x64x32xf32>
    %98 = arith.addf %95, %97 : vector<2x64x32xf32>
    %99 = vector.shape_cast %98 : vector<2x64x32xf32> to vector<128x32xf32>
    %c2_i32 = arith.constant 2 : i32
    %100 = vector.shape_cast %99 : vector<128x32xf32> to vector<2x64x32xf32>
    %cst_47 = arith.constant dense<0xFF800000> : vector<2x32xf32>
    %101 = vector.multi_reduction <maximumf>, %100, %cst_47 [1] : vector<2x64x32xf32> to vector<2x32xf32>
    %102 = arith.index_cast %c2_i32 : i32 to index
    %c0_48 = arith.constant 0 : index
    %c0_49 = arith.constant 0 : index
    %103 = vector.load %arg4[%102, %c0_48, %c0_49] : memref<5x64x32xf32, #tpu.memory_space<vmem>>, vector<1x32x32xf32>
    %104 = vector.shape_cast %103 : vector<1x32x32xf32> to vector<32x32xf32>
    %105 = arith.index_cast %c2_i32 : i32 to index
    %c32_50 = arith.constant 32 : index
    %c0_51 = arith.constant 0 : index
    %106 = vector.load %arg4[%105, %c32_50, %c0_51] : memref<5x64x32xf32, #tpu.memory_space<vmem>>, vector<1x32x32xf32>
    %107 = vector.shape_cast %106 : vector<1x32x32xf32> to vector<32x32xf32>
    %108 = arith.index_cast %c2_i32 : i32 to index
    %c0_52 = arith.constant 0 : index
    %c0_53 = arith.constant 0 : index
    %109 = vector.load %arg8[%108, %c0_52, %c0_53] : memref<5x64x32xf32, #tpu.memory_space<vmem>>, vector<1x32x32xf32>
    %110 = vector.shape_cast %109 : vector<1x32x32xf32> to vector<32x32xf32>
    %111 = arith.index_cast %c2_i32 : i32 to index
    %c32_54 = arith.constant 32 : index
    %c0_55 = arith.constant 0 : index
    %112 = vector.load %arg8[%111, %c32_54, %c0_55] : memref<5x64x32xf32, #tpu.memory_space<vmem>>, vector<1x32x32xf32>
    %113 = vector.shape_cast %112 : vector<1x32x32xf32> to vector<32x32xf32>
    %cst_56 = arith.constant 0.000000e+00 : f32
    %114 = vector.broadcast %cst_56 : f32 to vector<2x32xf32>
    %115 = arith.maximumf %101, %114 : vector<2x32xf32>
    %cst_57 = arith.constant dense<0.000000e+00> : vector<2x32xf32>
    %116 = tpu.matmul %115, %107, %cst_57 {dimension_numbers = #tpu.dot_dimension_numbers<[1], [0], [0], [1], [0, 0, 1, 1], [], []>} : vector<2x32xf32>, vector<32x32xf32>, vector<2x32xf32> -> vector<2x32xf32>
    %117 = arith.index_cast %c2_i32 : i32 to index
    %c0_58 = arith.constant 0 : index
    %c0_59 = arith.constant 0 : index
    %118 = vector.load %arg5[%117, %c0_58, %c0_59] : memref<5x1x32xf32, #tpu.memory_space<vmem>>, vector<1x1x32xf32>
    %119 = vector.shape_cast %118 : vector<1x1x32xf32> to vector<1x32xf32>
    %120 = vector.broadcast %119 : vector<1x32xf32> to vector<2x32xf32>
    %121 = arith.addf %116, %120 : vector<2x32xf32>
    %cst_60 = arith.constant dense<0.000000e+00> : vector<2x32xf32>
    %122 = tpu.matmul %101, %113, %cst_60 {dimension_numbers = #tpu.dot_dimension_numbers<[1], [0], [0], [1], [0, 0, 1, 1], [], []>} : vector<2x32xf32>, vector<32x32xf32>, vector<2x32xf32> -> vector<2x32xf32>
    %cst_61 = arith.constant 0.000000e+00 : f32
    %123 = vector.broadcast %cst_61 : f32 to vector<128x32xf32>
    %124 = arith.maximumf %99, %123 : vector<128x32xf32>
    %cst_62 = arith.constant dense<0.000000e+00> : vector<128x32xf32>
    %125 = tpu.matmul %124, %104, %cst_62 {dimension_numbers = #tpu.dot_dimension_numbers<[1], [0], [0], [1], [0, 0, 1, 1], [], []>} : vector<128x32xf32>, vector<32x32xf32>, vector<128x32xf32> -> vector<128x32xf32>
    %126 = vector.shape_cast %125 : vector<128x32xf32> to vector<2x64x32xf32>
    %127 = vector.shape_cast %121 : vector<2x32xf32> to vector<2x1x32xf32>
    %128 = vector.broadcast %127 : vector<2x1x32xf32> to vector<2x64x32xf32>
    %129 = arith.addf %126, %128 : vector<2x64x32xf32>
    %cst_63 = arith.constant 0.000000e+00 : f32
    %130 = vector.broadcast %cst_63 : f32 to vector<2x64x32xf32>
    %131 = arith.maximumf %129, %130 : vector<2x64x32xf32>
    %132 = vector.shape_cast %131 : vector<2x64x32xf32> to vector<128x32xf32>
    %133 = arith.index_cast %c2_i32 : i32 to index
    %c0_64 = arith.constant 0 : index
    %c0_65 = arith.constant 0 : index
    %134 = vector.load %arg6[%133, %c0_64, %c0_65] : memref<5x32x32xf32, #tpu.memory_space<vmem>>, vector<1x32x32xf32>
    %135 = vector.shape_cast %134 : vector<1x32x32xf32> to vector<32x32xf32>
    %cst_66 = arith.constant dense<0.000000e+00> : vector<128x32xf32>
    %136 = tpu.matmul %132, %135, %cst_66 {dimension_numbers = #tpu.dot_dimension_numbers<[1], [0], [0], [1], [0, 0, 1, 1], [], []>} : vector<128x32xf32>, vector<32x32xf32>, vector<128x32xf32> -> vector<128x32xf32>
    %137 = arith.index_cast %c2_i32 : i32 to index
    %c0_67 = arith.constant 0 : index
    %c0_68 = arith.constant 0 : index
    %138 = vector.load %arg7[%137, %c0_67, %c0_68] : memref<5x1x32xf32, #tpu.memory_space<vmem>>, vector<1x1x32xf32>
    %139 = vector.shape_cast %138 : vector<1x1x32xf32> to vector<1x32xf32>
    %140 = vector.broadcast %139 : vector<1x32xf32> to vector<128x32xf32>
    %141 = arith.addf %136, %140 : vector<128x32xf32>
    %cst_69 = arith.constant dense<0.000000e+00> : vector<128x32xf32>
    %142 = tpu.matmul %99, %110, %cst_69 {dimension_numbers = #tpu.dot_dimension_numbers<[1], [0], [0], [1], [0, 0, 1, 1], [], []>} : vector<128x32xf32>, vector<32x32xf32>, vector<128x32xf32> -> vector<128x32xf32>
    %143 = arith.addf %142, %141 : vector<128x32xf32>
    %144 = vector.shape_cast %143 : vector<128x32xf32> to vector<2x64x32xf32>
    %145 = vector.shape_cast %122 : vector<2x32xf32> to vector<2x1x32xf32>
    %146 = vector.broadcast %145 : vector<2x1x32xf32> to vector<2x64x32xf32>
    %147 = arith.addf %144, %146 : vector<2x64x32xf32>
    %148 = vector.shape_cast %147 : vector<2x64x32xf32> to vector<128x32xf32>
    %c3_i32 = arith.constant 3 : i32
    %149 = vector.shape_cast %148 : vector<128x32xf32> to vector<2x64x32xf32>
    %cst_70 = arith.constant dense<0xFF800000> : vector<2x32xf32>
    %150 = vector.multi_reduction <maximumf>, %149, %cst_70 [1] : vector<2x64x32xf32> to vector<2x32xf32>
    %151 = arith.index_cast %c3_i32 : i32 to index
    %c0_71 = arith.constant 0 : index
    %c0_72 = arith.constant 0 : index
    %152 = vector.load %arg4[%151, %c0_71, %c0_72] : memref<5x64x32xf32, #tpu.memory_space<vmem>>, vector<1x32x32xf32>
    %153 = vector.shape_cast %152 : vector<1x32x32xf32> to vector<32x32xf32>
    %154 = arith.index_cast %c3_i32 : i32 to index
    %c32_73 = arith.constant 32 : index
    %c0_74 = arith.constant 0 : index
    %155 = vector.load %arg4[%154, %c32_73, %c0_74] : memref<5x64x32xf32, #tpu.memory_space<vmem>>, vector<1x32x32xf32>
    %156 = vector.shape_cast %155 : vector<1x32x32xf32> to vector<32x32xf32>
    %157 = arith.index_cast %c3_i32 : i32 to index
    %c0_75 = arith.constant 0 : index
    %c0_76 = arith.constant 0 : index
    %158 = vector.load %arg8[%157, %c0_75, %c0_76] : memref<5x64x32xf32, #tpu.memory_space<vmem>>, vector<1x32x32xf32>
    %159 = vector.shape_cast %158 : vector<1x32x32xf32> to vector<32x32xf32>
    %160 = arith.index_cast %c3_i32 : i32 to index
    %c32_77 = arith.constant 32 : index
    %c0_78 = arith.constant 0 : index
    %161 = vector.load %arg8[%160, %c32_77, %c0_78] : memref<5x64x32xf32, #tpu.memory_space<vmem>>, vector<1x32x32xf32>
    %162 = vector.shape_cast %161 : vector<1x32x32xf32> to vector<32x32xf32>
    %cst_79 = arith.constant 0.000000e+00 : f32
    %163 = vector.broadcast %cst_79 : f32 to vector<2x32xf32>
    %164 = arith.maximumf %150, %163 : vector<2x32xf32>
    %cst_80 = arith.constant dense<0.000000e+00> : vector<2x32xf32>
    %165 = tpu.matmul %164, %156, %cst_80 {dimension_numbers = #tpu.dot_dimension_numbers<[1], [0], [0], [1], [0, 0, 1, 1], [], []>} : vector<2x32xf32>, vector<32x32xf32>, vector<2x32xf32> -> vector<2x32xf32>
    %166 = arith.index_cast %c3_i32 : i32 to index
    %c0_81 = arith.constant 0 : index
    %c0_82 = arith.constant 0 : index
    %167 = vector.load %arg5[%166, %c0_81, %c0_82] : memref<5x1x32xf32, #tpu.memory_space<vmem>>, vector<1x1x32xf32>
    %168 = vector.shape_cast %167 : vector<1x1x32xf32> to vector<1x32xf32>
    %169 = vector.broadcast %168 : vector<1x32xf32> to vector<2x32xf32>
    %170 = arith.addf %165, %169 : vector<2x32xf32>
    %cst_83 = arith.constant dense<0.000000e+00> : vector<2x32xf32>
    %171 = tpu.matmul %150, %162, %cst_83 {dimension_numbers = #tpu.dot_dimension_numbers<[1], [0], [0], [1], [0, 0, 1, 1], [], []>} : vector<2x32xf32>, vector<32x32xf32>, vector<2x32xf32> -> vector<2x32xf32>
    %cst_84 = arith.constant 0.000000e+00 : f32
    %172 = vector.broadcast %cst_84 : f32 to vector<128x32xf32>
    %173 = arith.maximumf %148, %172 : vector<128x32xf32>
    %cst_85 = arith.constant dense<0.000000e+00> : vector<128x32xf32>
    %174 = tpu.matmul %173, %153, %cst_85 {dimension_numbers = #tpu.dot_dimension_numbers<[1], [0], [0], [1], [0, 0, 1, 1], [], []>} : vector<128x32xf32>, vector<32x32xf32>, vector<128x32xf32> -> vector<128x32xf32>
    %175 = vector.shape_cast %174 : vector<128x32xf32> to vector<2x64x32xf32>
    %176 = vector.shape_cast %170 : vector<2x32xf32> to vector<2x1x32xf32>
    %177 = vector.broadcast %176 : vector<2x1x32xf32> to vector<2x64x32xf32>
    %178 = arith.addf %175, %177 : vector<2x64x32xf32>
    %cst_86 = arith.constant 0.000000e+00 : f32
    %179 = vector.broadcast %cst_86 : f32 to vector<2x64x32xf32>
    %180 = arith.maximumf %178, %179 : vector<2x64x32xf32>
    %181 = vector.shape_cast %180 : vector<2x64x32xf32> to vector<128x32xf32>
    %182 = arith.index_cast %c3_i32 : i32 to index
    %c0_87 = arith.constant 0 : index
    %c0_88 = arith.constant 0 : index
    %183 = vector.load %arg6[%182, %c0_87, %c0_88] : memref<5x32x32xf32, #tpu.memory_space<vmem>>, vector<1x32x32xf32>
    %184 = vector.shape_cast %183 : vector<1x32x32xf32> to vector<32x32xf32>
    %cst_89 = arith.constant dense<0.000000e+00> : vector<128x32xf32>
    %185 = tpu.matmul %181, %184, %cst_89 {dimension_numbers = #tpu.dot_dimension_numbers<[1], [0], [0], [1], [0, 0, 1, 1], [], []>} : vector<128x32xf32>, vector<32x32xf32>, vector<128x32xf32> -> vector<128x32xf32>
    %186 = arith.index_cast %c3_i32 : i32 to index
    %c0_90 = arith.constant 0 : index
    %c0_91 = arith.constant 0 : index
    %187 = vector.load %arg7[%186, %c0_90, %c0_91] : memref<5x1x32xf32, #tpu.memory_space<vmem>>, vector<1x1x32xf32>
    %188 = vector.shape_cast %187 : vector<1x1x32xf32> to vector<1x32xf32>
    %189 = vector.broadcast %188 : vector<1x32xf32> to vector<128x32xf32>
    %190 = arith.addf %185, %189 : vector<128x32xf32>
    %cst_92 = arith.constant dense<0.000000e+00> : vector<128x32xf32>
    %191 = tpu.matmul %148, %159, %cst_92 {dimension_numbers = #tpu.dot_dimension_numbers<[1], [0], [0], [1], [0, 0, 1, 1], [], []>} : vector<128x32xf32>, vector<32x32xf32>, vector<128x32xf32> -> vector<128x32xf32>
    %192 = arith.addf %191, %190 : vector<128x32xf32>
    %193 = vector.shape_cast %192 : vector<128x32xf32> to vector<2x64x32xf32>
    %194 = vector.shape_cast %171 : vector<2x32xf32> to vector<2x1x32xf32>
    %195 = vector.broadcast %194 : vector<2x1x32xf32> to vector<2x64x32xf32>
    %196 = arith.addf %193, %195 : vector<2x64x32xf32>
    %197 = vector.shape_cast %196 : vector<2x64x32xf32> to vector<128x32xf32>
    %c4_i32 = arith.constant 4 : i32
    %198 = vector.shape_cast %197 : vector<128x32xf32> to vector<2x64x32xf32>
    %cst_93 = arith.constant dense<0xFF800000> : vector<2x32xf32>
    %199 = vector.multi_reduction <maximumf>, %198, %cst_93 [1] : vector<2x64x32xf32> to vector<2x32xf32>
    %200 = arith.index_cast %c4_i32 : i32 to index
    %c0_94 = arith.constant 0 : index
    %c0_95 = arith.constant 0 : index
    %201 = vector.load %arg4[%200, %c0_94, %c0_95] : memref<5x64x32xf32, #tpu.memory_space<vmem>>, vector<1x32x32xf32>
    %202 = vector.shape_cast %201 : vector<1x32x32xf32> to vector<32x32xf32>
    %203 = arith.index_cast %c4_i32 : i32 to index
    %c32_96 = arith.constant 32 : index
    %c0_97 = arith.constant 0 : index
    %204 = vector.load %arg4[%203, %c32_96, %c0_97] : memref<5x64x32xf32, #tpu.memory_space<vmem>>, vector<1x32x32xf32>
    %205 = vector.shape_cast %204 : vector<1x32x32xf32> to vector<32x32xf32>
    %206 = arith.index_cast %c4_i32 : i32 to index
    %c0_98 = arith.constant 0 : index
    %c0_99 = arith.constant 0 : index
    %207 = vector.load %arg8[%206, %c0_98, %c0_99] : memref<5x64x32xf32, #tpu.memory_space<vmem>>, vector<1x32x32xf32>
    %208 = vector.shape_cast %207 : vector<1x32x32xf32> to vector<32x32xf32>
    %209 = arith.index_cast %c4_i32 : i32 to index
    %c32_100 = arith.constant 32 : index
    %c0_101 = arith.constant 0 : index
    %210 = vector.load %arg8[%209, %c32_100, %c0_101] : memref<5x64x32xf32, #tpu.memory_space<vmem>>, vector<1x32x32xf32>
    %211 = vector.shape_cast %210 : vector<1x32x32xf32> to vector<32x32xf32>
    %cst_102 = arith.constant 0.000000e+00 : f32
    %212 = vector.broadcast %cst_102 : f32 to vector<2x32xf32>
    %213 = arith.maximumf %199, %212 : vector<2x32xf32>
    %cst_103 = arith.constant dense<0.000000e+00> : vector<2x32xf32>
    %214 = tpu.matmul %213, %205, %cst_103 {dimension_numbers = #tpu.dot_dimension_numbers<[1], [0], [0], [1], [0, 0, 1, 1], [], []>} : vector<2x32xf32>, vector<32x32xf32>, vector<2x32xf32> -> vector<2x32xf32>
    %215 = arith.index_cast %c4_i32 : i32 to index
    %c0_104 = arith.constant 0 : index
    %c0_105 = arith.constant 0 : index
    %216 = vector.load %arg5[%215, %c0_104, %c0_105] : memref<5x1x32xf32, #tpu.memory_space<vmem>>, vector<1x1x32xf32>
    %217 = vector.shape_cast %216 : vector<1x1x32xf32> to vector<1x32xf32>
    %218 = vector.broadcast %217 : vector<1x32xf32> to vector<2x32xf32>
    %219 = arith.addf %214, %218 : vector<2x32xf32>
    %cst_106 = arith.constant dense<0.000000e+00> : vector<2x32xf32>
    %220 = tpu.matmul %199, %211, %cst_106 {dimension_numbers = #tpu.dot_dimension_numbers<[1], [0], [0], [1], [0, 0, 1, 1], [], []>} : vector<2x32xf32>, vector<32x32xf32>, vector<2x32xf32> -> vector<2x32xf32>
    %cst_107 = arith.constant 0.000000e+00 : f32
    %221 = vector.broadcast %cst_107 : f32 to vector<128x32xf32>
    %222 = arith.maximumf %197, %221 : vector<128x32xf32>
    %cst_108 = arith.constant dense<0.000000e+00> : vector<128x32xf32>
    %223 = tpu.matmul %222, %202, %cst_108 {dimension_numbers = #tpu.dot_dimension_numbers<[1], [0], [0], [1], [0, 0, 1, 1], [], []>} : vector<128x32xf32>, vector<32x32xf32>, vector<128x32xf32> -> vector<128x32xf32>
    %224 = vector.shape_cast %223 : vector<128x32xf32> to vector<2x64x32xf32>
    %225 = vector.shape_cast %219 : vector<2x32xf32> to vector<2x1x32xf32>
    %226 = vector.broadcast %225 : vector<2x1x32xf32> to vector<2x64x32xf32>
    %227 = arith.addf %224, %226 : vector<2x64x32xf32>
    %cst_109 = arith.constant 0.000000e+00 : f32
    %228 = vector.broadcast %cst_109 : f32 to vector<2x64x32xf32>
    %229 = arith.maximumf %227, %228 : vector<2x64x32xf32>
    %230 = vector.shape_cast %229 : vector<2x64x32xf32> to vector<128x32xf32>
    %231 = arith.index_cast %c4_i32 : i32 to index
    %c0_110 = arith.constant 0 : index
    %c0_111 = arith.constant 0 : index
    %232 = vector.load %arg6[%231, %c0_110, %c0_111] : memref<5x32x32xf32, #tpu.memory_space<vmem>>, vector<1x32x32xf32>
    %233 = vector.shape_cast %232 : vector<1x32x32xf32> to vector<32x32xf32>
    %cst_112 = arith.constant dense<0.000000e+00> : vector<128x32xf32>
    %234 = tpu.matmul %230, %233, %cst_112 {dimension_numbers = #tpu.dot_dimension_numbers<[1], [0], [0], [1], [0, 0, 1, 1], [], []>} : vector<128x32xf32>, vector<32x32xf32>, vector<128x32xf32> -> vector<128x32xf32>
    %235 = arith.index_cast %c4_i32 : i32 to index
    %c0_113 = arith.constant 0 : index
    %c0_114 = arith.constant 0 : index
    %236 = vector.load %arg7[%235, %c0_113, %c0_114] : memref<5x1x32xf32, #tpu.memory_space<vmem>>, vector<1x1x32xf32>
    %237 = vector.shape_cast %236 : vector<1x1x32xf32> to vector<1x32xf32>
    %238 = vector.broadcast %237 : vector<1x32xf32> to vector<128x32xf32>
    %239 = arith.addf %234, %238 : vector<128x32xf32>
    %cst_115 = arith.constant dense<0.000000e+00> : vector<128x32xf32>
    %240 = tpu.matmul %197, %208, %cst_115 {dimension_numbers = #tpu.dot_dimension_numbers<[1], [0], [0], [1], [0, 0, 1, 1], [], []>} : vector<128x32xf32>, vector<32x32xf32>, vector<128x32xf32> -> vector<128x32xf32>
    %241 = arith.addf %240, %239 : vector<128x32xf32>
    %242 = vector.shape_cast %241 : vector<128x32xf32> to vector<2x64x32xf32>
    %243 = vector.shape_cast %220 : vector<2x32xf32> to vector<2x1x32xf32>
    %244 = vector.broadcast %243 : vector<2x1x32xf32> to vector<2x64x32xf32>
    %245 = arith.addf %242, %244 : vector<2x64x32xf32>
    %246 = vector.shape_cast %245 : vector<2x64x32xf32> to vector<128x32xf32>
    %c4_i32_116 = arith.constant 4 : i32
    %247 = vector.shape_cast %246 : vector<128x32xf32> to vector<2x64x32xf32>
    %cst_117 = arith.constant dense<0xFF800000> : vector<2x32xf32>
    %248 = vector.multi_reduction <maximumf>, %247, %cst_117 [1] : vector<2x64x32xf32> to vector<2x32xf32>
    %cst_118 = arith.constant 0.000000e+00 : f32
    %249 = vector.broadcast %cst_118 : f32 to vector<2x32xf32>
    %250 = arith.maximumf %248, %249 : vector<2x32xf32>
    %c0_119 = arith.constant 0 : index
    %c0_120 = arith.constant 0 : index
    %251 = vector.load %arg9[%c0_119, %c0_120] : memref<32x8xf32, #tpu.memory_space<vmem>>, vector<32x8xf32>
    %cst_121 = arith.constant dense<0.000000e+00> : vector<2x8xf32>
    %252 = tpu.matmul %250, %251, %cst_121 {dimension_numbers = #tpu.dot_dimension_numbers<[1], [0], [0], [1], [0, 0, 1, 1], [], []>} : vector<2x32xf32>, vector<32x8xf32>, vector<2x8xf32> -> vector<2x8xf32>
    %c0_122 = arith.constant 0 : index
    %c0_123 = arith.constant 0 : index
    %253 = vector.load %arg10[%c0_122, %c0_123] : memref<1x8xf32, #tpu.memory_space<vmem>>, vector<1x8xf32>
    %254 = vector.broadcast %253 : vector<1x8xf32> to vector<2x8xf32>
    %255 = arith.addf %252, %254 : vector<2x8xf32>
    %c0_124 = arith.constant 0 : index
    %c0_125 = arith.constant 0 : index
    %c0_126 = arith.constant 0 : index
    %256 = vector.load %arg11[%c0_124, %c0_125, %c0_126] : memref<1x2x8xf32, #tpu.memory_space<vmem>>, vector<1x2x8xf32>
    %257 = vector.shape_cast %256 : vector<1x2x8xf32> to vector<2x8xf32>
    %258 = vector.shape_cast %255 : vector<2x8xf32> to vector<1x2x8xf32>
    tpu.vector_store %arg11[%c0_124, %c0_125, %c0_126], %258 {strides = array<i32>} : memref<1x2x8xf32, #tpu.memory_space<vmem>>, vector<1x2x8xf32>,
    return
  }
  func.func @transform_0(%arg0: i32) -> (i32, i32, i32) {
    %c0_i32 = arith.constant 0 : i32
    %c0_i32_0 = arith.constant 0 : i32
    %c0_i32_1 = arith.constant 0 : i32
    return %arg0, %c0_i32, %c0_i32_0 : i32, i32, i32
  }
  func.func @transform_1(%arg0: i32) -> (i32, i32) {
    %c0_i32 = arith.constant 0 : i32
    %c0_i32_0 = arith.constant 0 : i32
    %c0_i32_1 = arith.constant 0 : i32
    return %c0_i32, %c0_i32_0 : i32, i32
  }
  func.func @transform_2(%arg0: i32) -> (i32, i32) {
    %c0_i32 = arith.constant 0 : i32
    %c0_i32_0 = arith.constant 0 : i32
    %c0_i32_1 = arith.constant 0 : i32
    return %c0_i32, %c0_i32_0 : i32, i32
  }
  func.func @transform_3(%arg0: i32) -> (i32, i32, i32) {
    %c0_i32 = arith.constant 0 : i32
    %c0_i32_0 = arith.constant 0 : i32
    %c0_i32_1 = arith.constant 0 : i32
    %c0_i32_2 = arith.constant 0 : i32
    return %c0_i32, %c0_i32_0, %c0_i32_1 : i32, i32, i32
  }
  func.func @transform_4(%arg0: i32) -> (i32, i32, i32) {
    %c0_i32 = arith.constant 0 : i32
    %c0_i32_0 = arith.constant 0 : i32
    %c0_i32_1 = arith.constant 0 : i32
    %c0_i32_2 = arith.constant 0 : i32
    return %c0_i32, %c0_i32_0, %c0_i32_1 : i32, i32, i32
  }
  func.func @transform_5(%arg0: i32) -> (i32, i32, i32) {
    %c0_i32 = arith.constant 0 : i32
    %c0_i32_0 = arith.constant 0 : i32
    %c0_i32_1 = arith.constant 0 : i32
    %c0_i32_2 = arith.constant 0 : i32
    return %c0_i32, %c0_i32_0, %c0_i32_1 : i32, i32, i32
  }
  func.func @transform_6(%arg0: i32) -> (i32, i32, i32) {
    %c0_i32 = arith.constant 0 : i32
    %c0_i32_0 = arith.constant 0 : i32
    %c0_i32_1 = arith.constant 0 : i32
    %c0_i32_2 = arith.constant 0 : i32
    return %c0_i32, %c0_i32_0, %c0_i32_1 : i32, i32, i32
  }
  func.func @transform_7(%arg0: i32) -> (i32, i32, i32) {
    %c0_i32 = arith.constant 0 : i32
    %c0_i32_0 = arith.constant 0 : i32
    %c0_i32_1 = arith.constant 0 : i32
    %c0_i32_2 = arith.constant 0 : i32
    return %c0_i32, %c0_i32_0, %c0_i32_1 : i32, i32, i32
  }
  func.func @transform_8(%arg0: i32) -> (i32, i32) {
    %c0_i32 = arith.constant 0 : i32
    %c0_i32_0 = arith.constant 0 : i32
    %c0_i32_1 = arith.constant 0 : i32
    return %c0_i32, %c0_i32_0 : i32, i32
  }
  func.func @transform_9(%arg0: i32) -> (i32, i32) {
    %c0_i32 = arith.constant 0 : i32
    %c0_i32_0 = arith.constant 0 : i32
    %c0_i32_1 = arith.constant 0 : i32
    return %c0_i32, %c0_i32_0 : i32, i32
  }
  func.func @transform_10(%arg0: i32) -> (i32, i32, i32) {
    %c0_i32 = arith.constant 0 : i32
    %c0_i32_0 = arith.constant 0 : i32
    %c0_i32_1 = arith.constant 0 : i32
    return %arg0, %c0_i32, %c0_i32_0 : i32, i32, i32
  }
}

module attributes {stable_mosaic.version = 11 : i64} {
  func.func @_resnet_pointnet_kernel(%arg0: i32, %arg1: memref<2x64x3xf32, #tpu.memory_space<vmem>>, %arg2: memref<3x64xf32, #tpu.memory_space<vmem>>, %arg3: memref<1x64xf32, #tpu.memory_space<vmem>>, %arg4: memref<5x64x32xf32, #tpu.memory_space<vmem>>, %arg5: memref<5x1x32xf32, #tpu.memory_space<vmem>>, %arg6: memref<5x32x32xf32, #tpu.memory_space<vmem>>, %arg7: memref<5x1x32xf32, #tpu.memory_space<vmem>>, %arg8: memref<5x64x32xf32, #tpu.memory_space<vmem>>, %arg9: memref<32x8xf32, #tpu.memory_space<vmem>>, %arg10: memref<1x8xf32, #tpu.memory_space<vmem>>, %arg11: memref<1x2x8xf32, #tpu.memory_space<vmem>>) attributes {dimension_semantics = [#tpu.dimension_semantics<parallel>], iteration_bounds = array<i64: 2>, scalar_prefetch = 0 : i64, scratch_operands = 0 : i64, tpu.core_type = #tpu.core_type<tc>, window_params = [{transform_indices = @transform_0, window_bounds = array<i64: 2, 64, 3>}, {pipeline_mode = #tpu.pipeline_mode<synchronous>, transform_indices = @transform_1, window_bounds = array<i64: 3, 64>}, {pipeline_mode = #tpu.pipeline_mode<synchronous>, transform_indices = @transform_2, window_bounds = array<i64: 1, 64>}, {pipeline_mode = #tpu.pipeline_mode<synchronous>, transform_indices = @transform_3, window_bounds = array<i64: 5, 64, 32>}, {pipeline_mode = #tpu.pipeline_mode<synchronous>, transform_indices = @transform_4, window_bounds = array<i64: 5, 1, 32>}, {pipeline_mode = #tpu.pipeline_mode<synchronous>, transform_indices = @transform_5, window_bounds = array<i64: 5, 32, 32>}, {pipeline_mode = #tpu.pipeline_mode<synchronous>, transform_indices = @transform_6, window_bounds = array<i64: 5, 1, 32>}, {pipeline_mode = #tpu.pipeline_mode<synchronous>, transform_indices = @transform_7, window_bounds = array<i64: 5, 64, 32>}, {pipeline_mode = #tpu.pipeline_mode<synchronous>, transform_indices = @transform_8, window_bounds = array<i64: 32, 8>}, {pipeline_mode = #tpu.pipeline_mode<synchronous>, transform_indices = @transform_9, window_bounds = array<i64: 1, 8>}, {transform_indices = @transform_10, window_bounds = array<i64: 1, 2, 8>}]} {
    %c0 = arith.constant 0 : index
    %c0_0 = arith.constant 0 : index
    %c0_1 = arith.constant 0 : index
    %0 = vector.load %arg1[%c0, %c0_0, %c0_1] : memref<2x64x3xf32, #tpu.memory_space<vmem>>, vector<2x64x3xf32>
    %1 = vector.shape_cast %0 : vector<2x64x3xf32> to vector<128x3xf32>
    %c0_2 = arith.constant 0 : index
    %c0_3 = arith.constant 0 : index
    %2 = vector.load %arg2[%c0_2, %c0_3] : memref<3x64xf32, #tpu.memory_space<vmem>>, vector<3x64xf32>
    %c0_4 = arith.constant 0 : index
    %c0_5 = arith.constant 0 : index
    %3 = vector.load %arg3[%c0_4, %c0_5] : memref<1x64xf32, #tpu.memory_space<vmem>>, vector<1x64xf32>
    %4 = vector.extract_strided_slice %1 {offsets = [0, 0], sizes = [128, 1], strides = [1, 1]} : vector<128x3xf32> to vector<128x1xf32>
    %5 = vector.extract_strided_slice %2 {offsets = [0, 0], sizes = [1, 64], strides = [1, 1]} : vector<3x64xf32> to vector<1x64xf32>
    %6 = vector.shape_cast %5 : vector<1x64xf32> to vector<64xf32>
    %7 = vector.shape_cast %6 : vector<64xf32> to vector<1x64xf32>
    %8 = vector.broadcast %4 : vector<128x1xf32> to vector<128x64xf32>
    %9 = vector.broadcast %7 : vector<1x64xf32> to vector<128x64xf32>
    %10 = arith.mulf %8, %9 : vector<128x64xf32>
    %11 = vector.broadcast %3 : vector<1x64xf32> to vector<128x64xf32>
    %12 = arith.addf %11, %10 : vector<128x64xf32>
    %13 = vector.extract_strided_slice %1 {offsets = [0, 1], sizes = [128, 1], strides = [1, 1]} : vector<128x3xf32> to vector<128x1xf32>
    %14 = vector.extract_strided_slice %2 {offsets = [1, 0], sizes = [1, 64], strides = [1, 1]} : vector<3x64xf32> to vector<1x64xf32>
    %15 = vector.shape_cast %14 : vector<1x64xf32> to vector<64xf32>
    %16 = vector.shape_cast %15 : vector<64xf32> to vector<1x64xf32>
    %17 = vector.broadcast %13 : vector<128x1xf32> to vector<128x64xf32>
    %18 = vector.broadcast %16 : vector<1x64xf32> to vector<128x64xf32>
    %19 = arith.mulf %17, %18 : vector<128x64xf32>
    %20 = arith.addf %12, %19 : vector<128x64xf32>
    %21 = vector.extract_strided_slice %1 {offsets = [0, 2], sizes = [128, 1], strides = [1, 1]} : vector<128x3xf32> to vector<128x1xf32>
    %22 = vector.extract_strided_slice %2 {offsets = [2, 0], sizes = [1, 64], strides = [1, 1]} : vector<3x64xf32> to vector<1x64xf32>
    %23 = vector.shape_cast %22 : vector<1x64xf32> to vector<64xf32>
    %24 = vector.shape_cast %23 : vector<64xf32> to vector<1x64xf32>
    %25 = vector.broadcast %21 : vector<128x1xf32> to vector<128x64xf32>
    %26 = vector.broadcast %24 : vector<1x64xf32> to vector<128x64xf32>
    %27 = arith.mulf %25, %26 : vector<128x64xf32>
    %28 = arith.addf %20, %27 : vector<128x64xf32>
    %cst = arith.constant 0.000000e+00 : f32
    %29 = vector.broadcast %cst : f32 to vector<128x64xf32>
    %30 = arith.maximumf %28, %29 : vector<128x64xf32>
    %c0_6 = arith.constant 0 : index
    %c0_7 = arith.constant 0 : index
    %c0_8 = arith.constant 0 : index
    %31 = vector.load %arg4[%c0_6, %c0_7, %c0_8] : memref<5x64x32xf32, #tpu.memory_space<vmem>>, vector<1x64x32xf32>
    %32 = vector.shape_cast %31 : vector<1x64x32xf32> to vector<64x32xf32>
    %cst_9 = arith.constant dense<0.000000e+00> : vector<128x32xf32>
    %33 = tpu.matmul %30, %32, %cst_9 {dimension_numbers = #tpu.dot_dimension_numbers<[1], [0], [0], [1], [0, 0, 1, 1], [], []>} : vector<128x64xf32>, vector<64x32xf32>, vector<128x32xf32> -> vector<128x32xf32>
    %c0_10 = arith.constant 0 : index
    %c0_11 = arith.constant 0 : index
    %c0_12 = arith.constant 0 : index
    %34 = vector.load %arg5[%c0_10, %c0_11, %c0_12] : memref<5x1x32xf32, #tpu.memory_space<vmem>>, vector<1x1x32xf32>
    %35 = vector.shape_cast %34 : vector<1x1x32xf32> to vector<1x32xf32>
    %36 = vector.broadcast %35 : vector<1x32xf32> to vector<128x32xf32>
    %37 = arith.addf %33, %36 : vector<128x32xf32>
    %cst_13 = arith.constant 0.000000e+00 : f32
    %38 = vector.broadcast %cst_13 : f32 to vector<128x32xf32>
    %39 = arith.maximumf %37, %38 : vector<128x32xf32>
    %c0_14 = arith.constant 0 : index
    %c0_15 = arith.constant 0 : index
    %c0_16 = arith.constant 0 : index
    %40 = vector.load %arg6[%c0_14, %c0_15, %c0_16] : memref<5x32x32xf32, #tpu.memory_space<vmem>>, vector<1x32x32xf32>
    %41 = vector.shape_cast %40 : vector<1x32x32xf32> to vector<32x32xf32>
    %cst_17 = arith.constant dense<0.000000e+00> : vector<128x32xf32>
    %42 = tpu.matmul %39, %41, %cst_17 {dimension_numbers = #tpu.dot_dimension_numbers<[1], [0], [0], [1], [0, 0, 1, 1], [], []>} : vector<128x32xf32>, vector<32x32xf32>, vector<128x32xf32> -> vector<128x32xf32>
    %c0_18 = arith.constant 0 : index
    %c0_19 = arith.constant 0 : index
    %c0_20 = arith.constant 0 : index
    %43 = vector.load %arg7[%c0_18, %c0_19, %c0_20] : memref<5x1x32xf32, #tpu.memory_space<vmem>>, vector<1x1x32xf32>
    %44 = vector.shape_cast %43 : vector<1x1x32xf32> to vector<1x32xf32>
    %45 = vector.broadcast %44 : vector<1x32xf32> to vector<128x32xf32>
    %46 = arith.addf %42, %45 : vector<128x32xf32>
    %c0_21 = arith.constant 0 : index
    %c0_22 = arith.constant 0 : index
    %c0_23 = arith.constant 0 : index
    %47 = vector.load %arg8[%c0_21, %c0_22, %c0_23] : memref<5x64x32xf32, #tpu.memory_space<vmem>>, vector<1x64x32xf32>
    %48 = vector.shape_cast %47 : vector<1x64x32xf32> to vector<64x32xf32>
    %cst_24 = arith.constant dense<0.000000e+00> : vector<128x32xf32>
    %49 = tpu.matmul %28, %48, %cst_24 {dimension_numbers = #tpu.dot_dimension_numbers<[1], [0], [0], [1], [0, 0, 1, 1], [], []>} : vector<128x64xf32>, vector<64x32xf32>, vector<128x32xf32> -> vector<128x32xf32>
    %50 = arith.addf %49, %46 : vector<128x32xf32>
    %c1_i32 = arith.constant 1 : i32
    %51 = vector.shape_cast %50 : vector<128x32xf32> to vector<2x64x32xf32>
    %cst_25 = arith.constant dense<0xFF800000> : vector<2x32xf32>
    %52 = vector.multi_reduction <maximumf>, %51, %cst_25 [1] : vector<2x64x32xf32> to vector<2x32xf32>
    %53 = arith.index_cast %c1_i32 : i32 to index
    %c0_26 = arith.constant 0 : index
    %c0_27 = arith.constant 0 : index
    %54 = vector.load %arg4[%53, %c0_26, %c0_27] : memref<5x64x32xf32, #tpu.memory_space<vmem>>, vector<1x32x32xf32>
    %55 = vector.shape_cast %54 : vector<1x32x32xf32> to vector<32x32xf32>
    %56 = arith.index_cast %c1_i32 : i32 to index
    %c32 = arith.constant 32 : index
    %c0_28 = arith.constant 0 : index
    %57 = vector.load %arg4[%56, %c32, %c0_28] : memref<5x64x32xf32, #tpu.memory_space<vmem>>, vector<1x32x32xf32>
    %58 = vector.shape_cast %57 : vector<1x32x32xf32> to vector<32x32xf32>
    %59 = arith.index_cast %c1_i32 : i32 to index
    %c0_29 = arith.constant 0 : index
    %c0_30 = arith.constant 0 : index
    %60 = vector.load %arg8[%59, %c0_29, %c0_30] : memref<5x64x32xf32, #tpu.memory_space<vmem>>, vector<1x32x32xf32>
    %61 = vector.shape_cast %60 : vector<1x32x32xf32> to vector<32x32xf32>
    %62 = arith.index_cast %c1_i32 : i32 to index
    %c32_31 = arith.constant 32 : index
    %c0_32 = arith.constant 0 : index
    %63 = vector.load %arg8[%62, %c32_31, %c0_32] : memref<5x64x32xf32, #tpu.memory_space<vmem>>, vector<1x32x32xf32>
    %64 = vector.shape_cast %63 : vector<1x32x32xf32> to vector<32x32xf32>
    %cst_33 = arith.constant 0.000000e+00 : f32
    %65 = vector.broadcast %cst_33 : f32 to vector<2x32xf32>
    %66 = arith.maximumf %52, %65 : vector<2x32xf32>
    %cst_34 = arith.constant dense<0.000000e+00> : vector<2x32xf32>
    %67 = tpu.matmul %66, %58, %cst_34 {dimension_numbers = #tpu.dot_dimension_numbers<[1], [0], [0], [1], [0, 0, 1, 1], [], []>} : vector<2x32xf32>, vector<32x32xf32>, vector<2x32xf32> -> vector<2x32xf32>
    %68 = arith.index_cast %c1_i32 : i32 to index
    %c0_35 = arith.constant 0 : index
    %c0_36 = arith.constant 0 : index
    %69 = vector.load %arg5[%68, %c0_35, %c0_36] : memref<5x1x32xf32, #tpu.memory_space<vmem>>, vector<1x1x32xf32>
    %70 = vector.shape_cast %69 : vector<1x1x32xf32> to vector<1x32xf32>
    %71 = vector.broadcast %70 : vector<1x32xf32> to vector<2x32xf32>
    %72 = arith.addf %67, %71 : vector<2x32xf32>
    %cst_37 = arith.constant dense<0.000000e+00> : vector<2x32xf32>
    %73 = tpu.matmul %52, %64, %cst_37 {dimension_numbers = #tpu.dot_dimension_numbers<[1], [0], [0], [1], [0, 0, 1, 1], [], []>} : vector<2x32xf32>, vector<32x32xf32>, vector<2x32xf32> -> vector<2x32xf32>
    %cst_38 = arith.constant 0.000000e+00 : f32
    %74 = vector.broadcast %cst_38 : f32 to vector<128x32xf32>
    %75 = arith.maximumf %50, %74 : vector<128x32xf32>
    %cst_39 = arith.constant dense<0.000000e+00> : vector<128x32xf32>
    %76 = tpu.matmul %75, %55, %cst_39 {dimension_numbers = #tpu.dot_dimension_numbers<[1], [0], [0], [1], [0, 0, 1, 1], [], []>} : vector<128x32xf32>, vector<32x32xf32>, vector<128x32xf32> -> vector<128x32xf32>
    %77 = vector.shape_cast %76 : vector<128x32xf32> to vector<2x64x32xf32>
    %78 = vector.shape_cast %72 : vector<2x32xf32> to vector<2x1x32xf32>
    %79 = vector.broadcast %78 : vector<2x1x32xf32> to vector<2x64x32xf32>
    %80 = arith.addf %77, %79 : vector<2x64x32xf32>
    %cst_40 = arith.constant 0.000000e+00 : f32
    %81 = vector.broadcast %cst_40 : f32 to vector<2x64x32xf32>
    %82 = arith.maximumf %80, %81 : vector<2x64x32xf32>
    %83 = vector.shape_cast %82 : vector<2x64x32xf32> to vector<128x32xf32>
    %84 = arith.index_cast %c1_i32 : i32 to index
    %c0_41 = arith.constant 0 : index
    %c0_42 = arith.constant 0 : index
    %85 = vector.load %arg6[%84, %c0_41, %c0_42] : memref<5x32x32xf32, #tpu.memory_space<vmem>>, vector<1x32x32xf32>
    %86 = vector.shape_cast %85 : vector<1x32x32xf32> to vector<32x32xf32>
    %cst_43 = arith.constant dense<0.000000e+00> : vector<128x32xf32>
    %87 = tpu.matmul %83, %86, %cst_43 {dimension_numbers = #tpu.dot_dimension_numbers<[1], [0], [0], [1], [0, 0, 1, 1], [], []>} : vector<128x32xf32>, vector<32x32xf32>, vector<128x32xf32> -> vector<128x32xf32>
    %88 = arith.index_cast %c1_i32 : i32 to index
    %c0_44 = arith.constant 0 : index
    %c0_45 = arith.constant 0 : index
    %89 = vector.load %arg7[%88, %c0_44, %c0_45] : memref<5x1x32xf32, #tpu.memory_space<vmem>>, vector<1x1x32xf32>
    %90 = vector.shape_cast %89 : vector<1x1x32xf32> to vector<1x32xf32>
    %91 = vector.broadcast %90 : vector<1x32xf32> to vector<128x32xf32>
    %92 = arith.addf %87, %91 : vector<128x32xf32>
    %cst_46 = arith.constant dense<0.000000e+00> : vector<128x32xf32>
    %93 = tpu.matmul %50, %61, %cst_46 {dimension_numbers = #tpu.dot_dimension_numbers<[1], [0], [0], [1], [0, 0, 1, 1], [], []>} : vector<128x32xf32>, vector<32x32xf32>, vector<128x32xf32> -> vector<128x32xf32>
    %94 = arith.addf %93, %92 : vector<128x32xf32>
    %95 = vector.shape_cast %94 : vector<128x32xf32> to vector<2x64x32xf32>
    %96 = vector.shape_cast %73 : vector<2x32xf32> to vector<2x1x32xf32>
    %97 = vector.broadcast %96 : vector<2x1x32xf32> to vector<2x64x32xf32>
    %98 = arith.addf %95, %97 : vector<2x64x32xf32>
    %99 = vector.shape_cast %98 : vector<2x64x32xf32> to vector<128x32xf32>
    %c2_i32 = arith.constant 2 : i32
    %100 = vector.shape_cast %99 : vector<128x32xf32> to vector<2x64x32xf32>
    %cst_47 = arith.constant dense<0xFF800000> : vector<2x32xf32>
    %101 = vector.multi_reduction <maximumf>, %100, %cst_47 [1] : vector<2x64x32xf32> to vector<2x32xf32>
    %102 = arith.index_cast %c2_i32 : i32 to index
    %c0_48 = arith.constant 0 : index
    %c0_49 = arith.constant 0 : index
    %103 = vector.load %arg4[%102, %c0_48, %c0_49] : memref<5x64x32xf32, #tpu.memory_space<vmem>>, vector<1x32x32xf32>
    %104 = vector.shape_cast %103 : vector<1x32x32xf32> to vector<32x32xf32>
    %105 = arith.index_cast %c2_i32 : i32 to index
    %c32_50 = arith.constant 32 : index
    %c0_51 = arith.constant 0 : index
    %106 = vector.load %arg4[%105, %c32_50, %c0_51] : memref<5x64x32xf32, #tpu.memory_space<vmem>>, vector<1x32x32xf32>
    %107 = vector.shape_cast %106 : vector<1x32x32xf32> to vector<32x32xf32>
    %108 = arith.index_cast %c2_i32 : i32 to index
    %c0_52 = arith.constant 0 : index
    %c0_53 = arith.constant 0 : index
    %109 = vector.load %arg8[%108, %c0_52, %c0_53] : memref<5x64x32xf32, #tpu.memory_space<vmem>>, vector<1x32x32xf32>
    %110 = vector.shape_cast %109 : vector<1x32x32xf32> to vector<32x32xf32>
    %111 = arith.index_cast %c2_i32 : i32 to index
    %c32_54 = arith.constant 32 : index
    %c0_55 = arith.constant 0 : index
    %112 = vector.load %arg8[%111, %c32_54, %c0_55] : memref<5x64x32xf32, #tpu.memory_space<vmem>>, vector<1x32x32xf32>
    %113 = vector.shape_cast %112 : vector<1x32x32xf32> to vector<32x32xf32>
    %cst_56 = arith.constant 0.000000e+00 : f32
    %114 = vector.broadcast %cst_56 : f32 to vector<2x32xf32>
    %115 = arith.maximumf %101, %114 : vector<2x32xf32>
    %cst_57 = arith.constant dense<0.000000e+00> : vector<2x32xf32>
    %116 = tpu.matmul %115, %107, %cst_57 {dimension_numbers = #tpu.dot_dimension_numbers<[1], [0], [0], [1], [0, 0, 1, 1], [], []>} : vector<2x32xf32>, vector<32x32xf32>, vector<2x32xf32> -> vector<2x32xf32>
    %117 = arith.index_cast %c2_i32 : i32 to index
    %c0_58 = arith.constant 0 : index
    %c0_59 = arith.constant 0 : index
    %118 = vector.load %arg5[%117, %c0_58, %c0_59] : memref<5x1x32xf32, #tpu.memory_space<vmem>>, vector<1x1x32xf32>
    %119 = vector.shape_cast %118 : vector<1x1x32xf32> to vector<1x32xf32>
    %120 = vector.broadcast %119 : vector<1x32xf32> to vector<2x32xf32>
    %121 = arith.addf %116, %120 : vector<2x32xf32>
    %cst_60 = arith.constant dense<0.000000e+00> : vector<2x32xf32>
    %122 = tpu.matmul %101, %113, %cst_60 {dimension_numbers = #tpu.dot_dimension_numbers<[1], [0], [0], [1], [0, 0, 1, 1], [], []>} : vector<2x32xf32>, vector<32x32xf32>, vector<2x32xf32> -> vector<2x32xf32>
    %cst_61 = arith.constant 0.000000e+00 : f32
    %123 = vector.broadcast %cst_61 : f32 to vector<128x32xf32>
    %124 = arith.maximumf %99, %123 : vector<128x32xf32>
    %cst_62 = arith.constant dense<0.000000e+00> : vector<128x32xf32>
    %125 = tpu.matmul %124, %104, %cst_62 {dimension_numbers = #tpu.dot_dimension_numbers<[1], [0], [0], [1], [0, 0, 1, 1], [], []>} : vector<128x32xf32>, vector<32x32xf32>, vector<128x32xf32> -> vector<128x32xf32>
    %126 = vector.shape_cast %125 : vector<128x32xf32> to vector<2x64x32xf32>
    %127 = vector.shape_cast %121 : vector<2x32xf32> to vector<2x1x32xf32>
    %128 = vector.broadcast %127 : vector<2x1x32xf32> to vector<2x64x32xf32>
    %129 = arith.addf %126, %128 : vector<2x64x32xf32>
    %cst_63 = arith.constant 0.000000e+00 : f32
    %130 = vector.broadcast %cst_63 : f32 to vector<2x64x32xf32>
    %131 = arith.maximumf %129, %130 : vector<2x64x32xf32>
    %132 = vector.shape_cast %131 : vector<2x64x32xf32> to vector<128x32xf32>
    %133 = arith.index_cast %c2_i32 : i32 to index
    %c0_64 = arith.constant 0 : index
    %c0_65 = arith.constant 0 : index
    %134 = vector.load %arg6[%133, %c0_64, %c0_65] : memref<5x32x32xf32, #tpu.memory_space<vmem>>, vector<1x32x32xf32>
    %135 = vector.shape_cast %134 : vector<1x32x32xf32> to vector<32x32xf32>
    %cst_66 = arith.constant dense<0.000000e+00> : vector<128x32xf32>
    %136 = tpu.matmul %132, %135, %cst_66 {dimension_numbers = #tpu.dot_dimension_numbers<[1], [0], [0], [1], [0, 0, 1, 1], [], []>} : vector<128x32xf32>, vector<32x32xf32>, vector<128x32xf32> -> vector<128x32xf32>
    %137 = arith.index_cast %c2_i32 : i32 to index
    %c0_67 = arith.constant 0 : index
    %c0_68 = arith.constant 0 : index
    %138 = vector.load %arg7[%137, %c0_67, %c0_68] : memref<5x1x32xf32, #tpu.memory_space<vmem>>, vector<1x1x32xf32>
    %139 = vector.shape_cast %138 : vector<1x1x32xf32> to vector<1x32xf32>
    %140 = vector.broadcast %139 : vector<1x32xf32> to vector<128x32xf32>
    %141 = arith.addf %136, %140 : vector<128x32xf32>
    %cst_69 = arith.constant dense<0.000000e+00> : vector<128x32xf32>
    %142 = tpu.matmul %99, %110, %cst_69 {dimension_numbers = #tpu.dot_dimension_numbers<[1], [0], [0], [1], [0, 0, 1, 1], [], []>} : vector<128x32xf32>, vector<32x32xf32>, vector<128x32xf32> -> vector<128x32xf32>
    %143 = arith.addf %142, %141 : vector<128x32xf32>
    %144 = vector.shape_cast %143 : vector<128x32xf32> to vector<2x64x32xf32>
    %145 = vector.shape_cast %122 : vector<2x32xf32> to vector<2x1x32xf32>
    %146 = vector.broadcast %145 : vector<2x1x32xf32> to vector<2x64x32xf32>
    %147 = arith.addf %144, %146 : vector<2x64x32xf32>
    %148 = vector.shape_cast %147 : vector<2x64x32xf32> to vector<128x32xf32>
    %c3_i32 = arith.constant 3 : i32
    %149 = vector.shape_cast %148 : vector<128x32xf32> to vector<2x64x32xf32>
    %cst_70 = arith.constant dense<0xFF800000> : vector<2x32xf32>
    %150 = vector.multi_reduction <maximumf>, %149, %cst_70 [1] : vector<2x64x32xf32> to vector<2x32xf32>
    %151 = arith.index_cast %c3_i32 : i32 to index
    %c0_71 = arith.constant 0 : index
    %c0_72 = arith.constant 0 : index
    %152 = vector.load %arg4[%151, %c0_71, %c0_72] : memref<5x64x32xf32, #tpu.memory_space<vmem>>, vector<1x32x32xf32>
    %153 = vector.shape_cast %152 : vector<1x32x32xf32> to vector<32x32xf32>
    %154 = arith.index_cast %c3_i32 : i32 to index
    %c32_73 = arith.constant 32 : index
    %c0_74 = arith.constant 0 : index
    %155 = vector.load %arg4[%154, %c32_73, %c0_74] : memref<5x64x32xf32, #tpu.memory_space<vmem>>, vector<1x32x32xf32>
    %156 = vector.shape_cast %155 : vector<1x32x32xf32> to vector<32x32xf32>
    %157 = arith.index_cast %c3_i32 : i32 to index
    %c0_75 = arith.constant 0 : index
    %c0_76 = arith.constant 0 : index
    %158 = vector.load %arg8[%157, %c0_75, %c0_76] : memref<5x64x32xf32, #tpu.memory_space<vmem>>, vector<1x32x32xf32>
    %159 = vector.shape_cast %158 : vector<1x32x32xf32> to vector<32x32xf32>
    %160 = arith.index_cast %c3_i32 : i32 to index
    %c32_77 = arith.constant 32 : index
    %c0_78 = arith.constant 0 : index
    %161 = vector.load %arg8[%160, %c32_77, %c0_78] : memref<5x64x32xf32, #tpu.memory_space<vmem>>, vector<1x32x32xf32>
    %162 = vector.shape_cast %161 : vector<1x32x32xf32> to vector<32x32xf32>
    %cst_79 = arith.constant 0.000000e+00 : f32
    %163 = vector.broadcast %cst_79 : f32 to vector<2x32xf32>
    %164 = arith.maximumf %150, %163 : vector<2x32xf32>
    %cst_80 = arith.constant dense<0.000000e+00> : vector<2x32xf32>
    %165 = tpu.matmul %164, %156, %cst_80 {dimension_numbers = #tpu.dot_dimension_numbers<[1], [0], [0], [1], [0, 0, 1, 1], [], []>} : vector<2x32xf32>, vector<32x32xf32>, vector<2x32xf32> -> vector<2x32xf32>
    %166 = arith.index_cast %c3_i32 : i32 to index
    %c0_81 = arith.constant 0 : index
    %c0_82 = arith.constant 0 : index
    %167 = vector.load %arg5[%166, %c0_81, %c0_82] : memref<5x1x32xf32, #tpu.memory_space<vmem>>, vector<1x1x32xf32>
    %168 = vector.shape_cast %167 : vector<1x1x32xf32> to vector<1x32xf32>
    %169 = vector.broadcast %168 : vector<1x32xf32> to vector<2x32xf32>
    %170 = arith.addf %165, %169 : vector<2x32xf32>
    %cst_83 = arith.constant dense<0.000000e+00> : vector<2x32xf32>
    %171 = tpu.matmul %150, %162, %cst_83 {dimension_numbers = #tpu.dot_dimension_numbers<[1], [0], [0], [1], [0, 0, 1, 1], [], []>} : vector<2x32xf32>, vector<32x32xf32>, vector<2x32xf32> -> vector<2x32xf32>
    %cst_84 = arith.constant 0.000000e+00 : f32
    %172 = vector.broadcast %cst_84 : f32 to vector<128x32xf32>
    %173 = arith.maximumf %148, %172 : vector<128x32xf32>
    %cst_85 = arith.constant dense<0.000000e+00> : vector<128x32xf32>
    %174 = tpu.matmul %173, %153, %cst_85 {dimension_numbers = #tpu.dot_dimension_numbers<[1], [0], [0], [1], [0, 0, 1, 1], [], []>} : vector<128x32xf32>, vector<32x32xf32>, vector<128x32xf32> -> vector<128x32xf32>
    %175 = vector.shape_cast %174 : vector<128x32xf32> to vector<2x64x32xf32>
    %176 = vector.shape_cast %170 : vector<2x32xf32> to vector<2x1x32xf32>
    %177 = vector.broadcast %176 : vector<2x1x32xf32> to vector<2x64x32xf32>
    %178 = arith.addf %175, %177 : vector<2x64x32xf32>
    %cst_86 = arith.constant 0.000000e+00 : f32
    %179 = vector.broadcast %cst_86 : f32 to vector<2x64x32xf32>
    %180 = arith.maximumf %178, %179 : vector<2x64x32xf32>
    %181 = vector.shape_cast %180 : vector<2x64x32xf32> to vector<128x32xf32>
    %182 = arith.index_cast %c3_i32 : i32 to index
    %c0_87 = arith.constant 0 : index
    %c0_88 = arith.constant 0 : index
    %183 = vector.load %arg6[%182, %c0_87, %c0_88] : memref<5x32x32xf32, #tpu.memory_space<vmem>>, vector<1x32x32xf32>
    %184 = vector.shape_cast %183 : vector<1x32x32xf32> to vector<32x32xf32>
    %cst_89 = arith.constant dense<0.000000e+00> : vector<128x32xf32>
    %185 = tpu.matmul %181, %184, %cst_89 {dimension_numbers = #tpu.dot_dimension_numbers<[1], [0], [0], [1], [0, 0, 1, 1], [], []>} : vector<128x32xf32>, vector<32x32xf32>, vector<128x32xf32> -> vector<128x32xf32>
    %186 = arith.index_cast %c3_i32 : i32 to index
    %c0_90 = arith.constant 0 : index
    %c0_91 = arith.constant 0 : index
    %187 = vector.load %arg7[%186, %c0_90, %c0_91] : memref<5x1x32xf32, #tpu.memory_space<vmem>>, vector<1x1x32xf32>
    %188 = vector.shape_cast %187 : vector<1x1x32xf32> to vector<1x32xf32>
    %189 = vector.broadcast %188 : vector<1x32xf32> to vector<128x32xf32>
    %190 = arith.addf %185, %189 : vector<128x32xf32>
    %cst_92 = arith.constant dense<0.000000e+00> : vector<128x32xf32>
    %191 = tpu.matmul %148, %159, %cst_92 {dimension_numbers = #tpu.dot_dimension_numbers<[1], [0], [0], [1], [0, 0, 1, 1], [], []>} : vector<128x32xf32>, vector<32x32xf32>, vector<128x32xf32> -> vector<128x32xf32>
    %192 = arith.addf %191, %190 : vector<128x32xf32>
    %193 = vector.shape_cast %192 : vector<128x32xf32> to vector<2x64x32xf32>
    %194 = vector.shape_cast %171 : vector<2x32xf32> to vector<2x1x32xf32>
    %195 = vector.broadcast %194 : vector<2x1x32xf32> to vector<2x64x32xf32>
    %196 = arith.addf %193, %195 : vector<2x64x32xf32>
    %197 = vector.shape_cast %196 : vector<2x64x32xf32> to vector<128x32xf32>
    %c4_i32 = arith.constant 4 : i32
    %198 = vector.shape_cast %197 : vector<128x32xf32> to vector<2x64x32xf32>
    %cst_93 = arith.constant dense<0xFF800000> : vector<2x32xf32>
    %199 = vector.multi_reduction <maximumf>, %198, %cst_93 [1] : vector<2x64x32xf32> to vector<2x32xf32>
    %200 = arith.index_cast %c4_i32 : i32 to index
    %c0_94 = arith.constant 0 : index
    %c0_95 = arith.constant 0 : index
    %201 = vector.load %arg4[%200, %c0_94, %c0_95] : memref<5x64x32xf32, #tpu.memory_space<vmem>>, vector<1x32x32xf32>
    %202 = vector.shape_cast %201 : vector<1x32x32xf32> to vector<32x32xf32>
    %203 = arith.index_cast %c4_i32 : i32 to index
    %c32_96 = arith.constant 32 : index
    %c0_97 = arith.constant 0 : index
    %204 = vector.load %arg4[%203, %c32_96, %c0_97] : memref<5x64x32xf32, #tpu.memory_space<vmem>>, vector<1x32x32xf32>
    %205 = vector.shape_cast %204 : vector<1x32x32xf32> to vector<32x32xf32>
    %206 = arith.index_cast %c4_i32 : i32 to index
    %c0_98 = arith.constant 0 : index
    %c0_99 = arith.constant 0 : index
    %207 = vector.load %arg8[%206, %c0_98, %c0_99] : memref<5x64x32xf32, #tpu.memory_space<vmem>>, vector<1x32x32xf32>
    %208 = vector.shape_cast %207 : vector<1x32x32xf32> to vector<32x32xf32>
    %209 = arith.index_cast %c4_i32 : i32 to index
    %c32_100 = arith.constant 32 : index
    %c0_101 = arith.constant 0 : index
    %210 = vector.load %arg8[%209, %c32_100, %c0_101] : memref<5x64x32xf32, #tpu.memory_space<vmem>>, vector<1x32x32xf32>
    %211 = vector.shape_cast %210 : vector<1x32x32xf32> to vector<32x32xf32>
    %cst_102 = arith.constant 0.000000e+00 : f32
    %212 = vector.broadcast %cst_102 : f32 to vector<2x32xf32>
    %213 = arith.maximumf %199, %212 : vector<2x32xf32>
    %cst_103 = arith.constant dense<0.000000e+00> : vector<2x32xf32>
    %214 = tpu.matmul %213, %205, %cst_103 {dimension_numbers = #tpu.dot_dimension_numbers<[1], [0], [0], [1], [0, 0, 1, 1], [], []>} : vector<2x32xf32>, vector<32x32xf32>, vector<2x32xf32> -> vector<2x32xf32>
    %215 = arith.index_cast %c4_i32 : i32 to index
    %c0_104 = arith.constant 0 : index
    %c0_105 = arith.constant 0 : index
    %216 = vector.load %arg5[%215, %c0_104, %c0_105] : memref<5x1x32xf32, #tpu.memory_space<vmem>>, vector<1x1x32xf32>
    %217 = vector.shape_cast %216 : vector<1x1x32xf32> to vector<1x32xf32>
    %218 = vector.broadcast %217 : vector<1x32xf32> to vector<2x32xf32>
    %219 = arith.addf %214, %218 : vector<2x32xf32>
    %cst_106 = arith.constant dense<0.000000e+00> : vector<2x32xf32>
    %220 = tpu.matmul %199, %211, %cst_106 {dimension_numbers = #tpu.dot_dimension_numbers<[1], [0], [0], [1], [0, 0, 1, 1], [], []>} : vector<2x32xf32>, vector<32x32xf32>, vector<2x32xf32> -> vector<2x32xf32>
    %cst_107 = arith.constant 0.000000e+00 : f32
    %221 = vector.broadcast %cst_107 : f32 to vector<128x32xf32>
    %222 = arith.maximumf %197, %221 : vector<128x32xf32>
    %cst_108 = arith.constant dense<0.000000e+00> : vector<128x32xf32>
    %223 = tpu.matmul %222, %202, %cst_108 {dimension_numbers = #tpu.dot_dimension_numbers<[1], [0], [0], [1], [0, 0, 1, 1], [], []>} : vector<128x32xf32>, vector<32x32xf32>, vector<128x32xf32> -> vector<128x32xf32>
    %224 = vector.shape_cast %223 : vector<128x32xf32> to vector<2x64x32xf32>
    %225 = vector.shape_cast %219 : vector<2x32xf32> to vector<2x1x32xf32>
    %226 = vector.broadcast %225 : vector<2x1x32xf32> to vector<2x64x32xf32>
    %227 = arith.addf %224, %226 : vector<2x64x32xf32>
    %cst_109 = arith.constant 0.000000e+00 : f32
    %228 = vector.broadcast %cst_109 : f32 to vector<2x64x32xf32>
    %229 = arith.maximumf %227, %228 : vector<2x64x32xf32>
    %230 = vector.shape_cast %229 : vector<2x64x32xf32> to vector<128x32xf32>
    %231 = arith.index_cast %c4_i32 : i32 to index
    %c0_110 = arith.constant 0 : index
    %c0_111 = arith.constant 0 : index
    %232 = vector.load %arg6[%231, %c0_110, %c0_111] : memref<5x32x32xf32, #tpu.memory_space<vmem>>, vector<1x32x32xf32>
    %233 = vector.shape_cast %232 : vector<1x32x32xf32> to vector<32x32xf32>
    %cst_112 = arith.constant dense<0.000000e+00> : vector<128x32xf32>
    %234 = tpu.matmul %230, %233, %cst_112 {dimension_numbers = #tpu.dot_dimension_numbers<[1], [0], [0], [1], [0, 0, 1, 1], [], []>} : vector<128x32xf32>, vector<32x32xf32>, vector<128x32xf32> -> vector<128x32xf32>
    %235 = arith.index_cast %c4_i32 : i32 to index
    %c0_113 = arith.constant 0 : index
    %c0_114 = arith.constant 0 : index
    %236 = vector.load %arg7[%235, %c0_113, %c0_114] : memref<5x1x32xf32, #tpu.memory_space<vmem>>, vector<1x1x32xf32>
    %237 = vector.shape_cast %236 : vector<1x1x32xf32> to vector<1x32xf32>
    %238 = vector.broadcast %237 : vector<1x32xf32> to vector<128x32xf32>
    %239 = arith.addf %234, %238 : vector<128x32xf32>
    %cst_115 = arith.constant dense<0.000000e+00> : vector<128x32xf32>
    %240 = tpu.matmul %197, %208, %cst_115 {dimension_numbers = #tpu.dot_dimension_numbers<[1], [0], [0], [1], [0, 0, 1, 1], [], []>} : vector<128x32xf32>, vector<32x32xf32>, vector<128x32xf32> -> vector<128x32xf32>
    %241 = arith.addf %240, %239 : vector<128x32xf32>
    %242 = vector.shape_cast %241 : vector<128x32xf32> to vector<2x64x32xf32>
    %243 = vector.shape_cast %220 : vector<2x32xf32> to vector<2x1x32xf32>
    %244 = vector.broadcast %243 : vector<2x1x32xf32> to vector<2x64x32xf32>
    %245 = arith.addf %242, %244 : vector<2x64x32xf32>
    %246 = vector.shape_cast %245 : vector<2x64x32xf32> to vector<128x32xf32>
    %c4_i32_116 = arith.constant 4 : i32
    %247 = vector.shape_cast %246 : vector<128x32xf32> to vector<2x64x32xf32>
    %cst_117 = arith.constant dense<0xFF800000> : vector<2x32xf32>
    %248 = vector.multi_reduction <maximumf>, %247, %cst_117 [1] : vector<2x64x32xf32> to vector<2x32xf32>
    %cst_118 = arith.constant 0.000000e+00 : f32
    %249 = vector.broadcast %cst_118 : f32 to vector<2x32xf32>
    %250 = arith.maximumf %248, %249 : vector<2x32xf32>
    %c0_119 = arith.constant 0 : index
    %c0_120 = arith.constant 0 : index
    %251 = vector.load %arg9[%c0_119, %c0_120] : memref<32x8xf32, #tpu.memory_space<vmem>>, vector<32x8xf32>
    %cst_121 = arith.constant dense<0.000000e+00> : vector<2x8xf32>
    %252 = tpu.matmul %250, %251, %cst_121 {dimension_numbers = #tpu.dot_dimension_numbers<[1], [0], [0], [1], [0, 0, 1, 1], [], []>} : vector<2x32xf32>, vector<32x8xf32>, vector<2x8xf32> -> vector<2x8xf32>
    %c0_122 = arith.constant 0 : index
    %c0_123 = arith.constant 0 : index
    %253 = vector.load %arg10[%c0_122, %c0_123] : memref<1x8xf32, #tpu.memory_space<vmem>>, vector<1x8xf32>
    %254 = vector.broadcast %253 : vector<1x8xf32> to vector<2x8xf32>
    %255 = arith.addf %252, %254 : vector<2x8xf32>
    %c0_124 = arith.constant 0 : index
    %c0_125 = arith.constant 0 : index
    %c0_126 = arith.constant 0 : index
    %256 = vector.load %arg11[%c0_124, %c0_125, %c0_126] : memref<1x2x8xf32, #tpu.memory_space<vmem>>, vector<1x2x8xf32>
    %257 = vector.shape_cast %256 : vector<1x2x8xf32> to vector<2x8xf32>
    %258 = vector.shape_cast %255 : vector<2x8xf32> to vector<1x2x8xf32>
    tpu.vector_store %arg11[%c0_124, %c0_125, %c0_126], %258 {strides = array<i32>} : memref<1x2x8xf32, #tpu.memory_space<vmem>>, vector<1x2x8xf32>,
    return
  }
  func.func @transform_0(%arg0: i32) -> (i32, i32, i32) {
    %c0_i32 = arith.constant 0 : i32
    %c0_i32_0 = arith.constant 0 : i32
    %c0_i32_1 = arith.constant 0 : i32
    return %arg0, %c0_i32, %c0_i32_0 : i32, i32, i32
  }
  func.func @transform_1(%arg0: i32) -> (i32, i32) {
    %c0_i32 = arith.constant 0 : i32
    %c0_i32_0 = arith.constant 0 : i32
    %c0_i32_1 = arith.constant 0 : i32
    return %c0_i32, %c0_i32_0 : i32, i32
  }
  func.func @transform_2(%arg0: i32) -> (i32, i32) {
    %c0_i32 = arith.constant 0 : i32
    %c0_i32_0 = arith.constant 0 : i32
    %c0_i32_1 = arith.constant 0 : i32
    return %c0_i32, %c0_i32_0 : i32, i32
  }
  func.func @transform_3(%arg0: i32) -> (i32, i32, i32) {
    %c0_i32 = arith.constant 0 : i32
    %c0_i32_0 = arith.constant 0 : i32
    %c0_i32_1 = arith.constant 0 : i32
    %c0_i32_2 = arith.constant 0 : i32
    return %c0_i32, %c0_i32_0, %c0_i32_1 : i32, i32, i32
  }
  func.func @transform_4(%arg0: i32) -> (i32, i32, i32) {
    %c0_i32 = arith.constant 0 : i32
    %c0_i32_0 = arith.constant 0 : i32
    %c0_i32_1 = arith.constant 0 : i32
    %c0_i32_2 = arith.constant 0 : i32
    return %c0_i32, %c0_i32_0, %c0_i32_1 : i32, i32, i32
  }
  func.func @transform_5(%arg0: i32) -> (i32, i32, i32) {
    %c0_i32 = arith.constant 0 : i32
    %c0_i32_0 = arith.constant 0 : i32
    %c0_i32_1 = arith.constant 0 : i32
    %c0_i32_2 = arith.constant 0 : i32
    return %c0_i32, %c0_i32_0, %c0_i32_1 : i32, i32, i32
  }
  func.func @transform_6(%arg0: i32) -> (i32, i32, i32) {
    %c0_i32 = arith.constant 0 : i32
    %c0_i32_0 = arith.constant 0 : i32
    %c0_i32_1 = arith.constant 0 : i32
    %c0_i32_2 = arith.constant 0 : i32
    return %c0_i32, %c0_i32_0, %c0_i32_1 : i32, i32, i32
  }
  func.func @transform_7(%arg0: i32) -> (i32, i32, i32) {
    %c0_i32 = arith.constant 0 : i32
    %c0_i32_0 = arith.constant 0 : i32
    %c0_i32_1 = arith.constant 0 : i32
    %c0_i32_2 = arith.constant 0 : i32
    return %c0_i32, %c0_i32_0, %c0_i32_1 : i32, i32, i32
  }
  func.func @transform_8(%arg0: i32) -> (i32, i32) {
    %c0_i32 = arith.constant 0 : i32
    %c0_i32_0 = arith.constant 0 : i32
    %c0_i32_1 = arith.constant 0 : i32
    return %c0_i32, %c0_i32_0 : i32, i32
  }
  func.func @transform_9(%arg0: i32) -> (i32, i32) {
    %c0_i32 = arith.constant 0 : i32
    %c0_i32_0 = arith.constant 0 : i32
    %c0_i32_1 = arith.constant 0 : i32
    return %c0_i32, %c0_i32_0 : i32, i32
  }
  func.func @transform_10(%arg0: i32) -> (i32, i32, i32) {
    %c0_i32 = arith.constant 0 : i32
    %c0_i32_0 = arith.constant 0 : i32
    %c0_i32_1 = arith.constant 0 : i32
    return %arg0, %c0_i32, %c0_i32_0 : i32, i32, i32
  }
}

</mosaic_0001>

<bundles_post_ra>
// kernel: tpu_custom_call.1
= control target key start
LH: loop header
LB: loop body
LE: loop exit
PB: predicated region body
PF: predicated region fallthrough
CT: control target
= control target key end

     0   :  { %s8370_s0 = inlined_call_operand.vmem [shape: f32[4,64,3], index: 0, kind: input, shape index: {}]   ;;  %s8371_s1 = inlined_call_operand.vmem [shape: f32[3,64], index: 1, kind: input, shape index: {}]   ;;  %s8372_s2 = inlined_call_operand.vmem [shape: f32[1,64], index: 2, kind: input, shape index: {}]   ;;  %s8373_s3 = inlined_call_operand.vmem [shape: f32[5,64,32], index: 3, kind: input, shape index: {}]   ;;  %s8374_s4 = inlined_call_operand.vmem [shape: f32[5,1,32], index: 4, kind: input, shape index: {}]   ;;  %s8375_s5 = inlined_call_operand.vmem [shape: f32[5,32,32], index: 5, kind: input, shape index: {}]   ;;  %s8376_s6 = inlined_call_operand.vmem [shape: f32[5,1,32], index: 6, kind: input, shape index: {}]   ;;  %s8377_s7 = inlined_call_operand.vmem [shape: f32[5,64,32], index: 7, kind: input, shape index: {}]   ;;  %s8378_s8 = inlined_call_operand.vmem [shape: f32[32,8], index: 8, kind: input, shape index: {}]   ;;  %s8379_s9 = inlined_call_operand.vmem [shape: f32[1,8], index: 9, kind: input, shape index: {}]   ;;  %s8380_s10 = inlined_call_operand.hbm [shape: f32[2,2,8], index: 10, kind: output, shape index: {}]  }
   0x1   :  { %8381 = sst [smem:[#allocation5_spill]] %s8370_s0 }
   0x2   :  { %15 = vsyncpa [#allocation3], 0 }
   0x3   :  { %17 = vsyncpa [#allocation3 + $0x1], 0  ;;  %s6837_s13 = smov 0   ;;  %s6839_s14 = smov 0  }
   0x4   :  { %s6841_s15 = smov 0   ;;  %s6843_s16 = smov 0  }
   0x5 LB: > { %s6858_s17 = sadd.s32 4294967295, %s6773_s16   ;;  %s5324_s18 = sadd.s32 4294967294, %s6773_s16   ;;  %s6773_s16 = sphi %s6843_s16, %s8388_s16   ;;  %s6769_s15 = sphi %s6841_s15, %s8387_s15   ;;  %s6765_s14 = sphi %s6839_s14, %s8386_s14   ;;  %s6761_s13 = sphi %s6837_s13, %s8385_s13  }
   0x6   : > { %s6862_s19 = sadd.s32 1, %s6773_s16   ;;  %s245_s20 = sadd.s32 1, %s6769_s15 }
   0x7   : > { %s242_s21 = ssub.s32 %s6773_s16, %s6862_s19  ;;  %p255_p0 = scmp.ne.s32.totalorder %s6769_s15, %s6765_s14 }
   0x8   : > { %p243_p1 = scmp.eq.s32.totalorder %s242_s21, 0  ;;  %p256_p2 = scmp.eq.s32.totalorder %s6858_s17, 1 }
   0x9   : > { %p261_p3 = scmp.ne.s32.totalorder %s6765_s14, %s6761_s13  ;;  %p262_p4 = scmp.eq.s32.totalorder %s5324_s18, 1 }
   0xa   : > { %s6873_s22 = scalar_select %p243_p1, %s6769_s15, %s245_s20  }
   0xb   : > { %p6875_p5 = por %p256_p2, %p255_p0  ;;  %p6879_p6 = por %p262_p4, %p261_p3 }
   0xc   : > { %p5327_p7 = scmp.ge.s32.totalorder %s6773_s16, 1  ;;  %p317_p8 = scmp.lt.s32.totalorder %s6773_s16, 3 }
   0xe   : > { %p318_p9 = pnand %p5327_p7, %p317_p8 }
   0xf   : > { %s5329_s25 = sshll.u32 (!%p318_p9), %s6858_s17, 1  ;;  %s8384_s0 = sld [smem:[#allocation5_spill]] (!%p318_p9) }
  0x10   : > { %321 = sbr.rel (%p318_p9) target bundleno = 2810 (0xafa), region = 60  ;;  %p357_p10 = scmp.lt.s32.totalorder (!%p318_p9), %s5329_s25, 3 }
  0x11   : > { %s353_s12 = sand.u32 (!%p318_p9), 1, %s6765_s14  }
  0x12   : > { %s5328_s18 = sshll.u32 (!%p318_p9), %s353_s12, 1  ;;  %s5252_s11 = scalar_lea.sflag (!%p318_p9), [#allocation3], %s353_s12 }
  0x15   : > { %v6775_v0 = vmov 1   ;;  %v6776_v1 = vmov 0   ;;  %s8390_s25 = smov (!%p357_p10, %s5329_s25), 3  ;;  %v726_v2 = vld [vmem:[%s8373_s3 + $0x38] sm:$0xff]  ;;  %v725_v5 = vld [vmem:[%s8373_s3 + $0x30] sm:$0xff]  ;;  %v724_v6 = vld [vmem:[%s8373_s3 + $0x28] sm:$0xff]  ;;  %v461_v27 = vlaneseq }
  0x16   : > { %6688 = vset.pattern.permute.xlu1 %v6775_v0  ;;  %6687 = vset.pattern.permute.xlu0 %v6776_v1  ;;  %s5685_s26 = sshll.u32 %s8390_s25, 6  ;;  %v723_v8 = vld [vmem:[%s8373_s3 + $0x20] sm:$0xff]  ;;  %v6777_v9 = vmov 2   ;;  %v722_v11 = vld [vmem:[%s8373_s3 + $0x18] sm:$0xff]  ;;  %v721_v12 = vld [vmem:[%s8373_s3 + $0x10] sm:$0xff]  ;;  %vm734_vm0 = vcmask 523264  }
  0x17   : > { %s6891_s29 = scalar_lea.vmem %s8384_s0, %s5685_s26  ;;  %6039 = vmatprep.subr.mxu0 %v726_v2  ;;  %v720_v13 = vld [vmem:[%s8373_s3 + $0x8] sm:$0xff]  ;;  %v719_v14 = vld [vmem:[%s8373_s3] sm:$0xff]  ;;  %v6956_v28 = vshrl.u32 %v461_v27, 7  ;;  %vm955_vm1 = vcmask 261120   ;;  %vm6779_vm2 = vmmov 0   ;;  %vm1422_vm3 = vcmask 1041409  }
  0x18   : > { %v363_v3 = vld [vmem:[%s6891_s29] sm:$0xff]  ;;  %v364_v4 = vld [vmem:[%s6891_s29 + $0x8] sm:$0xff]  ;;  %6040 = vmatpush3.msra.mxu0 %v726_v2  ;;  %v365_v7 = vld [vmem:[%s6891_s29 + $0x10] sm:$0xff]  ;;  %s5682_s25 = sshll.u32 %s6858_s17, 5  ;;  %s355_s26 = scalar_lea.vmem [#allocation2], %s5328_s18  ;;  %vm5249_vm4 = vcmask 58368  }
  0x19   : > { %504 = vperm.xlu1 %6688, %v363_v3   ;;  %383 = vperm.xlu0 %6687, %v363_v3   ;;  %v366_v10 = vld [vmem:[%s6891_s29 + $0x18] sm:$0xff]  ;;  %v367_v15 = vld [vmem:[%s6891_s29 + $0x20] sm:$0xff]  ;;  %v369_v16 = vld [vmem:[%s6891_s29 + $0x30] sm:$0xff]  ;;  %v6960_v29 = vsub.s32 0, %v6956_v28  ;;  %v569_v32 = vsub.s32 1, %v6956_v28  ;;  %v669_v36 = vsub.s32 2, %v6956_v28  ;;  %s8335_s30 = scalar_lea.hbm %s8380_s10, %s5682_s25 }
  0x1a   : > { %6041 = vmatprep.subr.mxu0 %v725_v5  ;;  %v368_v17 = vld [vmem:[%s6891_s29 + $0x28] sm:$0xff]  ;;  %v371_v18 = vld [vmem:[%s6891_s29 + $0x40] sm:$0xff]  ;;  %v373_v19 = vld [vmem:[%s6891_s29 + $0x50] sm:$0xff]  ;;  %s6781_s17 = smov [#allocation2]  }
  0x1b   : > { %6042 = vmatpush3.msra.mxu0 %v725_v5  ;;  %v375_v20 = vld [vmem:[%s6891_s29 + $0x60] sm:$0xff]  ;;  %v370_v21 = vld [vmem:[%s6891_s29 + $0x38] sm:$0xff]  ;;  %v372_v22 = vld [vmem:[%s6891_s29 + $0x48] sm:$0xff]  ;;  %s6717_s18 = sshll.u32 %s6781_s17, 4  ;;  %s6718_s18 = int_to_ptr.vmem [resolvable:$false] %s6717_s18 }
  0x1c   : > { %6043 = vmatprep.subr.mxu0 %v724_v6  ;;  %v6941_v23 = vld [vmem:[%s6891_s29 + $0x70] sm:$0xff]  ;;  %v378_v24 = vld [vmem:[%s6891_s29 + $0x78] sm:$0xff]  ;;  %v376_v26 = vld [vmem:[%s6891_s29 + $0x68] sm:$0xff]  ;;  %s6719_s20 = scalar_lea.vmem %s6718_s18, 64 }
  0x1d   : > { %508 = vperm.xlu1 %6688, %v364_v4   ;;  %388 = vperm.xlu0 %6687, %v364_v4   ;;  %v374_v25 = vld [vmem:[%s6891_s29 + $0x58] sm:$0xff]  ;;  %v379_v30 = vld [vmem:[%s8371_s1] sm:$0x7]  ;;  %s5265_s29 = sshll.u32 %s355_s26, 4  ;;  %s5266_s29 = int_to_ptr.vmem [resolvable:$true] %s5265_s29 }
  0x1e   : > { %6044 = vmatpush3.msra.mxu0 %v724_v6  ;;  %v6967_v31 = vrot.slane %v379_v30, %v6960_v29  ;;  %v6975_v37 = vld [vmem:[%s8372_s2] ss:$0 sm:$0xff]  ;;  %v6978_v38 = vrot.slane %v379_v30, %v569_v32  ;;  %v6982_v43 = vrot.slane %v379_v30, %v669_v36  ;;  %s6713_s0 = scalar_lea.vmem %s5266_s29, 32  ;;  %p6720_p0 = scmp.lt.s32.totalorder %s5266_s29, %s6718_s18 }
  0x1f   : > { %6045 = vmatprep.subr.mxu0 %v723_v8  ;;  %p6714_p11 = scmp.ne.s32.totalorder %s5266_s29, %s6713_s0  ;;  %p6721_p1 = scmp.lt.s32.totalorder %s6719_s20, %s6713_s0 }
  0x20   : > { %6046 = vmatpush3.msra.mxu0 %v723_v8 }
  0x21   : > { %6689 = vset.pattern.permute.xlu1 %v6777_v9  ;;  %393 = vperm.xlu0 %6687, %v365_v7   ;;  %p6715_p12 = pnand %p6714_p11, %p6875_p5  ;;  %p6722_p2 = por %p6721_p1, %p6720_p0 }
  0x22   : > { %604 = vperm.xlu1 %6689, %v363_v3   ;;  %6047 = vmatprep.subr.mxu0 %v722_v11 }
  0x23   : > { %6048 = vmatpush3.msra.mxu0 %v722_v11  ;;  %p6716_p13 = pneg %p6715_p12 }
  0x24   : > { %6049 = vmatprep.subr.mxu0 %v721_v12 }
  0x25   : > { %398 = vperm.xlu0 %6687, %v366_v10   ;;  %6050 = vmatpush3.msra.mxu0 %v721_v12  ;;  %p6723_p3 = pnand %p6722_p2, %p6716_p13 }
  0x26   : > { %608 = vperm.xlu1 %6689, %v364_v4   ;;  %6051 = vmatprep.subr.mxu0 %v720_v13 }
  0x27   : > { %6052 = vmatpush3.msra.mxu0 %v720_v13 }
  0x28   : > { %6053 = vmatprep.subr.mxu0 %v719_v14 }
  0x29   : > { %6692 = vset.pattern.permute.xlu0 %v6777_v9  ;;  %6054 = vmatpush3.msra.mxu0 %v719_v14 }
  0x2a   : > { %6690 = vset.pattern.permute.xlu1 %v6775_v0  ;;  %612 = vperm.xlu0 %6692, %v365_v7  }
  0x2b   : > { %516 = vperm.xlu1 %6690, %v366_v10  }
  0x2e   : > { %620 = vperm.xlu0 %6692, %v367_v15  }
  0x2f   : > { %6691 = vset.pattern.permute.xlu1 %v6776_v1 }
  0x30   : > { %403 = vperm.xlu1 %6691, %v367_v15  }
  0x32   : > { %628 = vperm.xlu0 %6692, %v369_v16  }
  0x34   : > { %408 = vperm.xlu1 %6691, %v368_v17  }
  0x36   : > { %636 = vperm.xlu0 %6692, %v371_v18  }
  0x38   : > { %6693 = vset.pattern.permute.xlu1 %v6777_v9 }
  0x39   : > { %616 = vperm.xlu1 %6693, %v366_v10  }
  0x3a   : > { %644 = vperm.xlu0 %6692, %v373_v19  }
  0x3d   : > { %6694 = vset.pattern.permute.xlu1 %v6775_v0 }
  0x3e   : > { %524 = vperm.xlu1 %6694, %v368_v17   ;;  %652 = vperm.xlu0 %6692, %v375_v20  }
  0x42   : > { %6695 = vset.pattern.permute.xlu1 %v6776_v1  ;;  %6708 = vset.pattern.permute.xlu0 %v6775_v0 }
  0x43   : > { %413 = vperm.xlu1 %6695, %v369_v16   ;;  %512 = vperm.xlu0 %6708, %v365_v7  }
  0x47   : > { %418 = vperm.xlu1 %6695, %v370_v21   ;;  %520 = vperm.xlu0 %6708, %v367_v15  }
  0x4b   : > { %6696 = vset.pattern.permute.xlu1 %v6777_v9  ;;  %528 = vperm.xlu0 %6708, %v369_v16  }
  0x4c   : > { %624 = vperm.xlu1 %6696, %v368_v17  }
  0x4f   : > { %536 = vperm.xlu0 %6708, %v371_v18  }
  0x50   : > { %6697 = vset.pattern.permute.xlu1 %v6775_v0 }
  0x51   : > { %532 = vperm.xlu1 %6697, %v370_v21  }
  0x53   : > { %544 = vperm.xlu0 %6708, %v373_v19  }
  0x55   : > { %6698 = vset.pattern.permute.xlu1 %v6776_v1 }
  0x56   : > { %423 = vperm.xlu1 %6698, %v371_v18  }
  0x57   : > { %552 = vperm.xlu0 %6708, %v375_v20  }
  0x5a   : > { %428 = vperm.xlu1 %6698, %v372_v22  }
  0x5b   : > { %560 = vperm.xlu0 %6708, %v6941_v23  }
  0x5e   : > { %6699 = vset.pattern.permute.xlu1 %v6777_v9 }
  0x5f   : > { %632 = vperm.xlu1 %6699, %v370_v21   ;;  %6712 = vset.pattern.permute.xlu0 %v6777_v9 }
  0x60   : > { %664 = vperm.xlu0 %6712, %v378_v24  }
  0x63   : > { %6700 = vset.pattern.permute.xlu1 %v6775_v0 }
  0x64   : > { %540 = vperm.xlu1 %6700, %v372_v22  }
  0x68   : > { %6701 = vset.pattern.permute.xlu1 %v6776_v1 }
  0x69   : > { %433 = vperm.xlu1 %6701, %v373_v19  }
  0x6d   : > { %438 = vperm.xlu1 %6701, %v374_v25  }
  0x71   : > { %6702 = vset.pattern.permute.xlu1 %v6777_v9 }
  0x72   : > { %640 = vperm.xlu1 %6702, %v372_v22  }
  0x76   : > { %6703 = vset.pattern.permute.xlu1 %v6775_v0 }
  0x77   : > { %548 = vperm.xlu1 %6703, %v374_v25  }
  0x7b   : > { %6704 = vset.pattern.permute.xlu1 %v6776_v1 }
  0x7c   : > { %443 = vperm.xlu1 %6704, %v375_v20  }
  0x80   : > { %448 = vperm.xlu1 %6704, %v376_v26  }
  0x84   : > { %6705 = vset.pattern.permute.xlu1 %v6777_v9 }
  0x85   : > { %648 = vperm.xlu1 %6705, %v374_v25  }
  0x89   : > { %6706 = vset.pattern.permute.xlu1 %v6775_v0 }
  0x8a   : > { %556 = vperm.xlu1 %6706, %v376_v26  }
  0x8e   : > { %6707 = vset.pattern.permute.xlu1 %v6776_v1 }
  0x8f   : > { %453 = vperm.xlu1 %6707, %v6941_v23  }
  0x93   : > { %458 = vperm.xlu1 %6707, %v378_v24  }
  0x94   : > { %v505_v33 = vpop.permute.xlu1 %504  ;;  %v384_v34 = vpop.permute.xlu0 %383 }
  0x95   : > { %v465_v35 = vmul.f32 %v6967_v31, %v384_v34  ;;  %v571_v44 = vmul.f32 %v6978_v38, %v505_v33 }
  0x97   : > { %6709 = vset.pattern.permute.xlu1 %v6777_v9  ;;  %v487_v41 = vadd.f32 %v6975_v37, %v465_v35 }
  0x98   : > { %656 = vperm.xlu1 %6709, %v376_v26   ;;  %v509_v39 = vpop.permute.xlu1 %508  ;;  %v389_v40 = vpop.permute.xlu0 %388 }
  0x99   : > { %v466_v42 = vmul.f32 %v6967_v31, %v389_v40  ;;  %v587_v48 = vadd.f32 %v571_v44, %v487_v41  ;;  %v572_v50 = vmul.f32 %v6978_v38, %v509_v39 }
  0x9b   : > { %v488_v47 = vadd.f32 %v6975_v37, %v466_v42 }
  0x9c   : > { %6710 = vset.pattern.permute.xlu1 %v6775_v0  ;;  %v394_v45 = vpop.permute.xlu0 %393 }
  0x9d   : > { %564 = vperm.xlu1 %6710, %v378_v24   ;;  %v605_v46 = vpop.permute.xlu1 %604  ;;  %v588_v54 = vadd.f32 %v572_v50, %v488_v47  ;;  %v467_v5 = vmul.f32 %v6967_v31, %v394_v45 }
  0x9e   : > { %v671_v49 = vmul.f32 %v6982_v43, %v605_v46 }
  0x9f   : > { %v489_v10 = vadd.f32 %v6975_v37, %v467_v5 }
  0xa0   : > { %v6989_v51 = vadd.f32 %v671_v49, %v587_v48  ;;  %v399_v52 = vpop.permute.xlu0 %398 }
  0xa1   : > { %6711 = vset.pattern.permute.xlu1 %v6777_v9  ;;  %v609_v53 = vpop.permute.xlu1 %608  ;;  %v468_v4 = vmul.f32 %v6967_v31, %v399_v52 }
  0xa2   : > { %v672_v55 = vmul.f32 %v6982_v43, %v609_v53  ;;  %660 = vperm.xlu1 %6711, %v6941_v23   ;;  %v703_v56 = vmax.f32 %v6989_v51, 0.0 }
  0xa3   : > { %v490_v8 = vadd.f32 %v6975_v37, %v468_v4 }
  0xa4   : > { %v6995_v57 = vadd.f32 %v672_v55, %v588_v54  ;;  %6055 = vmatprep.mubr.msk.f32.mxu0 %vm734_vm0, %v703_v56 }
  0xa5   : > { %v613_v58 = vpop.permute.xlu0 %612 }
  0xa6   : > { %v704_v59 = vmax.f32 %v6995_v57, 0.0  ;;  %v517_v60 = vpop.permute.xlu1 %516  ;;  %v673_v14 = vmul.f32 %v6982_v43, %v613_v58 }
  0xa7   : > { %v574_v9 = vmul.f32 %v6978_v38, %v517_v60 }
  0xa8   : > { %6056 = vmatmul.mubr.msk.f32.vlgmr.msra.gmra.mxu0 %vm734_vm0, %v704_v59 }
  0xa9   : > { %v621_v61 = vpop.permute.xlu0 %620  ;;  %v590_v17 = vadd.f32 %v574_v9, %v490_v8 }
  0xaa   : > { %v675_v19 = vmul.f32 %v6982_v43, %v621_v61 }
  0xab   : > { %v404_v62 = vpop.permute.xlu1 %403 }
  0xac   : > { %v469_v15 = vmul.f32 %v6967_v31, %v404_v62 }
  0xad   : > { %v629_v63 = vpop.permute.xlu0 %628 }
  0xae   : > { %v491_v24 = vadd.f32 %v6975_v37, %v469_v15  ;;  %v677_v39 = vmul.f32 %v6982_v43, %v629_v63 }
  0xaf   : > { %v409_v0 = vpop.permute.xlu1 %408 }
  0xb0   : > { %v470_v20 = vmul.f32 %v6967_v31, %v409_v0 }
  0xb1   : > { %v637_v1 = vpop.permute.xlu0 %636 }
  0xb2   : > { %v492_v34 = vadd.f32 %v6975_v37, %v470_v20  ;;  %v679_v0 = vmul.f32 %v6982_v43, %v637_v1 }
  0xb4   : > { %v617_v2 = vpop.permute.xlu1 %616 }
  0xb5   : > { %v7000_v3 = vpop.permute.xlu0 %644  ;;  %v674_v11 = vmul.f32 %v6982_v43, %v617_v2 }
  0xb7   : > { %v7015_v21 = vadd.f32 %v674_v11, %v590_v17 }
  0xb9   : > { %v525_v6 = vpop.permute.xlu1 %524  ;;  %v7004_v7 = vpop.permute.xlu0 %652  ;;  %v706_v35 = vmax.f32 %v7015_v21, 0.0 }
  0xba   : > { %v576_v30 = vmul.f32 %v6978_v38, %v525_v6 }
  0xbc   : > { %v592_v45 = vadd.f32 %v576_v30, %v492_v34 }
  0xbe   : > { %v414_v12 = vpop.permute.xlu1 %413  ;;  %v513_v13 = vpop.permute.xlu0 %512 }
  0xbf   : > { %v573_v16 = vmul.f32 %v6978_v38, %v513_v13  ;;  %v471_v25 = vmul.f32 %v6967_v31, %v414_v12 }
  0xc1   : > { %v589_v18 = vadd.f32 %v573_v16, %v489_v10  ;;  %v493_v40 = vadd.f32 %v6975_v37, %v471_v25 }
  0xc2   : > { %v419_v22 = vpop.permute.xlu1 %418  ;;  %v521_v23 = vpop.permute.xlu0 %520 }
  0xc3   : > { %v7019_v26 = vadd.f32 %v673_v14, %v589_v18  ;;  %v575_v27 = vmul.f32 %v6978_v38, %v521_v23  ;;  %v472_v61 = vmul.f32 %v6967_v31, %v419_v22  ;;  %v947_v18 = vld [vmem:[%s8375_s5 + $0x18] sm:$0xff]  ;;  %v946_v22 = vld [vmem:[%s8375_s5 + $0x10] sm:$0xff] }
  0xc4   : > { %6079 = vmatprep.subr.mxu0 %v947_v18  ;;  %6634 = vmatprep.subr.mxu1 %v947_v18 }
  0xc5   : > { %v705_v32 = vmax.f32 %v7019_v26, 0.0  ;;  %v591_v33 = vadd.f32 %v575_v27, %v491_v24  ;;  %v494_v4 = vadd.f32 %v6975_v37, %v472_v61  ;;  %6080 = vmatpush3.msra.mxu0 %v947_v18  ;;  %6638 = vmatpush3.msra.mxu1 %v947_v18  ;;  %v681_v24 = vmul.f32 %v6982_v43, %v7000_v3  ;;  %v945_v27 = vld [vmem:[%s8375_s5 + $0x8] sm:$0xff] }
  0xc6   : > { %v529_v36 = vpop.permute.xlu0 %528  ;;  %6081 = vmatprep.subr.mxu0 %v946_v22  ;;  %6635 = vmatprep.subr.mxu1 %v946_v22 }
  0xc7   : > { %v7028_v41 = vadd.f32 %v675_v19, %v591_v33  ;;  %v577_v42 = vmul.f32 %v6978_v38, %v529_v36  ;;  %v625_v44 = vpop.permute.xlu1 %624  ;;  %6058 = vmatprep.mubr.msk.f32.mxu0 %vm734_vm0, %v705_v32  ;;  %6082 = vmatpush3.msra.mxu0 %v946_v22  ;;  %v944_v33 = vld [vmem:[%s8375_s5] sm:$0xff] }
  0xc8   : > { %v676_v46 = vmul.f32 %v6982_v43, %v625_v44  ;;  %6059 = vmatmul.mubr.msk.f32.gmra.mxu0 %vm734_vm0, %v706_v35  ;;  %6639 = vmatpush3.msra.mxu1 %v946_v22 }
  0xc9   : > { %v707_v47 = vmax.f32 %v7028_v41, 0.0  ;;  %v593_v48 = vadd.f32 %v577_v42, %v493_v40  ;;  %6083 = vmatprep.subr.mxu0 %v945_v27  ;;  %6636 = vmatprep.subr.mxu1 %v945_v27 }
  0xca   : > { %v7035_v49 = vadd.f32 %v676_v46, %v592_v45  ;;  %v537_v56 = vpop.permute.xlu0 %536  ;;  %6084 = vmatpush3.msra.mxu0 %v945_v27  ;;  %6640 = vmatpush3.msra.mxu1 %v945_v27 }
  0xcb   : > { %v7037_v50 = vadd.f32 %v677_v39, %v593_v48  ;;  %6061 = vmatprep.mubr.msk.f32.mxu0 %vm734_vm0, %v707_v47  ;;  %v579_v60 = vmul.f32 %v6978_v38, %v537_v56  ;;  %6085 = vmatprep.subr.mxu0 %v944_v33 }
  0xcc   : > { %v708_v52 = vmax.f32 %v7035_v49, 0.0  ;;  %v533_v53 = vpop.permute.xlu1 %532  ;;  %6637 = vmatprep.subr.mxu1 %v944_v33  ;;  %6086 = vmatpush3.msra.mxu0 %v944_v33 }
  0xcd   : > { %v709_v54 = vmax.f32 %v7037_v50, 0.0  ;;  %v578_v63 = vmul.f32 %v6978_v38, %v533_v53  ;;  %6641 = vmatpush3.msra.mxu1 %v944_v33 }
  0xce   : > { %6062 = vmatmul.mubr.msk.f32.gmra.mxu0 %vm734_vm0, %v708_v52  ;;  %v545_v14 = vpop.permute.xlu0 %544 }
  0xcf   : > { %6064 = vmatprep.mubr.msk.f32.mxu0 %vm734_vm0, %v709_v54  ;;  %v594_v6 = vadd.f32 %v578_v63, %v494_v4  ;;  %v581_v17 = vmul.f32 %v6978_v38, %v545_v14 }
  0xd1   : > { %v424_v55 = vpop.permute.xlu1 %423 }
  0xd2   : > { %v473_v58 = vmul.f32 %v6967_v31, %v424_v55  ;;  %v553_v45 = vpop.permute.xlu0 %552 }
  0xd3   : > { %v583_v48 = vmul.f32 %v6978_v38, %v553_v45 }
  0xd4   : > { %v495_v59 = vadd.f32 %v6975_v37, %v473_v58  ;;  %v683_v58 = vmul.f32 %v6982_v43, %v7004_v7 }
  0xd5   : > { %v429_v62 = vpop.permute.xlu1 %428 }
  0xd6   : > { %v595_v2 = vadd.f32 %v579_v60, %v495_v59  ;;  %v474_v19 = vmul.f32 %v6967_v31, %v429_v62 }
  0xd8   : > { %v7052_v9 = vadd.f32 %v679_v0, %v595_v2  ;;  %v496_v30 = vadd.f32 %v6975_v37, %v474_v19 }
  0xda   : > { %v633_v5 = vpop.permute.xlu1 %632  ;;  %v711_v13 = vmax.f32 %v7052_v9, 0.0 }
  0xdb   : > { %v678_v8 = vmul.f32 %v6982_v43, %v633_v5 }
  0xdd   : > { %v7054_v10 = vadd.f32 %v678_v8, %v594_v6 }
  0xdf   : > { %v710_v11 = vmax.f32 %v7054_v10, 0.0  ;;  %v541_v12 = vpop.permute.xlu1 %540 }
  0xe0   : > { %v580_v23 = vmul.f32 %v6978_v38, %v541_v12 }
  0xe1   : > { %6065 = vmatmul.mubr.msk.f32.gmra.mxu0 %vm734_vm0, %v710_v11 }
  0xe2   : > { %6067 = vmatprep.mubr.msk.f32.mxu0 %vm734_vm0, %v711_v13  ;;  %v596_v34 = vadd.f32 %v580_v23, %v496_v30  ;;  %v561_v13 = vpop.permute.xlu0 %560 }
  0xe3   : > { %v585_v30 = vmul.f32 %v6978_v38, %v561_v13  ;;  %v1149_v13 = vld [vmem:[%s8377_s7] sm:$0xff] }
  0xe4   : > { %v434_v1 = vpop.permute.xlu1 %433 }
  0xe5   : > { %v475_v15 = vmul.f32 %v6967_v31, %v434_v1 }
  0xe7   : > { %v497_v16 = vadd.f32 %v6975_v37, %v475_v15 }
  0xe8   : > { %v439_v20 = vpop.permute.xlu1 %438 }
  0xe9   : > { %v597_v25 = vadd.f32 %v581_v17, %v497_v16  ;;  %v476_v52 = vmul.f32 %v6967_v31, %v439_v20  ;;  %v665_v20 = vpop.permute.xlu0 %664 }
  0xea   : > { %v686_v27 = vmul.f32 %v6982_v43, %v665_v20 }
  0xeb   : > { %v7081_v35 = vadd.f32 %v681_v24, %v597_v25  ;;  %v498_v56 = vadd.f32 %v6975_v37, %v476_v52 }
  0xed   : > { %v641_v32 = vpop.permute.xlu1 %640  ;;  %v713_v42 = vmax.f32 %v7081_v35, 0.0 }
  0xee   : > { %v680_v3 = vmul.f32 %v6982_v43, %v641_v32 }
  0xf0   : > { %v7083_v36 = vadd.f32 %v680_v3, %v596_v34 }
  0xf2   : > { %v712_v39 = vmax.f32 %v7083_v36, 0.0  ;;  %v549_v40 = vpop.permute.xlu1 %548 }
  0xf3   : > { %v582_v54 = vmul.f32 %v6978_v38, %v549_v40 }
  0xf4   : > { %6068 = vmatmul.mubr.msk.f32.gmra.mxu0 %vm734_vm0, %v712_v39 }
  0xf5   : > { %6070 = vmatprep.mubr.msk.f32.mxu0 %vm734_vm0, %v713_v42  ;;  %v598_v60 = vadd.f32 %v582_v54, %v498_v56 }
  0xf7   : > { %v444_v44 = vpop.permute.xlu1 %443 }
  0xf8   : > { %v477_v46 = vmul.f32 %v6967_v31, %v444_v44 }
  0xfa   : > { %v499_v47 = vadd.f32 %v6975_v37, %v477_v46 }
  0xfb   : > { %v449_v53 = vpop.permute.xlu1 %448 }
  0xfc   : > { %v599_v55 = vadd.f32 %v583_v48, %v499_v47  ;;  %v478_v7 = vmul.f32 %v6967_v31, %v449_v53 }
  0xfe   : > { %v7098_v62 = vadd.f32 %v683_v58, %v599_v55  ;;  %v500_v11 = vadd.f32 %v6975_v37, %v478_v7  ;;  %v1153_v7 = vld [vmem:[%s8377_s7 + $0x20] sm:$0xff] }
 0x100   : > { %v649_v59 = vpop.permute.xlu1 %648  ;;  %v715_v4 = vmax.f32 %v7098_v62, 0.0 }
 0x101   : > { %v682_v61 = vmul.f32 %v6982_v43, %v649_v59 }
 0x103   : > { %v7100_v63 = vadd.f32 %v682_v61, %v598_v60 }
 0x105   : > { %v714_v0 = vmax.f32 %v7100_v63, 0.0  ;;  %v557_v2 = vpop.permute.xlu1 %556 }
 0x106   : > { %v584_v8 = vmul.f32 %v6978_v38, %v557_v2 }
 0x107   : > { %6071 = vmatmul.mubr.msk.f32.gmra.mxu0 %vm734_vm0, %v714_v0 }
 0x108   : > { %6073 = vmatprep.mubr.msk.f32.mxu0 %vm734_vm0, %v715_v4  ;;  %v600_v1 = vadd.f32 %v584_v8, %v500_v11  ;;  %v1155_v4 = vld [vmem:[%s8377_s7 + $0x30] sm:$0xff]  ;;  %v1150_v11 = vld [vmem:[%s8377_s7 + $0x8] sm:$0xff] }
 0x109   : > { %v1151_v8 = vld [vmem:[%s8377_s7 + $0x10] sm:$0xff] }
 0x10a   : > { %v454_v5 = vpop.permute.xlu1 %453 }
 0x10b   : > { %v479_v16 = vmul.f32 %v6967_v31, %v454_v5  ;;  %v1154_v5 = vld [vmem:[%s8377_s7 + $0x28] sm:$0xff] }
 0x10d   : > { %v501_v24 = vadd.f32 %v6975_v37, %v479_v16 }
 0x10e   : > { %v459_v6 = vpop.permute.xlu1 %458 }
 0x10f   : > { %v480_v15 = vmul.f32 %v6967_v31, %v459_v6  ;;  %v601_v32 = vadd.f32 %v585_v30, %v501_v24  ;;  %v1152_v6 = vld [vmem:[%s8377_s7 + $0x18] sm:$0xff] }
 0x111   : > { %v502_v22 = vadd.f32 %v6975_v37, %v480_v15  ;;  %v1156_v37 = vld [vmem:[%s8377_s7 + $0x38] sm:$0xff] }
 0x112   : > { %6111 = vmatprep.subr.mxu1 %v1156_v37 }
 0x113   : > { %v657_v12 = vpop.permute.xlu1 %656 }
 0x114   : > { %v684_v14 = vmul.f32 %v6982_v43, %v657_v12 }
 0x116   : > { %v7112_v17 = vadd.f32 %v684_v14, %v600_v1 }
 0x118   : > { %v716_v18 = vmax.f32 %v7112_v17, 0.0  ;;  %v565_v19 = vpop.permute.xlu1 %564 }
 0x119   : > { %v586_v23 = vmul.f32 %v6978_v38, %v565_v19  ;;  %v7136_v38 = vld [vmem:[%s8374_s4] ss:$0 sm:$0xff] }
 0x11a   : > { %6074 = vmatmul.mubr.msk.f32.gmra.mxu0 %vm734_vm0, %v716_v18 }
 0x11b   : > { %v602_v25 = vadd.f32 %v586_v23, %v502_v22 }
 0x11d   : > { %v661_v31 = vpop.permute.xlu1 %660  ;;  %v7122_v34 = vadd.f32 %v686_v27, %v602_v25 }
 0x11e   : > { %v685_v33 = vmul.f32 %v6982_v43, %v661_v31 }
 0x11f   : > { %v718_v40 = vmax.f32 %v7122_v34, 0.0 }
 0x120   : > { %v7124_v3 = vadd.f32 %v685_v33, %v601_v32 }
 0x122   : > { %v717_v39 = vmax.f32 %v7124_v3, 0.0 }
 0x124   : > { %6076 = vmatprep.mubr.msk.f32.mxu0 %vm734_vm0, %v717_v39 }
 0x125   : > { %6077 = vmatmul.mubr.msk.f32.gmra.mxu0 %vm734_vm0, %v718_v40 }
 0x168   : > { %v6057_v43 = vpop.f32.mrf.mxu0 }
 0x169   : > { %v855_v42 = vadd.f32 %v6057_v43, %v7136_v38 }
 0x16a   : > { %v849_v44 = vpop.f32.mrf.mxu0 }
 0x16b   : > { %v850_v45 = vadd.f32 %v7136_v38, %v849_v44  ;;  %v929_v47 = vmax.f32 %v855_v42, 0.0 }
 0x16d   : > { %v928_v46 = vmax.f32 %v850_v45, 0.0 }
 0x16f   : > { %6087 = vmatprep.mubr.msk.f32.mxu0 %vm955_vm1, %v928_v46 }
 0x170   : > { %6088 = vmatmul.mubr.msk.f32.vlgmr.msra.gmra.mxu0 %vm955_vm1, %v929_v47 }
 0x188   : > { %v6060_v48 = vpop.f32.mrf.mxu0 }
 0x189   : > { %v865_v52 = vadd.f32 %v6060_v48, %v7136_v38 }
 0x18a   : > { %v859_v53 = vpop.f32.mrf.mxu0 }
 0x18b   : > { %v860_v54 = vadd.f32 %v7136_v38, %v859_v53  ;;  %v931_v56 = vmax.f32 %v865_v52, 0.0 }
 0x18d   : > { %v930_v55 = vmax.f32 %v860_v54, 0.0 }
 0x18e   : > { %v6063_v58 = vpop.f32.mrf.mxu0 }
 0x18f   : > { %6090 = vmatprep.mubr.msk.f32.mxu0 %vm955_vm1, %v930_v55  ;;  %v875_v59 = vadd.f32 %v6063_v58, %v7136_v38 }
 0x190   : > { %v869_v60 = vpop.f32.mrf.mxu0  ;;  %6091 = vmatmul.mubr.msk.f32.gmra.mxu0 %vm955_vm1, %v931_v56 }
 0x191   : > { %v870_v61 = vadd.f32 %v7136_v38, %v869_v60  ;;  %v933_v2 = vmax.f32 %v875_v59, 0.0  ;;  %v5422_v60 = vld [vmem:[%s8375_s5 + $0x38] sm:$0xff] }
 0x193   : > { %v932_v0 = vmax.f32 %v870_v61, 0.0  ;;  %v5421_v61 = vld [vmem:[%s8375_s5 + $0x30] sm:$0xff] }
 0x195   : > { %6093 = vmatprep.mubr.msk.f32.mxu1 %vm955_vm1, %v932_v0 }
 0x196   : > { %6094 = vmatmul.mubr.msk.f32.vlgmr.msra.gmra.mxu1 %vm955_vm1, %v933_v2 }
 0x197   : > { %6112 = vmatpush3.msra.mxu1 %v1156_v37 }
 0x198   : > { %6113 = vmatprep.subr.mxu1 %v1155_v4 }
 0x199   : > { %6114 = vmatpush3.msra.mxu1 %v1155_v4  ;;  %v5350_v4 = vld [vmem:[%s8376_s6] ss:$0 sm:$0xff] }
 0x19a   : > { %6115 = vmatprep.subr.mxu1 %v1154_v5 }
 0x19b   : > { %6116 = vmatpush3.msra.mxu1 %v1154_v5 }
 0x19c   : > { %6117 = vmatprep.subr.mxu1 %v1153_v7 }
 0x19d   : > { %6118 = vmatpush3.msra.mxu1 %v1153_v7 }
 0x19e   : > { %6119 = vmatprep.subr.mxu1 %v1152_v6 }
 0x19f   : > { %6120 = vmatpush3.msra.mxu1 %v1152_v6 }
 0x1a0   : > { %6121 = vmatprep.subr.mxu1 %v1151_v8 }
 0x1a1   : > { %v6066_v12 = vpop.f32.mrf.mxu0  ;;  %6122 = vmatpush3.msra.mxu1 %v1151_v8 }
 0x1a2   : > { %6123 = vmatprep.subr.mxu1 %v1150_v11  ;;  %v885_v1 = vadd.f32 %v6066_v12, %v7136_v38 }
 0x1a3   : > { %v879_v14 = vpop.f32.mrf.mxu0  ;;  %6124 = vmatpush3.msra.mxu1 %v1150_v11 }
 0x1a4   : > { %v880_v15 = vadd.f32 %v7136_v38, %v879_v14  ;;  %6125 = vmatprep.subr.mxu1 %v1149_v13  ;;  %v935_v18 = vmax.f32 %v885_v1, 0.0 }
 0x1a5   : > { %6126 = vmatpush3.msra.mxu1 %v1149_v13 }
 0x1a6   : > { %v934_v16 = vmax.f32 %v880_v15, 0.0  ;;  %6205 = vmatprep.subr.mxu1 %v5422_v60 }
 0x1a8   : > { %6096 = vmatprep.mubr.msk.f32.mxu1 %vm955_vm1, %v934_v16 }
 0x1a9   : > { %6097 = vmatmul.mubr.msk.f32.gmra.mxu1 %vm955_vm1, %v935_v18 }
 0x1b4   : > { %v6069_v19 = vpop.f32.mrf.mxu0 }
 0x1b5   : > { %v895_v20 = vadd.f32 %v6069_v19, %v7136_v38 }
 0x1b6   : > { %v889_v22 = vpop.f32.mrf.mxu0 }
 0x1b7   : > { %v890_v23 = vadd.f32 %v7136_v38, %v889_v22  ;;  %v937_v25 = vmax.f32 %v895_v20, 0.0 }
 0x1b9   : > { %v936_v24 = vmax.f32 %v890_v23, 0.0 }
 0x1bb   : > { %6099 = vmatprep.mubr.msk.f32.mxu1 %vm955_vm1, %v936_v24 }
 0x1bc   : > { %6100 = vmatmul.mubr.msk.f32.gmra.mxu1 %vm955_vm1, %v937_v25 }
 0x1c7   : > { %v6072_v27 = vpop.f32.mrf.mxu0 }
 0x1c8   : > { %v905_v30 = vadd.f32 %v6072_v27, %v7136_v38 }
 0x1c9   : > { %v899_v31 = vpop.f32.mrf.mxu0 }
 0x1ca   : > { %v900_v32 = vadd.f32 %v7136_v38, %v899_v31  ;;  %v939_v39 = vmax.f32 %v905_v30, 0.0 }
 0x1cc   : > { %v938_v33 = vmax.f32 %v900_v32, 0.0 }
 0x1ce   : > { %6102 = vmatprep.mubr.msk.f32.mxu1 %vm955_vm1, %v938_v33 }
 0x1cf   : > { %6103 = vmatmul.mubr.msk.f32.gmra.mxu1 %vm955_vm1, %v939_v39 }
 0x1da   : > { %v6075_v40 = vpop.f32.mrf.mxu0 }
 0x1db   : > { %v915_v37 = vadd.f32 %v6075_v40, %v7136_v38 }
 0x1dc   : > { %v909_v43 = vpop.f32.mrf.mxu0 }
 0x1dd   : > { %v910_v42 = vadd.f32 %v7136_v38, %v909_v43  ;;  %v941_v45 = vmax.f32 %v915_v37, 0.0 }
 0x1df   : > { %v940_v44 = vmax.f32 %v910_v42, 0.0 }
 0x1e1   : > { %6105 = vmatprep.mubr.msk.f32.mxu1 %vm955_vm1, %v940_v44 }
 0x1e2   : > { %6106 = vmatmul.mubr.msk.f32.gmra.mxu1 %vm955_vm1, %v941_v45 }
 0x1e5   : > { %v6078_v46 = vpop.f32.mrf.mxu0 }
 0x1e6   : > { %v925_v47 = vadd.f32 %v6078_v46, %v7136_v38 }
 0x1e7   : > { %v919_v48 = vpop.f32.mrf.mxu0 }
 0x1e8   : > { %v920_v52 = vadd.f32 %v7136_v38, %v919_v48  ;;  %v943_v54 = vmax.f32 %v925_v47, 0.0 }
 0x1ea   : > { %v942_v53 = vmax.f32 %v920_v52, 0.0 }
 0x1ec   : > { %6108 = vmatprep.mubr.msk.f32.mxu1 %vm955_vm1, %v942_v53 }
 0x1ed   : > { %6109 = vmatmul.mubr.msk.f32.gmra.mxu1 %vm955_vm1, %v943_v54 }
 0x1ee   : > { %6127 = vmatprep.mubr.msk.f32.mxu1 %vm734_vm0, %v6989_v51  ;;  %v6778_v51 = vmov 0.0  }
 0x1ef   : > { %6151 = vmatprep.subr.mxu0 %v6778_v51  ;;  %6159 = vmatprep.mubr.msk.f32.mxu0 %vm6779_vm2, %v6778_v51 }
 0x1f1   : > { %6128 = vmatmul.mubr.msk.f32.vlgmr.msra.gmra.mxu1 %vm734_vm0, %v6995_v57  ;;  %v5390_v57 = vld [vmem:[%s8373_s3 + $0x78] sm:$0xff] }
 0x1f2   : > { %6130 = vmatprep.mubr.msk.f32.mxu1 %vm734_vm0, %v7019_v26  ;;  %6152 = vmatpush3.msra.mxu0 %v5390_v57  ;;  %v5388_v26 = vld [vmem:[%s8373_s3 + $0x68] sm:$0xff] }
 0x1f3   : > { %6153 = vmatprep.subr.mxu0 %v6778_v51  ;;  %6206 = vmatpush3.msra.mxu1 %v5422_v60 }
 0x1f4   : > { %6207 = vmatprep.subr.mxu1 %v5421_v61 }
 0x1f5   : > { %6131 = vmatmul.mubr.msk.f32.gmra.mxu1 %vm734_vm0, %v7015_v21  ;;  %v5389_v21 = vld [vmem:[%s8373_s3 + $0x70] sm:$0xff] }
 0x1f6   : > { %6133 = vmatprep.mubr.msk.f32.mxu1 %vm734_vm0, %v7028_v41  ;;  %6154 = vmatpush3.msra.mxu0 %v5389_v21  ;;  %v5387_v41 = vld [vmem:[%s8373_s3 + $0x60] sm:$0xff] }
 0x1f7   : > { %6155 = vmatprep.subr.mxu0 %v6778_v51  ;;  %6208 = vmatpush3.msra.mxu1 %v5421_v61 }
 0x1f8   : > { %6156 = vmatpush3.msra.mxu0 %v5388_v26 }
 0x1f9   : > { %6134 = vmatmul.mubr.msk.f32.gmra.mxu1 %vm734_vm0, %v7035_v49  ;;  %6157 = vmatprep.subr.mxu0 %v6778_v51 }
 0x1fa   : > { %6136 = vmatprep.mubr.msk.f32.mxu1 %vm734_vm0, %v7037_v50  ;;  %6158 = vmatpush3.msra.mxu0 %v5387_v41 }
 0x1fb   : > { %6162 = vmatprep.subr.mxu0 %v6778_v51 }
 0x1fd   : > { %6137 = vmatmul.mubr.msk.f32.gmra.mxu1 %vm734_vm0, %v7054_v10 }
 0x1fe   : > { %6139 = vmatprep.mubr.msk.f32.mxu1 %vm734_vm0, %v7052_v9 }
 0x201   : > { %6140 = vmatmul.mubr.msk.f32.gmra.mxu1 %vm734_vm0, %v7083_v36 }
 0x202   : > { %6142 = vmatprep.mubr.msk.f32.mxu1 %vm734_vm0, %v7081_v35 }
 0x205   : > { %6143 = vmatmul.mubr.msk.f32.gmra.mxu1 %vm734_vm0, %v7100_v63 }
 0x206   : > { %6145 = vmatprep.mubr.msk.f32.mxu1 %vm734_vm0, %v7098_v62 }
 0x209   : > { %6146 = vmatmul.mubr.msk.f32.gmra.mxu1 %vm734_vm0, %v7112_v17 }
 0x20a   : > { %6148 = vmatprep.mubr.msk.f32.mxu1 %vm734_vm0, %v7124_v3 }
 0x20d   : > { %6149 = vmatmul.mubr.msk.f32.gmra.mxu1 %vm734_vm0, %v7122_v34 }
 0x230   : > { %v6089_v34 = vpop.f32.mrf.mxu0 }
 0x231   : > { %v1076_v13 = vadd.f32 %v6089_v34, %v5350_v4 }
 0x232   : > { %v1070_v38 = vpop.f32.mrf.mxu0 }
 0x233   : > { %v1071_v8 = vadd.f32 %v5350_v4, %v1070_v38 }
 0x250   : > { %v6092_v56 = vpop.f32.mrf.mxu0 }
 0x251   : > { %v1086_v11 = vadd.f32 %v6092_v56, %v5350_v4 }
 0x252   : > { %v1080_v0 = vpop.f32.mrf.mxu0 }
 0x253   : > { %v1081_v7 = vadd.f32 %v5350_v4, %v1080_v0 }
 0x256   : > { %v6095_v49 = vpop.f32.mrf.mxu1 }
 0x257   : > { %v1096_v14 = vadd.f32 %v6095_v49, %v5350_v4 }
 0x258   : > { %v1090_v50 = vpop.f32.mrf.mxu1 }
 0x259   : > { %v1091_v15 = vadd.f32 %v5350_v4, %v1090_v50 }
 0x269   : > { %v6098_v9 = vpop.f32.mrf.mxu1 }
 0x26a   : > { %v1106_v19 = vadd.f32 %v6098_v9, %v5350_v4 }
 0x26b   : > { %v1100_v10 = vpop.f32.mrf.mxu1 }
 0x26c   : > { %v1101_v27 = vadd.f32 %v5350_v4, %v1100_v10 }
 0x27c   : > { %v6101_v35 = vpop.f32.mrf.mxu1 }
 0x27d   : > { %v1116_v50 = vadd.f32 %v6101_v35, %v5350_v4 }
 0x27e   : > { %v7242_v36 = vpop.f32.mrf.mxu1 }
 0x27f   : > { %v1111_v34 = vadd.f32 %v5350_v4, %v7242_v36 }
 0x28f   : > { %v6104_v62 = vpop.f32.mrf.mxu1 }
 0x290   : > { %v1126_v41 = vadd.f32 %v6104_v62, %v5350_v4 }
 0x291   : > { %v1120_v63 = vpop.f32.mrf.mxu1 }
 0x292   : > { %v1121_v49 = vadd.f32 %v5350_v4, %v1120_v63 }
 0x2a2   : > { %v6107_v17 = vpop.f32.mrf.mxu1 }
 0x2a3   : > { %v1136_v38 = vadd.f32 %v6107_v17, %v5350_v4 }
 0x2a4   : > { %v7244_v3 = vpop.f32.mrf.mxu1 }
 0x2a5   : > { %v1131_v0 = vadd.f32 %v5350_v4, %v7244_v3 }
 0x2ad   : > { %v7246_v55 = vpop.f32.mrf.mxu1 }
 0x2ae   : > { %v1146_v63 = vadd.f32 %v7246_v55, %v5350_v4 }
 0x2af   : > { %v7248_v58 = vpop.f32.mrf.mxu1 }
 0x2b1   : > { %v6129_v59 = vpop.f32.mrf.mxu1 }
 0x2b2   : > { %v7265_v22 = vadd.f32 %v6129_v59, %v1076_v13 }
 0x2b3   : > { %v1271_v2 = vpop.f32.mrf.mxu1 }
 0x2b4   : > { %v7261_v16 = vadd.f32 %v1271_v2, %v1071_v8  ;;  %v1351_v43 = vsel %vm955_vm1, %v7265_v22, -inf }
 0x2b5   : > { %v6132_v5 = vpop.f32.mrf.mxu1 }
 0x2b6   : > { %v7263_v18 = vadd.f32 %v6132_v5, %v1086_v11  ;;  %v1350_v31 = vsel %vm955_vm1, %v7261_v16, -inf }
 0x2b7   : > { %v1281_v6 = vpop.f32.mrf.mxu1 }
 0x2b8   : > { %v7259_v12 = vadd.f32 %v1281_v6, %v1081_v7  ;;  %v1354_v32 = vsel %vm955_vm1, %v7263_v18, -inf  ;;  %v1141_v6 = vadd.f32 %v5350_v4, %v7248_v58 }
 0x2b9   : > { %v6135_v1 = vpop.f32.mrf.mxu1  ;;  %v1355_v45 = vmax.f32 %v1351_v43, %v1354_v32 }
 0x2ba   : > { %v1352_v23 = vsel %vm955_vm1, %v7259_v12, -inf  ;;  %v7269_v24 = vadd.f32 %v6135_v1, %v1096_v14 }
 0x2bb   : > { %v1291_v20 = vpop.f32.mrf.mxu1  ;;  %v1353_v40 = vmax.f32 %v1350_v31, %v1352_v23 }
 0x2bc   : > { %v7271_v25 = vadd.f32 %v1291_v20, %v1091_v15  ;;  %v1358_v42 = vsel %vm955_vm1, %v7269_v24, -inf }
 0x2bd   : > { %v6138_v30 = vpop.f32.mrf.mxu1  ;;  %v1359_v53 = vmax.f32 %v1355_v45, %v1358_v42 }
 0x2be   : > { %v1356_v33 = vsel %vm955_vm1, %v7271_v25, -inf  ;;  %v7279_v39 = vadd.f32 %v6138_v30, %v1106_v19 }
 0x2bf   : > { %v1301_v37 = vpop.f32.mrf.mxu1  ;;  %v1357_v46 = vmax.f32 %v1353_v40, %v1356_v33 }
 0x2c0   : > { %v7285_v44 = vadd.f32 %v1301_v37, %v1101_v27  ;;  %v1362_v48 = vsel %vm955_vm1, %v7279_v39, -inf }
 0x2c1   : > { %v6141_v47 = vpop.f32.mrf.mxu1  ;;  %v1363_v21 = vmax.f32 %v1359_v53, %v1362_v48 }
 0x2c2   : > { %v1360_v52 = vsel %vm955_vm1, %v7285_v44, -inf  ;;  %v7296_v60 = vadd.f32 %v6141_v47, %v1116_v50  ;;  %v5395_v50 = vld [vmem:[%s8377_s7 + $0x60] sm:$0xff] }
 0x2c3   : > { %v1361_v54 = vmax.f32 %v1357_v46, %v1360_v52  ;;  %v1311_v57 = vpop.f32.mrf.mxu1 }
 0x2c4   : > { %v7299_v2 = vadd.f32 %v1311_v57, %v1111_v34  ;;  %v1372_v3 = vsel %vm955_vm1, %v7296_v60, -inf }
 0x2c5   : > { %v6144_v26 = vpop.f32.mrf.mxu1  ;;  %v1364_v9 = vmax.f32 %v1361_v54, %v1363_v21  ;;  %v5398_v21 = vld [vmem:[%s8377_s7 + $0x78] sm:$0xff] }
 0x2c6   : > { %v7292_v56 = vadd.f32 %v6144_v26, %v1126_v41  ;;  %v1371_v11 = vsel %vm955_vm1, %v7299_v2, -inf  ;;  %v5397_v41 = vld [vmem:[%s8377_s7 + $0x70] sm:$0xff] }
 0x2c7   : > { %v1321_v10 = vpop.f32.mrf.mxu1  ;;  %v1365_v62 = vrot.slane %v1364_v9, 4 }
 0x2c8   : > { %v7294_v59 = vadd.f32 %v1321_v10, %v1121_v49  ;;  %v1375_v36 = vsel %vm955_vm1, %v7292_v56, -inf  ;;  %v5396_v49 = vld [vmem:[%s8377_s7 + $0x68] sm:$0xff]  ;;  %v1571_v10 = vmax.f32 %v7261_v16, 0.0 }
 0x2c9   : > { %v6147_v61 = vpop.f32.mrf.mxu1  ;;  %v1366_v14 = vmax.f32 %v1364_v9, %v1365_v62  ;;  %v1376_v15 = vmax.f32 %v1372_v3, %v1375_v36  ;;  %v5386_v9 = vld [vmem:[%s8373_s3 + $0x58] sm:$0xff]  ;;  %v5393_v36 = vld [vmem:[%s8377_s7 + $0x50] sm:$0xff]  ;;  %v1575_v3 = vmax.f32 %v7271_v25, 0.0 }
 0x2ca   : > { %v7301_v5 = vadd.f32 %v6147_v61, %v1136_v38  ;;  %v1373_v17 = vsel %vm955_vm1, %v7294_v59, -inf  ;;  %v5385_v38 = vld [vmem:[%s8373_s3 + $0x50] sm:$0xff]  ;;  %v5384_v61 = vld [vmem:[%s8373_s3 + $0x48] sm:$0xff]  ;;  %v5394_v62 = vld [vmem:[%s8377_s7 + $0x58] sm:$0xff] }
 0x2cb   : > { %v1331_v35 = vpop.f32.mrf.mxu1  ;;  %v1374_v19 = vmax.f32 %v1371_v11, %v1373_v17  ;;  %v1367_v31 = vrot.slane %v1366_v14, 2  ;;  %v5392_v17 = vld [vmem:[%s8377_s7 + $0x48] sm:$0xff]  ;;  %v1576_v11 = vmax.f32 %v7269_v24, 0.0 }
 0x2cc   : > { %v7308_v7 = vadd.f32 %v1331_v35, %v1131_v0  ;;  %v1379_v55 = vsel %vm955_vm1, %v7301_v5, -inf  ;;  %v5383_v0 = vld [vmem:[%s8373_s3 + $0x40] sm:$0xff]  ;;  %v1572_v35 = vmax.f32 %v7265_v22, 0.0 }
 0x2cd   : > { %v6150_v8 = vpop.f32.mrf.mxu1  ;;  %v1380_v23 = vmax.f32 %v1376_v15, %v1379_v55  ;;  %v1368_v37 = vmax.f32 %v1366_v14, %v1367_v31  ;;  %v1577_v55 = vmax.f32 %v7285_v44, 0.0  ;;  %v1579_v14 = vmax.f32 %v7299_v2, 0.0 }
 0x2ce   : > { %v1377_v13 = vsel %vm955_vm1, %v7308_v7, -inf  ;;  %v7319_v1 = vadd.f32 %v6150_v8, %v1146_v63  ;;  %v1573_v63 = vmax.f32 %v7259_v12, 0.0  ;;  %v5391_v8 = vld [vmem:[%s8377_s7 + $0x40] sm:$0xff]  ;;  %v1580_v15 = vmax.f32 %v7296_v60, 0.0 }
 0x2cf   : > { %v1341_v20 = vpop.f32.mrf.mxu1  ;;  %v1378_v27 = vmax.f32 %v1374_v19, %v1377_v13  ;;  %v1369_v45 = vrot.slane %v1368_v37, 1  ;;  %v1578_v13 = vmax.f32 %v7279_v39, 0.0  ;;  %v1581_v19 = vmax.f32 %v7294_v59, 0.0 }
 0x2d0   : > { %v1383_v58 = vsel %vm955_vm1, %v7319_v1, -inf  ;;  %v7323_v4 = vadd.f32 %v1341_v20, %v1141_v6  ;;  %v1574_v6 = vmax.f32 %v7263_v18, 0.0  ;;  %v1582_v20 = vmax.f32 %v7292_v56, 0.0 }
 0x2d1   : > { %v1384_v32 = vmax.f32 %v1380_v23, %v1383_v58  ;;  %v1370_v52 = vmax.f32 %v1368_v37, %v1369_v45  ;;  %v1583_v58 = vmax.f32 %v7308_v7, 0.0  ;;  %v1584_v23 = vmax.f32 %v7301_v5, 0.0 }
 0x2d2   : > { %v1381_v30 = vsel %vm955_vm1, %v7323_v4, -inf }
 0x2d3   : > { %v1382_v33 = vmax.f32 %v1378_v27, %v1381_v30  ;;  %v1410_v54 = vmax.f32 %v1370_v52, 0.0  ;;  %v1585_v27 = vmax.f32 %v7323_v4, 0.0  ;;  %v1586_v30 = vmax.f32 %v7319_v1, 0.0 }
 0x2d5   : > { %v1385_v40 = vmax.f32 %v1382_v33, %v1384_v32 }
 0x2d7   : > { %v1386_v43 = vrot.slane %v1385_v40, 4 }
 0x2d9   : > { %v1387_v42 = vmax.f32 %v1385_v40, %v1386_v43 }
 0x2db   : > { %v1388_v46 = vrot.slane %v1387_v42, 2 }
 0x2dd   : > { %v1389_v47 = vmax.f32 %v1387_v42, %v1388_v46 }
 0x2df   : > { %v1390_v48 = vrot.slane %v1389_v47, 1 }
 0x2e1   : > { %v1391_v53 = vmax.f32 %v1389_v47, %v1390_v48 }
 0x2e3   : > { %v1411_v57 = vmax.f32 %v1391_v53, 0.0  ;;  %v1498_v34 = vsel %vm1422_vm3, %v1391_v53, %v1370_v52 }
 0x2e5   : > { %v1423_v26 = vsel %vm1422_vm3, %v1411_v57, %v1410_v54 }
 0x2e6   : > { %6160 = vmatmul.mubr.msk.f32.vlgmr.msra.gmra.mxu0 %vm955_vm1, %v1423_v26 }
 0x2e7   : > { %6163 = vmatpush3.msra.mxu0 %v5398_v21  ;;  %6170 = vmatprep.mubr.msk.f32.mxu0 %vm6779_vm2, %v6778_v51 }
 0x2e8   : > { %6164 = vmatprep.subr.mxu0 %v6778_v51 }
 0x2e9   : > { %6165 = vmatpush3.msra.mxu0 %v5397_v41 }
 0x2ea   : > { %6166 = vmatprep.subr.mxu0 %v6778_v51 }
 0x2eb   : > { %6167 = vmatpush3.msra.mxu0 %v5396_v49 }
 0x2ec   : > { %6168 = vmatprep.subr.mxu0 %v6778_v51 }
 0x2ed   : > { %6169 = vmatpush3.msra.mxu0 %v5395_v50 }
 0x2ee   : > { %6171 = vmatmul.mubr.msk.f32.vlgmr.msra.gmra.mxu0 %vm955_vm1, %v1498_v34  ;;  %6173 = vmatprep.subr.mxu0 %v5386_v9 }
 0x2ef   : > { %6174 = vmatpush3.msra.mxu0 %v5386_v9  ;;  %6181 = vmatprep.mubr.msk.f32.mxu0 %vm955_vm1, %v1571_v10 }
 0x2f0   : > { %6175 = vmatprep.subr.mxu0 %v5385_v38 }
 0x2f1   : > { %6176 = vmatpush3.msra.mxu0 %v5385_v38 }
 0x2f2   : > { %6177 = vmatprep.subr.mxu0 %v5384_v61 }
 0x2f3   : > { %6178 = vmatpush3.msra.mxu0 %v5384_v61 }
 0x2f4   : > { %6179 = vmatprep.subr.mxu0 %v5383_v0 }
 0x2f5   : > { %6180 = vmatpush3.msra.mxu0 %v5383_v0 }
 0x2f6   : > { %6182 = vmatmul.mubr.msk.f32.vlgmr.msra.gmra.mxu0 %vm955_vm1, %v1572_v35  ;;  %6237 = vmatprep.subr.mxu0 %v5394_v62 }
 0x2f7   : > { %6184 = vmatprep.mubr.msk.f32.mxu0 %vm955_vm1, %v1573_v63  ;;  %6238 = vmatpush3.msra.mxu0 %v5394_v62 }
 0x2f8   : > { %6239 = vmatprep.subr.mxu0 %v5393_v36 }
 0x2f9   : > { %6240 = vmatpush3.msra.mxu0 %v5393_v36 }
 0x2fa   : > { %6185 = vmatmul.mubr.msk.f32.gmra.mxu0 %vm955_vm1, %v1574_v6  ;;  %6241 = vmatprep.subr.mxu0 %v5392_v17 }
 0x2fb   : > { %6187 = vmatprep.mubr.msk.f32.mxu0 %vm955_vm1, %v1575_v3  ;;  %6242 = vmatpush3.msra.mxu0 %v5392_v17 }
 0x2fc   : > { %6243 = vmatprep.subr.mxu0 %v5391_v8 }
 0x2fd   : > { %6244 = vmatpush3.msra.mxu0 %v5391_v8 }
 0x2fe   : > { %6188 = vmatmul.mubr.msk.f32.gmra.mxu0 %vm955_vm1, %v1576_v11 }
 0x2ff   : > { %6190 = vmatprep.mubr.msk.f32.mxu0 %vm955_vm1, %v1577_v55 }
 0x302   : > { %6191 = vmatmul.mubr.msk.f32.gmra.mxu0 %vm955_vm1, %v1578_v13 }
 0x303   : > { %6193 = vmatprep.mubr.msk.f32.mxu0 %vm955_vm1, %v1579_v14 }
 0x306   : > { %6194 = vmatmul.mubr.msk.f32.gmra.mxu0 %vm955_vm1, %v1580_v15 }
 0x307   : > { %6196 = vmatprep.mubr.msk.f32.mxu0 %vm955_vm1, %v1581_v19 }
 0x30a   : > { %6197 = vmatmul.mubr.msk.f32.gmra.mxu0 %vm955_vm1, %v1582_v20 }
 0x30b   : > { %6199 = vmatprep.mubr.msk.f32.mxu0 %vm955_vm1, %v1583_v58 }
 0x30e   : > { %6200 = vmatmul.mubr.msk.f32.gmra.mxu0 %vm955_vm1, %v1584_v23 }
 0x30f   : > { %6202 = vmatprep.mubr.msk.f32.mxu0 %vm955_vm1, %v1585_v27 }
 0x312   : > { %6203 = vmatmul.mubr.msk.f32.gmra.mxu0 %vm955_vm1, %v1586_v30 }
 0x313   : > { %6245 = vmatprep.mubr.msk.f32.mxu0 %vm955_vm1, %v7261_v16  ;;  %v5419_v16 = vld [vmem:[%s8375_s5 + $0x20] sm:$0xff] }
 0x316   : > { %6246 = vmatmul.mubr.msk.f32.vlgmr.msra.gmra.mxu0 %vm955_vm1, %v7265_v22 }
 0x317   : > { %6248 = vmatprep.mubr.msk.f32.mxu0 %vm955_vm1, %v7259_v12  ;;  %v5420_v12 = vld [vmem:[%s8375_s5 + $0x28] sm:$0xff] }
 0x318   : > { %6209 = vmatprep.subr.mxu1 %v5420_v12 }
 0x319   : > { %6210 = vmatpush3.msra.mxu1 %v5420_v12 }
 0x31a   : > { %6249 = vmatmul.mubr.msk.f32.gmra.mxu0 %vm955_vm1, %v7263_v18  ;;  %6211 = vmatprep.subr.mxu1 %v5419_v16  ;;  %v6780_v18 = vmov 1966171168  }
 0x31b   : > { %6251 = vmatprep.mubr.msk.f32.mxu0 %vm955_vm1, %v7271_v25  ;;  %6212 = vmatpush3.msra.mxu1 %v5419_v16  ;;  %v1782_v22 = vunpack.c.l.s4 %v6780_v18 }
 0x31c   : > { %6269 = vmatprep.subr.mxu1 %v6778_v51 }
 0x31e   : > { %6252 = vmatmul.mubr.msk.f32.gmra.mxu0 %vm955_vm1, %v7269_v24  ;;  %v1783_v24 = vunpack.c.0.s8 %v1782_v22 }
 0x31f   : > { %6254 = vmatprep.mubr.msk.f32.mxu0 %vm955_vm1, %v7285_v44 }
 0x322   : > { %6255 = vmatmul.mubr.msk.f32.gmra.mxu0 %vm955_vm1, %v7279_v39  ;;  %v5400_v39 = vld [vmem:[%s8374_s4 + $0x1] ss:$0 sm:$0xff] }
 0x323   : > { %6257 = vmatprep.mubr.msk.f32.mxu0 %vm955_vm1, %v7299_v2 }
 0x326   : > { %6258 = vmatmul.mubr.msk.f32.gmra.mxu0 %vm955_vm1, %v7296_v60 }
 0x327   : > { %6260 = vmatprep.mubr.msk.f32.mxu0 %vm955_vm1, %v7294_v59 }
 0x32a   : > { %6261 = vmatmul.mubr.msk.f32.gmra.mxu0 %vm955_vm1, %v7292_v56  ;;  %v7447_v56 = vsub.s32 %v1783_v24, %v6956_v28  ;;  %v5464_v24 = vld [vmem:[%s8373_s3 + $0xb8] sm:$0xff] }
 0x32b   : > { %6263 = vmatprep.mubr.msk.f32.mxu0 %vm955_vm1, %v7308_v7 }
 0x32e   : > { %6264 = vmatmul.mubr.msk.f32.gmra.mxu0 %vm955_vm1, %v7301_v5 }
 0x32f   : > { %6266 = vmatprep.mubr.msk.f32.mxu0 %vm955_vm1, %v7323_v4 }
 0x332   : > { %6267 = vmatmul.mubr.msk.f32.gmra.mxu0 %vm955_vm1, %v7319_v1 }
 0x3a6   : > { %v1492_v25 = vpop.f32.mrf.mxu0 }
 0x3a7   : > { %v1493_v59 = vadd.f32 %v5400_v39, %v1492_v25  ;;  %v5463_v25 = vld [vmem:[%s8373_s3 + $0xb0] sm:$0xff]  ;;  %v5462_v39 = vld [vmem:[%s8373_s3 + $0xa8] sm:$0xff] }
 0x3a8   : > { %v6161_v44 = vpop.f32.mrf.mxu0 }
 0x3a9   : > { %v1787_v60 = vrot.slane %v1493_v59, %v7447_v56  ;;  %v5461_v44 = vld [vmem:[%s8373_s3 + $0xa0] sm:$0xff] }
 0x3ab   : > { %v1795_v7 = vrot.slane %v1787_v60, %v7447_v56  ;;  %v1788_v46 = vcombine.high %v1787_v60, %v1787_v60 }
 0x3ad   : > { %v1806_v1 = vrot.slane %v1795_v7, %v6960_v29  ;;  %v1802_v21 = vrot.slane %v1788_v46, %v7447_v56 }
 0x3ae   : > { %v7450_v2 = vpop.f32.mrf.mxu0 }
 0x3af   : > { %v1810_v34 = vrot.slane %v1802_v21, %v6960_v29 }
 0x3b0   : > { %v6172_v5 = vpop.f32.mrf.mxu0 }
 0x3b6   : > { %v6183_v4 = vpop.f32.mrf.mxu0 }
 0x3b7   : > { %v1814_v31 = vadd.f32 %v6183_v4, %v1806_v1 }
 0x3b8   : > { %v1701_v32 = vpop.f32.mrf.mxu0 }
 0x3b9   : > { %v1813_v33 = vadd.f32 %v1806_v1, %v1701_v32  ;;  %v1830_v43 = vmax.f32 %v1814_v31, 0.0 }
 0x3ba   : > { %v6186_v40 = vpop.f32.mrf.mxu0 }
 0x3bb   : > { %v1829_v37 = vmax.f32 %v1813_v33, 0.0  ;;  %v1816_v42 = vadd.f32 %v6186_v40, %v1806_v1  ;;  %v7492_v40 = vrot.slane %v7450_v2, %v7447_v56  ;;  %v5496_v2 = vld [vmem:[%s8375_s5 + $0x58] sm:$0xff] }
 0x3bc   : > { %v1711_v28 = vpop.f32.mrf.mxu0  ;;  %6323 = vmatprep.subr.mxu0 %v5496_v2 }
 0x3bd   : > { %v1815_v45 = vadd.f32 %v1806_v1, %v1711_v28  ;;  %6213 = vmatprep.mubr.msk.f32.mxu1 %vm955_vm1, %v1829_v37  ;;  %v1832_v52 = vmax.f32 %v1816_v42, 0.0  ;;  %v2259_v46 = vrot.slane %v7492_v40, %v7447_v56  ;;  %6324 = vmatpush3.msra.mxu0 %v5496_v2 }
 0x3be   : > { %v6189_v47 = vpop.f32.mrf.mxu0  ;;  %6214 = vmatmul.mubr.msk.f32.vlgmr.msra.gmra.mxu1 %vm955_vm1, %v1830_v43  ;;  %v7497_v43 = vld [vmem:[%s8376_s6 + $0x1] ss:$0 sm:$0xff] }
 0x3bf   : > { %v1831_v48 = vmax.f32 %v1815_v45, 0.0  ;;  %v1818_v53 = vadd.f32 %v6189_v47, %v1806_v1  ;;  %6270 = vmatpush3.msra.mxu1 %v5464_v24 }
 0x3c0   : > { %v1721_v54 = vpop.f32.mrf.mxu0  ;;  %6271 = vmatprep.subr.mxu1 %v6778_v51 }
 0x3c1   : > { %v1817_v57 = vadd.f32 %v1806_v1, %v1721_v54  ;;  %6216 = vmatprep.mubr.msk.f32.mxu1 %vm955_vm1, %v1831_v48  ;;  %v1834_v49 = vmax.f32 %v1818_v53, 0.0  ;;  %6272 = vmatpush3.msra.mxu1 %v5463_v25 }
 0x3c2   : > { %v6192_v26 = vpop.f32.mrf.mxu0  ;;  %6217 = vmatmul.mubr.msk.f32.gmra.mxu1 %vm955_vm1, %v1832_v52  ;;  %6273 = vmatprep.subr.mxu1 %v6778_v51  ;;  %v5495_v52 = vld [vmem:[%s8375_s5 + $0x50] sm:$0xff] }
 0x3c3   : > { %v1833_v41 = vmax.f32 %v1817_v57, 0.0  ;;  %v1820_v50 = vadd.f32 %v6192_v26, %v1806_v1  ;;  %6274 = vmatpush3.msra.mxu1 %v5462_v39  ;;  %6325 = vmatprep.subr.mxu0 %v5495_v52 }
 0x3c4   : > { %v1731_v9 = vpop.f32.mrf.mxu0  ;;  %6275 = vmatprep.subr.mxu1 %v6778_v51  ;;  %6326 = vmatpush3.msra.mxu0 %v5495_v52 }
 0x3c5   : > { %v1819_v10 = vadd.f32 %v1806_v1, %v1731_v9  ;;  %6219 = vmatprep.mubr.msk.f32.mxu1 %vm955_vm1, %v1833_v41  ;;  %v1836_v0 = vmax.f32 %v1820_v50, 0.0  ;;  %6276 = vmatpush3.msra.mxu1 %v5461_v44 }
 0x3c6   : > { %v6195_v38 = vpop.f32.mrf.mxu0  ;;  %6220 = vmatmul.mubr.msk.f32.gmra.mxu1 %vm955_vm1, %v1834_v49  ;;  %6280 = vmatprep.subr.mxu1 %v6778_v51  ;;  %v2270_v49 = vrot.slane %v2259_v46, %v6960_v29 }
 0x3c7   : > { %v1835_v61 = vmax.f32 %v1819_v10, 0.0  ;;  %v1822_v62 = vadd.f32 %v6195_v38, %v1810_v34 }
 0x3c8   : > { %v1741_v35 = vpop.f32.mrf.mxu0 }
 0x3c9   : > { %v1821_v63 = vadd.f32 %v1810_v34, %v1741_v35  ;;  %6222 = vmatprep.mubr.msk.f32.mxu1 %vm955_vm1, %v1835_v61  ;;  %v1838_v6 = vmax.f32 %v1822_v62, 0.0 }
 0x3ca   : > { %v6198_v36 = vpop.f32.mrf.mxu0  ;;  %6223 = vmatmul.mubr.msk.f32.gmra.mxu1 %vm955_vm1, %v1836_v0 }
 0x3cb   : > { %v1837_v17 = vmax.f32 %v1821_v63, 0.0  ;;  %v1824_v3 = vadd.f32 %v6198_v36, %v1810_v34 }
 0x3cc   : > { %v1751_v8 = vpop.f32.mrf.mxu0 }
 0x3cd   : > { %v1823_v11 = vadd.f32 %v1810_v34, %v1751_v8  ;;  %6225 = vmatprep.mubr.msk.f32.mxu1 %vm955_vm1, %v1837_v17  ;;  %v1840_v14 = vmax.f32 %v1824_v3, 0.0 }
 0x3ce   : > { %v6201_v55 = vpop.f32.mrf.mxu0  ;;  %6226 = vmatmul.mubr.msk.f32.gmra.mxu1 %vm955_vm1, %v1838_v6 }
 0x3cf   : > { %v1839_v13 = vmax.f32 %v1823_v11, 0.0  ;;  %v1826_v15 = vadd.f32 %v6201_v55, %v1810_v34 }
 0x3d0   : > { %v1761_v19 = vpop.f32.mrf.mxu0 }
 0x3d1   : > { %v1825_v20 = vadd.f32 %v1810_v34, %v1761_v19  ;;  %6228 = vmatprep.mubr.msk.f32.mxu1 %vm955_vm1, %v1839_v13  ;;  %v1842_v27 = vmax.f32 %v1826_v15, 0.0 }
 0x3d2   : > { %v6204_v58 = vpop.f32.mrf.mxu0  ;;  %6229 = vmatmul.mubr.msk.f32.gmra.mxu1 %vm955_vm1, %v1840_v14 }
 0x3d3   : > { %v1841_v23 = vmax.f32 %v1825_v20, 0.0  ;;  %v1828_v30 = vadd.f32 %v6204_v58, %v1810_v34  ;;  %v2252_v20 = vcombine.high %v7492_v40, %v7492_v40 }
 0x3d4   : > { %v1771_v12 = vpop.f32.mrf.mxu0 }
 0x3d5   : > { %v1827_v16 = vadd.f32 %v1810_v34, %v1771_v12  ;;  %6231 = vmatprep.mubr.msk.f32.mxu1 %vm955_vm1, %v1841_v23  ;;  %v1844_v22 = vmax.f32 %v1828_v30, 0.0 }
 0x3d6   : > { %6232 = vmatmul.mubr.msk.f32.gmra.mxu1 %vm955_vm1, %v1842_v27  ;;  %v6247_v59 = vpop.f32.mrf.mxu0 }
 0x3d7   : > { %v1843_v18 = vmax.f32 %v1827_v16, 0.0 }
 0x3d8   : > { %v2165_v60 = vpop.f32.mrf.mxu0 }
 0x3d9   : > { %6234 = vmatprep.mubr.msk.f32.mxu1 %vm955_vm1, %v1843_v18 }
 0x3da   : > { %6235 = vmatmul.mubr.msk.f32.gmra.mxu1 %vm955_vm1, %v1844_v22  ;;  %v6250_v5 = vpop.f32.mrf.mxu0 }
 0x3db   : > { %6277 = vmatprep.mubr.msk.f32.mxu1 %vm6779_vm2, %v6778_v51 }
 0x3dc   : > { %v2175_v7 = vpop.f32.mrf.mxu0 }
 0x3de   : > { %v6253_v1 = vpop.f32.mrf.mxu0 }
 0x3e0   : > { %v2185_v4 = vpop.f32.mrf.mxu0 }
 0x3e2   : > { %v6256_v31 = vpop.f32.mrf.mxu0 }
 0x3e4   : > { %v2195_v33 = vpop.f32.mrf.mxu0 }
 0x3e6   : > { %v7499_v28 = vpop.f32.mrf.mxu0 }
 0x3e8   : > { %v2205_v21 = vpop.f32.mrf.mxu0 }
 0x3ea   : > { %v6262_v35 = vpop.f32.mrf.mxu0 }
 0x3ec   : > { %v2215_v58 = vpop.f32.mrf.mxu0 }
 0x47e   : > { %v6215_v32 = vpop.f32.mrf.mxu1 }
 0x47f   : > { %v1978_v53 = vadd.f32 %v6215_v32, %v7497_v43 }
 0x480   : > { %v1972_v37 = vpop.f32.mrf.mxu1 }
 0x481   : > { %v1973_v47 = vadd.f32 %v7497_v43, %v1972_v37  ;;  %v2171_v34 = vadd.f32 %v6247_v59, %v1978_v53 }
 0x482   : > { %v6218_v42 = vpop.f32.mrf.mxu1 }
 0x483   : > { %v1988_v45 = vadd.f32 %v6218_v42, %v7497_v43  ;;  %v2166_v50 = vadd.f32 %v2165_v60, %v1973_v47  ;;  %v7523_v8 = vadd.f32 %v2270_v49, %v2171_v34  ;;  %v6265_v60 = vpop.f32.mrf.mxu0 }
 0x484   : > { %v1982_v48 = vpop.f32.mrf.mxu1 }
 0x485   : > { %v1983_v54 = vadd.f32 %v7497_v43, %v1982_v48  ;;  %v2181_v26 = vadd.f32 %v6250_v5, %v1988_v45  ;;  %v7521_v6 = vadd.f32 %v2270_v49, %v2166_v50  ;;  %v2294_v22 = vsel %vm955_vm1, %v7523_v8, -inf  ;;  %v2225_v48 = vpop.f32.mrf.mxu0 }
 0x486   : > { %v6221_v57 = vpop.f32.mrf.mxu1 }
 0x487   : > { %v1998_v41 = vadd.f32 %v6221_v57, %v7497_v43  ;;  %v2176_v9 = vadd.f32 %v2175_v7, %v1983_v54  ;;  %v7518_v63 = vadd.f32 %v2270_v49, %v2181_v26  ;;  %v2293_v27 = vsel %vm955_vm1, %v7521_v6, -inf }
 0x488   : > { %v1992_v10 = vpop.f32.mrf.mxu1 }
 0x489   : > { %v1993_v38 = vadd.f32 %v7497_v43, %v1992_v10  ;;  %v7516_v61 = vadd.f32 %v2270_v49, %v2176_v9  ;;  %v2191_v0 = vadd.f32 %v6253_v1, %v1998_v41  ;;  %v2297_v23 = vsel %vm955_vm1, %v7518_v63, -inf }
 0x48a   : > { %v6224_v62 = vpop.f32.mrf.mxu1  ;;  %v2298_v25 = vmax.f32 %v2294_v22, %v2297_v23 }
 0x48b   : > { %v2186_v36 = vadd.f32 %v2185_v4, %v1993_v38  ;;  %v2008_v17 = vadd.f32 %v6224_v62, %v7497_v43  ;;  %v2295_v13 = vsel %vm955_vm1, %v7516_v61, -inf  ;;  %v7529_v14 = vadd.f32 %v2270_v49, %v2191_v0  ;;  %v6268_v0 = vpop.f32.mrf.mxu0 }
 0x48c   : > { %v2002_v3 = vpop.f32.mrf.mxu1  ;;  %v2296_v24 = vmax.f32 %v2293_v27, %v2295_v13 }
 0x48d   : > { %v7525_v11 = vadd.f32 %v2270_v49, %v2186_v36  ;;  %v2201_v55 = vadd.f32 %v6256_v31, %v2008_v17  ;;  %v2003_v15 = vadd.f32 %v7497_v43, %v2002_v3  ;;  %v2301_v39 = vsel %vm955_vm1, %v7529_v14, -inf }
 0x48e   : > { %v6227_v19 = vpop.f32.mrf.mxu1  ;;  %v2266_v31 = vrot.slane %v2252_v20, %v7447_v56  ;;  %v2302_v37 = vmax.f32 %v2298_v25, %v2301_v39 }
 0x48f   : > { %v2299_v30 = vsel %vm955_vm1, %v7525_v11, -inf  ;;  %v7540_v12 = vadd.f32 %v2270_v49, %v2201_v55  ;;  %v2196_v16 = vadd.f32 %v2195_v33, %v2003_v15  ;;  %v2018_v7 = vadd.f32 %v6227_v19, %v7497_v43 }
 0x490   : > { %v2012_v18 = vpop.f32.mrf.mxu1  ;;  %v2300_v5 = vmax.f32 %v2296_v24, %v2299_v30  ;;  %v2274_v57 = vrot.slane %v2266_v31, %v6960_v29 }
 0x491   : > { %v7546_v44 = vadd.f32 %v2270_v49, %v2196_v16  ;;  %v2013_v1 = vadd.f32 %v7497_v43, %v2012_v18  ;;  %v2305_v32 = vsel %vm955_vm1, %v7540_v12, -inf  ;;  %v2211_v52 = vadd.f32 %v7499_v28, %v2018_v7 }
 0x492   : > { %v6230_v59 = vpop.f32.mrf.mxu1  ;;  %v2306_v2 = vmax.f32 %v2302_v37, %v2305_v32 }
 0x493   : > { %v2028_v4 = vadd.f32 %v6230_v59, %v7497_v43  ;;  %v2303_v33 = vsel %vm955_vm1, %v7546_v44, -inf  ;;  %v2206_v53 = vadd.f32 %v2205_v21, %v2013_v1  ;;  %v7565_v62 = vadd.f32 %v2274_v57, %v2211_v52 }
 0x494   : > { %v2022_v40 = vpop.f32.mrf.mxu1  ;;  %v2304_v42 = vmax.f32 %v2300_v5, %v2303_v33 }
 0x495   : > { %v2221_v45 = vadd.f32 %v6262_v35, %v2028_v4  ;;  %v2023_v46 = vadd.f32 %v7497_v43, %v2022_v40  ;;  %v7567_v28 = vadd.f32 %v2274_v57, %v2206_v53  ;;  %v2315_v23 = vsel %vm955_vm1, %v7565_v62, -inf }
 0x496   : > { %v6233_v47 = vpop.f32.mrf.mxu1  ;;  %v2307_v49 = vmax.f32 %v2304_v42, %v2306_v2 }
 0x497   : > { %v2038_v54 = vadd.f32 %v6233_v47, %v7497_v43  ;;  %v2216_v26 = vadd.f32 %v2215_v58, %v2023_v46  ;;  %v7561_v10 = vadd.f32 %v2274_v57, %v2221_v45  ;;  %v2235_v58 = vpop.f32.mrf.mxu0  ;;  %v2314_v27 = vsel %vm955_vm1, %v7567_v28, -inf }
 0x498   : > { %v2032_v41 = vpop.f32.mrf.mxu1  ;;  %v2308_v3 = vrot.slane %v2307_v49, 4 }
 0x499   : > { %v2231_v50 = vadd.f32 %v6265_v60, %v2038_v54  ;;  %v2033_v9 = vadd.f32 %v7497_v43, %v2032_v41  ;;  %v7563_v34 = vadd.f32 %v2274_v57, %v2216_v26  ;;  %v2318_v13 = vsel %vm955_vm1, %v7561_v10, -inf  ;;  %v5472_v54 = vld [vmem:[%s8377_s7 + $0xb8] sm:$0xff]  ;;  %v5471_v26 = vld [vmem:[%s8377_s7 + $0xb0] sm:$0xff]  ;;  %v5470_v41 = vld [vmem:[%s8377_s7 + $0xa8] sm:$0xff] }
 0x49a   : > { %v6236_v38 = vpop.f32.mrf.mxu1  ;;  %v2309_v24 = vmax.f32 %v2307_v49, %v2308_v3  ;;  %v2319_v25 = vmax.f32 %v2315_v23, %v2318_v13  ;;  %v5469_v49 = vld [vmem:[%s8377_s7 + $0xa0] sm:$0xff]  ;;  %v2514_v3 = vmax.f32 %v7523_v8, 0.0  ;;  %v2515_v13 = vmax.f32 %v7516_v61, 0.0 }
 0x49b   : > { %v2226_v21 = vadd.f32 %v2225_v48, %v2033_v9  ;;  %v2048_v35 = vadd.f32 %v6236_v38, %v7497_v43  ;;  %v7570_v36 = vadd.f32 %v2274_v57, %v2231_v50  ;;  %v2316_v15 = vsel %vm955_vm1, %v7563_v34, -inf  ;;  %v5460_v50 = vld [vmem:[%s8373_s3 + $0x98] sm:$0xff]  ;;  %v5465_v23 = vld [vmem:[%s8377_s7 + $0x80] sm:$0xff] }
 0x49c   : > { %v2042_v17 = vpop.f32.mrf.mxu1  ;;  %v2317_v39 = vmax.f32 %v2314_v27, %v2316_v15  ;;  %v2310_v1 = vrot.slane %v2309_v24, 2  ;;  %v2513_v38 = vmax.f32 %v7521_v6, 0.0  ;;  %v5467_v15 = vld [vmem:[%s8377_s7 + $0x90] sm:$0xff]  ;;  %v2518_v27 = vmax.f32 %v7529_v14, 0.0 }
 0x49d   : > { %v7572_v55 = vadd.f32 %v2274_v57, %v2226_v21  ;;  %v2241_v19 = vadd.f32 %v6268_v0, %v2048_v35  ;;  %v2043_v20 = vadd.f32 %v7497_v43, %v2042_v17  ;;  %v2322_v30 = vsel %vm955_vm1, %v7570_v36, -inf  ;;  %v5459_v0 = vld [vmem:[%s8373_s3 + $0x90] sm:$0xff]  ;;  %v5458_v21 = vld [vmem:[%s8373_s3 + $0x88] sm:$0xff]  ;;  %v5457_v35 = vld [vmem:[%s8373_s3 + $0x80] sm:$0xff] }
 0x49e   : > { %v2323_v60 = vmax.f32 %v2319_v25, %v2322_v30  ;;  %v2311_v33 = vmax.f32 %v2309_v24, %v2310_v1  ;;  %v5468_v17 = vld [vmem:[%s8377_s7 + $0x98] sm:$0xff]  ;;  %v2519_v30 = vmax.f32 %v7546_v44, 0.0  ;;  %v2522_v24 = vmax.f32 %v7565_v62, 0.0 }
 0x49f   : > { %v2320_v16 = vsel %vm955_vm1, %v7572_v55, -inf  ;;  %v7587_v18 = vadd.f32 %v2274_v57, %v2241_v19  ;;  %v2236_v22 = vadd.f32 %v2235_v58, %v2043_v20  ;;  %v5466_v19 = vld [vmem:[%s8377_s7 + $0x88] sm:$0xff]  ;;  %v2516_v20 = vmax.f32 %v7518_v63, 0.0 }
 0x4a0   : > { %v2321_v5 = vmax.f32 %v2317_v39, %v2320_v16  ;;  %v2312_v45 = vrot.slane %v2311_v33, 1  ;;  %v2517_v58 = vmax.f32 %v7525_v11, 0.0  ;;  %v2520_v16 = vmax.f32 %v7540_v12, 0.0 }
 0x4a1   : > { %v2326_v43 = vsel %vm955_vm1, %v7587_v18, -inf  ;;  %v7591_v59 = vadd.f32 %v2274_v57, %v2236_v22  ;;  %v2521_v22 = vmax.f32 %v7567_v28, 0.0  ;;  %v2523_v25 = vmax.f32 %v7563_v34, 0.0 }
 0x4a2   : > { %v2327_v4 = vmax.f32 %v2323_v60, %v2326_v43  ;;  %v2313_v47 = vmax.f32 %v2311_v33, %v2312_v45  ;;  %v2524_v39 = vmax.f32 %v7561_v10, 0.0  ;;  %v2525_v43 = vmax.f32 %v7572_v55, 0.0 }
 0x4a3   : > { %v2324_v7 = vsel %vm955_vm1, %v7591_v59, -inf  ;;  %v2526_v60 = vmax.f32 %v7570_v36, 0.0 }
 0x4a4   : > { %v2325_v31 = vmax.f32 %v2321_v5, %v2324_v7  ;;  %v2353_v52 = vmax.f32 %v2313_v47, 0.0  ;;  %v2527_v5 = vmax.f32 %v7591_v59, 0.0  ;;  %v2528_v7 = vmax.f32 %v7587_v18, 0.0 }
 0x4a6   : > { %v2328_v32 = vmax.f32 %v2325_v31, %v2327_v4 }
 0x4a8   : > { %v2329_v40 = vrot.slane %v2328_v32, 4 }
 0x4aa   : > { %v2330_v37 = vmax.f32 %v2328_v32, %v2329_v40 }
 0x4ac   : > { %v2331_v42 = vrot.slane %v2330_v37, 2 }
 0x4ae   : > { %v2332_v46 = vmax.f32 %v2330_v37, %v2331_v42 }
 0x4b0   : > { %v2333_v48 = vrot.slane %v2332_v46, 1 }
 0x4b2   : > { %v2334_v2 = vmax.f32 %v2332_v46, %v2333_v48 }
 0x4b4   : > { %v2354_v53 = vmax.f32 %v2334_v2, 0.0  ;;  %v2440_v9 = vsel %vm1422_vm3, %v2334_v2, %v2313_v47 }
 0x4b6   : > { %v2365_v57 = vsel %vm1422_vm3, %v2354_v53, %v2353_v52 }
 0x4b7   : > { %6278 = vmatmul.mubr.msk.f32.vlgmr.msra.gmra.mxu1 %vm955_vm1, %v2365_v57 }
 0x4b8   : > { %6281 = vmatpush3.msra.mxu1 %v5472_v54  ;;  %6288 = vmatprep.mubr.msk.f32.mxu1 %vm6779_vm2, %v6778_v51 }
 0x4b9   : > { %6282 = vmatprep.subr.mxu1 %v6778_v51 }
 0x4ba   : > { %6283 = vmatpush3.msra.mxu1 %v5471_v26 }
 0x4bb   : > { %6284 = vmatprep.subr.mxu1 %v6778_v51 }
 0x4bc   : > { %6285 = vmatpush3.msra.mxu1 %v5470_v41 }
 0x4bd   : > { %6286 = vmatprep.subr.mxu1 %v6778_v51 }
 0x4be   : > { %6287 = vmatpush3.msra.mxu1 %v5469_v49 }
 0x4bf   : > { %6289 = vmatmul.mubr.msk.f32.vlgmr.msra.gmra.mxu1 %vm955_vm1, %v2440_v9  ;;  %6291 = vmatprep.subr.mxu1 %v5460_v50 }
 0x4c0   : > { %6292 = vmatpush3.msra.mxu1 %v5460_v50  ;;  %6299 = vmatprep.mubr.msk.f32.mxu1 %vm955_vm1, %v2513_v38 }
 0x4c1   : > { %6293 = vmatprep.subr.mxu1 %v5459_v0 }
 0x4c2   : > { %6294 = vmatpush3.msra.mxu1 %v5459_v0 }
 0x4c3   : > { %6295 = vmatprep.subr.mxu1 %v5458_v21 }
 0x4c4   : > { %6296 = vmatpush3.msra.mxu1 %v5458_v21 }
 0x4c5   : > { %6297 = vmatprep.subr.mxu1 %v5457_v35 }
 0x4c6   : > { %6298 = vmatpush3.msra.mxu1 %v5457_v35 }
 0x4c7   : > { %6300 = vmatmul.mubr.msk.f32.vlgmr.msra.gmra.mxu1 %vm955_vm1, %v2514_v3  ;;  %6355 = vmatprep.subr.mxu1 %v5468_v17 }
 0x4c8   : > { %6302 = vmatprep.mubr.msk.f32.mxu1 %vm955_vm1, %v2515_v13  ;;  %6356 = vmatpush3.msra.mxu1 %v5468_v17 }
 0x4c9   : > { %6357 = vmatprep.subr.mxu1 %v5467_v15 }
 0x4ca   : > { %6358 = vmatpush3.msra.mxu1 %v5467_v15 }
 0x4cb   : > { %6303 = vmatmul.mubr.msk.f32.gmra.mxu1 %vm955_vm1, %v2516_v20  ;;  %6359 = vmatprep.subr.mxu1 %v5466_v19 }
 0x4cc   : > { %6305 = vmatprep.mubr.msk.f32.mxu1 %vm955_vm1, %v2517_v58  ;;  %6360 = vmatpush3.msra.mxu1 %v5466_v19 }
 0x4cd   : > { %6361 = vmatprep.subr.mxu1 %v5465_v23 }
 0x4ce   : > { %6362 = vmatpush3.msra.mxu1 %v5465_v23 }
 0x4cf   : > { %6306 = vmatmul.mubr.msk.f32.gmra.mxu1 %vm955_vm1, %v2518_v27 }
 0x4d0   : > { %6308 = vmatprep.mubr.msk.f32.mxu1 %vm955_vm1, %v2519_v30 }
 0x4d3   : > { %6309 = vmatmul.mubr.msk.f32.gmra.mxu1 %vm955_vm1, %v2520_v16 }
 0x4d4   : > { %6311 = vmatprep.mubr.msk.f32.mxu1 %vm955_vm1, %v2521_v22 }
 0x4d7   : > { %6312 = vmatmul.mubr.msk.f32.gmra.mxu1 %vm955_vm1, %v2522_v24 }
 0x4d8   : > { %6314 = vmatprep.mubr.msk.f32.mxu1 %vm955_vm1, %v2523_v25 }
 0x4db   : > { %6315 = vmatmul.mubr.msk.f32.gmra.mxu1 %vm955_vm1, %v2524_v39 }
 0x4dc   : > { %6317 = vmatprep.mubr.msk.f32.mxu1 %vm955_vm1, %v2525_v43 }
 0x4df   : > { %6318 = vmatmul.mubr.msk.f32.gmra.mxu1 %vm955_vm1, %v2526_v60 }
 0x4e0   : > { %6320 = vmatprep.mubr.msk.f32.mxu1 %vm955_vm1, %v2527_v5 }
 0x4e3   : > { %6321 = vmatmul.mubr.msk.f32.gmra.mxu1 %vm955_vm1, %v2528_v7 }
 0x4e4   : > { %6363 = vmatprep.mubr.msk.f32.mxu1 %vm955_vm1, %v7521_v6 }
 0x4e7   : > { %6364 = vmatmul.mubr.msk.f32.vlgmr.msra.gmra.mxu1 %vm955_vm1, %v7523_v8  ;;  %v5474_v8 = vld [vmem:[%s8374_s4 + $0x2] ss:$0 sm:$0xff] }
 0x4e8   : > { %6366 = vmatprep.mubr.msk.f32.mxu1 %vm955_vm1, %v7516_v61  ;;  %v5494_v61 = vld [vmem:[%s8375_s5 + $0x48] sm:$0xff] }
 0x4e9   : > { %6327 = vmatprep.subr.mxu0 %v5494_v61 }
 0x4ea   : > { %6328 = vmatpush3.msra.mxu0 %v5494_v61 }
 0x4eb   : > { %6367 = vmatmul.mubr.msk.f32.gmra.mxu1 %vm955_vm1, %v7518_v63  ;;  %v5493_v63 = vld [vmem:[%s8375_s5 + $0x40] sm:$0xff] }
 0x4ec   : > { %6369 = vmatprep.mubr.msk.f32.mxu1 %vm955_vm1, %v7525_v11  ;;  %6329 = vmatprep.subr.mxu0 %v5493_v63 }
 0x4ed   : > { %6330 = vmatpush3.msra.mxu0 %v5493_v63  ;;  %v5538_v63 = vld [vmem:[%s8373_s3 + $0xf8] sm:$0xff] }
 0x4ee   : > { %6387 = vmatprep.subr.mxu0 %v6778_v51 }
 0x4ef   : > { %6370 = vmatmul.mubr.msk.f32.gmra.mxu1 %vm955_vm1, %v7529_v14 }
 0x4f0   : > { %6372 = vmatprep.mubr.msk.f32.mxu1 %vm955_vm1, %v7546_v44 }
 0x4f3   : > { %6373 = vmatmul.mubr.msk.f32.gmra.mxu1 %vm955_vm1, %v7540_v12 }
 0x4f4   : > { %6375 = vmatprep.mubr.msk.f32.mxu1 %vm955_vm1, %v7567_v28 }
 0x4f7   : > { %6376 = vmatmul.mubr.msk.f32.gmra.mxu1 %vm955_vm1, %v7565_v62 }
 0x4f8   : > { %6378 = vmatprep.mubr.msk.f32.mxu1 %vm955_vm1, %v7563_v34 }
 0x4fb   : > { %6379 = vmatmul.mubr.msk.f32.gmra.mxu1 %vm955_vm1, %v7561_v10 }
 0x4fc   : > { %6381 = vmatprep.mubr.msk.f32.mxu1 %vm955_vm1, %v7572_v55 }
 0x4ff   : > { %6382 = vmatmul.mubr.msk.f32.gmra.mxu1 %vm955_vm1, %v7570_v36 }
 0x500   : > { %6384 = vmatprep.mubr.msk.f32.mxu1 %vm955_vm1, %v7591_v59 }
 0x503   : > { %6385 = vmatmul.mubr.msk.f32.gmra.mxu1 %vm955_vm1, %v7587_v18 }
 0x577   : > { %v2434_v6 = vpop.f32.mrf.mxu1 }
 0x578   : > { %v2435_v14 = vadd.f32 %v5474_v8, %v2434_v6  ;;  %v5537_v6 = vld [vmem:[%s8373_s3 + $0xf0] sm:$0xff]  ;;  %v5536_v8 = vld [vmem:[%s8373_s3 + $0xe8] sm:$0xff] }
 0x579   : > { %v6279_v11 = vpop.f32.mrf.mxu1 }
 0x57a   : > { %v2729_v12 = vrot.slane %v2435_v14, %v7447_v56  ;;  %v5535_v11 = vld [vmem:[%s8373_s3 + $0xe0] sm:$0xff] }
 0x57c   : > { %v2737_v34 = vrot.slane %v2729_v12, %v7447_v56  ;;  %v2730_v40 = vcombine.high %v2729_v12, %v2729_v12 }
 0x57e   : > { %v2748_v62 = vrot.slane %v2737_v34, %v6960_v29  ;;  %v2744_v2 = vrot.slane %v2730_v40, %v7447_v56 }
 0x57f   : > { %v7715_v44 = vpop.f32.mrf.mxu1 }
 0x580   : > { %v2752_v49 = vrot.slane %v2744_v2, %v6960_v29 }
 0x581   : > { %v6290_v10 = vpop.f32.mrf.mxu1 }
 0x587   : > { %v6301_v28 = vpop.f32.mrf.mxu1 }
 0x588   : > { %v2756_v36 = vadd.f32 %v6301_v28, %v2748_v62 }
 0x589   : > { %v2643_v55 = vpop.f32.mrf.mxu1 }
 0x58a   : > { %v2755_v18 = vadd.f32 %v2748_v62, %v2643_v55  ;;  %v2772_v4 = vmax.f32 %v2756_v36, 0.0 }
 0x58b   : > { %v6304_v59 = vpop.f32.mrf.mxu1 }
 0x58c   : > { %v2771_v1 = vmax.f32 %v2755_v18, 0.0  ;;  %v2758_v31 = vadd.f32 %v6304_v59, %v2748_v62  ;;  %v7757_v59 = vrot.slane %v7715_v44, %v7447_v56  ;;  %v5570_v44 = vld [vmem:[%s8375_s5 + $0x78] sm:$0xff] }
 0x58d   : > { %v2653_v32 = vpop.f32.mrf.mxu1  ;;  %6441 = vmatprep.subr.mxu1 %v5570_v44 }
 0x58e   : > { %v2757_v33 = vadd.f32 %v2748_v62, %v2653_v32  ;;  %6331 = vmatprep.mubr.msk.f32.mxu0 %vm955_vm1, %v2771_v1  ;;  %v2774_v45 = vmax.f32 %v2758_v31, 0.0  ;;  %v3201_v40 = vrot.slane %v7757_v59, %v7447_v56  ;;  %6442 = vmatpush3.msra.mxu1 %v5570_v44 }
 0x58f   : > { %v6307_v37 = vpop.f32.mrf.mxu1  ;;  %6332 = vmatmul.mubr.msk.f32.vlgmr.msra.gmra.mxu0 %vm955_vm1, %v2772_v4  ;;  %v7762_v4 = vld [vmem:[%s8376_s6 + $0x2] ss:$0 sm:$0xff] }
 0x590   : > { %v2773_v42 = vmax.f32 %v2757_v33, 0.0  ;;  %v2760_v46 = vadd.f32 %v6307_v37, %v2748_v62  ;;  %6388 = vmatpush3.msra.mxu0 %v5538_v63 }
 0x591   : > { %v2663_v47 = vpop.f32.mrf.mxu1  ;;  %6389 = vmatprep.subr.mxu0 %v6778_v51 }
 0x592   : > { %v2759_v48 = vadd.f32 %v2748_v62, %v2663_v47  ;;  %6334 = vmatprep.mubr.msk.f32.mxu0 %vm955_vm1, %v2773_v42  ;;  %v2776_v54 = vmax.f32 %v2760_v46, 0.0  ;;  %6390 = vmatpush3.msra.mxu0 %v5537_v6 }
 0x593   : > { %v6310_v52 = vpop.f32.mrf.mxu1  ;;  %6335 = vmatmul.mubr.msk.f32.gmra.mxu0 %vm955_vm1, %v2774_v45  ;;  %6391 = vmatprep.subr.mxu0 %v6778_v51  ;;  %v5569_v45 = vld [vmem:[%s8375_s5 + $0x70] sm:$0xff] }
 0x594   : > { %v2775_v53 = vmax.f32 %v2759_v48, 0.0  ;;  %v2762_v57 = vadd.f32 %v6310_v52, %v2748_v62  ;;  %6392 = vmatpush3.msra.mxu0 %v5536_v8  ;;  %6443 = vmatprep.subr.mxu1 %v5569_v45 }
 0x595   : > { %v2673_v26 = vpop.f32.mrf.mxu1  ;;  %6393 = vmatprep.subr.mxu0 %v6778_v51  ;;  %6444 = vmatpush3.msra.mxu1 %v5569_v45 }
 0x596   : > { %v2761_v41 = vadd.f32 %v2748_v62, %v2673_v26  ;;  %6337 = vmatprep.mubr.msk.f32.mxu0 %vm955_vm1, %v2775_v53  ;;  %v2778_v38 = vmax.f32 %v2762_v57, 0.0  ;;  %6394 = vmatpush3.msra.mxu0 %v5535_v11 }
 0x597   : > { %v6313_v50 = vpop.f32.mrf.mxu1  ;;  %6338 = vmatmul.mubr.msk.f32.gmra.mxu0 %vm955_vm1, %v2776_v54  ;;  %6398 = vmatprep.subr.mxu0 %v6778_v51  ;;  %v3212_v54 = vrot.slane %v3201_v40, %v6960_v29 }
 0x598   : > { %v2777_v9 = vmax.f32 %v2761_v41, 0.0  ;;  %v2764_v0 = vadd.f32 %v6313_v50, %v2752_v49 }
 0x599   : > { %v2683_v21 = vpop.f32.mrf.mxu1 }
 0x59a   : > { %v2763_v35 = vadd.f32 %v2752_v49, %v2683_v21  ;;  %6340 = vmatprep.mubr.msk.f32.mxu0 %vm955_vm1, %v2777_v9  ;;  %v2780_v13 = vmax.f32 %v2764_v0, 0.0 }
 0x59b   : > { %v6316_v17 = vpop.f32.mrf.mxu1  ;;  %6341 = vmatmul.mubr.msk.f32.gmra.mxu0 %vm955_vm1, %v2778_v38 }
 0x59c   : > { %v2779_v3 = vmax.f32 %v2763_v35, 0.0  ;;  %v2766_v15 = vadd.f32 %v6316_v17, %v2752_v49 }
 0x59d   : > { %v2693_v19 = vpop.f32.mrf.mxu1 }
 0x59e   : > { %v2765_v20 = vadd.f32 %v2752_v49, %v2693_v19  ;;  %6343 = vmatprep.mubr.msk.f32.mxu0 %vm955_vm1, %v2779_v3  ;;  %v2782_v27 = vmax.f32 %v2766_v15, 0.0 }
 0x59f   : > { %v6319_v58 = vpop.f32.mrf.mxu1  ;;  %6344 = vmatmul.mubr.msk.f32.gmra.mxu0 %vm955_vm1, %v2780_v13 }
 0x5a0   : > { %v2781_v23 = vmax.f32 %v2765_v20, 0.0  ;;  %v2768_v30 = vadd.f32 %v6319_v58, %v2752_v49 }
 0x5a1   : > { %v2703_v16 = vpop.f32.mrf.mxu1 }
 0x5a2   : > { %v2767_v22 = vadd.f32 %v2752_v49, %v2703_v16  ;;  %6346 = vmatprep.mubr.msk.f32.mxu0 %vm955_vm1, %v2781_v23  ;;  %v2784_v39 = vmax.f32 %v2768_v30, 0.0 }
 0x5a3   : > { %v6322_v24 = vpop.f32.mrf.mxu1  ;;  %6347 = vmatmul.mubr.msk.f32.gmra.mxu0 %vm955_vm1, %v2782_v27 }
 0x5a4   : > { %v2783_v25 = vmax.f32 %v2767_v22, 0.0  ;;  %v2770_v43 = vadd.f32 %v6322_v24, %v2752_v49  ;;  %v3194_v22 = vcombine.high %v7757_v59, %v7757_v59 }
 0x5a5   : > { %v2713_v60 = vpop.f32.mrf.mxu1 }
 0x5a6   : > { %v2769_v5 = vadd.f32 %v2752_v49, %v2713_v60  ;;  %6349 = vmatprep.mubr.msk.f32.mxu0 %vm955_vm1, %v2783_v25  ;;  %v2786_v61 = vmax.f32 %v2770_v43, 0.0 }
 0x5a7   : > { %6350 = vmatmul.mubr.msk.f32.gmra.mxu0 %vm955_vm1, %v2784_v39  ;;  %v6365_v14 = vpop.f32.mrf.mxu1 }
 0x5a8   : > { %v2785_v7 = vmax.f32 %v2769_v5, 0.0 }
 0x5a9   : > { %v3107_v12 = vpop.f32.mrf.mxu1 }
 0x5aa   : > { %6352 = vmatprep.mubr.msk.f32.mxu0 %vm955_vm1, %v2785_v7 }
 0x5ab   : > { %6353 = vmatmul.mubr.msk.f32.gmra.mxu0 %vm955_vm1, %v2786_v61  ;;  %v6368_v10 = vpop.f32.mrf.mxu1 }
 0x5ac   : > { %6395 = vmatprep.mubr.msk.f32.mxu0 %vm6779_vm2, %v6778_v51 }
 0x5ad   : > { %v3117_v34 = vpop.f32.mrf.mxu1 }
 0x5af   : > { %v6371_v62 = vpop.f32.mrf.mxu1 }
 0x5b1   : > { %v3127_v28 = vpop.f32.mrf.mxu1 }
 0x5b3   : > { %v6374_v36 = vpop.f32.mrf.mxu1 }
 0x5b5   : > { %v3137_v18 = vpop.f32.mrf.mxu1 }
 0x5b7   : > { %v7764_v32 = vpop.f32.mrf.mxu1 }
 0x5b9   : > { %v3147_v2 = vpop.f32.mrf.mxu1 }
 0x5bb   : > { %v6380_v21 = vpop.f32.mrf.mxu1 }
 0x5bd   : > { %v3157_v24 = vpop.f32.mrf.mxu1 }
 0x64f   : > { %v6333_v55 = vpop.f32.mrf.mxu0 }
 0x650   : > { %v2920_v46 = vadd.f32 %v6333_v55, %v7762_v4 }
 0x651   : > { %v2914_v1 = vpop.f32.mrf.mxu0 }
 0x652   : > { %v2915_v37 = vadd.f32 %v7762_v4, %v2914_v1  ;;  %v3113_v49 = vadd.f32 %v6365_v14, %v2920_v46 }
 0x653   : > { %v6336_v31 = vpop.f32.mrf.mxu0 }
 0x654   : > { %v2930_v33 = vadd.f32 %v6336_v31, %v7762_v4  ;;  %v3108_v57 = vadd.f32 %v3107_v12, %v2915_v37  ;;  %v7788_v19 = vadd.f32 %v3212_v54, %v3113_v49  ;;  %v6383_v12 = vpop.f32.mrf.mxu1 }
 0x655   : > { %v2924_v42 = vpop.f32.mrf.mxu0 }
 0x656   : > { %v2925_v47 = vadd.f32 %v7762_v4, %v2924_v42  ;;  %v3123_v52 = vadd.f32 %v6368_v10, %v2930_v33  ;;  %v7786_v13 = vadd.f32 %v3212_v54, %v3108_v57  ;;  %v3236_v61 = vsel %vm955_vm1, %v7788_v19, -inf  ;;  %v3167_v42 = vpop.f32.mrf.mxu1 }
 0x657   : > { %v6339_v48 = vpop.f32.mrf.mxu0 }
 0x658   : > { %v2940_v53 = vadd.f32 %v6339_v48, %v7762_v4  ;;  %v3118_v26 = vadd.f32 %v3117_v34, %v2925_v47  ;;  %v7783_v35 = vadd.f32 %v3212_v54, %v3123_v52  ;;  %v3235_v39 = vsel %vm955_vm1, %v7786_v13, -inf }
 0x659   : > { %v2934_v41 = vpop.f32.mrf.mxu0 }
 0x65a   : > { %v2935_v50 = vadd.f32 %v7762_v4, %v2934_v41  ;;  %v7781_v9 = vadd.f32 %v3212_v54, %v3118_v26  ;;  %v3133_v38 = vadd.f32 %v6371_v62, %v2940_v53  ;;  %v3239_v25 = vsel %vm955_vm1, %v7783_v35, -inf }
 0x65b   : > { %v6342_v0 = vpop.f32.mrf.mxu0  ;;  %v3240_v6 = vmax.f32 %v3236_v61, %v3239_v25 }
 0x65c   : > { %v3128_v17 = vadd.f32 %v3127_v28, %v2935_v50  ;;  %v2950_v3 = vadd.f32 %v6342_v0, %v7762_v4  ;;  %v3237_v23 = vsel %vm955_vm1, %v7781_v9, -inf  ;;  %v7794_v27 = vadd.f32 %v3212_v54, %v3133_v38  ;;  %v6386_v38 = vpop.f32.mrf.mxu1 }
 0x65d   : > { %v2944_v15 = vpop.f32.mrf.mxu0  ;;  %v3238_v63 = vmax.f32 %v3235_v39, %v3237_v23 }
 0x65e   : > { %v7790_v20 = vadd.f32 %v3212_v54, %v3128_v17  ;;  %v3143_v58 = vadd.f32 %v6374_v36, %v2950_v3  ;;  %v2945_v30 = vadd.f32 %v7762_v4, %v2944_v15  ;;  %v3243_v8 = vsel %vm955_vm1, %v7794_v27, -inf }
 0x65f   : > { %v6345_v16 = vpop.f32.mrf.mxu0  ;;  %v3208_v36 = vrot.slane %v3194_v22, %v7447_v56  ;;  %v3244_v1 = vmax.f32 %v3240_v6, %v3243_v8 }
 0x660   : > { %v3241_v43 = vsel %vm955_vm1, %v7790_v20, -inf  ;;  %v7805_v60 = vadd.f32 %v3212_v54, %v3143_v58  ;;  %v3138_v5 = vadd.f32 %v3137_v18, %v2945_v30  ;;  %v2960_v34 = vadd.f32 %v6345_v16, %v7762_v4 }
 0x661   : > { %v2954_v7 = vpop.f32.mrf.mxu0  ;;  %v3242_v10 = vmax.f32 %v3238_v63, %v3241_v43  ;;  %v3216_v48 = vrot.slane %v3208_v36, %v6960_v29 }
 0x662   : > { %v7811_v11 = vadd.f32 %v3212_v54, %v3138_v5  ;;  %v2955_v62 = vadd.f32 %v7762_v4, %v2954_v7  ;;  %v3247_v55 = vsel %vm955_vm1, %v7805_v60, -inf  ;;  %v3153_v45 = vadd.f32 %v7764_v32, %v2960_v34 }
 0x663   : > { %v6348_v14 = vpop.f32.mrf.mxu0  ;;  %v3248_v44 = vmax.f32 %v3244_v1, %v3247_v55 }
 0x664   : > { %v2970_v28 = vadd.f32 %v6348_v14, %v7762_v4  ;;  %v3245_v18 = vsel %vm955_vm1, %v7811_v11, -inf  ;;  %v3148_v46 = vadd.f32 %v3147_v2, %v2955_v62  ;;  %v7830_v0 = vadd.f32 %v3216_v48, %v3153_v45 }
 0x665   : > { %v2964_v59 = vpop.f32.mrf.mxu0  ;;  %v3246_v31 = vmax.f32 %v3242_v10, %v3245_v18 }
 0x666   : > { %v3163_v33 = vadd.f32 %v6380_v21, %v2970_v28  ;;  %v2965_v40 = vadd.f32 %v7762_v4, %v2964_v59  ;;  %v7832_v32 = vadd.f32 %v3216_v48, %v3148_v46  ;;  %v3257_v25 = vsel %vm955_vm1, %v7830_v0, -inf }
 0x667   : > { %v6351_v37 = vpop.f32.mrf.mxu0  ;;  %v3249_v54 = vmax.f32 %v3246_v31, %v3248_v44 }
 0x668   : > { %v2980_v47 = vadd.f32 %v6351_v37, %v7762_v4  ;;  %v3158_v52 = vadd.f32 %v3157_v24, %v2965_v40  ;;  %v7826_v41 = vadd.f32 %v3216_v48, %v3163_v33  ;;  %v3177_v24 = vpop.f32.mrf.mxu1  ;;  %v3256_v39 = vsel %vm955_vm1, %v7832_v32, -inf }
 0x669   : > { %v2974_v53 = vpop.f32.mrf.mxu0  ;;  %v3250_v15 = vrot.slane %v3249_v54, 4 }
 0x66a   : > { %v3173_v57 = vadd.f32 %v6383_v12, %v2980_v47  ;;  %v2975_v26 = vadd.f32 %v7762_v4, %v2974_v53  ;;  %v7828_v49 = vadd.f32 %v3216_v48, %v3158_v52  ;;  %v3260_v23 = vsel %vm955_vm1, %v7826_v41, -inf  ;;  %v5546_v47 = vld [vmem:[%s8377_s7 + $0xf8] sm:$0xff]  ;;  %v5545_v52 = vld [vmem:[%s8377_s7 + $0xf0] sm:$0xff]  ;;  %v5544_v53 = vld [vmem:[%s8377_s7 + $0xe8] sm:$0xff] }
 0x66b   : > { %v6354_v50 = vpop.f32.mrf.mxu0  ;;  %v3251_v63 = vmax.f32 %v3249_v54, %v3250_v15  ;;  %v3261_v6 = vmax.f32 %v3257_v25, %v3260_v23  ;;  %v5543_v54 = vld [vmem:[%s8377_s7 + $0xe0] sm:$0xff]  ;;  %v3456_v15 = vmax.f32 %v7788_v19, 0.0  ;;  %v3457_v23 = vmax.f32 %v7781_v9, 0.0 }
 0x66c   : > { %v3168_v2 = vadd.f32 %v3167_v42, %v2975_v26  ;;  %v2990_v21 = vadd.f32 %v6354_v50, %v7762_v4  ;;  %v7835_v17 = vadd.f32 %v3216_v48, %v3173_v57  ;;  %v3258_v30 = vsel %vm955_vm1, %v7828_v49, -inf  ;;  %v5534_v57 = vld [vmem:[%s8373_s3 + $0xd8] sm:$0xff]  ;;  %v5539_v25 = vld [vmem:[%s8377_s7 + $0xc0] sm:$0xff] }
 0x66d   : > { %v2984_v3 = vpop.f32.mrf.mxu0  ;;  %v3259_v8 = vmax.f32 %v3256_v39, %v3258_v30  ;;  %v3252_v62 = vrot.slane %v3251_v63, 2  ;;  %v3455_v50 = vmax.f32 %v7786_v13, 0.0  ;;  %v5541_v30 = vld [vmem:[%s8377_s7 + $0xd0] sm:$0xff]  ;;  %v3460_v39 = vmax.f32 %v7794_v27, 0.0 }
 0x66e   : > { %v7837_v58 = vadd.f32 %v3216_v48, %v3168_v2  ;;  %v3183_v16 = vadd.f32 %v6386_v38, %v2990_v21  ;;  %v2985_v22 = vadd.f32 %v7762_v4, %v2984_v3  ;;  %v3264_v43 = vsel %vm955_vm1, %v7835_v17, -inf  ;;  %v5533_v38 = vld [vmem:[%s8373_s3 + $0xd0] sm:$0xff]  ;;  %v5532_v2 = vld [vmem:[%s8373_s3 + $0xc8] sm:$0xff]  ;;  %v5531_v21 = vld [vmem:[%s8373_s3 + $0xc0] sm:$0xff] }
 0x66f   : > { %v3265_v12 = vmax.f32 %v3261_v6, %v3264_v43  ;;  %v3253_v18 = vmax.f32 %v3251_v63, %v3252_v62  ;;  %v5542_v3 = vld [vmem:[%s8377_s7 + $0xd8] sm:$0xff]  ;;  %v3461_v43 = vmax.f32 %v7811_v11, 0.0  ;;  %v3464_v63 = vmax.f32 %v7830_v0, 0.0 }
 0x670   : > { %v3262_v5 = vsel %vm955_vm1, %v7837_v58, -inf  ;;  %v7852_v7 = vadd.f32 %v3216_v48, %v3183_v16  ;;  %v3178_v61 = vadd.f32 %v3177_v24, %v2985_v22  ;;  %v5540_v16 = vld [vmem:[%s8377_s7 + $0xc8] sm:$0xff]  ;;  %v3458_v22 = vmax.f32 %v7783_v35, 0.0 }
 0x671   : > { %v3263_v10 = vmax.f32 %v3259_v8, %v3262_v5  ;;  %v3254_v33 = vrot.slane %v3253_v18, 1  ;;  %v3459_v24 = vmax.f32 %v7790_v20, 0.0  ;;  %v3462_v5 = vmax.f32 %v7805_v60, 0.0 }
 0x672   : > { %v3268_v4 = vsel %vm955_vm1, %v7852_v7, -inf  ;;  %v7856_v14 = vadd.f32 %v3216_v48, %v3178_v61  ;;  %v3463_v61 = vmax.f32 %v7832_v32, 0.0  ;;  %v3465_v6 = vmax.f32 %v7828_v49, 0.0 }
 0x673   : > { %v3269_v28 = vmax.f32 %v3265_v12, %v3268_v4  ;;  %v3255_v37 = vmax.f32 %v3253_v18, %v3254_v33  ;;  %v3466_v8 = vmax.f32 %v7826_v41, 0.0  ;;  %v3467_v4 = vmax.f32 %v7837_v58, 0.0 }
 0x674   : > { %v3266_v34 = vsel %vm955_vm1, %v7856_v14, -inf  ;;  %v3468_v12 = vmax.f32 %v7835_v17, 0.0 }
 0x675   : > { %v3267_v36 = vmax.f32 %v3263_v10, %v3266_v34  ;;  %v3295_v45 = vmax.f32 %v3255_v37, 0.0  ;;  %v3469_v10 = vmax.f32 %v7856_v14, 0.0  ;;  %v3470_v34 = vmax.f32 %v7852_v7, 0.0 }
 0x677   : > { %v3270_v55 = vmax.f32 %v3267_v36, %v3269_v28 }
 0x679   : > { %v3271_v59 = vrot.slane %v3270_v55, 4 }
 0x67b   : > { %v3272_v1 = vmax.f32 %v3270_v55, %v3271_v59 }
 0x67d   : > { %v3273_v31 = vrot.slane %v3272_v1, 2 }
 0x67f   : > { %v3274_v40 = vmax.f32 %v3272_v1, %v3273_v31 }
 0x681   : > { %v3275_v42 = vrot.slane %v3274_v40, 1 }
 0x683   : > { %v3276_v44 = vmax.f32 %v3274_v40, %v3275_v42 }
 0x685   : > { %v3296_v46 = vmax.f32 %v3276_v44, 0.0  ;;  %v3382_v26 = vsel %vm1422_vm3, %v3276_v44, %v3255_v37 }
 0x687   : > { %v3307_v48 = vsel %vm1422_vm3, %v3296_v46, %v3295_v45 }
 0x688   : > { %6396 = vmatmul.mubr.msk.f32.vlgmr.msra.gmra.mxu0 %vm955_vm1, %v3307_v48 }
 0x689   : > { %6399 = vmatpush3.msra.mxu0 %v5546_v47  ;;  %6406 = vmatprep.mubr.msk.f32.mxu0 %vm6779_vm2, %v6778_v51 }
 0x68a   : > { %6400 = vmatprep.subr.mxu0 %v6778_v51 }
 0x68b   : > { %6401 = vmatpush3.msra.mxu0 %v5545_v52 }
 0x68c   : > { %6402 = vmatprep.subr.mxu0 %v6778_v51 }
 0x68d   : > { %6403 = vmatpush3.msra.mxu0 %v5544_v53 }
 0x68e   : > { %6404 = vmatprep.subr.mxu0 %v6778_v51 }
 0x68f   : > { %6405 = vmatpush3.msra.mxu0 %v5543_v54 }
 0x690   : > { %6407 = vmatmul.mubr.msk.f32.vlgmr.msra.gmra.mxu0 %vm955_vm1, %v3382_v26  ;;  %6409 = vmatprep.subr.mxu0 %v5534_v57 }
 0x691   : > { %6410 = vmatpush3.msra.mxu0 %v5534_v57  ;;  %6417 = vmatprep.mubr.msk.f32.mxu0 %vm955_vm1, %v3455_v50 }
 0x692   : > { %6411 = vmatprep.subr.mxu0 %v5533_v38 }
 0x693   : > { %6412 = vmatpush3.msra.mxu0 %v5533_v38 }
 0x694   : > { %6413 = vmatprep.subr.mxu0 %v5532_v2 }
 0x695   : > { %6414 = vmatpush3.msra.mxu0 %v5532_v2 }
 0x696   : > { %6415 = vmatprep.subr.mxu0 %v5531_v21 }
 0x697   : > { %6416 = vmatpush3.msra.mxu0 %v5531_v21 }
 0x698   : > { %6418 = vmatmul.mubr.msk.f32.vlgmr.msra.gmra.mxu0 %vm955_vm1, %v3456_v15  ;;  %6473 = vmatprep.subr.mxu0 %v5542_v3 }
 0x699   : > { %6420 = vmatprep.mubr.msk.f32.mxu0 %vm955_vm1, %v3457_v23  ;;  %6474 = vmatpush3.msra.mxu0 %v5542_v3 }
 0x69a   : > { %6475 = vmatprep.subr.mxu0 %v5541_v30 }
 0x69b   : > { %6476 = vmatpush3.msra.mxu0 %v5541_v30 }
 0x69c   : > { %6421 = vmatmul.mubr.msk.f32.gmra.mxu0 %vm955_vm1, %v3458_v22  ;;  %6477 = vmatprep.subr.mxu0 %v5540_v16 }
 0x69d   : > { %6423 = vmatprep.mubr.msk.f32.mxu0 %vm955_vm1, %v3459_v24  ;;  %6478 = vmatpush3.msra.mxu0 %v5540_v16 }
 0x69e   : > { %6479 = vmatprep.subr.mxu0 %v5539_v25 }
 0x69f   : > { %6480 = vmatpush3.msra.mxu0 %v5539_v25 }
 0x6a0   : > { %6424 = vmatmul.mubr.msk.f32.gmra.mxu0 %vm955_vm1, %v3460_v39 }
 0x6a1   : > { %6426 = vmatprep.mubr.msk.f32.mxu0 %vm955_vm1, %v3461_v43 }
 0x6a4   : > { %6427 = vmatmul.mubr.msk.f32.gmra.mxu0 %vm955_vm1, %v3462_v5 }
 0x6a5   : > { %6429 = vmatprep.mubr.msk.f32.mxu0 %vm955_vm1, %v3463_v61 }
 0x6a8   : > { %6430 = vmatmul.mubr.msk.f32.gmra.mxu0 %vm955_vm1, %v3464_v63 }
 0x6a9   : > { %6432 = vmatprep.mubr.msk.f32.mxu0 %vm955_vm1, %v3465_v6 }
 0x6ac   : > { %6433 = vmatmul.mubr.msk.f32.gmra.mxu0 %vm955_vm1, %v3466_v8 }
 0x6ad   : > { %6435 = vmatprep.mubr.msk.f32.mxu0 %vm955_vm1, %v3467_v4 }
 0x6b0   : > { %6436 = vmatmul.mubr.msk.f32.gmra.mxu0 %vm955_vm1, %v3468_v12 }
 0x6b1   : > { %6438 = vmatprep.mubr.msk.f32.mxu0 %vm955_vm1, %v3469_v10 }
 0x6b4   : > { %6439 = vmatmul.mubr.msk.f32.gmra.mxu0 %vm955_vm1, %v3470_v34 }
 0x6b5   : > { %6481 = vmatprep.mubr.msk.f32.mxu0 %vm955_vm1, %v7786_v13 }
 0x6b8   : > { %6482 = vmatmul.mubr.msk.f32.vlgmr.msra.gmra.mxu0 %vm955_vm1, %v7788_v19  ;;  %v5548_v19 = vld [vmem:[%s8374_s4 + $0x3] ss:$0 sm:$0xff] }
 0x6b9   : > { %6484 = vmatprep.mubr.msk.f32.mxu0 %vm955_vm1, %v7781_v9  ;;  %v5568_v9 = vld [vmem:[%s8375_s5 + $0x68] sm:$0xff] }
 0x6ba   : > { %6445 = vmatprep.subr.mxu1 %v5568_v9 }
 0x6bb   : > { %6446 = vmatpush3.msra.mxu1 %v5568_v9 }
 0x6bc   : > { %6485 = vmatmul.mubr.msk.f32.gmra.mxu0 %vm955_vm1, %v7783_v35  ;;  %v5567_v35 = vld [vmem:[%s8375_s5 + $0x60] sm:$0xff] }
 0x6bd   : > { %6487 = vmatprep.mubr.msk.f32.mxu0 %vm955_vm1, %v7790_v20  ;;  %6447 = vmatprep.subr.mxu1 %v5567_v35 }
 0x6be   : > { %6448 = vmatpush3.msra.mxu1 %v5567_v35  ;;  %v5612_v35 = vld [vmem:[%s8373_s3 + $0x138] sm:$0xff] }
 0x6bf   : > { %6505 = vmatprep.subr.mxu1 %v6778_v51 }
 0x6c0   : > { %6488 = vmatmul.mubr.msk.f32.gmra.mxu0 %vm955_vm1, %v7794_v27 }
 0x6c1   : > { %6490 = vmatprep.mubr.msk.f32.mxu0 %vm955_vm1, %v7811_v11 }
 0x6c4   : > { %6491 = vmatmul.mubr.msk.f32.gmra.mxu0 %vm955_vm1, %v7805_v60 }
 0x6c5   : > { %6493 = vmatprep.mubr.msk.f32.mxu0 %vm955_vm1, %v7832_v32 }
 0x6c8   : > { %6494 = vmatmul.mubr.msk.f32.gmra.mxu0 %vm955_vm1, %v7830_v0 }
 0x6c9   : > { %6496 = vmatprep.mubr.msk.f32.mxu0 %vm955_vm1, %v7828_v49 }
 0x6cc   : > { %6497 = vmatmul.mubr.msk.f32.gmra.mxu0 %vm955_vm1, %v7826_v41 }
 0x6cd   : > { %6499 = vmatprep.mubr.msk.f32.mxu0 %vm955_vm1, %v7837_v58 }
 0x6d0   : > { %6500 = vmatmul.mubr.msk.f32.gmra.mxu0 %vm955_vm1, %v7835_v17 }
 0x6d1   : > { %6502 = vmatprep.mubr.msk.f32.mxu0 %vm955_vm1, %v7856_v14 }
 0x6d4   : > { %6503 = vmatmul.mubr.msk.f32.gmra.mxu0 %vm955_vm1, %v7852_v7 }
 0x748   : > { %v3376_v13 = vpop.f32.mrf.mxu0 }
 0x749   : > { %v3377_v27 = vadd.f32 %v5548_v19, %v3376_v13  ;;  %v5611_v13 = vld [vmem:[%s8373_s3 + $0x130] sm:$0xff]  ;;  %v5610_v19 = vld [vmem:[%s8373_s3 + $0x128] sm:$0xff] }
 0x74a   : > { %v6397_v20 = vpop.f32.mrf.mxu0 }
 0x74b   : > { %v3671_v60 = vrot.slane %v3377_v27, %v7447_v56  ;;  %v5609_v20 = vld [vmem:[%s8373_s3 + $0x120] sm:$0xff] }
 0x74d   : > { %v3679_v49 = vrot.slane %v3671_v60, %v7447_v56  ;;  %v3672_v59 = vcombine.high %v3671_v60, %v3671_v60 }
 0x74f   : > { %v3690_v0 = vrot.slane %v3679_v49, %v6960_v29  ;;  %v3686_v44 = vrot.slane %v3672_v59, %v7447_v56 }
 0x750   : > { %v7980_v11 = vpop.f32.mrf.mxu0 }
 0x751   : > { %v3694_v54 = vrot.slane %v3686_v44, %v6960_v29 }
 0x752   : > { %v6408_v41 = vpop.f32.mrf.mxu0 }
 0x758   : > { %v6419_v32 = vpop.f32.mrf.mxu0 }
 0x759   : > { %v3698_v17 = vadd.f32 %v6419_v32, %v3690_v0 }
 0x75a   : > { %v3585_v58 = vpop.f32.mrf.mxu0 }
 0x75b   : > { %v3697_v7 = vadd.f32 %v3690_v0, %v3585_v58  ;;  %v3714_v28 = vmax.f32 %v3698_v17, 0.0 }
 0x75c   : > { %v6422_v14 = vpop.f32.mrf.mxu0 }
 0x75d   : > { %v3713_v62 = vmax.f32 %v3697_v7, 0.0  ;;  %v3700_v36 = vadd.f32 %v6422_v14, %v3690_v0  ;;  %v4135_v14 = vrot.slane %v7980_v11, %v7447_v56  ;;  %v5644_v11 = vld [vmem:[%s8375_s5 + $0x98] sm:$0xff] }
 0x75e   : > { %v3595_v55 = vpop.f32.mrf.mxu0  ;;  %6559 = vmatprep.subr.mxu0 %v5644_v11 }
 0x75f   : > { %v3699_v18 = vadd.f32 %v3690_v0, %v3595_v55  ;;  %6449 = vmatprep.mubr.msk.f32.mxu1 %vm955_vm1, %v3713_v62  ;;  %v3716_v33 = vmax.f32 %v3700_v36, 0.0  ;;  %v4143_v59 = vrot.slane %v4135_v14, %v7447_v56  ;;  %6560 = vmatpush3.msra.mxu0 %v5644_v11 }
 0x760   : > { %v6425_v1 = vpop.f32.mrf.mxu0  ;;  %6450 = vmatmul.mubr.msk.f32.vlgmr.msra.gmra.mxu1 %vm955_vm1, %v3714_v28  ;;  %v8025_v28 = vld [vmem:[%s8376_s6 + $0x3] ss:$0 sm:$0xff] }
 0x761   : > { %v3715_v31 = vmax.f32 %v3699_v18, 0.0  ;;  %v3702_v40 = vadd.f32 %v6425_v1, %v3690_v0  ;;  %6506 = vmatpush3.msra.mxu1 %v5612_v35 }
 0x762   : > { %v3605_v37 = vpop.f32.mrf.mxu0  ;;  %6507 = vmatprep.subr.mxu1 %v6778_v51 }
 0x763   : > { %v3701_v42 = vadd.f32 %v3690_v0, %v3605_v37  ;;  %6452 = vmatprep.mubr.msk.f32.mxu1 %vm955_vm1, %v3715_v31  ;;  %v3718_v47 = vmax.f32 %v3702_v40, 0.0  ;;  %6508 = vmatpush3.msra.mxu1 %v5611_v13 }
 0x764   : > { %v6428_v45 = vpop.f32.mrf.mxu0  ;;  %6453 = vmatmul.mubr.msk.f32.gmra.mxu1 %vm955_vm1, %v3716_v33  ;;  %6509 = vmatprep.subr.mxu1 %v6778_v51  ;;  %v5643_v33 = vld [vmem:[%s8375_s5 + $0x90] sm:$0xff] }
 0x765   : > { %v3717_v46 = vmax.f32 %v3701_v42, 0.0  ;;  %v3704_v48 = vadd.f32 %v6428_v45, %v3690_v0  ;;  %6510 = vmatpush3.msra.mxu1 %v5610_v19  ;;  %6561 = vmatprep.subr.mxu0 %v5643_v33 }
 0x766   : > { %v3615_v52 = vpop.f32.mrf.mxu0  ;;  %6511 = vmatprep.subr.mxu1 %v6778_v51  ;;  %6562 = vmatpush3.msra.mxu0 %v5643_v33 }
 0x767   : > { %v3703_v53 = vadd.f32 %v3690_v0, %v3615_v52  ;;  %6455 = vmatprep.mubr.msk.f32.mxu1 %vm955_vm1, %v3717_v46  ;;  %v3720_v50 = vmax.f32 %v3704_v48, 0.0  ;;  %6512 = vmatpush3.msra.mxu1 %v5609_v20 }
 0x768   : > { %v6431_v57 = vpop.f32.mrf.mxu0  ;;  %6456 = vmatmul.mubr.msk.f32.gmra.mxu1 %vm955_vm1, %v3718_v47  ;;  %6516 = vmatprep.subr.mxu1 %v6778_v51  ;;  %v4154_v47 = vrot.slane %v4143_v59, %v6960_v29 }
 0x769   : > { %v3719_v26 = vmax.f32 %v3703_v53, 0.0  ;;  %v3706_v38 = vadd.f32 %v6431_v57, %v3694_v54 }
 0x76a   : > { %v3625_v2 = vpop.f32.mrf.mxu0 }
 0x76b   : > { %v3705_v21 = vadd.f32 %v3694_v54, %v3625_v2  ;;  %6458 = vmatprep.mubr.msk.f32.mxu1 %vm955_vm1, %v3719_v26  ;;  %v3722_v23 = vmax.f32 %v3706_v38, 0.0 }
 0x76c   : > { %v6434_v3 = vpop.f32.mrf.mxu0  ;;  %6459 = vmatmul.mubr.msk.f32.gmra.mxu1 %vm955_vm1, %v3720_v50 }
 0x76d   : > { %v3721_v15 = vmax.f32 %v3705_v21, 0.0  ;;  %v3708_v30 = vadd.f32 %v6434_v3, %v3694_v54 }
 0x76e   : > { %v3635_v16 = vpop.f32.mrf.mxu0 }
 0x76f   : > { %v3707_v22 = vadd.f32 %v3694_v54, %v3635_v16  ;;  %6461 = vmatprep.mubr.msk.f32.mxu1 %vm955_vm1, %v3721_v15  ;;  %v3724_v39 = vmax.f32 %v3708_v30, 0.0 }
 0x770   : > { %v6437_v24 = vpop.f32.mrf.mxu0  ;;  %6462 = vmatmul.mubr.msk.f32.gmra.mxu1 %vm955_vm1, %v3722_v23 }
 0x771   : > { %v3723_v25 = vmax.f32 %v3707_v22, 0.0  ;;  %v3710_v43 = vadd.f32 %v6437_v24, %v3694_v54 }
 0x772   : > { %v3645_v5 = vpop.f32.mrf.mxu0 }
 0x773   : > { %v3709_v61 = vadd.f32 %v3694_v54, %v3645_v5  ;;  %6464 = vmatprep.mubr.msk.f32.mxu1 %vm955_vm1, %v3723_v25  ;;  %v3726_v8 = vmax.f32 %v3710_v43, 0.0  ;;  %v4136_v25 = vcombine.high %v4135_v14, %v4135_v14 }
 0x774   : > { %v6440_v63 = vpop.f32.mrf.mxu0  ;;  %6465 = vmatmul.mubr.msk.f32.gmra.mxu1 %vm955_vm1, %v3724_v39 }
 0x775   : > { %v3725_v6 = vmax.f32 %v3709_v61, 0.0  ;;  %v3712_v4 = vadd.f32 %v6440_v63, %v3694_v54  ;;  %v4150_v13 = vrot.slane %v4136_v25, %v7447_v56 }
 0x776   : > { %v3655_v12 = vpop.f32.mrf.mxu0 }
 0x777   : > { %v3711_v10 = vadd.f32 %v3694_v54, %v3655_v12  ;;  %6467 = vmatprep.mubr.msk.f32.mxu1 %vm955_vm1, %v3725_v6  ;;  %v3728_v9 = vmax.f32 %v3712_v4, 0.0  ;;  %v4158_v59 = vrot.slane %v4150_v13, %v6960_v29 }
 0x778   : > { %6468 = vmatmul.mubr.msk.f32.gmra.mxu1 %vm955_vm1, %v3726_v8  ;;  %v6483_v27 = vpop.f32.mrf.mxu0 }
 0x779   : > { %v3727_v34 = vmax.f32 %v3711_v10, 0.0 }
 0x77a   : > { %v4049_v60 = vpop.f32.mrf.mxu0 }
 0x77b   : > { %6470 = vmatprep.mubr.msk.f32.mxu1 %vm955_vm1, %v3727_v34 }
 0x77c   : > { %6471 = vmatmul.mubr.msk.f32.gmra.mxu1 %vm955_vm1, %v3728_v9  ;;  %v6486_v41 = vpop.f32.mrf.mxu0 }
 0x77d   : > { %6513 = vmatprep.mubr.msk.f32.mxu1 %vm6779_vm2, %v6778_v51 }
 0x77e   : > { %v4059_v49 = vpop.f32.mrf.mxu0 }
 0x780   : > { %v6489_v0 = vpop.f32.mrf.mxu0 }
 0x782   : > { %v4069_v32 = vpop.f32.mrf.mxu0 }
 0x784   : > { %v6492_v17 = vpop.f32.mrf.mxu0 }
 0x786   : > { %v4079_v7 = vpop.f32.mrf.mxu0 }
 0x788   : > { %v8027_v55 = vpop.f32.mrf.mxu0 }
 0x78a   : > { %v4089_v44 = vpop.f32.mrf.mxu0 }
 0x78c   : > { %v6498_v2 = vpop.f32.mrf.mxu0 }
 0x78e   : > { %v4099_v63 = vpop.f32.mrf.mxu0 }
 0x820   : > { %v6451_v58 = vpop.f32.mrf.mxu1 }
 0x821   : > { %v3862_v40 = vadd.f32 %v6451_v58, %v8025_v28 }
 0x822   : > { %v3856_v62 = vpop.f32.mrf.mxu1 }
 0x823   : > { %v3857_v1 = vadd.f32 %v8025_v28, %v3856_v62  ;;  %v4055_v54 = vadd.f32 %v6483_v27, %v3862_v40 }
 0x824   : > { %v6454_v36 = vpop.f32.mrf.mxu1 }
 0x825   : > { %v3872_v18 = vadd.f32 %v6454_v36, %v8025_v28  ;;  %v4050_v48 = vadd.f32 %v4049_v60, %v3857_v1  ;;  %v8050_v16 = vadd.f32 %v4154_v47, %v4055_v54 }
 0x826   : > { %v3866_v31 = vpop.f32.mrf.mxu1 }
 0x827   : > { %v3867_v37 = vadd.f32 %v8025_v28, %v3866_v31  ;;  %v4065_v45 = vadd.f32 %v6486_v41, %v3872_v18  ;;  %v8048_v23 = vadd.f32 %v4154_v47, %v4050_v48  ;;  %v4178_v9 = vsel %vm955_vm1, %v8050_v16, -inf  ;;  %v6501_v41 = vpop.f32.mrf.mxu0 }
 0x828   : > { %v6457_v42 = vpop.f32.mrf.mxu1 }
 0x829   : > { %v3882_v46 = vadd.f32 %v6457_v42, %v8025_v28  ;;  %v4060_v52 = vadd.f32 %v4059_v49, %v3867_v37  ;;  %v8045_v21 = vadd.f32 %v4154_v47, %v4065_v45  ;;  %v4177_v8 = vsel %vm955_vm1, %v8048_v23, -inf  ;;  %v4109_v11 = vpop.f32.mrf.mxu0 }
 0x82a   : > { %v3876_v53 = vpop.f32.mrf.mxu1 }
 0x82b   : > { %v3877_v57 = vadd.f32 %v8025_v28, %v3876_v53  ;;  %v8043_v26 = vadd.f32 %v4154_v47, %v4060_v52  ;;  %v4075_v50 = vadd.f32 %v6489_v0, %v3882_v46  ;;  %v4181_v6 = vsel %vm955_vm1, %v8045_v21, -inf }
 0x82c   : > { %v6460_v38 = vpop.f32.mrf.mxu1  ;;  %v4182_v19 = vmax.f32 %v4178_v9, %v4181_v6 }
 0x82d   : > { %v4070_v3 = vadd.f32 %v4069_v32, %v3877_v57  ;;  %v3892_v15 = vadd.f32 %v6460_v38, %v8025_v28  ;;  %v4179_v39 = vsel %vm955_vm1, %v8043_v26, -inf  ;;  %v8056_v43 = vadd.f32 %v4154_v47, %v4075_v50  ;;  %v6504_v50 = vpop.f32.mrf.mxu0 }
 0x82e   : > { %v3886_v30 = vpop.f32.mrf.mxu1  ;;  %v4180_v35 = vmax.f32 %v4177_v8, %v4179_v39 }
 0x82f   : > { %v8052_v22 = vadd.f32 %v4154_v47, %v4070_v3  ;;  %v4085_v24 = vadd.f32 %v6492_v17, %v3892_v15  ;;  %v3887_v5 = vadd.f32 %v8025_v28, %v3886_v30  ;;  %v4185_v20 = vsel %vm955_vm1, %v8056_v43, -inf }
 0x830   : > { %v6463_v61 = vpop.f32.mrf.mxu1  ;;  %v4186_v62 = vmax.f32 %v4182_v19, %v4185_v20 }
 0x831   : > { %v4183_v4 = vsel %vm955_vm1, %v8052_v22, -inf  ;;  %v8065_v12 = vadd.f32 %v4154_v47, %v4085_v24  ;;  %v4080_v10 = vadd.f32 %v4079_v7, %v3887_v5  ;;  %v3902_v0 = vadd.f32 %v6463_v61, %v8025_v28 }
 0x832   : > { %v3896_v34 = vpop.f32.mrf.mxu1  ;;  %v4184_v49 = vmax.f32 %v4180_v35, %v4183_v4 }
 0x833   : > { %v8072_v27 = vadd.f32 %v4154_v47, %v4080_v10  ;;  %v3897_v32 = vadd.f32 %v8025_v28, %v3896_v34  ;;  %v4189_v58 = vsel %vm955_vm1, %v8065_v12, -inf  ;;  %v4095_v40 = vadd.f32 %v8027_v55, %v3902_v0 }
 0x834   : > { %v6466_v60 = vpop.f32.mrf.mxu1  ;;  %v4190_v33 = vmax.f32 %v4186_v62, %v4189_v58 }
 0x835   : > { %v3912_v17 = vadd.f32 %v6466_v60, %v8025_v28  ;;  %v4187_v7 = vsel %vm955_vm1, %v8072_v27, -inf  ;;  %v4090_v37 = vadd.f32 %v4089_v44, %v3897_v32  ;;  %v8090_v38 = vadd.f32 %v4158_v59, %v4095_v40 }
 0x836   : > { %v3906_v14 = vpop.f32.mrf.mxu1  ;;  %v4188_v36 = vmax.f32 %v4184_v49, %v4187_v7 }
 0x837   : > { %v4105_v18 = vadd.f32 %v6498_v2, %v3912_v17  ;;  %v3907_v1 = vadd.f32 %v8025_v28, %v3906_v14  ;;  %v8092_v2 = vadd.f32 %v4158_v59, %v4090_v37  ;;  %v4199_v6 = vsel %vm955_vm1, %v8090_v38, -inf  ;;  %v5620_v37 = vld [vmem:[%s8377_s7 + $0x138] sm:$0xff] }
 0x838   : > { %v6469_v31 = vpop.f32.mrf.mxu1  ;;  %v4191_v47 = vmax.f32 %v4188_v36, %v4190_v33 }
 0x839   : > { %v3922_v42 = vadd.f32 %v6469_v31, %v8025_v28  ;;  %v4100_v45 = vadd.f32 %v4099_v63, %v3907_v1  ;;  %v8085_v48 = vadd.f32 %v4158_v59, %v4105_v18  ;;  %v4119_v63 = vpop.f32.mrf.mxu0  ;;  %v4198_v8 = vsel %vm955_vm1, %v8092_v2, -inf }
 0x83a   : > { %v3916_v46 = vpop.f32.mrf.mxu1  ;;  %v4192_v30 = vrot.slane %v4191_v47, 4 }
 0x83b   : > { %v4115_v52 = vadd.f32 %v6501_v41, %v3922_v42  ;;  %v3917_v53 = vadd.f32 %v8025_v28, %v3916_v46  ;;  %v8088_v54 = vadd.f32 %v4158_v59, %v4100_v45  ;;  %v4202_v24 = vsel %vm955_vm1, %v8085_v48, -inf  ;;  %v5619_v45 = vld [vmem:[%s8377_s7 + $0x130] sm:$0xff]  ;;  %v5618_v46 = vld [vmem:[%s8377_s7 + $0x128] sm:$0xff] }
 0x83c   : > { %v6472_v57 = vpop.f32.mrf.mxu1  ;;  %v4193_v35 = vmax.f32 %v4191_v47, %v4192_v30  ;;  %v4203_v13 = vmax.f32 %v4199_v6, %v4202_v24  ;;  %v5617_v47 = vld [vmem:[%s8377_s7 + $0x120] sm:$0xff]  ;;  %v4398_v30 = vmax.f32 %v8050_v16, 0.0  ;;  %v4399_v24 = vmax.f32 %v8043_v26, 0.0 }
 0x83d   : > { %v4110_v55 = vadd.f32 %v4109_v11, %v3917_v53  ;;  %v3932_v44 = vadd.f32 %v6472_v57, %v8025_v28  ;;  %v8095_v3 = vadd.f32 %v4158_v59, %v4115_v52  ;;  %v4200_v25 = vsel %vm955_vm1, %v8088_v54, -inf  ;;  %v5608_v52 = vld [vmem:[%s8373_s3 + $0x118] sm:$0xff]  ;;  %v5613_v6 = vld [vmem:[%s8377_s7 + $0x100] sm:$0xff] }
 0x83e   : > { %v3926_v15 = vpop.f32.mrf.mxu1  ;;  %v4201_v19 = vmax.f32 %v4198_v8, %v4200_v25  ;;  %v4194_v0 = vrot.slane %v4193_v35, 2  ;;  %v4397_v57 = vmax.f32 %v8048_v23, 0.0  ;;  %v5615_v25 = vld [vmem:[%s8377_s7 + $0x110] sm:$0xff]  ;;  %v4402_v8 = vmax.f32 %v8056_v43, 0.0 }
 0x83f   : > { %v8101_v39 = vadd.f32 %v4158_v59, %v4110_v55  ;;  %v4125_v5 = vadd.f32 %v6504_v50, %v3932_v44  ;;  %v3927_v61 = vadd.f32 %v8025_v28, %v3926_v15  ;;  %v4206_v4 = vsel %vm955_vm1, %v8095_v3, -inf  ;;  %v5607_v50 = vld [vmem:[%s8373_s3 + $0x110] sm:$0xff]  ;;  %v5606_v55 = vld [vmem:[%s8373_s3 + $0x108] sm:$0xff]  ;;  %v5605_v44 = vld [vmem:[%s8373_s3 + $0x100] sm:$0xff] }
 0x840   : > { %v4207_v60 = vmax.f32 %v4203_v13, %v4206_v4  ;;  %v4195_v7 = vmax.f32 %v4193_v35, %v4194_v0  ;;  %v5616_v15 = vld [vmem:[%s8377_s7 + $0x118] sm:$0xff]  ;;  %v4403_v4 = vmax.f32 %v8072_v27, 0.0  ;;  %v4406_v35 = vmax.f32 %v8090_v38, 0.0 }
 0x841   : > { %v4204_v10 = vsel %vm955_vm1, %v8101_v39, -inf  ;;  %v8112_v34 = vadd.f32 %v4158_v59, %v4125_v5  ;;  %v4120_v9 = vadd.f32 %v4119_v63, %v3927_v61  ;;  %v5614_v5 = vld [vmem:[%s8377_s7 + $0x108] sm:$0xff]  ;;  %v4400_v61 = vmax.f32 %v8045_v21, 0.0 }
 0x842   : > { %v4205_v41 = vmax.f32 %v4201_v19, %v4204_v10  ;;  %v4196_v18 = vrot.slane %v4195_v7, 1  ;;  %v4401_v63 = vmax.f32 %v8052_v22, 0.0  ;;  %v4404_v10 = vmax.f32 %v8065_v12, 0.0 }
 0x843   : > { %v4210_v28 = vsel %vm955_vm1, %v8112_v34, -inf  ;;  %v8116_v20 = vadd.f32 %v4158_v59, %v4120_v9  ;;  %v4405_v9 = vmax.f32 %v8092_v2, 0.0  ;;  %v4407_v13 = vmax.f32 %v8088_v54, 0.0 }
 0x844   : > { %v4211_v32 = vmax.f32 %v4207_v60, %v4210_v28  ;;  %v4197_v31 = vmax.f32 %v4195_v7, %v4196_v18  ;;  %v4408_v19 = vmax.f32 %v8085_v48, 0.0  ;;  %v4409_v28 = vmax.f32 %v8101_v39, 0.0 }
 0x845   : > { %v4208_v49 = vsel %vm955_vm1, %v8116_v20, -inf  ;;  %v4410_v60 = vmax.f32 %v8095_v3, 0.0 }
 0x846   : > { %v4209_v17 = vmax.f32 %v4205_v41, %v4208_v49  ;;  %v4237_v59 = vmax.f32 %v4197_v31, 0.0  ;;  %v4411_v41 = vmax.f32 %v8116_v20, 0.0  ;;  %v4412_v49 = vmax.f32 %v8112_v34, 0.0 }
 0x848   : > { %v4212_v58 = vmax.f32 %v4209_v17, %v4211_v32 }
 0x84a   : > { %v4213_v14 = vrot.slane %v4212_v58, 4 }
 0x84c   : > { %v4214_v62 = vmax.f32 %v4212_v58, %v4213_v14 }
 0x84e   : > { %v4215_v36 = vrot.slane %v4214_v62, 2 }
 0x850   : > { %v4216_v1 = vmax.f32 %v4214_v62, %v4215_v36 }
 0x852   : > { %v4217_v11 = vrot.slane %v4216_v1, 1 }
 0x854   : > { %v4218_v33 = vmax.f32 %v4216_v1, %v4217_v11 }
 0x856   : > { %v4238_v40 = vmax.f32 %v4218_v33, 0.0  ;;  %v4324_v53 = vsel %vm1422_vm3, %v4218_v33, %v4197_v31 }
 0x858   : > { %v4249_v42 = vsel %vm1422_vm3, %v4238_v40, %v4237_v59 }
 0x859   : > { %6514 = vmatmul.mubr.msk.f32.vlgmr.msra.gmra.mxu1 %vm955_vm1, %v4249_v42 }
 0x85a   : > { %6517 = vmatpush3.msra.mxu1 %v5620_v37  ;;  %6524 = vmatprep.mubr.msk.f32.mxu1 %vm6779_vm2, %v6778_v51 }
 0x85b   : > { %6518 = vmatprep.subr.mxu1 %v6778_v51 }
 0x85c   : > { %6519 = vmatpush3.msra.mxu1 %v5619_v45 }
 0x85d   : > { %6520 = vmatprep.subr.mxu1 %v6778_v51 }
 0x85e   : > { %6521 = vmatpush3.msra.mxu1 %v5618_v46 }
 0x85f   : > { %6522 = vmatprep.subr.mxu1 %v6778_v51 }
 0x860   : > { %6523 = vmatpush3.msra.mxu1 %v5617_v47 }
 0x861   : > { %6525 = vmatmul.mubr.msk.f32.vlgmr.msra.gmra.mxu1 %vm955_vm1, %v4324_v53  ;;  %6527 = vmatprep.subr.mxu1 %v5608_v52 }
 0x862   : > { %6528 = vmatpush3.msra.mxu1 %v5608_v52  ;;  %6535 = vmatprep.mubr.msk.f32.mxu1 %vm955_vm1, %v4397_v57 }
 0x863   : > { %6529 = vmatprep.subr.mxu1 %v5607_v50 }
 0x864   : > { %6530 = vmatpush3.msra.mxu1 %v5607_v50 }
 0x865   : > { %6531 = vmatprep.subr.mxu1 %v5606_v55 }
 0x866   : > { %6532 = vmatpush3.msra.mxu1 %v5606_v55 }
 0x867   : > { %6533 = vmatprep.subr.mxu1 %v5605_v44 }
 0x868   : > { %6534 = vmatpush3.msra.mxu1 %v5605_v44 }
 0x869   : > { %6536 = vmatmul.mubr.msk.f32.vlgmr.msra.gmra.mxu1 %vm955_vm1, %v4398_v30  ;;  %6591 = vmatprep.subr.mxu1 %v5616_v15 }
 0x86a   : > { %6538 = vmatprep.mubr.msk.f32.mxu1 %vm955_vm1, %v4399_v24  ;;  %6592 = vmatpush3.msra.mxu1 %v5616_v15 }
 0x86b   : > { %6593 = vmatprep.subr.mxu1 %v5615_v25 }
 0x86c   : > { %6594 = vmatpush3.msra.mxu1 %v5615_v25 }
 0x86d   : > { %6539 = vmatmul.mubr.msk.f32.gmra.mxu1 %vm955_vm1, %v4400_v61  ;;  %6595 = vmatprep.subr.mxu1 %v5614_v5 }
 0x86e   : > { %6541 = vmatprep.mubr.msk.f32.mxu1 %vm955_vm1, %v4401_v63  ;;  %6596 = vmatpush3.msra.mxu1 %v5614_v5 }
 0x86f   : > { %6597 = vmatprep.subr.mxu1 %v5613_v6 }
 0x870   : > { %6598 = vmatpush3.msra.mxu1 %v5613_v6 }
 0x871   : > { %6542 = vmatmul.mubr.msk.f32.gmra.mxu1 %vm955_vm1, %v4402_v8 }
 0x872   : > { %6544 = vmatprep.mubr.msk.f32.mxu1 %vm955_vm1, %v4403_v4 }
 0x875   : > { %6545 = vmatmul.mubr.msk.f32.gmra.mxu1 %vm955_vm1, %v4404_v10 }
 0x876   : > { %6547 = vmatprep.mubr.msk.f32.mxu1 %vm955_vm1, %v4405_v9 }
 0x879   : > { %6548 = vmatmul.mubr.msk.f32.gmra.mxu1 %vm955_vm1, %v4406_v35 }
 0x87a   : > { %6550 = vmatprep.mubr.msk.f32.mxu1 %vm955_vm1, %v4407_v13 }
 0x87d   : > { %6551 = vmatmul.mubr.msk.f32.gmra.mxu1 %vm955_vm1, %v4408_v19 }
 0x87e   : > { %6553 = vmatprep.mubr.msk.f32.mxu1 %vm955_vm1, %v4409_v28 }
 0x881   : > { %6554 = vmatmul.mubr.msk.f32.gmra.mxu1 %vm955_vm1, %v4410_v60 }
 0x882   : > { %6556 = vmatprep.mubr.msk.f32.mxu1 %vm955_vm1, %v4411_v41 }
 0x885   : > { %6557 = vmatmul.mubr.msk.f32.gmra.mxu1 %vm955_vm1, %v4412_v49 }
 0x886   : > { %6599 = vmatprep.mubr.msk.f32.mxu1 %vm955_vm1, %v8048_v23 }
 0x889   : > { %6600 = vmatmul.mubr.msk.f32.vlgmr.msra.gmra.mxu1 %vm955_vm1, %v8050_v16  ;;  %v5622_v16 = vld [vmem:[%s8374_s4 + $0x4] ss:$0 sm:$0xff] }
 0x88a   : > { %6602 = vmatprep.mubr.msk.f32.mxu1 %vm955_vm1, %v8043_v26  ;;  %v5642_v26 = vld [vmem:[%s8375_s5 + $0x88] sm:$0xff] }
 0x88b   : > { %6563 = vmatprep.subr.mxu0 %v5642_v26 }
 0x88c   : > { %6564 = vmatpush3.msra.mxu0 %v5642_v26 }
 0x88d   : > { %6603 = vmatmul.mubr.msk.f32.gmra.mxu1 %vm955_vm1, %v8045_v21  ;;  %v5641_v21 = vld [vmem:[%s8375_s5 + $0x80] sm:$0xff] }
 0x88e   : > { %6605 = vmatprep.mubr.msk.f32.mxu1 %vm955_vm1, %v8052_v22  ;;  %6565 = vmatprep.subr.mxu0 %v5641_v21 }
 0x88f   : > { %6566 = vmatpush3.msra.mxu0 %v5641_v21  ;;  %v5166_v21 = vld [vmem:[%s8378_s8 + $0x18] sm:$0xff] }
 0x890   : > { %6623 = vmatprep.subr.mxu0 %v6778_v51 }
 0x891   : > { %6606 = vmatmul.mubr.msk.f32.gmra.mxu1 %vm955_vm1, %v8056_v43 }
 0x892   : > { %6608 = vmatprep.mubr.msk.f32.mxu1 %vm955_vm1, %v8072_v27 }
 0x895   : > { %6609 = vmatmul.mubr.msk.f32.gmra.mxu1 %vm955_vm1, %v8065_v12 }
 0x896   : > { %6611 = vmatprep.mubr.msk.f32.mxu1 %vm955_vm1, %v8092_v2 }
 0x899   : > { %6612 = vmatmul.mubr.msk.f32.gmra.mxu1 %vm955_vm1, %v8090_v38 }
 0x89a   : > { %6614 = vmatprep.mubr.msk.f32.mxu1 %vm955_vm1, %v8088_v54 }
 0x89d   : > { %6615 = vmatmul.mubr.msk.f32.gmra.mxu1 %vm955_vm1, %v8085_v48 }
 0x89e   : > { %6617 = vmatprep.mubr.msk.f32.mxu1 %vm955_vm1, %v8101_v39 }
 0x8a1   : > { %6618 = vmatmul.mubr.msk.f32.gmra.mxu1 %vm955_vm1, %v8095_v3 }
 0x8a2   : > { %6620 = vmatprep.mubr.msk.f32.mxu1 %vm955_vm1, %v8116_v20 }
 0x8a5   : > { %6621 = vmatmul.mubr.msk.f32.gmra.mxu1 %vm955_vm1, %v8112_v34 }
 0x919   : > { %v4318_v23 = vpop.f32.mrf.mxu1 }
 0x91a   : > { %v4319_v43 = vadd.f32 %v5622_v16, %v4318_v23  ;;  %v5165_v23 = vld [vmem:[%s8378_s8 + $0x10] sm:$0xff]  ;;  %v5164_v16 = vld [vmem:[%s8378_s8 + $0x8] sm:$0xff] }
 0x91b   : > { %v6515_v22 = vpop.f32.mrf.mxu1 }
 0x91c   : > { %v4613_v12 = vrot.slane %v4319_v43, %v7447_v56  ;;  %v5163_v22 = vld [vmem:[%s8378_s8] sm:$0xff] }
 0x91e   : > { %v4621_v54 = vrot.slane %v4613_v12, %v7447_v56  ;;  %v4614_v14 = vcombine.high %v4613_v12, %v4613_v12 }
 0x920   : > { %v4632_v38 = vrot.slane %v4621_v54, %v6960_v29  ;;  %v4628_v33 = vrot.slane %v4614_v14, %v7447_v56 }
 0x921   : > { %v8240_v27 = vpop.f32.mrf.mxu1 }
 0x922   : > { %v4636_v47 = vrot.slane %v4628_v33, %v6960_v29 }
 0x923   : > { %v6526_v48 = vpop.f32.mrf.mxu1 }
 0x929   : > { %v6537_v2 = vpop.f32.mrf.mxu1 }
 0x92a   : > { %v4640_v3 = vadd.f32 %v6537_v2, %v4632_v38 }
 0x92b   : > { %v4527_v39 = vpop.f32.mrf.mxu1 }
 0x92c   : > { %v4639_v34 = vadd.f32 %v4632_v38, %v4527_v39  ;;  %v4656_v32 = vmax.f32 %v4640_v3, 0.0 }
 0x92d   : > { %v6540_v20 = vpop.f32.mrf.mxu1 }
 0x92e   : > { %v4655_v0 = vmax.f32 %v4639_v34, 0.0  ;;  %v4642_v17 = vadd.f32 %v6540_v20, %v4632_v38  ;;  %v5077_v20 = vrot.slane %v8240_v27, %v7447_v56 }
 0x92f   : > { %v4537_v58 = vpop.f32.mrf.mxu1 }
 0x930   : > { %v4641_v7 = vadd.f32 %v4632_v38, %v4537_v58  ;;  %6567 = vmatprep.mubr.msk.f32.mxu0 %vm955_vm1, %v4655_v0  ;;  %v4658_v18 = vmax.f32 %v4642_v17, 0.0 }
 0x931   : > { %v6543_v62 = vpop.f32.mrf.mxu1  ;;  %6568 = vmatmul.mubr.msk.f32.vlgmr.msra.gmra.mxu0 %vm955_vm1, %v4656_v32  ;;  %v8284_v32 = vld [vmem:[%s8376_s6 + $0x4] ss:$0 sm:$0xff] }
 0x932   : > { %v4657_v36 = vmax.f32 %v4641_v7, 0.0  ;;  %v4644_v1 = vadd.f32 %v6543_v62, %v4632_v38  ;;  %6624 = vmatpush3.msra.mxu0 %v5166_v21  ;;  %v5085_v7 = vrot.slane %v5077_v20, %v7447_v56 }
 0x933   : > { %v4547_v31 = vpop.f32.mrf.mxu1  ;;  %6625 = vmatprep.subr.mxu0 %v6778_v51 }
 0x934   : > { %v4643_v11 = vadd.f32 %v4632_v38, %v4547_v31  ;;  %6570 = vmatprep.mubr.msk.f32.mxu0 %vm955_vm1, %v4657_v36  ;;  %v4660_v37 = vmax.f32 %v4644_v1, 0.0  ;;  %6626 = vmatpush3.msra.mxu0 %v5165_v23 }
 0x935   : > { %v6546_v59 = vpop.f32.mrf.mxu1  ;;  %6571 = vmatmul.mubr.msk.f32.gmra.mxu0 %vm955_vm1, %v4658_v18  ;;  %6627 = vmatprep.subr.mxu0 %v6778_v51 }
 0x936   : > { %v4659_v40 = vmax.f32 %v4643_v11, 0.0  ;;  %v4646_v42 = vadd.f32 %v6546_v59, %v4632_v38  ;;  %6628 = vmatpush3.msra.mxu0 %v5164_v16  ;;  %v5096_v11 = vrot.slane %v5085_v7, %v6960_v29 }
 0x937   : > { %v4557_v45 = vpop.f32.mrf.mxu1  ;;  %6629 = vmatprep.subr.mxu0 %v6778_v51 }
 0x938   : > { %v4645_v46 = vadd.f32 %v4632_v38, %v4557_v45  ;;  %6573 = vmatprep.mubr.msk.f32.mxu0 %vm955_vm1, %v4659_v40  ;;  %v4662_v57 = vmax.f32 %v4646_v42, 0.0  ;;  %6630 = vmatpush3.msra.mxu0 %v5163_v22 }
 0x939   : > { %v6549_v52 = vpop.f32.mrf.mxu1  ;;  %6574 = vmatmul.mubr.msk.f32.gmra.mxu0 %vm955_vm1, %v4660_v37 }
 0x93a   : > { %v4661_v53 = vmax.f32 %v4645_v46, 0.0  ;;  %v4648_v50 = vadd.f32 %v6549_v52, %v4636_v47 }
 0x93b   : > { %v4567_v55 = vpop.f32.mrf.mxu1 }
 0x93c   : > { %v4647_v44 = vadd.f32 %v4636_v47, %v4567_v55  ;;  %6576 = vmatprep.mubr.msk.f32.mxu0 %vm955_vm1, %v4661_v53  ;;  %v4664_v24 = vmax.f32 %v4648_v50, 0.0 }
 0x93d   : > { %v6552_v15 = vpop.f32.mrf.mxu1  ;;  %6577 = vmatmul.mubr.msk.f32.gmra.mxu0 %vm955_vm1, %v4662_v57 }
 0x93e   : > { %v4663_v30 = vmax.f32 %v4647_v44, 0.0  ;;  %v4650_v25 = vadd.f32 %v6552_v15, %v4636_v47  ;;  %v5078_v15 = vcombine.high %v5077_v20, %v5077_v20 }
 0x93f   : > { %v4577_v5 = vpop.f32.mrf.mxu1 }
 0x940   : > { %v4649_v61 = vadd.f32 %v4636_v47, %v4577_v5  ;;  %6579 = vmatprep.mubr.msk.f32.mxu0 %vm955_vm1, %v4663_v30  ;;  %v4666_v8 = vmax.f32 %v4650_v25, 0.0 }
 0x941   : > { %v6555_v63 = vpop.f32.mrf.mxu1  ;;  %6580 = vmatmul.mubr.msk.f32.gmra.mxu0 %vm955_vm1, %v4664_v24 }
 0x942   : > { %v4665_v6 = vmax.f32 %v4649_v61, 0.0  ;;  %v4652_v4 = vadd.f32 %v6555_v63, %v4636_v47 }
 0x943   : > { %v4587_v10 = vpop.f32.mrf.mxu1 }
 0x944   : > { %v4651_v9 = vadd.f32 %v4636_v47, %v4587_v10  ;;  %6582 = vmatprep.mubr.msk.f32.mxu0 %vm955_vm1, %v4665_v6  ;;  %v4668_v19 = vmax.f32 %v4652_v4, 0.0 }
 0x945   : > { %v6558_v35 = vpop.f32.mrf.mxu1  ;;  %6583 = vmatmul.mubr.msk.f32.gmra.mxu0 %vm955_vm1, %v4666_v8 }
 0x946   : > { %v4667_v13 = vmax.f32 %v4651_v9, 0.0  ;;  %v4654_v28 = vadd.f32 %v6558_v35, %v4636_v47 }
 0x947   : > { %v4597_v60 = vpop.f32.mrf.mxu1 }
 0x948   : > { %v4653_v41 = vadd.f32 %v4636_v47, %v4597_v60  ;;  %6585 = vmatprep.mubr.msk.f32.mxu0 %vm955_vm1, %v4667_v13  ;;  %v4670_v26 = vmax.f32 %v4654_v28, 0.0 }
 0x949   : > { %6586 = vmatmul.mubr.msk.f32.gmra.mxu0 %vm955_vm1, %v4668_v19  ;;  %v6601_v43 = vpop.f32.mrf.mxu1 }
 0x94a   : > { %v4669_v49 = vmax.f32 %v4653_v41, 0.0  ;;  %v5092_v41 = vrot.slane %v5078_v15, %v7447_v56 }
 0x94b   : > { %v4991_v12 = vpop.f32.mrf.mxu1 }
 0x94c   : > { %6588 = vmatprep.mubr.msk.f32.mxu0 %vm955_vm1, %v4669_v49 }
 0x94d   : > { %6589 = vmatmul.mubr.msk.f32.gmra.mxu0 %vm955_vm1, %v4670_v26  ;;  %v6604_v48 = vpop.f32.mrf.mxu1 }
 0x94e   : > { %6631 = vmatprep.mubr.msk.f32.mxu0 %vm6779_vm2, %v6778_v51 }
 0x94f   : > { %v5001_v54 = vpop.f32.mrf.mxu1 }
 0x951   : > { %v6607_v38 = vpop.f32.mrf.mxu1 }
 0x953   : > { %v5011_v2 = vpop.f32.mrf.mxu1 }
 0x955   : > { %v6610_v3 = vpop.f32.mrf.mxu1 }
 0x957   : > { %v5021_v39 = vpop.f32.mrf.mxu1 }
 0x959   : > { %v8286_v51 = vpop.f32.mrf.mxu1 }
 0x95b   : > { %v5031_v18 = vpop.f32.mrf.mxu1 }
 0x95d   : > { %v6616_v52 = vpop.f32.mrf.mxu1 }
 0x95f   : > { %v5041_v8 = vpop.f32.mrf.mxu1 }
 0x961   : > { %v6619_v23 = vpop.f32.mrf.mxu1 }
 0x9f1   : > { %v6569_v34 = vpop.f32.mrf.mxu0 }
 0x9f2   : > { %v4804_v62 = vadd.f32 %v6569_v34, %v8284_v32 }
 0x9f3   : > { %v4798_v0 = vpop.f32.mrf.mxu0 }
 0x9f4   : > { %v4799_v17 = vadd.f32 %v8284_v32, %v4798_v0  ;;  %v4997_v37 = vadd.f32 %v6601_v43, %v4804_v62  ;;  %v5100_v0 = vrot.slane %v5092_v41, %v6960_v29 }
 0x9f5   : > { %v6572_v58 = vpop.f32.mrf.mxu0 }
 0x9f6   : > { %v4814_v14 = vadd.f32 %v6572_v58, %v8284_v32  ;;  %v4992_v1 = vadd.f32 %v4991_v12, %v4799_v17  ;;  %v5104_v30 = vadd.f32 %v5096_v11, %v4997_v37  ;;  %v5051_v17 = vpop.f32.mrf.mxu1 }
 0x9f7   : > { %v4808_v36 = vpop.f32.mrf.mxu0 }
 0x9f8   : > { %v4809_v27 = vadd.f32 %v8284_v32, %v4808_v36  ;;  %v5007_v33 = vadd.f32 %v6604_v48, %v4814_v14  ;;  %v5103_v53 = vadd.f32 %v5096_v11, %v4992_v1  ;;  %v5120_v49 = vsel %vm955_vm1, %v5104_v30, -inf  ;;  %v6622_v37 = vpop.f32.mrf.mxu1 }
 0x9f9   : > { %v6575_v31 = vpop.f32.mrf.mxu0 }
 0x9fa   : > { %v5002_v59 = vadd.f32 %v5001_v54, %v4809_v27  ;;  %v4824_v40 = vadd.f32 %v6575_v31, %v8284_v32  ;;  %v5106_v50 = vadd.f32 %v5096_v11, %v5007_v33  ;;  %v5119_v4 = vsel %vm955_vm1, %v5103_v53, -inf  ;;  %v5061_v15 = vpop.f32.mrf.mxu1 }
 0x9fb   : > { %v4818_v42 = vpop.f32.mrf.mxu0 }
 0x9fc   : > { %v5105_v45 = vadd.f32 %v5096_v11, %v5002_v59  ;;  %v5017_v46 = vadd.f32 %v6607_v38, %v4824_v40  ;;  %v4819_v47 = vadd.f32 %v8284_v32, %v4818_v42  ;;  %v5123_v9 = vsel %vm955_vm1, %v5106_v50, -inf }
 0x9fd   : > { %v6578_v57 = vpop.f32.mrf.mxu0  ;;  %v5124_v16 = vmax.f32 %v5120_v49, %v5123_v9 }
 0x9fe   : > { %v5012_v55 = vadd.f32 %v5011_v2, %v4819_v47  ;;  %v4834_v44 = vadd.f32 %v6578_v57, %v8284_v32  ;;  %v5121_v24 = vsel %vm955_vm1, %v5105_v45, -inf  ;;  %v5108_v5 = vadd.f32 %v5096_v11, %v5017_v46 }
 0x9ff   : > { %v4828_v25 = vpop.f32.mrf.mxu0  ;;  %v5122_v28 = vmax.f32 %v5119_v4, %v5121_v24 }
 0xa00   : > { %v5107_v61 = vadd.f32 %v5096_v11, %v5012_v55  ;;  %v5027_v63 = vadd.f32 %v6610_v3, %v4834_v44  ;;  %v4829_v6 = vadd.f32 %v8284_v32, %v4828_v25  ;;  %v5127_v26 = vsel %vm955_vm1, %v5108_v5, -inf }
 0xa01   : > { %v6581_v10 = vpop.f32.mrf.mxu0  ;;  %v5128_v56 = vmax.f32 %v5124_v16, %v5127_v26 }
 0xa02   : > { %v5125_v35 = vsel %vm955_vm1, %v5107_v61, -inf  ;;  %v5110_v13 = vadd.f32 %v5096_v11, %v5027_v63  ;;  %v5022_v19 = vadd.f32 %v5021_v39, %v4829_v6  ;;  %v4844_v43 = vadd.f32 %v6581_v10, %v8284_v32 }
 0xa03   : > { %v4838_v60 = vpop.f32.mrf.mxu0  ;;  %v5126_v22 = vmax.f32 %v5122_v28, %v5125_v35 }
 0xa04   : > { %v5109_v21 = vadd.f32 %v5096_v11, %v5022_v19  ;;  %v4839_v12 = vadd.f32 %v8284_v32, %v4838_v60  ;;  %v5131_v54 = vsel %vm955_vm1, %v5110_v13, -inf  ;;  %v5037_v7 = vadd.f32 %v8286_v51, %v4844_v43 }
 0xa05   : > { %v6584_v48 = vpop.f32.mrf.mxu0  ;;  %v5132_v58 = vmax.f32 %v5128_v56, %v5131_v54  ;;  %v5679_v56 = vld [vmem:[%s8379_s9] ss:$0 sm:$0xff] }
 0xa06   : > { %v5129_v38 = vsel %vm955_vm1, %v5109_v21, -inf  ;;  %v4854_v2 = vadd.f32 %v6584_v48, %v8284_v32  ;;  %v5032_v14 = vadd.f32 %v5031_v18, %v4839_v12  ;;  %v5112_v42 = vadd.f32 %v5100_v0, %v5037_v7 }
 0xa07   : > { %v5130_v3 = vmax.f32 %v5126_v22, %v5129_v38  ;;  %v4848_v39 = vpop.f32.mrf.mxu0 }
 0xa08   : > { %v5047_v34 = vadd.f32 %v6616_v52, %v4854_v2  ;;  %v4849_v20 = vadd.f32 %v8284_v32, %v4848_v39  ;;  %v5111_v45 = vadd.f32 %v5100_v0, %v5032_v14  ;;  %v5141_v30 = vsel %vm955_vm1, %v5112_v42, -inf }
 0xa09   : > { %v6587_v62 = vpop.f32.mrf.mxu0  ;;  %v5133_v1 = vmax.f32 %v5130_v3, %v5132_v58 }
 0xa0a   : > { %v5042_v36 = vadd.f32 %v5041_v8, %v4849_v20  ;;  %v4864_v27 = vadd.f32 %v6587_v62, %v8284_v32  ;;  %v5114_v31 = vadd.f32 %v5100_v0, %v5047_v34  ;;  %v5140_v24 = vsel %vm955_vm1, %v5111_v45, -inf }
 0xa0b   : > { %v4858_v11 = vpop.f32.mrf.mxu0  ;;  %v5134_v18 = vrot.slane %v5133_v1, 4 }
 0xa0c   : > { %v5113_v33 = vadd.f32 %v5100_v0, %v5042_v36  ;;  %v5057_v59 = vadd.f32 %v6619_v23, %v4864_v27  ;;  %v4859_v40 = vadd.f32 %v8284_v32, %v4858_v11  ;;  %v5144_v52 = vsel %vm955_vm1, %v5114_v31, -inf }
 0xa0d   : > { %v6590_v29 = vpop.f32.mrf.mxu0  ;;  %v5135_v6 = vmax.f32 %v5133_v1, %v5134_v18  ;;  %v5145_v8 = vmax.f32 %v5141_v30, %v5144_v52 }
 0xa0e   : > { %v5116_v46 = vadd.f32 %v5100_v0, %v5057_v59  ;;  %v5052_v47 = vadd.f32 %v5051_v17, %v4859_v40  ;;  %v4874_v51 = vadd.f32 %v6590_v29, %v8284_v32  ;;  %v5142_v57 = vsel %vm955_vm1, %v5113_v33, -inf }
 0xa0f   : > { %v4868_v53 = vpop.f32.mrf.mxu0  ;;  %v5143_v4 = vmax.f32 %v5140_v24, %v5142_v57  ;;  %v5136_v19 = vrot.slane %v5135_v6, 2 }
 0xa10   : > { %v5115_v50 = vadd.f32 %v5100_v0, %v5052_v47  ;;  %v5067_v55 = vadd.f32 %v6622_v37, %v4874_v51  ;;  %v4869_v44 = vadd.f32 %v8284_v32, %v4868_v53  ;;  %v5148_v25 = vsel %vm955_vm1, %v5116_v46, -inf }
 0xa11   : > { %v5149_v35 = vmax.f32 %v5145_v8, %v5148_v25  ;;  %v5137_v49 = vmax.f32 %v5135_v6, %v5136_v19 }
 0xa12   : > { %v5146_v5 = vsel %vm955_vm1, %v5115_v50, -inf  ;;  %v5118_v61 = vadd.f32 %v5100_v0, %v5067_v55  ;;  %v5062_v63 = vadd.f32 %v5061_v15, %v4869_v44 }
 0xa13   : > { %v5147_v13 = vmax.f32 %v5143_v4, %v5146_v5  ;;  %v5138_v23 = vrot.slane %v5137_v49, 1 }
 0xa14   : > { %v5152_v10 = vsel %vm955_vm1, %v5118_v61, -inf  ;;  %v5117_v9 = vadd.f32 %v5100_v0, %v5062_v63 }
 0xa15   : > { %v5153_v28 = vmax.f32 %v5149_v35, %v5152_v10  ;;  %v5139_v43 = vmax.f32 %v5137_v49, %v5138_v23 }
 0xa16   : > { %v5150_v32 = vsel %vm955_vm1, %v5117_v9, -inf }
 0xa17   : > { %v5151_v60 = vmax.f32 %v5147_v13, %v5150_v32  ;;  %v5161_v54 = vmax.f32 %v5139_v43, 0.0 }
 0xa19   : > { %v5154_v41 = vmax.f32 %v5151_v60, %v5153_v28 }
 0xa1b   : > { %v5155_v26 = vrot.slane %v5154_v41, 4 }
 0xa1d   : > { %v5156_v21 = vmax.f32 %v5154_v41, %v5155_v26 }
 0xa1f   : > { %v5157_v16 = vrot.slane %v5156_v21, 2 }
 0xa21   : > { %v5158_v22 = vmax.f32 %v5156_v21, %v5157_v16 }
 0xa23   : > { %v5159_v12 = vrot.slane %v5158_v22, 1 }
 0xa25   : > { %v5160_v48 = vmax.f32 %v5158_v22, %v5159_v12 }
 0xa27   : > { %v5162_v38 = vmax.f32 %v5160_v48, 0.0 }
 0xa29   : > { %v5176_v2 = vsel %vm1422_vm3, %v5162_v38, %v5161_v54 }
 0xa2a   : > { %6632 = vmatmul.mubr.msk.f32.vlgmr.msra.gmra.mxu0 %vm955_vm1, %v5176_v2 }
 0xaea   : > { %v5245_v3 = vpop.f32.mrf.mxu0 }
 0xaeb   : > { %v5246_v39 = vadd.f32 %v5679_v56, %v5245_v3 }
 0xaec   : > { %v6633_v34 = vpop.f32.mrf.mxu0 }
 0xaed   : > { %5250 = vst.msk [vmem:[%s355_s26] sm:$0x3] %vm5249_vm4, %v5246_v39 }
 0xaee   : > { %6726 = shalt.err (!%p6723_p3)
}
 0xaef   : > { %s6727_s21 = scalar_lea.hbm %s8335_s30, 32  ;;  %s6731_s26 = scalar_lea.hbm %s8380_s10, 64 }
 0xaf0   : > { %p6728_p4 = scmp.ne.s32.totalorder %s8335_s30, %s6727_s21  ;;  %p6732_p9 = scmp.lt.s32.totalorder %s8335_s30, %s8380_s10 }
 0xaf1   : > { %p6733_p10 = scmp.lt.s32.totalorder %s6731_s26, %s6727_s21 }
 0xaf2   : > { %p6729_p7 = pnand %p6728_p4, %p6875_p5 }
 0xaf3   : > { %p6734_p11 = por %p6733_p10, %p6732_p9 }
 0xaf4   : > { %p6730_p8 = pneg %p6729_p7 }
 0xaf6   : > { %p6735_p12 = pnand %p6734_p11, %p6730_p8 }
 0xaf8   : > { %6738 = shalt.err (!%p6735_p12)
}
 0xaf9   : > { %6642 = dma.vmem_to_hbm [thread:$0]  (%p6875_p5), %s5266_s29, 32, %s8335_s30, %s5252_s11  }
 0xafa PF: > { %p6648_p13 = scmp.ge.s32.totalorder %s6773_s16, 2  ;;  %s5277_s0 = sand.u32 1, %s6761_s13  }
 0xafb   : > { %s5278_s17 = scalar_lea.sflag [#allocation3], %s5277_s0 }
 0xafc   : > { %p6645_p0 = pnand %p6648_p13, %p6879_p6 }
 0xafe   : > { %p6646_p1 = pneg %p6645_p0 }
 0xb00   : > { %6756 = dma.done.wait (%p6646_p1), %s5278_s17, 32  }
 0xb01   : > { %6758 = vsyncadd (%p6646_p1), %s5278_s17, 4294967264  ;;  %p20_p2 = scmp.ge.s32.totalorder %s6862_s19, 4   ;;  %s8385_s13 = smov %s6765_s14 }
 0xb02   : > { %s8386_s14 = smov %s6769_s15  ;;  %s8387_s15 = smov %s6873_s22 }
 0xb03   : > { %s8388_s16 = smov %s6862_s19  ;;  %22 = sbr.rel (!%p20_p2) target bundleno = 5 (0x5), region = 115 }
 0xb08   :  { %5283 = vsyncpa [#allocation3], 1 }
 0xb09   :  { %5285 = vsyncpa [#allocation3 + $0x1], 1 }

// kernel: tpu_custom_call.1
= control target key start
LH: loop header
LB: loop body
LE: loop exit
PB: predicated region body
PF: predicated region fallthrough
CT: control target
= control target key end

     0   :  { %s8370_s0 = inlined_call_operand.vmem [shape: f32[4,64,3], index: 0, kind: input, shape index: {}]   ;;  %s8371_s1 = inlined_call_operand.vmem [shape: f32[3,64], index: 1, kind: input, shape index: {}]   ;;  %s8372_s2 = inlined_call_operand.vmem [shape: f32[1,64], index: 2, kind: input, shape index: {}]   ;;  %s8373_s3 = inlined_call_operand.vmem [shape: f32[5,64,32], index: 3, kind: input, shape index: {}]   ;;  %s8374_s4 = inlined_call_operand.vmem [shape: f32[5,1,32], index: 4, kind: input, shape index: {}]   ;;  %s8375_s5 = inlined_call_operand.vmem [shape: f32[5,32,32], index: 5, kind: input, shape index: {}]   ;;  %s8376_s6 = inlined_call_operand.vmem [shape: f32[5,1,32], index: 6, kind: input, shape index: {}]   ;;  %s8377_s7 = inlined_call_operand.vmem [shape: f32[5,64,32], index: 7, kind: input, shape index: {}]   ;;  %s8378_s8 = inlined_call_operand.vmem [shape: f32[32,8], index: 8, kind: input, shape index: {}]   ;;  %s8379_s9 = inlined_call_operand.vmem [shape: f32[1,8], index: 9, kind: input, shape index: {}]   ;;  %s8380_s10 = inlined_call_operand.hbm [shape: f32[2,2,8], index: 10, kind: output, shape index: {}]  }
   0x1   :  { %8381 = sst [smem:[#allocation5_spill]] %s8370_s0 }
   0x2   :  { %15 = vsyncpa [#allocation3], 0 }
   0x3   :  { %17 = vsyncpa [#allocation3 + $0x1], 0  ;;  %s6837_s13 = smov 0   ;;  %s6839_s14 = smov 0  }
   0x4   :  { %s6841_s15 = smov 0   ;;  %s6843_s16 = smov 0  }
   0x5 LB: > { %s6858_s17 = sadd.s32 4294967295, %s6773_s16   ;;  %s5324_s18 = sadd.s32 4294967294, %s6773_s16   ;;  %s6773_s16 = sphi %s6843_s16, %s8388_s16   ;;  %s6769_s15 = sphi %s6841_s15, %s8387_s15   ;;  %s6765_s14 = sphi %s6839_s14, %s8386_s14   ;;  %s6761_s13 = sphi %s6837_s13, %s8385_s13  }
   0x6   : > { %s6862_s19 = sadd.s32 1, %s6773_s16   ;;  %s245_s20 = sadd.s32 1, %s6769_s15 }
   0x7   : > { %s242_s21 = ssub.s32 %s6773_s16, %s6862_s19  ;;  %p255_p0 = scmp.ne.s32.totalorder %s6769_s15, %s6765_s14 }
   0x8   : > { %p243_p1 = scmp.eq.s32.totalorder %s242_s21, 0  ;;  %p256_p2 = scmp.eq.s32.totalorder %s6858_s17, 1 }
   0x9   : > { %p261_p3 = scmp.ne.s32.totalorder %s6765_s14, %s6761_s13  ;;  %p262_p4 = scmp.eq.s32.totalorder %s5324_s18, 1 }
   0xa   : > { %s6873_s22 = scalar_select %p243_p1, %s6769_s15, %s245_s20  }
   0xb   : > { %p6875_p5 = por %p256_p2, %p255_p0  ;;  %p6879_p6 = por %p262_p4, %p261_p3 }
   0xc   : > { %p5327_p7 = scmp.ge.s32.totalorder %s6773_s16, 1  ;;  %p317_p8 = scmp.lt.s32.totalorder %s6773_s16, 3 }
   0xe   : > { %p318_p9 = pnand %p5327_p7, %p317_p8 }
   0xf   : > { %s5329_s25 = sshll.u32 (!%p318_p9), %s6858_s17, 1  ;;  %s8384_s0 = sld [smem:[#allocation5_spill]] (!%p318_p9) }
  0x10   : > { %321 = sbr.rel (%p318_p9) target bundleno = 2810 (0xafa), region = 60  ;;  %p357_p10 = scmp.lt.s32.totalorder (!%p318_p9), %s5329_s25, 3 }
  0x11   : > { %s353_s12 = sand.u32 (!%p318_p9), 1, %s6765_s14  }
  0x12   : > { %s5328_s18 = sshll.u32 (!%p318_p9), %s353_s12, 1  ;;  %s5252_s11 = scalar_lea.sflag (!%p318_p9), [#allocation3], %s353_s12 }
  0x15   : > { %v6775_v0 = vmov 1   ;;  %v6776_v1 = vmov 0   ;;  %s8390_s25 = smov (!%p357_p10, %s5329_s25), 3  ;;  %v726_v2 = vld [vmem:[%s8373_s3 + $0x38] sm:$0xff]  ;;  %v725_v5 = vld [vmem:[%s8373_s3 + $0x30] sm:$0xff]  ;;  %v724_v6 = vld [vmem:[%s8373_s3 + $0x28] sm:$0xff]  ;;  %v461_v27 = vlaneseq }
  0x16   : > { %6688 = vset.pattern.permute.xlu1 %v6775_v0  ;;  %6687 = vset.pattern.permute.xlu0 %v6776_v1  ;;  %s5685_s26 = sshll.u32 %s8390_s25, 6  ;;  %v723_v8 = vld [vmem:[%s8373_s3 + $0x20] sm:$0xff]  ;;  %v6777_v9 = vmov 2   ;;  %v722_v11 = vld [vmem:[%s8373_s3 + $0x18] sm:$0xff]  ;;  %v721_v12 = vld [vmem:[%s8373_s3 + $0x10] sm:$0xff]  ;;  %vm734_vm0 = vcmask 523264  }
  0x17   : > { %s6891_s29 = scalar_lea.vmem %s8384_s0, %s5685_s26  ;;  %6039 = vmatprep.subr.mxu0 %v726_v2  ;;  %v720_v13 = vld [vmem:[%s8373_s3 + $0x8] sm:$0xff]  ;;  %v719_v14 = vld [vmem:[%s8373_s3] sm:$0xff]  ;;  %v6956_v28 = vshrl.u32 %v461_v27, 7  ;;  %vm955_vm1 = vcmask 261120   ;;  %vm6779_vm2 = vmmov 0   ;;  %vm1422_vm3 = vcmask 1041409  }
  0x18   : > { %v363_v3 = vld [vmem:[%s6891_s29] sm:$0xff]  ;;  %v364_v4 = vld [vmem:[%s6891_s29 + $0x8] sm:$0xff]  ;;  %6040 = vmatpush3.msra.mxu0 %v726_v2  ;;  %v365_v7 = vld [vmem:[%s6891_s29 + $0x10] sm:$0xff]  ;;  %s5682_s25 = sshll.u32 %s6858_s17, 5  ;;  %s355_s26 = scalar_lea.vmem [#allocation2], %s5328_s18  ;;  %vm5249_vm4 = vcmask 58368  }
  0x19   : > { %504 = vperm.xlu1 %6688, %v363_v3   ;;  %383 = vperm.xlu0 %6687, %v363_v3   ;;  %v366_v10 = vld [vmem:[%s6891_s29 + $0x18] sm:$0xff]  ;;  %v367_v15 = vld [vmem:[%s6891_s29 + $0x20] sm:$0xff]  ;;  %v369_v16 = vld [vmem:[%s6891_s29 + $0x30] sm:$0xff]  ;;  %v6960_v29 = vsub.s32 0, %v6956_v28  ;;  %v569_v32 = vsub.s32 1, %v6956_v28  ;;  %v669_v36 = vsub.s32 2, %v6956_v28  ;;  %s8335_s30 = scalar_lea.hbm %s8380_s10, %s5682_s25 }
  0x1a   : > { %6041 = vmatprep.subr.mxu0 %v725_v5  ;;  %v368_v17 = vld [vmem:[%s6891_s29 + $0x28] sm:$0xff]  ;;  %v371_v18 = vld [vmem:[%s6891_s29 + $0x40] sm:$0xff]  ;;  %v373_v19 = vld [vmem:[%s6891_s29 + $0x50] sm:$0xff]  ;;  %s6781_s17 = smov [#allocation2]  }
  0x1b   : > { %6042 = vmatpush3.msra.mxu0 %v725_v5  ;;  %v375_v20 = vld [vmem:[%s6891_s29 + $0x60] sm:$0xff]  ;;  %v370_v21 = vld [vmem:[%s6891_s29 + $0x38] sm:$0xff]  ;;  %v372_v22 = vld [vmem:[%s6891_s29 + $0x48] sm:$0xff]  ;;  %s6717_s18 = sshll.u32 %s6781_s17, 4  ;;  %s6718_s18 = int_to_ptr.vmem [resolvable:$false] %s6717_s18 }
  0x1c   : > { %6043 = vmatprep.subr.mxu0 %v724_v6  ;;  %v6941_v23 = vld [vmem:[%s6891_s29 + $0x70] sm:$0xff]  ;;  %v378_v24 = vld [vmem:[%s6891_s29 + $0x78] sm:$0xff]  ;;  %v376_v26 = vld [vmem:[%s6891_s29 + $0x68] sm:$0xff]  ;;  %s6719_s20 = scalar_lea.vmem %s6718_s18, 64 }
  0x1d   : > { %508 = vperm.xlu1 %6688, %v364_v4   ;;  %388 = vperm.xlu0 %6687, %v364_v4   ;;  %v374_v25 = vld [vmem:[%s6891_s29 + $0x58] sm:$0xff]  ;;  %v379_v30 = vld [vmem:[%s8371_s1] sm:$0x7]  ;;  %s5265_s29 = sshll.u32 %s355_s26, 4  ;;  %s5266_s29 = int_to_ptr.vmem [resolvable:$true] %s5265_s29 }
  0x1e   : > { %6044 = vmatpush3.msra.mxu0 %v724_v6  ;;  %v6967_v31 = vrot.slane %v379_v30, %v6960_v29  ;;  %v6975_v37 = vld [vmem:[%s8372_s2] ss:$0 sm:$0xff]  ;;  %v6978_v38 = vrot.slane %v379_v30, %v569_v32  ;;  %v6982_v43 = vrot.slane %v379_v30, %v669_v36  ;;  %s6713_s0 = scalar_lea.vmem %s5266_s29, 32  ;;  %p6720_p0 = scmp.lt.s32.totalorder %s5266_s29, %s6718_s18 }
  0x1f   : > { %6045 = vmatprep.subr.mxu0 %v723_v8  ;;  %p6714_p11 = scmp.ne.s32.totalorder %s5266_s29, %s6713_s0  ;;  %p6721_p1 = scmp.lt.s32.totalorder %s6719_s20, %s6713_s0 }
  0x20   : > { %6046 = vmatpush3.msra.mxu0 %v723_v8 }
  0x21   : > { %6689 = vset.pattern.permute.xlu1 %v6777_v9  ;;  %393 = vperm.xlu0 %6687, %v365_v7   ;;  %p6715_p12 = pnand %p6714_p11, %p6875_p5  ;;  %p6722_p2 = por %p6721_p1, %p6720_p0 }
  0x22   : > { %604 = vperm.xlu1 %6689, %v363_v3   ;;  %6047 = vmatprep.subr.mxu0 %v722_v11 }
  0x23   : > { %6048 = vmatpush3.msra.mxu0 %v722_v11  ;;  %p6716_p13 = pneg %p6715_p12 }
  0x24   : > { %6049 = vmatprep.subr.mxu0 %v721_v12 }
  0x25   : > { %398 = vperm.xlu0 %6687, %v366_v10   ;;  %6050 = vmatpush3.msra.mxu0 %v721_v12  ;;  %p6723_p3 = pnand %p6722_p2, %p6716_p13 }
  0x26   : > { %608 = vperm.xlu1 %6689, %v364_v4   ;;  %6051 = vmatprep.subr.mxu0 %v720_v13 }
  0x27   : > { %6052 = vmatpush3.msra.mxu0 %v720_v13 }
  0x28   : > { %6053 = vmatprep.subr.mxu0 %v719_v14 }
  0x29   : > { %6692 = vset.pattern.permute.xlu0 %v6777_v9  ;;  %6054 = vmatpush3.msra.mxu0 %v719_v14 }
  0x2a   : > { %6690 = vset.pattern.permute.xlu1 %v6775_v0  ;;  %612 = vperm.xlu0 %6692, %v365_v7  }
  0x2b   : > { %516 = vperm.xlu1 %6690, %v366_v10  }
  0x2e   : > { %620 = vperm.xlu0 %6692, %v367_v15  }
  0x2f   : > { %6691 = vset.pattern.permute.xlu1 %v6776_v1 }
  0x30   : > { %403 = vperm.xlu1 %6691, %v367_v15  }
  0x32   : > { %628 = vperm.xlu0 %6692, %v369_v16  }
  0x34   : > { %408 = vperm.xlu1 %6691, %v368_v17  }
  0x36   : > { %636 = vperm.xlu0 %6692, %v371_v18  }
  0x38   : > { %6693 = vset.pattern.permute.xlu1 %v6777_v9 }
  0x39   : > { %616 = vperm.xlu1 %6693, %v366_v10  }
  0x3a   : > { %644 = vperm.xlu0 %6692, %v373_v19  }
  0x3d   : > { %6694 = vset.pattern.permute.xlu1 %v6775_v0 }
  0x3e   : > { %524 = vperm.xlu1 %6694, %v368_v17   ;;  %652 = vperm.xlu0 %6692, %v375_v20  }
  0x42   : > { %6695 = vset.pattern.permute.xlu1 %v6776_v1  ;;  %6708 = vset.pattern.permute.xlu0 %v6775_v0 }
  0x43   : > { %413 = vperm.xlu1 %6695, %v369_v16   ;;  %512 = vperm.xlu0 %6708, %v365_v7  }
  0x47   : > { %418 = vperm.xlu1 %6695, %v370_v21   ;;  %520 = vperm.xlu0 %6708, %v367_v15  }
  0x4b   : > { %6696 = vset.pattern.permute.xlu1 %v6777_v9  ;;  %528 = vperm.xlu0 %6708, %v369_v16  }
  0x4c   : > { %624 = vperm.xlu1 %6696, %v368_v17  }
  0x4f   : > { %536 = vperm.xlu0 %6708, %v371_v18  }
  0x50   : > { %6697 = vset.pattern.permute.xlu1 %v6775_v0 }
  0x51   : > { %532 = vperm.xlu1 %6697, %v370_v21  }
  0x53   : > { %544 = vperm.xlu0 %6708, %v373_v19  }
  0x55   : > { %6698 = vset.pattern.permute.xlu1 %v6776_v1 }
  0x56   : > { %423 = vperm.xlu1 %6698, %v371_v18  }
  0x57   : > { %552 = vperm.xlu0 %6708, %v375_v20  }
  0x5a   : > { %428 = vperm.xlu1 %6698, %v372_v22  }
  0x5b   : > { %560 = vperm.xlu0 %6708, %v6941_v23  }
  0x5e   : > { %6699 = vset.pattern.permute.xlu1 %v6777_v9 }
  0x5f   : > { %632 = vperm.xlu1 %6699, %v370_v21   ;;  %6712 = vset.pattern.permute.xlu0 %v6777_v9 }
  0x60   : > { %664 = vperm.xlu0 %6712, %v378_v24  }
  0x63   : > { %6700 = vset.pattern.permute.xlu1 %v6775_v0 }
  0x64   : > { %540 = vperm.xlu1 %6700, %v372_v22  }
  0x68   : > { %6701 = vset.pattern.permute.xlu1 %v6776_v1 }
  0x69   : > { %433 = vperm.xlu1 %6701, %v373_v19  }
  0x6d   : > { %438 = vperm.xlu1 %6701, %v374_v25  }
  0x71   : > { %6702 = vset.pattern.permute.xlu1 %v6777_v9 }
  0x72   : > { %640 = vperm.xlu1 %6702, %v372_v22  }
  0x76   : > { %6703 = vset.pattern.permute.xlu1 %v6775_v0 }
  0x77   : > { %548 = vperm.xlu1 %6703, %v374_v25  }
  0x7b   : > { %6704 = vset.pattern.permute.xlu1 %v6776_v1 }
  0x7c   : > { %443 = vperm.xlu1 %6704, %v375_v20  }
  0x80   : > { %448 = vperm.xlu1 %6704, %v376_v26  }
  0x84   : > { %6705 = vset.pattern.permute.xlu1 %v6777_v9 }
  0x85   : > { %648 = vperm.xlu1 %6705, %v374_v25  }
  0x89   : > { %6706 = vset.pattern.permute.xlu1 %v6775_v0 }
  0x8a   : > { %556 = vperm.xlu1 %6706, %v376_v26  }
  0x8e   : > { %6707 = vset.pattern.permute.xlu1 %v6776_v1 }
  0x8f   : > { %453 = vperm.xlu1 %6707, %v6941_v23  }
  0x93   : > { %458 = vperm.xlu1 %6707, %v378_v24  }
  0x94   : > { %v505_v33 = vpop.permute.xlu1 %504  ;;  %v384_v34 = vpop.permute.xlu0 %383 }
  0x95   : > { %v465_v35 = vmul.f32 %v6967_v31, %v384_v34  ;;  %v571_v44 = vmul.f32 %v6978_v38, %v505_v33 }
  0x97   : > { %6709 = vset.pattern.permute.xlu1 %v6777_v9  ;;  %v487_v41 = vadd.f32 %v6975_v37, %v465_v35 }
  0x98   : > { %656 = vperm.xlu1 %6709, %v376_v26   ;;  %v509_v39 = vpop.permute.xlu1 %508  ;;  %v389_v40 = vpop.permute.xlu0 %388 }
  0x99   : > { %v466_v42 = vmul.f32 %v6967_v31, %v389_v40  ;;  %v587_v48 = vadd.f32 %v571_v44, %v487_v41  ;;  %v572_v50 = vmul.f32 %v6978_v38, %v509_v39 }
  0x9b   : > { %v488_v47 = vadd.f32 %v6975_v37, %v466_v42 }
  0x9c   : > { %6710 = vset.pattern.permute.xlu1 %v6775_v0  ;;  %v394_v45 = vpop.permute.xlu0 %393 }
  0x9d   : > { %564 = vperm.xlu1 %6710, %v378_v24   ;;  %v605_v46 = vpop.permute.xlu1 %604  ;;  %v588_v54 = vadd.f32 %v572_v50, %v488_v47  ;;  %v467_v5 = vmul.f32 %v6967_v31, %v394_v45 }
  0x9e   : > { %v671_v49 = vmul.f32 %v6982_v43, %v605_v46 }
  0x9f   : > { %v489_v10 = vadd.f32 %v6975_v37, %v467_v5 }
  0xa0   : > { %v6989_v51 = vadd.f32 %v671_v49, %v587_v48  ;;  %v399_v52 = vpop.permute.xlu0 %398 }
  0xa1   : > { %6711 = vset.pattern.permute.xlu1 %v6777_v9  ;;  %v609_v53 = vpop.permute.xlu1 %608  ;;  %v468_v4 = vmul.f32 %v6967_v31, %v399_v52 }
  0xa2   : > { %v672_v55 = vmul.f32 %v6982_v43, %v609_v53  ;;  %660 = vperm.xlu1 %6711, %v6941_v23   ;;  %v703_v56 = vmax.f32 %v6989_v51, 0.0 }
  0xa3   : > { %v490_v8 = vadd.f32 %v6975_v37, %v468_v4 }
  0xa4   : > { %v6995_v57 = vadd.f32 %v672_v55, %v588_v54  ;;  %6055 = vmatprep.mubr.msk.f32.mxu0 %vm734_vm0, %v703_v56 }
  0xa5   : > { %v613_v58 = vpop.permute.xlu0 %612 }
  0xa6   : > { %v704_v59 = vmax.f32 %v6995_v57, 0.0  ;;  %v517_v60 = vpop.permute.xlu1 %516  ;;  %v673_v14 = vmul.f32 %v6982_v43, %v613_v58 }
  0xa7   : > { %v574_v9 = vmul.f32 %v6978_v38, %v517_v60 }
  0xa8   : > { %6056 = vmatmul.mubr.msk.f32.vlgmr.msra.gmra.mxu0 %vm734_vm0, %v704_v59 }
  0xa9   : > { %v621_v61 = vpop.permute.xlu0 %620  ;;  %v590_v17 = vadd.f32 %v574_v9, %v490_v8 }
  0xaa   : > { %v675_v19 = vmul.f32 %v6982_v43, %v621_v61 }
  0xab   : > { %v404_v62 = vpop.permute.xlu1 %403 }
  0xac   : > { %v469_v15 = vmul.f32 %v6967_v31, %v404_v62 }
  0xad   : > { %v629_v63 = vpop.permute.xlu0 %628 }
  0xae   : > { %v491_v24 = vadd.f32 %v6975_v37, %v469_v15  ;;  %v677_v39 = vmul.f32 %v6982_v43, %v629_v63 }
  0xaf   : > { %v409_v0 = vpop.permute.xlu1 %408 }
  0xb0   : > { %v470_v20 = vmul.f32 %v6967_v31, %v409_v0 }
  0xb1   : > { %v637_v1 = vpop.permute.xlu0 %636 }
  0xb2   : > { %v492_v34 = vadd.f32 %v6975_v37, %v470_v20  ;;  %v679_v0 = vmul.f32 %v6982_v43, %v637_v1 }
  0xb4   : > { %v617_v2 = vpop.permute.xlu1 %616 }
  0xb5   : > { %v7000_v3 = vpop.permute.xlu0 %644  ;;  %v674_v11 = vmul.f32 %v6982_v43, %v617_v2 }
  0xb7   : > { %v7015_v21 = vadd.f32 %v674_v11, %v590_v17 }
  0xb9   : > { %v525_v6 = vpop.permute.xlu1 %524  ;;  %v7004_v7 = vpop.permute.xlu0 %652  ;;  %v706_v35 = vmax.f32 %v7015_v21, 0.0 }
  0xba   : > { %v576_v30 = vmul.f32 %v6978_v38, %v525_v6 }
  0xbc   : > { %v592_v45 = vadd.f32 %v576_v30, %v492_v34 }
  0xbe   : > { %v414_v12 = vpop.permute.xlu1 %413  ;;  %v513_v13 = vpop.permute.xlu0 %512 }
  0xbf   : > { %v573_v16 = vmul.f32 %v6978_v38, %v513_v13  ;;  %v471_v25 = vmul.f32 %v6967_v31, %v414_v12 }
  0xc1   : > { %v589_v18 = vadd.f32 %v573_v16, %v489_v10  ;;  %v493_v40 = vadd.f32 %v6975_v37, %v471_v25 }
  0xc2   : > { %v419_v22 = vpop.permute.xlu1 %418  ;;  %v521_v23 = vpop.permute.xlu0 %520 }
  0xc3   : > { %v7019_v26 = vadd.f32 %v673_v14, %v589_v18  ;;  %v575_v27 = vmul.f32 %v6978_v38, %v521_v23  ;;  %v472_v61 = vmul.f32 %v6967_v31, %v419_v22  ;;  %v947_v18 = vld [vmem:[%s8375_s5 + $0x18] sm:$0xff]  ;;  %v946_v22 = vld [vmem:[%s8375_s5 + $0x10] sm:$0xff] }
  0xc4   : > { %6079 = vmatprep.subr.mxu0 %v947_v18  ;;  %6634 = vmatprep.subr.mxu1 %v947_v18 }
  0xc5   : > { %v705_v32 = vmax.f32 %v7019_v26, 0.0  ;;  %v591_v33 = vadd.f32 %v575_v27, %v491_v24  ;;  %v494_v4 = vadd.f32 %v6975_v37, %v472_v61  ;;  %6080 = vmatpush3.msra.mxu0 %v947_v18  ;;  %6638 = vmatpush3.msra.mxu1 %v947_v18  ;;  %v681_v24 = vmul.f32 %v6982_v43, %v7000_v3  ;;  %v945_v27 = vld [vmem:[%s8375_s5 + $0x8] sm:$0xff] }
  0xc6   : > { %v529_v36 = vpop.permute.xlu0 %528  ;;  %6081 = vmatprep.subr.mxu0 %v946_v22  ;;  %6635 = vmatprep.subr.mxu1 %v946_v22 }
  0xc7   : > { %v7028_v41 = vadd.f32 %v675_v19, %v591_v33  ;;  %v577_v42 = vmul.f32 %v6978_v38, %v529_v36  ;;  %v625_v44 = vpop.permute.xlu1 %624  ;;  %6058 = vmatprep.mubr.msk.f32.mxu0 %vm734_vm0, %v705_v32  ;;  %6082 = vmatpush3.msra.mxu0 %v946_v22  ;;  %v944_v33 = vld [vmem:[%s8375_s5] sm:$0xff] }
  0xc8   : > { %v676_v46 = vmul.f32 %v6982_v43, %v625_v44  ;;  %6059 = vmatmul.mubr.msk.f32.gmra.mxu0 %vm734_vm0, %v706_v35  ;;  %6639 = vmatpush3.msra.mxu1 %v946_v22 }
  0xc9   : > { %v707_v47 = vmax.f32 %v7028_v41, 0.0  ;;  %v593_v48 = vadd.f32 %v577_v42, %v493_v40  ;;  %6083 = vmatprep.subr.mxu0 %v945_v27  ;;  %6636 = vmatprep.subr.mxu1 %v945_v27 }
  0xca   : > { %v7035_v49 = vadd.f32 %v676_v46, %v592_v45  ;;  %v537_v56 = vpop.permute.xlu0 %536  ;;  %6084 = vmatpush3.msra.mxu0 %v945_v27  ;;  %6640 = vmatpush3.msra.mxu1 %v945_v27 }
  0xcb   : > { %v7037_v50 = vadd.f32 %v677_v39, %v593_v48  ;;  %6061 = vmatprep.mubr.msk.f32.mxu0 %vm734_vm0, %v707_v47  ;;  %v579_v60 = vmul.f32 %v6978_v38, %v537_v56  ;;  %6085 = vmatprep.subr.mxu0 %v944_v33 }
  0xcc   : > { %v708_v52 = vmax.f32 %v7035_v49, 0.0  ;;  %v533_v53 = vpop.permute.xlu1 %532  ;;  %6637 = vmatprep.subr.mxu1 %v944_v33  ;;  %6086 = vmatpush3.msra.mxu0 %v944_v33 }
  0xcd   : > { %v709_v54 = vmax.f32 %v7037_v50, 0.0  ;;  %v578_v63 = vmul.f32 %v6978_v38, %v533_v53  ;;  %6641 = vmatpush3.msra.mxu1 %v944_v33 }
  0xce   : > { %6062 = vmatmul.mubr.msk.f32.gmra.mxu0 %vm734_vm0, %v708_v52  ;;  %v545_v14 = vpop.permute.xlu0 %544 }
  0xcf   : > { %6064 = vmatprep.mubr.msk.f32.mxu0 %vm734_vm0, %v709_v54  ;;  %v594_v6 = vadd.f32 %v578_v63, %v494_v4  ;;  %v581_v17 = vmul.f32 %v6978_v38, %v545_v14 }
  0xd1   : > { %v424_v55 = vpop.permute.xlu1 %423 }
  0xd2   : > { %v473_v58 = vmul.f32 %v6967_v31, %v424_v55  ;;  %v553_v45 = vpop.permute.xlu0 %552 }
  0xd3   : > { %v583_v48 = vmul.f32 %v6978_v38, %v553_v45 }
  0xd4   : > { %v495_v59 = vadd.f32 %v6975_v37, %v473_v58  ;;  %v683_v58 = vmul.f32 %v6982_v43, %v7004_v7 }
  0xd5   : > { %v429_v62 = vpop.permute.xlu1 %428 }
  0xd6   : > { %v595_v2 = vadd.f32 %v579_v60, %v495_v59  ;;  %v474_v19 = vmul.f32 %v6967_v31, %v429_v62 }
  0xd8   : > { %v7052_v9 = vadd.f32 %v679_v0, %v595_v2  ;;  %v496_v30 = vadd.f32 %v6975_v37, %v474_v19 }
  0xda   : > { %v633_v5 = vpop.permute.xlu1 %632  ;;  %v711_v13 = vmax.f32 %v7052_v9, 0.0 }
  0xdb   : > { %v678_v8 = vmul.f32 %v6982_v43, %v633_v5 }
  0xdd   : > { %v7054_v10 = vadd.f32 %v678_v8, %v594_v6 }
  0xdf   : > { %v710_v11 = vmax.f32 %v7054_v10, 0.0  ;;  %v541_v12 = vpop.permute.xlu1 %540 }
  0xe0   : > { %v580_v23 = vmul.f32 %v6978_v38, %v541_v12 }
  0xe1   : > { %6065 = vmatmul.mubr.msk.f32.gmra.mxu0 %vm734_vm0, %v710_v11 }
  0xe2   : > { %6067 = vmatprep.mubr.msk.f32.mxu0 %vm734_vm0, %v711_v13  ;;  %v596_v34 = vadd.f32 %v580_v23, %v496_v30  ;;  %v561_v13 = vpop.permute.xlu0 %560 }
  0xe3   : > { %v585_v30 = vmul.f32 %v6978_v38, %v561_v13  ;;  %v1149_v13 = vld [vmem:[%s8377_s7] sm:$0xff] }
  0xe4   : > { %v434_v1 = vpop.permute.xlu1 %433 }
  0xe5   : > { %v475_v15 = vmul.f32 %v6967_v31, %v434_v1 }
  0xe7   : > { %v497_v16 = vadd.f32 %v6975_v37, %v475_v15 }
  0xe8   : > { %v439_v20 = vpop.permute.xlu1 %438 }
  0xe9   : > { %v597_v25 = vadd.f32 %v581_v17, %v497_v16  ;;  %v476_v52 = vmul.f32 %v6967_v31, %v439_v20  ;;  %v665_v20 = vpop.permute.xlu0 %664 }
  0xea   : > { %v686_v27 = vmul.f32 %v6982_v43, %v665_v20 }
  0xeb   : > { %v7081_v35 = vadd.f32 %v681_v24, %v597_v25  ;;  %v498_v56 = vadd.f32 %v6975_v37, %v476_v52 }
  0xed   : > { %v641_v32 = vpop.permute.xlu1 %640  ;;  %v713_v42 = vmax.f32 %v7081_v35, 0.0 }
  0xee   : > { %v680_v3 = vmul.f32 %v6982_v43, %v641_v32 }
  0xf0   : > { %v7083_v36 = vadd.f32 %v680_v3, %v596_v34 }
  0xf2   : > { %v712_v39 = vmax.f32 %v7083_v36, 0.0  ;;  %v549_v40 = vpop.permute.xlu1 %548 }
  0xf3   : > { %v582_v54 = vmul.f32 %v6978_v38, %v549_v40 }
  0xf4   : > { %6068 = vmatmul.mubr.msk.f32.gmra.mxu0 %vm734_vm0, %v712_v39 }
  0xf5   : > { %6070 = vmatprep.mubr.msk.f32.mxu0 %vm734_vm0, %v713_v42  ;;  %v598_v60 = vadd.f32 %v582_v54, %v498_v56 }
  0xf7   : > { %v444_v44 = vpop.permute.xlu1 %443 }
  0xf8   : > { %v477_v46 = vmul.f32 %v6967_v31, %v444_v44 }
  0xfa   : > { %v499_v47 = vadd.f32 %v6975_v37, %v477_v46 }
  0xfb   : > { %v449_v53 = vpop.permute.xlu1 %448 }
  0xfc   : > { %v599_v55 = vadd.f32 %v583_v48, %v499_v47  ;;  %v478_v7 = vmul.f32 %v6967_v31, %v449_v53 }
  0xfe   : > { %v7098_v62 = vadd.f32 %v683_v58, %v599_v55  ;;  %v500_v11 = vadd.f32 %v6975_v37, %v478_v7  ;;  %v1153_v7 = vld [vmem:[%s8377_s7 + $0x20] sm:$0xff] }
 0x100   : > { %v649_v59 = vpop.permute.xlu1 %648  ;;  %v715_v4 = vmax.f32 %v7098_v62, 0.0 }
 0x101   : > { %v682_v61 = vmul.f32 %v6982_v43, %v649_v59 }
 0x103   : > { %v7100_v63 = vadd.f32 %v682_v61, %v598_v60 }
 0x105   : > { %v714_v0 = vmax.f32 %v7100_v63, 0.0  ;;  %v557_v2 = vpop.permute.xlu1 %556 }
 0x106   : > { %v584_v8 = vmul.f32 %v6978_v38, %v557_v2 }
 0x107   : > { %6071 = vmatmul.mubr.msk.f32.gmra.mxu0 %vm734_vm0, %v714_v0 }
 0x108   : > { %6073 = vmatprep.mubr.msk.f32.mxu0 %vm734_vm0, %v715_v4  ;;  %v600_v1 = vadd.f32 %v584_v8, %v500_v11  ;;  %v1155_v4 = vld [vmem:[%s8377_s7 + $0x30] sm:$0xff]  ;;  %v1150_v11 = vld [vmem:[%s8377_s7 + $0x8] sm:$0xff] }
 0x109   : > { %v1151_v8 = vld [vmem:[%s8377_s7 + $0x10] sm:$0xff] }
 0x10a   : > { %v454_v5 = vpop.permute.xlu1 %453 }
 0x10b   : > { %v479_v16 = vmul.f32 %v6967_v31, %v454_v5  ;;  %v1154_v5 = vld [vmem:[%s8377_s7 + $0x28] sm:$0xff] }
 0x10d   : > { %v501_v24 = vadd.f32 %v6975_v37, %v479_v16 }
 0x10e   : > { %v459_v6 = vpop.permute.xlu1 %458 }
 0x10f   : > { %v480_v15 = vmul.f32 %v6967_v31, %v459_v6  ;;  %v601_v32 = vadd.f32 %v585_v30, %v501_v24  ;;  %v1152_v6 = vld [vmem:[%s8377_s7 + $0x18] sm:$0xff] }
 0x111   : > { %v502_v22 = vadd.f32 %v6975_v37, %v480_v15  ;;  %v1156_v37 = vld [vmem:[%s8377_s7 + $0x38] sm:$0xff] }
 0x112   : > { %6111 = vmatprep.subr.mxu1 %v1156_v37 }
 0x113   : > { %v657_v12 = vpop.permute.xlu1 %656 }
 0x114   : > { %v684_v14 = vmul.f32 %v6982_v43, %v657_v12 }
 0x116   : > { %v7112_v17 = vadd.f32 %v684_v14, %v600_v1 }
 0x118   : > { %v716_v18 = vmax.f32 %v7112_v17, 0.0  ;;  %v565_v19 = vpop.permute.xlu1 %564 }
 0x119   : > { %v586_v23 = vmul.f32 %v6978_v38, %v565_v19  ;;  %v7136_v38 = vld [vmem:[%s8374_s4] ss:$0 sm:$0xff] }
 0x11a   : > { %6074 = vmatmul.mubr.msk.f32.gmra.mxu0 %vm734_vm0, %v716_v18 }
 0x11b   : > { %v602_v25 = vadd.f32 %v586_v23, %v502_v22 }
 0x11d   : > { %v661_v31 = vpop.permute.xlu1 %660  ;;  %v7122_v34 = vadd.f32 %v686_v27, %v602_v25 }
 0x11e   : > { %v685_v33 = vmul.f32 %v6982_v43, %v661_v31 }
 0x11f   : > { %v718_v40 = vmax.f32 %v7122_v34, 0.0 }
 0x120   : > { %v7124_v3 = vadd.f32 %v685_v33, %v601_v32 }
 0x122   : > { %v717_v39 = vmax.f32 %v7124_v3, 0.0 }
 0x124   : > { %6076 = vmatprep.mubr.msk.f32.mxu0 %vm734_vm0, %v717_v39 }
 0x125   : > { %6077 = vmatmul.mubr.msk.f32.gmra.mxu0 %vm734_vm0, %v718_v40 }
 0x168   : > { %v6057_v43 = vpop.f32.mrf.mxu0 }
 0x169   : > { %v855_v42 = vadd.f32 %v6057_v43, %v7136_v38 }
 0x16a   : > { %v849_v44 = vpop.f32.mrf.mxu0 }
 0x16b   : > { %v850_v45 = vadd.f32 %v7136_v38, %v849_v44  ;;  %v929_v47 = vmax.f32 %v855_v42, 0.0 }
 0x16d   : > { %v928_v46 = vmax.f32 %v850_v45, 0.0 }
 0x16f   : > { %6087 = vmatprep.mubr.msk.f32.mxu0 %vm955_vm1, %v928_v46 }
 0x170   : > { %6088 = vmatmul.mubr.msk.f32.vlgmr.msra.gmra.mxu0 %vm955_vm1, %v929_v47 }
 0x188   : > { %v6060_v48 = vpop.f32.mrf.mxu0 }
 0x189   : > { %v865_v52 = vadd.f32 %v6060_v48, %v7136_v38 }
 0x18a   : > { %v859_v53 = vpop.f32.mrf.mxu0 }
 0x18b   : > { %v860_v54 = vadd.f32 %v7136_v38, %v859_v53  ;;  %v931_v56 = vmax.f32 %v865_v52, 0.0 }
 0x18d   : > { %v930_v55 = vmax.f32 %v860_v54, 0.0 }
 0x18e   : > { %v6063_v58 = vpop.f32.mrf.mxu0 }
 0x18f   : > { %6090 = vmatprep.mubr.msk.f32.mxu0 %vm955_vm1, %v930_v55  ;;  %v875_v59 = vadd.f32 %v6063_v58, %v7136_v38 }
 0x190   : > { %v869_v60 = vpop.f32.mrf.mxu0  ;;  %6091 = vmatmul.mubr.msk.f32.gmra.mxu0 %vm955_vm1, %v931_v56 }
 0x191   : > { %v870_v61 = vadd.f32 %v7136_v38, %v869_v60  ;;  %v933_v2 = vmax.f32 %v875_v59, 0.0  ;;  %v5422_v60 = vld [vmem:[%s8375_s5 + $0x38] sm:$0xff] }
 0x193   : > { %v932_v0 = vmax.f32 %v870_v61, 0.0  ;;  %v5421_v61 = vld [vmem:[%s8375_s5 + $0x30] sm:$0xff] }
 0x195   : > { %6093 = vmatprep.mubr.msk.f32.mxu1 %vm955_vm1, %v932_v0 }
 0x196   : > { %6094 = vmatmul.mubr.msk.f32.vlgmr.msra.gmra.mxu1 %vm955_vm1, %v933_v2 }
 0x197   : > { %6112 = vmatpush3.msra.mxu1 %v1156_v37 }
 0x198   : > { %6113 = vmatprep.subr.mxu1 %v1155_v4 }
 0x199   : > { %6114 = vmatpush3.msra.mxu1 %v1155_v4  ;;  %v5350_v4 = vld [vmem:[%s8376_s6] ss:$0 sm:$0xff] }
 0x19a   : > { %6115 = vmatprep.subr.mxu1 %v1154_v5 }
 0x19b   : > { %6116 = vmatpush3.msra.mxu1 %v1154_v5 }
 0x19c   : > { %6117 = vmatprep.subr.mxu1 %v1153_v7 }
 0x19d   : > { %6118 = vmatpush3.msra.mxu1 %v1153_v7 }
 0x19e   : > { %6119 = vmatprep.subr.mxu1 %v1152_v6 }
 0x19f   : > { %6120 = vmatpush3.msra.mxu1 %v1152_v6 }
 0x1a0   : > { %6121 = vmatprep.subr.mxu1 %v1151_v8 }
 0x1a1   : > { %v6066_v12 = vpop.f32.mrf.mxu0  ;;  %6122 = vmatpush3.msra.mxu1 %v1151_v8 }
 0x1a2   : > { %6123 = vmatprep.subr.mxu1 %v1150_v11  ;;  %v885_v1 = vadd.f32 %v6066_v12, %v7136_v38 }
 0x1a3   : > { %v879_v14 = vpop.f32.mrf.mxu0  ;;  %6124 = vmatpush3.msra.mxu1 %v1150_v11 }
 0x1a4   : > { %v880_v15 = vadd.f32 %v7136_v38, %v879_v14  ;;  %6125 = vmatprep.subr.mxu1 %v1149_v13  ;;  %v935_v18 = vmax.f32 %v885_v1, 0.0 }
 0x1a5   : > { %6126 = vmatpush3.msra.mxu1 %v1149_v13 }
 0x1a6   : > { %v934_v16 = vmax.f32 %v880_v15, 0.0  ;;  %6205 = vmatprep.subr.mxu1 %v5422_v60 }
 0x1a8   : > { %6096 = vmatprep.mubr.msk.f32.mxu1 %vm955_vm1, %v934_v16 }
 0x1a9   : > { %6097 = vmatmul.mubr.msk.f32.gmra.mxu1 %vm955_vm1, %v935_v18 }
 0x1b4   : > { %v6069_v19 = vpop.f32.mrf.mxu0 }
 0x1b5   : > { %v895_v20 = vadd.f32 %v6069_v19, %v7136_v38 }
 0x1b6   : > { %v889_v22 = vpop.f32.mrf.mxu0 }
 0x1b7   : > { %v890_v23 = vadd.f32 %v7136_v38, %v889_v22  ;;  %v937_v25 = vmax.f32 %v895_v20, 0.0 }
 0x1b9   : > { %v936_v24 = vmax.f32 %v890_v23, 0.0 }
 0x1bb   : > { %6099 = vmatprep.mubr.msk.f32.mxu1 %vm955_vm1, %v936_v24 }
 0x1bc   : > { %6100 = vmatmul.mubr.msk.f32.gmra.mxu1 %vm955_vm1, %v937_v25 }
 0x1c7   : > { %v6072_v27 = vpop.f32.mrf.mxu0 }
 0x1c8   : > { %v905_v30 = vadd.f32 %v6072_v27, %v7136_v38 }
 0x1c9   : > { %v899_v31 = vpop.f32.mrf.mxu0 }
 0x1ca   : > { %v900_v32 = vadd.f32 %v7136_v38, %v899_v31  ;;  %v939_v39 = vmax.f32 %v905_v30, 0.0 }
 0x1cc   : > { %v938_v33 = vmax.f32 %v900_v32, 0.0 }
 0x1ce   : > { %6102 = vmatprep.mubr.msk.f32.mxu1 %vm955_vm1, %v938_v33 }
 0x1cf   : > { %6103 = vmatmul.mubr.msk.f32.gmra.mxu1 %vm955_vm1, %v939_v39 }
 0x1da   : > { %v6075_v40 = vpop.f32.mrf.mxu0 }
 0x1db   : > { %v915_v37 = vadd.f32 %v6075_v40, %v7136_v38 }
 0x1dc   : > { %v909_v43 = vpop.f32.mrf.mxu0 }
 0x1dd   : > { %v910_v42 = vadd.f32 %v7136_v38, %v909_v43  ;;  %v941_v45 = vmax.f32 %v915_v37, 0.0 }
 0x1df   : > { %v940_v44 = vmax.f32 %v910_v42, 0.0 }
 0x1e1   : > { %6105 = vmatprep.mubr.msk.f32.mxu1 %vm955_vm1, %v940_v44 }
 0x1e2   : > { %6106 = vmatmul.mubr.msk.f32.gmra.mxu1 %vm955_vm1, %v941_v45 }
 0x1e5   : > { %v6078_v46 = vpop.f32.mrf.mxu0 }
 0x1e6   : > { %v925_v47 = vadd.f32 %v6078_v46, %v7136_v38 }
 0x1e7   : > { %v919_v48 = vpop.f32.mrf.mxu0 }
 0x1e8   : > { %v920_v52 = vadd.f32 %v7136_v38, %v919_v48  ;;  %v943_v54 = vmax.f32 %v925_v47, 0.0 }
 0x1ea   : > { %v942_v53 = vmax.f32 %v920_v52, 0.0 }
 0x1ec   : > { %6108 = vmatprep.mubr.msk.f32.mxu1 %vm955_vm1, %v942_v53 }
 0x1ed   : > { %6109 = vmatmul.mubr.msk.f32.gmra.mxu1 %vm955_vm1, %v943_v54 }
 0x1ee   : > { %6127 = vmatprep.mubr.msk.f32.mxu1 %vm734_vm0, %v6989_v51  ;;  %v6778_v51 = vmov 0.0  }
 0x1ef   : > { %6151 = vmatprep.subr.mxu0 %v6778_v51  ;;  %6159 = vmatprep.mubr.msk.f32.mxu0 %vm6779_vm2, %v6778_v51 }
 0x1f1   : > { %6128 = vmatmul.mubr.msk.f32.vlgmr.msra.gmra.mxu1 %vm734_vm0, %v6995_v57  ;;  %v5390_v57 = vld [vmem:[%s8373_s3 + $0x78] sm:$0xff] }
 0x1f2   : > { %6130 = vmatprep.mubr.msk.f32.mxu1 %vm734_vm0, %v7019_v26  ;;  %6152 = vmatpush3.msra.mxu0 %v5390_v57  ;;  %v5388_v26 = vld [vmem:[%s8373_s3 + $0x68] sm:$0xff] }
 0x1f3   : > { %6153 = vmatprep.subr.mxu0 %v6778_v51  ;;  %6206 = vmatpush3.msra.mxu1 %v5422_v60 }
 0x1f4   : > { %6207 = vmatprep.subr.mxu1 %v5421_v61 }
 0x1f5   : > { %6131 = vmatmul.mubr.msk.f32.gmra.mxu1 %vm734_vm0, %v7015_v21  ;;  %v5389_v21 = vld [vmem:[%s8373_s3 + $0x70] sm:$0xff] }
 0x1f6   : > { %6133 = vmatprep.mubr.msk.f32.mxu1 %vm734_vm0, %v7028_v41  ;;  %6154 = vmatpush3.msra.mxu0 %v5389_v21  ;;  %v5387_v41 = vld [vmem:[%s8373_s3 + $0x60] sm:$0xff] }
 0x1f7   : > { %6155 = vmatprep.subr.mxu0 %v6778_v51  ;;  %6208 = vmatpush3.msra.mxu1 %v5421_v61 }
 0x1f8   : > { %6156 = vmatpush3.msra.mxu0 %v5388_v26 }
 0x1f9   : > { %6134 = vmatmul.mubr.msk.f32.gmra.mxu1 %vm734_vm0, %v7035_v49  ;;  %6157 = vmatprep.subr.mxu0 %v6778_v51 }
 0x1fa   : > { %6136 = vmatprep.mubr.msk.f32.mxu1 %vm734_vm0, %v7037_v50  ;;  %6158 = vmatpush3.msra.mxu0 %v5387_v41 }
 0x1fb   : > { %6162 = vmatprep.subr.mxu0 %v6778_v51 }
 0x1fd   : > { %6137 = vmatmul.mubr.msk.f32.gmra.mxu1 %vm734_vm0, %v7054_v10 }
 0x1fe   : > { %6139 = vmatprep.mubr.msk.f32.mxu1 %vm734_vm0, %v7052_v9 }
 0x201   : > { %6140 = vmatmul.mubr.msk.f32.gmra.mxu1 %vm734_vm0, %v7083_v36 }
 0x202   : > { %6142 = vmatprep.mubr.msk.f32.mxu1 %vm734_vm0, %v7081_v35 }
 0x205   : > { %6143 = vmatmul.mubr.msk.f32.gmra.mxu1 %vm734_vm0, %v7100_v63 }
 0x206   : > { %6145 = vmatprep.mubr.msk.f32.mxu1 %vm734_vm0, %v7098_v62 }
 0x209   : > { %6146 = vmatmul.mubr.msk.f32.gmra.mxu1 %vm734_vm0, %v7112_v17 }
 0x20a   : > { %6148 = vmatprep.mubr.msk.f32.mxu1 %vm734_vm0, %v7124_v3 }
 0x20d   : > { %6149 = vmatmul.mubr.msk.f32.gmra.mxu1 %vm734_vm0, %v7122_v34 }
 0x230   : > { %v6089_v34 = vpop.f32.mrf.mxu0 }
 0x231   : > { %v1076_v13 = vadd.f32 %v6089_v34, %v5350_v4 }
 0x232   : > { %v1070_v38 = vpop.f32.mrf.mxu0 }
 0x233   : > { %v1071_v8 = vadd.f32 %v5350_v4, %v1070_v38 }
 0x250   : > { %v6092_v56 = vpop.f32.mrf.mxu0 }
 0x251   : > { %v1086_v11 = vadd.f32 %v6092_v56, %v5350_v4 }
 0x252   : > { %v1080_v0 = vpop.f32.mrf.mxu0 }
 0x253   : > { %v1081_v7 = vadd.f32 %v5350_v4, %v1080_v0 }
 0x256   : > { %v6095_v49 = vpop.f32.mrf.mxu1 }
 0x257   : > { %v1096_v14 = vadd.f32 %v6095_v49, %v5350_v4 }
 0x258   : > { %v1090_v50 = vpop.f32.mrf.mxu1 }
 0x259   : > { %v1091_v15 = vadd.f32 %v5350_v4, %v1090_v50 }
 0x269   : > { %v6098_v9 = vpop.f32.mrf.mxu1 }
 0x26a   : > { %v1106_v19 = vadd.f32 %v6098_v9, %v5350_v4 }
 0x26b   : > { %v1100_v10 = vpop.f32.mrf.mxu1 }
 0x26c   : > { %v1101_v27 = vadd.f32 %v5350_v4, %v1100_v10 }
 0x27c   : > { %v6101_v35 = vpop.f32.mrf.mxu1 }
 0x27d   : > { %v1116_v50 = vadd.f32 %v6101_v35, %v5350_v4 }
 0x27e   : > { %v7242_v36 = vpop.f32.mrf.mxu1 }
 0x27f   : > { %v1111_v34 = vadd.f32 %v5350_v4, %v7242_v36 }
 0x28f   : > { %v6104_v62 = vpop.f32.mrf.mxu1 }
 0x290   : > { %v1126_v41 = vadd.f32 %v6104_v62, %v5350_v4 }
 0x291   : > { %v1120_v63 = vpop.f32.mrf.mxu1 }
 0x292   : > { %v1121_v49 = vadd.f32 %v5350_v4, %v1120_v63 }
 0x2a2   : > { %v6107_v17 = vpop.f32.mrf.mxu1 }
 0x2a3   : > { %v1136_v38 = vadd.f32 %v6107_v17, %v5350_v4 }
 0x2a4   : > { %v7244_v3 = vpop.f32.mrf.mxu1 }
 0x2a5   : > { %v1131_v0 = vadd.f32 %v5350_v4, %v7244_v3 }
 0x2ad   : > { %v7246_v55 = vpop.f32.mrf.mxu1 }
 0x2ae   : > { %v1146_v63 = vadd.f32 %v7246_v55, %v5350_v4 }
 0x2af   : > { %v7248_v58 = vpop.f32.mrf.mxu1 }
 0x2b1   : > { %v6129_v59 = vpop.f32.mrf.mxu1 }
 0x2b2   : > { %v7265_v22 = vadd.f32 %v6129_v59, %v1076_v13 }
 0x2b3   : > { %v1271_v2 = vpop.f32.mrf.mxu1 }
 0x2b4   : > { %v7261_v16 = vadd.f32 %v1271_v2, %v1071_v8  ;;  %v1351_v43 = vsel %vm955_vm1, %v7265_v22, -inf }
 0x2b5   : > { %v6132_v5 = vpop.f32.mrf.mxu1 }
 0x2b6   : > { %v7263_v18 = vadd.f32 %v6132_v5, %v1086_v11  ;;  %v1350_v31 = vsel %vm955_vm1, %v7261_v16, -inf }
 0x2b7   : > { %v1281_v6 = vpop.f32.mrf.mxu1 }
 0x2b8   : > { %v7259_v12 = vadd.f32 %v1281_v6, %v1081_v7  ;;  %v1354_v32 = vsel %vm955_vm1, %v7263_v18, -inf  ;;  %v1141_v6 = vadd.f32 %v5350_v4, %v7248_v58 }
 0x2b9   : > { %v6135_v1 = vpop.f32.mrf.mxu1  ;;  %v1355_v45 = vmax.f32 %v1351_v43, %v1354_v32 }
 0x2ba   : > { %v1352_v23 = vsel %vm955_vm1, %v7259_v12, -inf  ;;  %v7269_v24 = vadd.f32 %v6135_v1, %v1096_v14 }
 0x2bb   : > { %v1291_v20 = vpop.f32.mrf.mxu1  ;;  %v1353_v40 = vmax.f32 %v1350_v31, %v1352_v23 }
 0x2bc   : > { %v7271_v25 = vadd.f32 %v1291_v20, %v1091_v15  ;;  %v1358_v42 = vsel %vm955_vm1, %v7269_v24, -inf }
 0x2bd   : > { %v6138_v30 = vpop.f32.mrf.mxu1  ;;  %v1359_v53 = vmax.f32 %v1355_v45, %v1358_v42 }
 0x2be   : > { %v1356_v33 = vsel %vm955_vm1, %v7271_v25, -inf  ;;  %v7279_v39 = vadd.f32 %v6138_v30, %v1106_v19 }
 0x2bf   : > { %v1301_v37 = vpop.f32.mrf.mxu1  ;;  %v1357_v46 = vmax.f32 %v1353_v40, %v1356_v33 }
 0x2c0   : > { %v7285_v44 = vadd.f32 %v1301_v37, %v1101_v27  ;;  %v1362_v48 = vsel %vm955_vm1, %v7279_v39, -inf }
 0x2c1   : > { %v6141_v47 = vpop.f32.mrf.mxu1  ;;  %v1363_v21 = vmax.f32 %v1359_v53, %v1362_v48 }
 0x2c2   : > { %v1360_v52 = vsel %vm955_vm1, %v7285_v44, -inf  ;;  %v7296_v60 = vadd.f32 %v6141_v47, %v1116_v50  ;;  %v5395_v50 = vld [vmem:[%s8377_s7 + $0x60] sm:$0xff] }
 0x2c3   : > { %v1361_v54 = vmax.f32 %v1357_v46, %v1360_v52  ;;  %v1311_v57 = vpop.f32.mrf.mxu1 }
 0x2c4   : > { %v7299_v2 = vadd.f32 %v1311_v57, %v1111_v34  ;;  %v1372_v3 = vsel %vm955_vm1, %v7296_v60, -inf }
 0x2c5   : > { %v6144_v26 = vpop.f32.mrf.mxu1  ;;  %v1364_v9 = vmax.f32 %v1361_v54, %v1363_v21  ;;  %v5398_v21 = vld [vmem:[%s8377_s7 + $0x78] sm:$0xff] }
 0x2c6   : > { %v7292_v56 = vadd.f32 %v6144_v26, %v1126_v41  ;;  %v1371_v11 = vsel %vm955_vm1, %v7299_v2, -inf  ;;  %v5397_v41 = vld [vmem:[%s8377_s7 + $0x70] sm:$0xff] }
 0x2c7   : > { %v1321_v10 = vpop.f32.mrf.mxu1  ;;  %v1365_v62 = vrot.slane %v1364_v9, 4 }
 0x2c8   : > { %v7294_v59 = vadd.f32 %v1321_v10, %v1121_v49  ;;  %v1375_v36 = vsel %vm955_vm1, %v7292_v56, -inf  ;;  %v5396_v49 = vld [vmem:[%s8377_s7 + $0x68] sm:$0xff]  ;;  %v1571_v10 = vmax.f32 %v7261_v16, 0.0 }
 0x2c9   : > { %v6147_v61 = vpop.f32.mrf.mxu1  ;;  %v1366_v14 = vmax.f32 %v1364_v9, %v1365_v62  ;;  %v1376_v15 = vmax.f32 %v1372_v3, %v1375_v36  ;;  %v5386_v9 = vld [vmem:[%s8373_s3 + $0x58] sm:$0xff]  ;;  %v5393_v36 = vld [vmem:[%s8377_s7 + $0x50] sm:$0xff]  ;;  %v1575_v3 = vmax.f32 %v7271_v25, 0.0 }
 0x2ca   : > { %v7301_v5 = vadd.f32 %v6147_v61, %v1136_v38  ;;  %v1373_v17 = vsel %vm955_vm1, %v7294_v59, -inf  ;;  %v5385_v38 = vld [vmem:[%s8373_s3 + $0x50] sm:$0xff]  ;;  %v5384_v61 = vld [vmem:[%s8373_s3 + $0x48] sm:$0xff]  ;;  %v5394_v62 = vld [vmem:[%s8377_s7 + $0x58] sm:$0xff] }
 0x2cb   : > { %v1331_v35 = vpop.f32.mrf.mxu1  ;;  %v1374_v19 = vmax.f32 %v1371_v11, %v1373_v17  ;;  %v1367_v31 = vrot.slane %v1366_v14, 2  ;;  %v5392_v17 = vld [vmem:[%s8377_s7 + $0x48] sm:$0xff]  ;;  %v1576_v11 = vmax.f32 %v7269_v24, 0.0 }
 0x2cc   : > { %v7308_v7 = vadd.f32 %v1331_v35, %v1131_v0  ;;  %v1379_v55 = vsel %vm955_vm1, %v7301_v5, -inf  ;;  %v5383_v0 = vld [vmem:[%s8373_s3 + $0x40] sm:$0xff]  ;;  %v1572_v35 = vmax.f32 %v7265_v22, 0.0 }
 0x2cd   : > { %v6150_v8 = vpop.f32.mrf.mxu1  ;;  %v1380_v23 = vmax.f32 %v1376_v15, %v1379_v55  ;;  %v1368_v37 = vmax.f32 %v1366_v14, %v1367_v31  ;;  %v1577_v55 = vmax.f32 %v7285_v44, 0.0  ;;  %v1579_v14 = vmax.f32 %v7299_v2, 0.0 }
 0x2ce   : > { %v1377_v13 = vsel %vm955_vm1, %v7308_v7, -inf  ;;  %v7319_v1 = vadd.f32 %v6150_v8, %v1146_v63  ;;  %v1573_v63 = vmax.f32 %v7259_v12, 0.0  ;;  %v5391_v8 = vld [vmem:[%s8377_s7 + $0x40] sm:$0xff]  ;;  %v1580_v15 = vmax.f32 %v7296_v60, 0.0 }
 0x2cf   : > { %v1341_v20 = vpop.f32.mrf.mxu1  ;;  %v1378_v27 = vmax.f32 %v1374_v19, %v1377_v13  ;;  %v1369_v45 = vrot.slane %v1368_v37, 1  ;;  %v1578_v13 = vmax.f32 %v7279_v39, 0.0  ;;  %v1581_v19 = vmax.f32 %v7294_v59, 0.0 }
 0x2d0   : > { %v1383_v58 = vsel %vm955_vm1, %v7319_v1, -inf  ;;  %v7323_v4 = vadd.f32 %v1341_v20, %v1141_v6  ;;  %v1574_v6 = vmax.f32 %v7263_v18, 0.0  ;;  %v1582_v20 = vmax.f32 %v7292_v56, 0.0 }
 0x2d1   : > { %v1384_v32 = vmax.f32 %v1380_v23, %v1383_v58  ;;  %v1370_v52 = vmax.f32 %v1368_v37, %v1369_v45  ;;  %v1583_v58 = vmax.f32 %v7308_v7, 0.0  ;;  %v1584_v23 = vmax.f32 %v7301_v5, 0.0 }
 0x2d2   : > { %v1381_v30 = vsel %vm955_vm1, %v7323_v4, -inf }
 0x2d3   : > { %v1382_v33 = vmax.f32 %v1378_v27, %v1381_v30  ;;  %v1410_v54 = vmax.f32 %v1370_v52, 0.0  ;;  %v1585_v27 = vmax.f32 %v7323_v4, 0.0  ;;  %v1586_v30 = vmax.f32 %v7319_v1, 0.0 }
 0x2d5   : > { %v1385_v40 = vmax.f32 %v1382_v33, %v1384_v32 }
 0x2d7   : > { %v1386_v43 = vrot.slane %v1385_v40, 4 }
 0x2d9   : > { %v1387_v42 = vmax.f32 %v1385_v40, %v1386_v43 }
 0x2db   : > { %v1388_v46 = vrot.slane %v1387_v42, 2 }
 0x2dd   : > { %v1389_v47 = vmax.f32 %v1387_v42, %v1388_v46 }
 0x2df   : > { %v1390_v48 = vrot.slane %v1389_v47, 1 }
 0x2e1   : > { %v1391_v53 = vmax.f32 %v1389_v47, %v1390_v48 }
 0x2e3   : > { %v1411_v57 = vmax.f32 %v1391_v53, 0.0  ;;  %v1498_v34 = vsel %vm1422_vm3, %v1391_v53, %v1370_v52 }
 0x2e5   : > { %v1423_v26 = vsel %vm1422_vm3, %v1411_v57, %v1410_v54 }
 0x2e6   : > { %6160 = vmatmul.mubr.msk.f32.vlgmr.msra.gmra.mxu0 %vm955_vm1, %v1423_v26 }
 0x2e7   : > { %6163 = vmatpush3.msra.mxu0 %v5398_v21  ;;  %6170 = vmatprep.mubr.msk.f32.mxu0 %vm6779_vm2, %v6778_v51 }
 0x2e8   : > { %6164 = vmatprep.subr.mxu0 %v6778_v51 }
 0x2e9   : > { %6165 = vmatpush3.msra.mxu0 %v5397_v41 }
 0x2ea   : > { %6166 = vmatprep.subr.mxu0 %v6778_v51 }
 0x2eb   : > { %6167 = vmatpush3.msra.mxu0 %v5396_v49 }
 0x2ec   : > { %6168 = vmatprep.subr.mxu0 %v6778_v51 }
 0x2ed   : > { %6169 = vmatpush3.msra.mxu0 %v5395_v50 }
 0x2ee   : > { %6171 = vmatmul.mubr.msk.f32.vlgmr.msra.gmra.mxu0 %vm955_vm1, %v1498_v34  ;;  %6173 = vmatprep.subr.mxu0 %v5386_v9 }
 0x2ef   : > { %6174 = vmatpush3.msra.mxu0 %v5386_v9  ;;  %6181 = vmatprep.mubr.msk.f32.mxu0 %vm955_vm1, %v1571_v10 }
 0x2f0   : > { %6175 = vmatprep.subr.mxu0 %v5385_v38 }
 0x2f1   : > { %6176 = vmatpush3.msra.mxu0 %v5385_v38 }
 0x2f2   : > { %6177 = vmatprep.subr.mxu0 %v5384_v61 }
 0x2f3   : > { %6178 = vmatpush3.msra.mxu0 %v5384_v61 }
 0x2f4   : > { %6179 = vmatprep.subr.mxu0 %v5383_v0 }
 0x2f5   : > { %6180 = vmatpush3.msra.mxu0 %v5383_v0 }
 0x2f6   : > { %6182 = vmatmul.mubr.msk.f32.vlgmr.msra.gmra.mxu0 %vm955_vm1, %v1572_v35  ;;  %6237 = vmatprep.subr.mxu0 %v5394_v62 }
 0x2f7   : > { %6184 = vmatprep.mubr.msk.f32.mxu0 %vm955_vm1, %v1573_v63  ;;  %6238 = vmatpush3.msra.mxu0 %v5394_v62 }
 0x2f8   : > { %6239 = vmatprep.subr.mxu0 %v5393_v36 }
 0x2f9   : > { %6240 = vmatpush3.msra.mxu0 %v5393_v36 }
 0x2fa   : > { %6185 = vmatmul.mubr.msk.f32.gmra.mxu0 %vm955_vm1, %v1574_v6  ;;  %6241 = vmatprep.subr.mxu0 %v5392_v17 }
 0x2fb   : > { %6187 = vmatprep.mubr.msk.f32.mxu0 %vm955_vm1, %v1575_v3  ;;  %6242 = vmatpush3.msra.mxu0 %v5392_v17 }
 0x2fc   : > { %6243 = vmatprep.subr.mxu0 %v5391_v8 }
 0x2fd   : > { %6244 = vmatpush3.msra.mxu0 %v5391_v8 }
 0x2fe   : > { %6188 = vmatmul.mubr.msk.f32.gmra.mxu0 %vm955_vm1, %v1576_v11 }
 0x2ff   : > { %6190 = vmatprep.mubr.msk.f32.mxu0 %vm955_vm1, %v1577_v55 }
 0x302   : > { %6191 = vmatmul.mubr.msk.f32.gmra.mxu0 %vm955_vm1, %v1578_v13 }
 0x303   : > { %6193 = vmatprep.mubr.msk.f32.mxu0 %vm955_vm1, %v1579_v14 }
 0x306   : > { %6194 = vmatmul.mubr.msk.f32.gmra.mxu0 %vm955_vm1, %v1580_v15 }
 0x307   : > { %6196 = vmatprep.mubr.msk.f32.mxu0 %vm955_vm1, %v1581_v19 }
 0x30a   : > { %6197 = vmatmul.mubr.msk.f32.gmra.mxu0 %vm955_vm1, %v1582_v20 }
 0x30b   : > { %6199 = vmatprep.mubr.msk.f32.mxu0 %vm955_vm1, %v1583_v58 }
 0x30e   : > { %6200 = vmatmul.mubr.msk.f32.gmra.mxu0 %vm955_vm1, %v1584_v23 }
 0x30f   : > { %6202 = vmatprep.mubr.msk.f32.mxu0 %vm955_vm1, %v1585_v27 }
 0x312   : > { %6203 = vmatmul.mubr.msk.f32.gmra.mxu0 %vm955_vm1, %v1586_v30 }
 0x313   : > { %6245 = vmatprep.mubr.msk.f32.mxu0 %vm955_vm1, %v7261_v16  ;;  %v5419_v16 = vld [vmem:[%s8375_s5 + $0x20] sm:$0xff] }
 0x316   : > { %6246 = vmatmul.mubr.msk.f32.vlgmr.msra.gmra.mxu0 %vm955_vm1, %v7265_v22 }
 0x317   : > { %6248 = vmatprep.mubr.msk.f32.mxu0 %vm955_vm1, %v7259_v12  ;;  %v5420_v12 = vld [vmem:[%s8375_s5 + $0x28] sm:$0xff] }
 0x318   : > { %6209 = vmatprep.subr.mxu1 %v5420_v12 }
 0x319   : > { %6210 = vmatpush3.msra.mxu1 %v5420_v12 }
 0x31a   : > { %6249 = vmatmul.mubr.msk.f32.gmra.mxu0 %vm955_vm1, %v7263_v18  ;;  %6211 = vmatprep.subr.mxu1 %v5419_v16  ;;  %v6780_v18 = vmov 1966171168  }
 0x31b   : > { %6251 = vmatprep.mubr.msk.f32.mxu0 %vm955_vm1, %v7271_v25  ;;  %6212 = vmatpush3.msra.mxu1 %v5419_v16  ;;  %v1782_v22 = vunpack.c.l.s4 %v6780_v18 }
 0x31c   : > { %6269 = vmatprep.subr.mxu1 %v6778_v51 }
 0x31e   : > { %6252 = vmatmul.mubr.msk.f32.gmra.mxu0 %vm955_vm1, %v7269_v24  ;;  %v1783_v24 = vunpack.c.0.s8 %v1782_v22 }
 0x31f   : > { %6254 = vmatprep.mubr.msk.f32.mxu0 %vm955_vm1, %v7285_v44 }
 0x322   : > { %6255 = vmatmul.mubr.msk.f32.gmra.mxu0 %vm955_vm1, %v7279_v39  ;;  %v5400_v39 = vld [vmem:[%s8374_s4 + $0x1] ss:$0 sm:$0xff] }
 0x323   : > { %6257 = vmatprep.mubr.msk.f32.mxu0 %vm955_vm1, %v7299_v2 }
 0x326   : > { %6258 = vmatmul.mubr.msk.f32.gmra.mxu0 %vm955_vm1, %v7296_v60 }
 0x327   : > { %6260 = vmatprep.mubr.msk.f32.mxu0 %vm955_vm1, %v7294_v59 }
 0x32a   : > { %6261 = vmatmul.mubr.msk.f32.gmra.mxu0 %vm955_vm1, %v7292_v56  ;;  %v7447_v56 = vsub.s32 %v1783_v24, %v6956_v28  ;;  %v5464_v24 = vld [vmem:[%s8373_s3 + $0xb8] sm:$0xff] }
 0x32b   : > { %6263 = vmatprep.mubr.msk.f32.mxu0 %vm955_vm1, %v7308_v7 }
 0x32e   : > { %6264 = vmatmul.mubr.msk.f32.gmra.mxu0 %vm955_vm1, %v7301_v5 }
 0x32f   : > { %6266 = vmatprep.mubr.msk.f32.mxu0 %vm955_vm1, %v7323_v4 }
 0x332   : > { %6267 = vmatmul.mubr.msk.f32.gmra.mxu0 %vm955_vm1, %v7319_v1 }
 0x3a6   : > { %v1492_v25 = vpop.f32.mrf.mxu0 }
 0x3a7   : > { %v1493_v59 = vadd.f32 %v5400_v39, %v1492_v25  ;;  %v5463_v25 = vld [vmem:[%s8373_s3 + $0xb0] sm:$0xff]  ;;  %v5462_v39 = vld [vmem:[%s8373_s3 + $0xa8] sm:$0xff] }
 0x3a8   : > { %v6161_v44 = vpop.f32.mrf.mxu0 }
 0x3a9   : > { %v1787_v60 = vrot.slane %v1493_v59, %v7447_v56  ;;  %v5461_v44 = vld [vmem:[%s8373_s3 + $0xa0] sm:$0xff] }
 0x3ab   : > { %v1795_v7 = vrot.slane %v1787_v60, %v7447_v56  ;;  %v1788_v46 = vcombine.high %v1787_v60, %v1787_v60 }
 0x3ad   : > { %v1806_v1 = vrot.slane %v1795_v7, %v6960_v29  ;;  %v1802_v21 = vrot.slane %v1788_v46, %v7447_v56 }
 0x3ae   : > { %v7450_v2 = vpop.f32.mrf.mxu0 }
 0x3af   : > { %v1810_v34 = vrot.slane %v1802_v21, %v6960_v29 }
 0x3b0   : > { %v6172_v5 = vpop.f32.mrf.mxu0 }
 0x3b6   : > { %v6183_v4 = vpop.f32.mrf.mxu0 }
 0x3b7   : > { %v1814_v31 = vadd.f32 %v6183_v4, %v1806_v1 }
 0x3b8   : > { %v1701_v32 = vpop.f32.mrf.mxu0 }
 0x3b9   : > { %v1813_v33 = vadd.f32 %v1806_v1, %v1701_v32  ;;  %v1830_v43 = vmax.f32 %v1814_v31, 0.0 }
 0x3ba   : > { %v6186_v40 = vpop.f32.mrf.mxu0 }
 0x3bb   : > { %v1829_v37 = vmax.f32 %v1813_v33, 0.0  ;;  %v1816_v42 = vadd.f32 %v6186_v40, %v1806_v1  ;;  %v7492_v40 = vrot.slane %v7450_v2, %v7447_v56  ;;  %v5496_v2 = vld [vmem:[%s8375_s5 + $0x58] sm:$0xff] }
 0x3bc   : > { %v1711_v28 = vpop.f32.mrf.mxu0  ;;  %6323 = vmatprep.subr.mxu0 %v5496_v2 }
 0x3bd   : > { %v1815_v45 = vadd.f32 %v1806_v1, %v1711_v28  ;;  %6213 = vmatprep.mubr.msk.f32.mxu1 %vm955_vm1, %v1829_v37  ;;  %v1832_v52 = vmax.f32 %v1816_v42, 0.0  ;;  %v2259_v46 = vrot.slane %v7492_v40, %v7447_v56  ;;  %6324 = vmatpush3.msra.mxu0 %v5496_v2 }
 0x3be   : > { %v6189_v47 = vpop.f32.mrf.mxu0  ;;  %6214 = vmatmul.mubr.msk.f32.vlgmr.msra.gmra.mxu1 %vm955_vm1, %v1830_v43  ;;  %v7497_v43 = vld [vmem:[%s8376_s6 + $0x1] ss:$0 sm:$0xff] }
 0x3bf   : > { %v1831_v48 = vmax.f32 %v1815_v45, 0.0  ;;  %v1818_v53 = vadd.f32 %v6189_v47, %v1806_v1  ;;  %6270 = vmatpush3.msra.mxu1 %v5464_v24 }
 0x3c0   : > { %v1721_v54 = vpop.f32.mrf.mxu0  ;;  %6271 = vmatprep.subr.mxu1 %v6778_v51 }
 0x3c1   : > { %v1817_v57 = vadd.f32 %v1806_v1, %v1721_v54  ;;  %6216 = vmatprep.mubr.msk.f32.mxu1 %vm955_vm1, %v1831_v48  ;;  %v1834_v49 = vmax.f32 %v1818_v53, 0.0  ;;  %6272 = vmatpush3.msra.mxu1 %v5463_v25 }
 0x3c2   : > { %v6192_v26 = vpop.f32.mrf.mxu0  ;;  %6217 = vmatmul.mubr.msk.f32.gmra.mxu1 %vm955_vm1, %v1832_v52  ;;  %6273 = vmatprep.subr.mxu1 %v6778_v51  ;;  %v5495_v52 = vld [vmem:[%s8375_s5 + $0x50] sm:$0xff] }
 0x3c3   : > { %v1833_v41 = vmax.f32 %v1817_v57, 0.0  ;;  %v1820_v50 = vadd.f32 %v6192_v26, %v1806_v1  ;;  %6274 = vmatpush3.msra.mxu1 %v5462_v39  ;;  %6325 = vmatprep.subr.mxu0 %v5495_v52 }
 0x3c4   : > { %v1731_v9 = vpop.f32.mrf.mxu0  ;;  %6275 = vmatprep.subr.mxu1 %v6778_v51  ;;  %6326 = vmatpush3.msra.mxu0 %v5495_v52 }
 0x3c5   : > { %v1819_v10 = vadd.f32 %v1806_v1, %v1731_v9  ;;  %6219 = vmatprep.mubr.msk.f32.mxu1 %vm955_vm1, %v1833_v41  ;;  %v1836_v0 = vmax.f32 %v1820_v50, 0.0  ;;  %6276 = vmatpush3.msra.mxu1 %v5461_v44 }
 0x3c6   : > { %v6195_v38 = vpop.f32.mrf.mxu0  ;;  %6220 = vmatmul.mubr.msk.f32.gmra.mxu1 %vm955_vm1, %v1834_v49  ;;  %6280 = vmatprep.subr.mxu1 %v6778_v51  ;;  %v2270_v49 = vrot.slane %v2259_v46, %v6960_v29 }
 0x3c7   : > { %v1835_v61 = vmax.f32 %v1819_v10, 0.0  ;;  %v1822_v62 = vadd.f32 %v6195_v38, %v1810_v34 }
 0x3c8   : > { %v1741_v35 = vpop.f32.mrf.mxu0 }
 0x3c9   : > { %v1821_v63 = vadd.f32 %v1810_v34, %v1741_v35  ;;  %6222 = vmatprep.mubr.msk.f32.mxu1 %vm955_vm1, %v1835_v61  ;;  %v1838_v6 = vmax.f32 %v1822_v62, 0.0 }
 0x3ca   : > { %v6198_v36 = vpop.f32.mrf.mxu0  ;;  %6223 = vmatmul.mubr.msk.f32.gmra.mxu1 %vm955_vm1, %v1836_v0 }
 0x3cb   : > { %v1837_v17 = vmax.f32 %v1821_v63, 0.0  ;;  %v1824_v3 = vadd.f32 %v6198_v36, %v1810_v34 }
 0x3cc   : > { %v1751_v8 = vpop.f32.mrf.mxu0 }
 0x3cd   : > { %v1823_v11 = vadd.f32 %v1810_v34, %v1751_v8  ;;  %6225 = vmatprep.mubr.msk.f32.mxu1 %vm955_vm1, %v1837_v17  ;;  %v1840_v14 = vmax.f32 %v1824_v3, 0.0 }
 0x3ce   : > { %v6201_v55 = vpop.f32.mrf.mxu0  ;;  %6226 = vmatmul.mubr.msk.f32.gmra.mxu1 %vm955_vm1, %v1838_v6 }
 0x3cf   : > { %v1839_v13 = vmax.f32 %v1823_v11, 0.0  ;;  %v1826_v15 = vadd.f32 %v6201_v55, %v1810_v34 }
 0x3d0   : > { %v1761_v19 = vpop.f32.mrf.mxu0 }
 0x3d1   : > { %v1825_v20 = vadd.f32 %v1810_v34, %v1761_v19  ;;  %6228 = vmatprep.mubr.msk.f32.mxu1 %vm955_vm1, %v1839_v13  ;;  %v1842_v27 = vmax.f32 %v1826_v15, 0.0 }
 0x3d2   : > { %v6204_v58 = vpop.f32.mrf.mxu0  ;;  %6229 = vmatmul.mubr.msk.f32.gmra.mxu1 %vm955_vm1, %v1840_v14 }
 0x3d3   : > { %v1841_v23 = vmax.f32 %v1825_v20, 0.0  ;;  %v1828_v30 = vadd.f32 %v6204_v58, %v1810_v34  ;;  %v2252_v20 = vcombine.high %v7492_v40, %v7492_v40 }
 0x3d4   : > { %v1771_v12 = vpop.f32.mrf.mxu0 }
 0x3d5   : > { %v1827_v16 = vadd.f32 %v1810_v34, %v1771_v12  ;;  %6231 = vmatprep.mubr.msk.f32.mxu1 %vm955_vm1, %v1841_v23  ;;  %v1844_v22 = vmax.f32 %v1828_v30, 0.0 }
 0x3d6   : > { %6232 = vmatmul.mubr.msk.f32.gmra.mxu1 %vm955_vm1, %v1842_v27  ;;  %v6247_v59 = vpop.f32.mrf.mxu0 }
 0x3d7   : > { %v1843_v18 = vmax.f32 %v1827_v16, 0.0 }
 0x3d8   : > { %v2165_v60 = vpop.f32.mrf.mxu0 }
 0x3d9   : > { %6234 = vmatprep.mubr.msk.f32.mxu1 %vm955_vm1, %v1843_v18 }
 0x3da   : > { %6235 = vmatmul.mubr.msk.f32.gmra.mxu1 %vm955_vm1, %v1844_v22  ;;  %v6250_v5 = vpop.f32.mrf.mxu0 }
 0x3db   : > { %6277 = vmatprep.mubr.msk.f32.mxu1 %vm6779_vm2, %v6778_v51 }
 0x3dc   : > { %v2175_v7 = vpop.f32.mrf.mxu0 }
 0x3de   : > { %v6253_v1 = vpop.f32.mrf.mxu0 }
 0x3e0   : > { %v2185_v4 = vpop.f32.mrf.mxu0 }
 0x3e2   : > { %v6256_v31 = vpop.f32.mrf.mxu0 }
 0x3e4   : > { %v2195_v33 = vpop.f32.mrf.mxu0 }
 0x3e6   : > { %v7499_v28 = vpop.f32.mrf.mxu0 }
 0x3e8   : > { %v2205_v21 = vpop.f32.mrf.mxu0 }
 0x3ea   : > { %v6262_v35 = vpop.f32.mrf.mxu0 }
 0x3ec   : > { %v2215_v58 = vpop.f32.mrf.mxu0 }
 0x47e   : > { %v6215_v32 = vpop.f32.mrf.mxu1 }
 0x47f   : > { %v1978_v53 = vadd.f32 %v6215_v32, %v7497_v43 }
 0x480   : > { %v1972_v37 = vpop.f32.mrf.mxu1 }
 0x481   : > { %v1973_v47 = vadd.f32 %v7497_v43, %v1972_v37  ;;  %v2171_v34 = vadd.f32 %v6247_v59, %v1978_v53 }
 0x482   : > { %v6218_v42 = vpop.f32.mrf.mxu1 }
 0x483   : > { %v1988_v45 = vadd.f32 %v6218_v42, %v7497_v43  ;;  %v2166_v50 = vadd.f32 %v2165_v60, %v1973_v47  ;;  %v7523_v8 = vadd.f32 %v2270_v49, %v2171_v34  ;;  %v6265_v60 = vpop.f32.mrf.mxu0 }
 0x484   : > { %v1982_v48 = vpop.f32.mrf.mxu1 }
 0x485   : > { %v1983_v54 = vadd.f32 %v7497_v43, %v1982_v48  ;;  %v2181_v26 = vadd.f32 %v6250_v5, %v1988_v45  ;;  %v7521_v6 = vadd.f32 %v2270_v49, %v2166_v50  ;;  %v2294_v22 = vsel %vm955_vm1, %v7523_v8, -inf  ;;  %v2225_v48 = vpop.f32.mrf.mxu0 }
 0x486   : > { %v6221_v57 = vpop.f32.mrf.mxu1 }
 0x487   : > { %v1998_v41 = vadd.f32 %v6221_v57, %v7497_v43  ;;  %v2176_v9 = vadd.f32 %v2175_v7, %v1983_v54  ;;  %v7518_v63 = vadd.f32 %v2270_v49, %v2181_v26  ;;  %v2293_v27 = vsel %vm955_vm1, %v7521_v6, -inf }
 0x488   : > { %v1992_v10 = vpop.f32.mrf.mxu1 }
 0x489   : > { %v1993_v38 = vadd.f32 %v7497_v43, %v1992_v10  ;;  %v7516_v61 = vadd.f32 %v2270_v49, %v2176_v9  ;;  %v2191_v0 = vadd.f32 %v6253_v1, %v1998_v41  ;;  %v2297_v23 = vsel %vm955_vm1, %v7518_v63, -inf }
 0x48a   : > { %v6224_v62 = vpop.f32.mrf.mxu1  ;;  %v2298_v25 = vmax.f32 %v2294_v22, %v2297_v23 }
 0x48b   : > { %v2186_v36 = vadd.f32 %v2185_v4, %v1993_v38  ;;  %v2008_v17 = vadd.f32 %v6224_v62, %v7497_v43  ;;  %v2295_v13 = vsel %vm955_vm1, %v7516_v61, -inf  ;;  %v7529_v14 = vadd.f32 %v2270_v49, %v2191_v0  ;;  %v6268_v0 = vpop.f32.mrf.mxu0 }
 0x48c   : > { %v2002_v3 = vpop.f32.mrf.mxu1  ;;  %v2296_v24 = vmax.f32 %v2293_v27, %v2295_v13 }
 0x48d   : > { %v7525_v11 = vadd.f32 %v2270_v49, %v2186_v36  ;;  %v2201_v55 = vadd.f32 %v6256_v31, %v2008_v17  ;;  %v2003_v15 = vadd.f32 %v7497_v43, %v2002_v3  ;;  %v2301_v39 = vsel %vm955_vm1, %v7529_v14, -inf }
 0x48e   : > { %v6227_v19 = vpop.f32.mrf.mxu1  ;;  %v2266_v31 = vrot.slane %v2252_v20, %v7447_v56  ;;  %v2302_v37 = vmax.f32 %v2298_v25, %v2301_v39 }
 0x48f   : > { %v2299_v30 = vsel %vm955_vm1, %v7525_v11, -inf  ;;  %v7540_v12 = vadd.f32 %v2270_v49, %v2201_v55  ;;  %v2196_v16 = vadd.f32 %v2195_v33, %v2003_v15  ;;  %v2018_v7 = vadd.f32 %v6227_v19, %v7497_v43 }
 0x490   : > { %v2012_v18 = vpop.f32.mrf.mxu1  ;;  %v2300_v5 = vmax.f32 %v2296_v24, %v2299_v30  ;;  %v2274_v57 = vrot.slane %v2266_v31, %v6960_v29 }
 0x491   : > { %v7546_v44 = vadd.f32 %v2270_v49, %v2196_v16  ;;  %v2013_v1 = vadd.f32 %v7497_v43, %v2012_v18  ;;  %v2305_v32 = vsel %vm955_vm1, %v7540_v12, -inf  ;;  %v2211_v52 = vadd.f32 %v7499_v28, %v2018_v7 }
 0x492   : > { %v6230_v59 = vpop.f32.mrf.mxu1  ;;  %v2306_v2 = vmax.f32 %v2302_v37, %v2305_v32 }
 0x493   : > { %v2028_v4 = vadd.f32 %v6230_v59, %v7497_v43  ;;  %v2303_v33 = vsel %vm955_vm1, %v7546_v44, -inf  ;;  %v2206_v53 = vadd.f32 %v2205_v21, %v2013_v1  ;;  %v7565_v62 = vadd.f32 %v2274_v57, %v2211_v52 }
 0x494   : > { %v2022_v40 = vpop.f32.mrf.mxu1  ;;  %v2304_v42 = vmax.f32 %v2300_v5, %v2303_v33 }
 0x495   : > { %v2221_v45 = vadd.f32 %v6262_v35, %v2028_v4  ;;  %v2023_v46 = vadd.f32 %v7497_v43, %v2022_v40  ;;  %v7567_v28 = vadd.f32 %v2274_v57, %v2206_v53  ;;  %v2315_v23 = vsel %vm955_vm1, %v7565_v62, -inf }
 0x496   : > { %v6233_v47 = vpop.f32.mrf.mxu1  ;;  %v2307_v49 = vmax.f32 %v2304_v42, %v2306_v2 }
 0x497   : > { %v2038_v54 = vadd.f32 %v6233_v47, %v7497_v43  ;;  %v2216_v26 = vadd.f32 %v2215_v58, %v2023_v46  ;;  %v7561_v10 = vadd.f32 %v2274_v57, %v2221_v45  ;;  %v2235_v58 = vpop.f32.mrf.mxu0  ;;  %v2314_v27 = vsel %vm955_vm1, %v7567_v28, -inf }
 0x498   : > { %v2032_v41 = vpop.f32.mrf.mxu1  ;;  %v2308_v3 = vrot.slane %v2307_v49, 4 }
 0x499   : > { %v2231_v50 = vadd.f32 %v6265_v60, %v2038_v54  ;;  %v2033_v9 = vadd.f32 %v7497_v43, %v2032_v41  ;;  %v7563_v34 = vadd.f32 %v2274_v57, %v2216_v26  ;;  %v2318_v13 = vsel %vm955_vm1, %v7561_v10, -inf  ;;  %v5472_v54 = vld [vmem:[%s8377_s7 + $0xb8] sm:$0xff]  ;;  %v5471_v26 = vld [vmem:[%s8377_s7 + $0xb0] sm:$0xff]  ;;  %v5470_v41 = vld [vmem:[%s8377_s7 + $0xa8] sm:$0xff] }
 0x49a   : > { %v6236_v38 = vpop.f32.mrf.mxu1  ;;  %v2309_v24 = vmax.f32 %v2307_v49, %v2308_v3  ;;  %v2319_v25 = vmax.f32 %v2315_v23, %v2318_v13  ;;  %v5469_v49 = vld [vmem:[%s8377_s7 + $0xa0] sm:$0xff]  ;;  %v2514_v3 = vmax.f32 %v7523_v8, 0.0  ;;  %v2515_v13 = vmax.f32 %v7516_v61, 0.0 }
 0x49b   : > { %v2226_v21 = vadd.f32 %v2225_v48, %v2033_v9  ;;  %v2048_v35 = vadd.f32 %v6236_v38, %v7497_v43  ;;  %v7570_v36 = vadd.f32 %v2274_v57, %v2231_v50  ;;  %v2316_v15 = vsel %vm955_vm1, %v7563_v34, -inf  ;;  %v5460_v50 = vld [vmem:[%s8373_s3 + $0x98] sm:$0xff]  ;;  %v5465_v23 = vld [vmem:[%s8377_s7 + $0x80] sm:$0xff] }
 0x49c   : > { %v2042_v17 = vpop.f32.mrf.mxu1  ;;  %v2317_v39 = vmax.f32 %v2314_v27, %v2316_v15  ;;  %v2310_v1 = vrot.slane %v2309_v24, 2  ;;  %v2513_v38 = vmax.f32 %v7521_v6, 0.0  ;;  %v5467_v15 = vld [vmem:[%s8377_s7 + $0x90] sm:$0xff]  ;;  %v2518_v27 = vmax.f32 %v7529_v14, 0.0 }
 0x49d   : > { %v7572_v55 = vadd.f32 %v2274_v57, %v2226_v21  ;;  %v2241_v19 = vadd.f32 %v6268_v0, %v2048_v35  ;;  %v2043_v20 = vadd.f32 %v7497_v43, %v2042_v17  ;;  %v2322_v30 = vsel %vm955_vm1, %v7570_v36, -inf  ;;  %v5459_v0 = vld [vmem:[%s8373_s3 + $0x90] sm:$0xff]  ;;  %v5458_v21 = vld [vmem:[%s8373_s3 + $0x88] sm:$0xff]  ;;  %v5457_v35 = vld [vmem:[%s8373_s3 + $0x80] sm:$0xff] }
 0x49e   : > { %v2323_v60 = vmax.f32 %v2319_v25, %v2322_v30  ;;  %v2311_v33 = vmax.f32 %v2309_v24, %v2310_v1  ;;  %v5468_v17 = vld [vmem:[%s8377_s7 + $0x98] sm:$0xff]  ;;  %v2519_v30 = vmax.f32 %v7546_v44, 0.0  ;;  %v2522_v24 = vmax.f32 %v7565_v62, 0.0 }
 0x49f   : > { %v2320_v16 = vsel %vm955_vm1, %v7572_v55, -inf  ;;  %v7587_v18 = vadd.f32 %v2274_v57, %v2241_v19  ;;  %v2236_v22 = vadd.f32 %v2235_v58, %v2043_v20  ;;  %v5466_v19 = vld [vmem:[%s8377_s7 + $0x88] sm:$0xff]  ;;  %v2516_v20 = vmax.f32 %v7518_v63, 0.0 }
 0x4a0   : > { %v2321_v5 = vmax.f32 %v2317_v39, %v2320_v16  ;;  %v2312_v45 = vrot.slane %v2311_v33, 1  ;;  %v2517_v58 = vmax.f32 %v7525_v11, 0.0  ;;  %v2520_v16 = vmax.f32 %v7540_v12, 0.0 }
 0x4a1   : > { %v2326_v43 = vsel %vm955_vm1, %v7587_v18, -inf  ;;  %v7591_v59 = vadd.f32 %v2274_v57, %v2236_v22  ;;  %v2521_v22 = vmax.f32 %v7567_v28, 0.0  ;;  %v2523_v25 = vmax.f32 %v7563_v34, 0.0 }
 0x4a2   : > { %v2327_v4 = vmax.f32 %v2323_v60, %v2326_v43  ;;  %v2313_v47 = vmax.f32 %v2311_v33, %v2312_v45  ;;  %v2524_v39 = vmax.f32 %v7561_v10, 0.0  ;;  %v2525_v43 = vmax.f32 %v7572_v55, 0.0 }
 0x4a3   : > { %v2324_v7 = vsel %vm955_vm1, %v7591_v59, -inf  ;;  %v2526_v60 = vmax.f32 %v7570_v36, 0.0 }
 0x4a4   : > { %v2325_v31 = vmax.f32 %v2321_v5, %v2324_v7  ;;  %v2353_v52 = vmax.f32 %v2313_v47, 0.0  ;;  %v2527_v5 = vmax.f32 %v7591_v59, 0.0  ;;  %v2528_v7 = vmax.f32 %v7587_v18, 0.0 }
 0x4a6   : > { %v2328_v32 = vmax.f32 %v2325_v31, %v2327_v4 }
 0x4a8   : > { %v2329_v40 = vrot.slane %v2328_v32, 4 }
 0x4aa   : > { %v2330_v37 = vmax.f32 %v2328_v32, %v2329_v40 }
 0x4ac   : > { %v2331_v42 = vrot.slane %v2330_v37, 2 }
 0x4ae   : > { %v2332_v46 = vmax.f32 %v2330_v37, %v2331_v42 }
 0x4b0   : > { %v2333_v48 = vrot.slane %v2332_v46, 1 }
 0x4b2   : > { %v2334_v2 = vmax.f32 %v2332_v46, %v2333_v48 }
 0x4b4   : > { %v2354_v53 = vmax.f32 %v2334_v2, 0.0  ;;  %v2440_v9 = vsel %vm1422_vm3, %v2334_v2, %v2313_v47 }
 0x4b6   : > { %v2365_v57 = vsel %vm1422_vm3, %v2354_v53, %v2353_v52 }
 0x4b7   : > { %6278 = vmatmul.mubr.msk.f32.vlgmr.msra.gmra.mxu1 %vm955_vm1, %v2365_v57 }
 0x4b8   : > { %6281 = vmatpush3.msra.mxu1 %v5472_v54  ;;  %6288 = vmatprep.mubr.msk.f32.mxu1 %vm6779_vm2, %v6778_v51 }
 0x4b9   : > { %6282 = vmatprep.subr.mxu1 %v6778_v51 }
 0x4ba   : > { %6283 = vmatpush3.msra.mxu1 %v5471_v26 }
 0x4bb   : > { %6284 = vmatprep.subr.mxu1 %v6778_v51 }
 0x4bc   : > { %6285 = vmatpush3.msra.mxu1 %v5470_v41 }
 0x4bd   : > { %6286 = vmatprep.subr.mxu1 %v6778_v51 }
 0x4be   : > { %6287 = vmatpush3.msra.mxu1 %v5469_v49 }
 0x4bf   : > { %6289 = vmatmul.mubr.msk.f32.vlgmr.msra.gmra.mxu1 %vm955_vm1, %v2440_v9  ;;  %6291 = vmatprep.subr.mxu1 %v5460_v50 }
 0x4c0   : > { %6292 = vmatpush3.msra.mxu1 %v5460_v50  ;;  %6299 = vmatprep.mubr.msk.f32.mxu1 %vm955_vm1, %v2513_v38 }
 0x4c1   : > { %6293 = vmatprep.subr.mxu1 %v5459_v0 }
 0x4c2   : > { %6294 = vmatpush3.msra.mxu1 %v5459_v0 }
 0x4c3   : > { %6295 = vmatprep.subr.mxu1 %v5458_v21 }
 0x4c4   : > { %6296 = vmatpush3.msra.mxu1 %v5458_v21 }
 0x4c5   : > { %6297 = vmatprep.subr.mxu1 %v5457_v35 }
 0x4c6   : > { %6298 = vmatpush3.msra.mxu1 %v5457_v35 }
 0x4c7   : > { %6300 = vmatmul.mubr.msk.f32.vlgmr.msra.gmra.mxu1 %vm955_vm1, %v2514_v3  ;;  %6355 = vmatprep.subr.mxu1 %v5468_v17 }
 0x4c8   : > { %6302 = vmatprep.mubr.msk.f32.mxu1 %vm955_vm1, %v2515_v13  ;;  %6356 = vmatpush3.msra.mxu1 %v5468_v17 }
 0x4c9   : > { %6357 = vmatprep.subr.mxu1 %v5467_v15 }
 0x4ca   : > { %6358 = vmatpush3.msra.mxu1 %v5467_v15 }
 0x4cb   : > { %6303 = vmatmul.mubr.msk.f32.gmra.mxu1 %vm955_vm1, %v2516_v20  ;;  %6359 = vmatprep.subr.mxu1 %v5466_v19 }
 0x4cc   : > { %6305 = vmatprep.mubr.msk.f32.mxu1 %vm955_vm1, %v2517_v58  ;;  %6360 = vmatpush3.msra.mxu1 %v5466_v19 }
 0x4cd   : > { %6361 = vmatprep.subr.mxu1 %v5465_v23 }
 0x4ce   : > { %6362 = vmatpush3.msra.mxu1 %v5465_v23 }
 0x4cf   : > { %6306 = vmatmul.mubr.msk.f32.gmra.mxu1 %vm955_vm1, %v2518_v27 }
 0x4d0   : > { %6308 = vmatprep.mubr.msk.f32.mxu1 %vm955_vm1, %v2519_v30 }
 0x4d3   : > { %6309 = vmatmul.mubr.msk.f32.gmra.mxu1 %vm955_vm1, %v2520_v16 }
 0x4d4   : > { %6311 = vmatprep.mubr.msk.f32.mxu1 %vm955_vm1, %v2521_v22 }
 0x4d7   : > { %6312 = vmatmul.mubr.msk.f32.gmra.mxu1 %vm955_vm1, %v2522_v24 }
 0x4d8   : > { %6314 = vmatprep.mubr.msk.f32.mxu1 %vm955_vm1, %v2523_v25 }
 0x4db   : > { %6315 = vmatmul.mubr.msk.f32.gmra.mxu1 %vm955_vm1, %v2524_v39 }
 0x4dc   : > { %6317 = vmatprep.mubr.msk.f32.mxu1 %vm955_vm1, %v2525_v43 }
 0x4df   : > { %6318 = vmatmul.mubr.msk.f32.gmra.mxu1 %vm955_vm1, %v2526_v60 }
 0x4e0   : > { %6320 = vmatprep.mubr.msk.f32.mxu1 %vm955_vm1, %v2527_v5 }
 0x4e3   : > { %6321 = vmatmul.mubr.msk.f32.gmra.mxu1 %vm955_vm1, %v2528_v7 }
 0x4e4   : > { %6363 = vmatprep.mubr.msk.f32.mxu1 %vm955_vm1, %v7521_v6 }
 0x4e7   : > { %6364 = vmatmul.mubr.msk.f32.vlgmr.msra.gmra.mxu1 %vm955_vm1, %v7523_v8  ;;  %v5474_v8 = vld [vmem:[%s8374_s4 + $0x2] ss:$0 sm:$0xff] }
 0x4e8   : > { %6366 = vmatprep.mubr.msk.f32.mxu1 %vm955_vm1, %v7516_v61  ;;  %v5494_v61 = vld [vmem:[%s8375_s5 + $0x48] sm:$0xff] }
 0x4e9   : > { %6327 = vmatprep.subr.mxu0 %v5494_v61 }
 0x4ea   : > { %6328 = vmatpush3.msra.mxu0 %v5494_v61 }
 0x4eb   : > { %6367 = vmatmul.mubr.msk.f32.gmra.mxu1 %vm955_vm1, %v7518_v63  ;;  %v5493_v63 = vld [vmem:[%s8375_s5 + $0x40] sm:$0xff] }
 0x4ec   : > { %6369 = vmatprep.mubr.msk.f32.mxu1 %vm955_vm1, %v7525_v11  ;;  %6329 = vmatprep.subr.mxu0 %v5493_v63 }
 0x4ed   : > { %6330 = vmatpush3.msra.mxu0 %v5493_v63  ;;  %v5538_v63 = vld [vmem:[%s8373_s3 + $0xf8] sm:$0xff] }
 0x4ee   : > { %6387 = vmatprep.subr.mxu0 %v6778_v51 }
 0x4ef   : > { %6370 = vmatmul.mubr.msk.f32.gmra.mxu1 %vm955_vm1, %v7529_v14 }
 0x4f0   : > { %6372 = vmatprep.mubr.msk.f32.mxu1 %vm955_vm1, %v7546_v44 }
 0x4f3   : > { %6373 = vmatmul.mubr.msk.f32.gmra.mxu1 %vm955_vm1, %v7540_v12 }
 0x4f4   : > { %6375 = vmatprep.mubr.msk.f32.mxu1 %vm955_vm1, %v7567_v28 }
 0x4f7   : > { %6376 = vmatmul.mubr.msk.f32.gmra.mxu1 %vm955_vm1, %v7565_v62 }
 0x4f8   : > { %6378 = vmatprep.mubr.msk.f32.mxu1 %vm955_vm1, %v7563_v34 }
 0x4fb   : > { %6379 = vmatmul.mubr.msk.f32.gmra.mxu1 %vm955_vm1, %v7561_v10 }
 0x4fc   : > { %6381 = vmatprep.mubr.msk.f32.mxu1 %vm955_vm1, %v7572_v55 }
 0x4ff   : > { %6382 = vmatmul.mubr.msk.f32.gmra.mxu1 %vm955_vm1, %v7570_v36 }
 0x500   : > { %6384 = vmatprep.mubr.msk.f32.mxu1 %vm955_vm1, %v7591_v59 }
 0x503   : > { %6385 = vmatmul.mubr.msk.f32.gmra.mxu1 %vm955_vm1, %v7587_v18 }
 0x577   : > { %v2434_v6 = vpop.f32.mrf.mxu1 }
 0x578   : > { %v2435_v14 = vadd.f32 %v5474_v8, %v2434_v6  ;;  %v5537_v6 = vld [vmem:[%s8373_s3 + $0xf0] sm:$0xff]  ;;  %v5536_v8 = vld [vmem:[%s8373_s3 + $0xe8] sm:$0xff] }
 0x579   : > { %v6279_v11 = vpop.f32.mrf.mxu1 }
 0x57a   : > { %v2729_v12 = vrot.slane %v2435_v14, %v7447_v56  ;;  %v5535_v11 = vld [vmem:[%s8373_s3 + $0xe0] sm:$0xff] }
 0x57c   : > { %v2737_v34 = vrot.slane %v2729_v12, %v7447_v56  ;;  %v2730_v40 = vcombine.high %v2729_v12, %v2729_v12 }
 0x57e   : > { %v2748_v62 = vrot.slane %v2737_v34, %v6960_v29  ;;  %v2744_v2 = vrot.slane %v2730_v40, %v7447_v56 }
 0x57f   : > { %v7715_v44 = vpop.f32.mrf.mxu1 }
 0x580   : > { %v2752_v49 = vrot.slane %v2744_v2, %v6960_v29 }
 0x581   : > { %v6290_v10 = vpop.f32.mrf.mxu1 }
 0x587   : > { %v6301_v28 = vpop.f32.mrf.mxu1 }
 0x588   : > { %v2756_v36 = vadd.f32 %v6301_v28, %v2748_v62 }
 0x589   : > { %v2643_v55 = vpop.f32.mrf.mxu1 }
 0x58a   : > { %v2755_v18 = vadd.f32 %v2748_v62, %v2643_v55  ;;  %v2772_v4 = vmax.f32 %v2756_v36, 0.0 }
 0x58b   : > { %v6304_v59 = vpop.f32.mrf.mxu1 }
 0x58c   : > { %v2771_v1 = vmax.f32 %v2755_v18, 0.0  ;;  %v2758_v31 = vadd.f32 %v6304_v59, %v2748_v62  ;;  %v7757_v59 = vrot.slane %v7715_v44, %v7447_v56  ;;  %v5570_v44 = vld [vmem:[%s8375_s5 + $0x78] sm:$0xff] }
 0x58d   : > { %v2653_v32 = vpop.f32.mrf.mxu1  ;;  %6441 = vmatprep.subr.mxu1 %v5570_v44 }
 0x58e   : > { %v2757_v33 = vadd.f32 %v2748_v62, %v2653_v32  ;;  %6331 = vmatprep.mubr.msk.f32.mxu0 %vm955_vm1, %v2771_v1  ;;  %v2774_v45 = vmax.f32 %v2758_v31, 0.0  ;;  %v3201_v40 = vrot.slane %v7757_v59, %v7447_v56  ;;  %6442 = vmatpush3.msra.mxu1 %v5570_v44 }
 0x58f   : > { %v6307_v37 = vpop.f32.mrf.mxu1  ;;  %6332 = vmatmul.mubr.msk.f32.vlgmr.msra.gmra.mxu0 %vm955_vm1, %v2772_v4  ;;  %v7762_v4 = vld [vmem:[%s8376_s6 + $0x2] ss:$0 sm:$0xff] }
 0x590   : > { %v2773_v42 = vmax.f32 %v2757_v33, 0.0  ;;  %v2760_v46 = vadd.f32 %v6307_v37, %v2748_v62  ;;  %6388 = vmatpush3.msra.mxu0 %v5538_v63 }
 0x591   : > { %v2663_v47 = vpop.f32.mrf.mxu1  ;;  %6389 = vmatprep.subr.mxu0 %v6778_v51 }
 0x592   : > { %v2759_v48 = vadd.f32 %v2748_v62, %v2663_v47  ;;  %6334 = vmatprep.mubr.msk.f32.mxu0 %vm955_vm1, %v2773_v42  ;;  %v2776_v54 = vmax.f32 %v2760_v46, 0.0  ;;  %6390 = vmatpush3.msra.mxu0 %v5537_v6 }
 0x593   : > { %v6310_v52 = vpop.f32.mrf.mxu1  ;;  %6335 = vmatmul.mubr.msk.f32.gmra.mxu0 %vm955_vm1, %v2774_v45  ;;  %6391 = vmatprep.subr.mxu0 %v6778_v51  ;;  %v5569_v45 = vld [vmem:[%s8375_s5 + $0x70] sm:$0xff] }
 0x594   : > { %v2775_v53 = vmax.f32 %v2759_v48, 0.0  ;;  %v2762_v57 = vadd.f32 %v6310_v52, %v2748_v62  ;;  %6392 = vmatpush3.msra.mxu0 %v5536_v8  ;;  %6443 = vmatprep.subr.mxu1 %v5569_v45 }
 0x595   : > { %v2673_v26 = vpop.f32.mrf.mxu1  ;;  %6393 = vmatprep.subr.mxu0 %v6778_v51  ;;  %6444 = vmatpush3.msra.mxu1 %v5569_v45 }
 0x596   : > { %v2761_v41 = vadd.f32 %v2748_v62, %v2673_v26  ;;  %6337 = vmatprep.mubr.msk.f32.mxu0 %vm955_vm1, %v2775_v53  ;;  %v2778_v38 = vmax.f32 %v2762_v57, 0.0  ;;  %6394 = vmatpush3.msra.mxu0 %v5535_v11 }
 0x597   : > { %v6313_v50 = vpop.f32.mrf.mxu1  ;;  %6338 = vmatmul.mubr.msk.f32.gmra.mxu0 %vm955_vm1, %v2776_v54  ;;  %6398 = vmatprep.subr.mxu0 %v6778_v51  ;;  %v3212_v54 = vrot.slane %v3201_v40, %v6960_v29 }
 0x598   : > { %v2777_v9 = vmax.f32 %v2761_v41, 0.0  ;;  %v2764_v0 = vadd.f32 %v6313_v50, %v2752_v49 }
 0x599   : > { %v2683_v21 = vpop.f32.mrf.mxu1 }
 0x59a   : > { %v2763_v35 = vadd.f32 %v2752_v49, %v2683_v21  ;;  %6340 = vmatprep.mubr.msk.f32.mxu0 %vm955_vm1, %v2777_v9  ;;  %v2780_v13 = vmax.f32 %v2764_v0, 0.0 }
 0x59b   : > { %v6316_v17 = vpop.f32.mrf.mxu1  ;;  %6341 = vmatmul.mubr.msk.f32.gmra.mxu0 %vm955_vm1, %v2778_v38 }
 0x59c   : > { %v2779_v3 = vmax.f32 %v2763_v35, 0.0  ;;  %v2766_v15 = vadd.f32 %v6316_v17, %v2752_v49 }
 0x59d   : > { %v2693_v19 = vpop.f32.mrf.mxu1 }
 0x59e   : > { %v2765_v20 = vadd.f32 %v2752_v49, %v2693_v19  ;;  %6343 = vmatprep.mubr.msk.f32.mxu0 %vm955_vm1, %v2779_v3  ;;  %v2782_v27 = vmax.f32 %v2766_v15, 0.0 }
 0x59f   : > { %v6319_v58 = vpop.f32.mrf.mxu1  ;;  %6344 = vmatmul.mubr.msk.f32.gmra.mxu0 %vm955_vm1, %v2780_v13 }
 0x5a0   : > { %v2781_v23 = vmax.f32 %v2765_v20, 0.0  ;;  %v2768_v30 = vadd.f32 %v6319_v58, %v2752_v49 }
 0x5a1   : > { %v2703_v16 = vpop.f32.mrf.mxu1 }
 0x5a2   : > { %v2767_v22 = vadd.f32 %v2752_v49, %v2703_v16  ;;  %6346 = vmatprep.mubr.msk.f32.mxu0 %vm955_vm1, %v2781_v23  ;;  %v2784_v39 = vmax.f32 %v2768_v30, 0.0 }
 0x5a3   : > { %v6322_v24 = vpop.f32.mrf.mxu1  ;;  %6347 = vmatmul.mubr.msk.f32.gmra.mxu0 %vm955_vm1, %v2782_v27 }
 0x5a4   : > { %v2783_v25 = vmax.f32 %v2767_v22, 0.0  ;;  %v2770_v43 = vadd.f32 %v6322_v24, %v2752_v49  ;;  %v3194_v22 = vcombine.high %v7757_v59, %v7757_v59 }
 0x5a5   : > { %v2713_v60 = vpop.f32.mrf.mxu1 }
 0x5a6   : > { %v2769_v5 = vadd.f32 %v2752_v49, %v2713_v60  ;;  %6349 = vmatprep.mubr.msk.f32.mxu0 %vm955_vm1, %v2783_v25  ;;  %v2786_v61 = vmax.f32 %v2770_v43, 0.0 }
 0x5a7   : > { %6350 = vmatmul.mubr.msk.f32.gmra.mxu0 %vm955_vm1, %v2784_v39  ;;  %v6365_v14 = vpop.f32.mrf.mxu1 }
 0x5a8   : > { %v2785_v7 = vmax.f32 %v2769_v5, 0.0 }
 0x5a9   : > { %v3107_v12 = vpop.f32.mrf.mxu1 }
 0x5aa   : > { %6352 = vmatprep.mubr.msk.f32.mxu0 %vm955_vm1, %v2785_v7 }
 0x5ab   : > { %6353 = vmatmul.mubr.msk.f32.gmra.mxu0 %vm955_vm1, %v2786_v61  ;;  %v6368_v10 = vpop.f32.mrf.mxu1 }
 0x5ac   : > { %6395 = vmatprep.mubr.msk.f32.mxu0 %vm6779_vm2, %v6778_v51 }
 0x5ad   : > { %v3117_v34 = vpop.f32.mrf.mxu1 }
 0x5af   : > { %v6371_v62 = vpop.f32.mrf.mxu1 }
 0x5b1   : > { %v3127_v28 = vpop.f32.mrf.mxu1 }
 0x5b3   : > { %v6374_v36 = vpop.f32.mrf.mxu1 }
 0x5b5   : > { %v3137_v18 = vpop.f32.mrf.mxu1 }
 0x5b7   : > { %v7764_v32 = vpop.f32.mrf.mxu1 }
 0x5b9   : > { %v3147_v2 = vpop.f32.mrf.mxu1 }
 0x5bb   : > { %v6380_v21 = vpop.f32.mrf.mxu1 }
 0x5bd   : > { %v3157_v24 = vpop.f32.mrf.mxu1 }
 0x64f   : > { %v6333_v55 = vpop.f32.mrf.mxu0 }
 0x650   : > { %v2920_v46 = vadd.f32 %v6333_v55, %v7762_v4 }
 0x651   : > { %v2914_v1 = vpop.f32.mrf.mxu0 }
 0x652   : > { %v2915_v37 = vadd.f32 %v7762_v4, %v2914_v1  ;;  %v3113_v49 = vadd.f32 %v6365_v14, %v2920_v46 }
 0x653   : > { %v6336_v31 = vpop.f32.mrf.mxu0 }
 0x654   : > { %v2930_v33 = vadd.f32 %v6336_v31, %v7762_v4  ;;  %v3108_v57 = vadd.f32 %v3107_v12, %v2915_v37  ;;  %v7788_v19 = vadd.f32 %v3212_v54, %v3113_v49  ;;  %v6383_v12 = vpop.f32.mrf.mxu1 }
 0x655   : > { %v2924_v42 = vpop.f32.mrf.mxu0 }
 0x656   : > { %v2925_v47 = vadd.f32 %v7762_v4, %v2924_v42  ;;  %v3123_v52 = vadd.f32 %v6368_v10, %v2930_v33  ;;  %v7786_v13 = vadd.f32 %v3212_v54, %v3108_v57  ;;  %v3236_v61 = vsel %vm955_vm1, %v7788_v19, -inf  ;;  %v3167_v42 = vpop.f32.mrf.mxu1 }
 0x657   : > { %v6339_v48 = vpop.f32.mrf.mxu0 }
 0x658   : > { %v2940_v53 = vadd.f32 %v6339_v48, %v7762_v4  ;;  %v3118_v26 = vadd.f32 %v3117_v34, %v2925_v47  ;;  %v7783_v35 = vadd.f32 %v3212_v54, %v3123_v52  ;;  %v3235_v39 = vsel %vm955_vm1, %v7786_v13, -inf }
 0x659   : > { %v2934_v41 = vpop.f32.mrf.mxu0 }
 0x65a   : > { %v2935_v50 = vadd.f32 %v7762_v4, %v2934_v41  ;;  %v7781_v9 = vadd.f32 %v3212_v54, %v3118_v26  ;;  %v3133_v38 = vadd.f32 %v6371_v62, %v2940_v53  ;;  %v3239_v25 = vsel %vm955_vm1, %v7783_v35, -inf }
 0x65b   : > { %v6342_v0 = vpop.f32.mrf.mxu0  ;;  %v3240_v6 = vmax.f32 %v3236_v61, %v3239_v25 }
 0x65c   : > { %v3128_v17 = vadd.f32 %v3127_v28, %v2935_v50  ;;  %v2950_v3 = vadd.f32 %v6342_v0, %v7762_v4  ;;  %v3237_v23 = vsel %vm955_vm1, %v7781_v9, -inf  ;;  %v7794_v27 = vadd.f32 %v3212_v54, %v3133_v38  ;;  %v6386_v38 = vpop.f32.mrf.mxu1 }
 0x65d   : > { %v2944_v15 = vpop.f32.mrf.mxu0  ;;  %v3238_v63 = vmax.f32 %v3235_v39, %v3237_v23 }
 0x65e   : > { %v7790_v20 = vadd.f32 %v3212_v54, %v3128_v17  ;;  %v3143_v58 = vadd.f32 %v6374_v36, %v2950_v3  ;;  %v2945_v30 = vadd.f32 %v7762_v4, %v2944_v15  ;;  %v3243_v8 = vsel %vm955_vm1, %v7794_v27, -inf }
 0x65f   : > { %v6345_v16 = vpop.f32.mrf.mxu0  ;;  %v3208_v36 = vrot.slane %v3194_v22, %v7447_v56  ;;  %v3244_v1 = vmax.f32 %v3240_v6, %v3243_v8 }
 0x660   : > { %v3241_v43 = vsel %vm955_vm1, %v7790_v20, -inf  ;;  %v7805_v60 = vadd.f32 %v3212_v54, %v3143_v58  ;;  %v3138_v5 = vadd.f32 %v3137_v18, %v2945_v30  ;;  %v2960_v34 = vadd.f32 %v6345_v16, %v7762_v4 }
 0x661   : > { %v2954_v7 = vpop.f32.mrf.mxu0  ;;  %v3242_v10 = vmax.f32 %v3238_v63, %v3241_v43  ;;  %v3216_v48 = vrot.slane %v3208_v36, %v6960_v29 }
 0x662   : > { %v7811_v11 = vadd.f32 %v3212_v54, %v3138_v5  ;;  %v2955_v62 = vadd.f32 %v7762_v4, %v2954_v7  ;;  %v3247_v55 = vsel %vm955_vm1, %v7805_v60, -inf  ;;  %v3153_v45 = vadd.f32 %v7764_v32, %v2960_v34 }
 0x663   : > { %v6348_v14 = vpop.f32.mrf.mxu0  ;;  %v3248_v44 = vmax.f32 %v3244_v1, %v3247_v55 }
 0x664   : > { %v2970_v28 = vadd.f32 %v6348_v14, %v7762_v4  ;;  %v3245_v18 = vsel %vm955_vm1, %v7811_v11, -inf  ;;  %v3148_v46 = vadd.f32 %v3147_v2, %v2955_v62  ;;  %v7830_v0 = vadd.f32 %v3216_v48, %v3153_v45 }
 0x665   : > { %v2964_v59 = vpop.f32.mrf.mxu0  ;;  %v3246_v31 = vmax.f32 %v3242_v10, %v3245_v18 }
 0x666   : > { %v3163_v33 = vadd.f32 %v6380_v21, %v2970_v28  ;;  %v2965_v40 = vadd.f32 %v7762_v4, %v2964_v59  ;;  %v7832_v32 = vadd.f32 %v3216_v48, %v3148_v46  ;;  %v3257_v25 = vsel %vm955_vm1, %v7830_v0, -inf }
 0x667   : > { %v6351_v37 = vpop.f32.mrf.mxu0  ;;  %v3249_v54 = vmax.f32 %v3246_v31, %v3248_v44 }
 0x668   : > { %v2980_v47 = vadd.f32 %v6351_v37, %v7762_v4  ;;  %v3158_v52 = vadd.f32 %v3157_v24, %v2965_v40  ;;  %v7826_v41 = vadd.f32 %v3216_v48, %v3163_v33  ;;  %v3177_v24 = vpop.f32.mrf.mxu1  ;;  %v3256_v39 = vsel %vm955_vm1, %v7832_v32, -inf }
 0x669   : > { %v2974_v53 = vpop.f32.mrf.mxu0  ;;  %v3250_v15 = vrot.slane %v3249_v54, 4 }
 0x66a   : > { %v3173_v57 = vadd.f32 %v6383_v12, %v2980_v47  ;;  %v2975_v26 = vadd.f32 %v7762_v4, %v2974_v53  ;;  %v7828_v49 = vadd.f32 %v3216_v48, %v3158_v52  ;;  %v3260_v23 = vsel %vm955_vm1, %v7826_v41, -inf  ;;  %v5546_v47 = vld [vmem:[%s8377_s7 + $0xf8] sm:$0xff]  ;;  %v5545_v52 = vld [vmem:[%s8377_s7 + $0xf0] sm:$0xff]  ;;  %v5544_v53 = vld [vmem:[%s8377_s7 + $0xe8] sm:$0xff] }
 0x66b   : > { %v6354_v50 = vpop.f32.mrf.mxu0  ;;  %v3251_v63 = vmax.f32 %v3249_v54, %v3250_v15  ;;  %v3261_v6 = vmax.f32 %v3257_v25, %v3260_v23  ;;  %v5543_v54 = vld [vmem:[%s8377_s7 + $0xe0] sm:$0xff]  ;;  %v3456_v15 = vmax.f32 %v7788_v19, 0.0  ;;  %v3457_v23 = vmax.f32 %v7781_v9, 0.0 }
 0x66c   : > { %v3168_v2 = vadd.f32 %v3167_v42, %v2975_v26  ;;  %v2990_v21 = vadd.f32 %v6354_v50, %v7762_v4  ;;  %v7835_v17 = vadd.f32 %v3216_v48, %v3173_v57  ;;  %v3258_v30 = vsel %vm955_vm1, %v7828_v49, -inf  ;;  %v5534_v57 = vld [vmem:[%s8373_s3 + $0xd8] sm:$0xff]  ;;  %v5539_v25 = vld [vmem:[%s8377_s7 + $0xc0] sm:$0xff] }
 0x66d   : > { %v2984_v3 = vpop.f32.mrf.mxu0  ;;  %v3259_v8 = vmax.f32 %v3256_v39, %v3258_v30  ;;  %v3252_v62 = vrot.slane %v3251_v63, 2  ;;  %v3455_v50 = vmax.f32 %v7786_v13, 0.0  ;;  %v5541_v30 = vld [vmem:[%s8377_s7 + $0xd0] sm:$0xff]  ;;  %v3460_v39 = vmax.f32 %v7794_v27, 0.0 }
 0x66e   : > { %v7837_v58 = vadd.f32 %v3216_v48, %v3168_v2  ;;  %v3183_v16 = vadd.f32 %v6386_v38, %v2990_v21  ;;  %v2985_v22 = vadd.f32 %v7762_v4, %v2984_v3  ;;  %v3264_v43 = vsel %vm955_vm1, %v7835_v17, -inf  ;;  %v5533_v38 = vld [vmem:[%s8373_s3 + $0xd0] sm:$0xff]  ;;  %v5532_v2 = vld [vmem:[%s8373_s3 + $0xc8] sm:$0xff]  ;;  %v5531_v21 = vld [vmem:[%s8373_s3 + $0xc0] sm:$0xff] }
 0x66f   : > { %v3265_v12 = vmax.f32 %v3261_v6, %v3264_v43  ;;  %v3253_v18 = vmax.f32 %v3251_v63, %v3252_v62  ;;  %v5542_v3 = vld [vmem:[%s8377_s7 + $0xd8] sm:$0xff]  ;;  %v3461_v43 = vmax.f32 %v7811_v11, 0.0  ;;  %v3464_v63 = vmax.f32 %v7830_v0, 0.0 }
 0x670   : > { %v3262_v5 = vsel %vm955_vm1, %v7837_v58, -inf  ;;  %v7852_v7 = vadd.f32 %v3216_v48, %v3183_v16  ;;  %v3178_v61 = vadd.f32 %v3177_v24, %v2985_v22  ;;  %v5540_v16 = vld [vmem:[%s8377_s7 + $0xc8] sm:$0xff]  ;;  %v3458_v22 = vmax.f32 %v7783_v35, 0.0 }
 0x671   : > { %v3263_v10 = vmax.f32 %v3259_v8, %v3262_v5  ;;  %v3254_v33 = vrot.slane %v3253_v18, 1  ;;  %v3459_v24 = vmax.f32 %v7790_v20, 0.0  ;;  %v3462_v5 = vmax.f32 %v7805_v60, 0.0 }
 0x672   : > { %v3268_v4 = vsel %vm955_vm1, %v7852_v7, -inf  ;;  %v7856_v14 = vadd.f32 %v3216_v48, %v3178_v61  ;;  %v3463_v61 = vmax.f32 %v7832_v32, 0.0  ;;  %v3465_v6 = vmax.f32 %v7828_v49, 0.0 }
 0x673   : > { %v3269_v28 = vmax.f32 %v3265_v12, %v3268_v4  ;;  %v3255_v37 = vmax.f32 %v3253_v18, %v3254_v33  ;;  %v3466_v8 = vmax.f32 %v7826_v41, 0.0  ;;  %v3467_v4 = vmax.f32 %v7837_v58, 0.0 }
 0x674   : > { %v3266_v34 = vsel %vm955_vm1, %v7856_v14, -inf  ;;  %v3468_v12 = vmax.f32 %v7835_v17, 0.0 }
 0x675   : > { %v3267_v36 = vmax.f32 %v3263_v10, %v3266_v34  ;;  %v3295_v45 = vmax.f32 %v3255_v37, 0.0  ;;  %v3469_v10 = vmax.f32 %v7856_v14, 0.0  ;;  %v3470_v34 = vmax.f32 %v7852_v7, 0.0 }
 0x677   : > { %v3270_v55 = vmax.f32 %v3267_v36, %v3269_v28 }
 0x679   : > { %v3271_v59 = vrot.slane %v3270_v55, 4 }
 0x67b   : > { %v3272_v1 = vmax.f32 %v3270_v55, %v3271_v59 }
 0x67d   : > { %v3273_v31 = vrot.slane %v3272_v1, 2 }
 0x67f   : > { %v3274_v40 = vmax.f32 %v3272_v1, %v3273_v31 }
 0x681   : > { %v3275_v42 = vrot.slane %v3274_v40, 1 }
 0x683   : > { %v3276_v44 = vmax.f32 %v3274_v40, %v3275_v42 }
 0x685   : > { %v3296_v46 = vmax.f32 %v3276_v44, 0.0  ;;  %v3382_v26 = vsel %vm1422_vm3, %v3276_v44, %v3255_v37 }
 0x687   : > { %v3307_v48 = vsel %vm1422_vm3, %v3296_v46, %v3295_v45 }
 0x688   : > { %6396 = vmatmul.mubr.msk.f32.vlgmr.msra.gmra.mxu0 %vm955_vm1, %v3307_v48 }
 0x689   : > { %6399 = vmatpush3.msra.mxu0 %v5546_v47  ;;  %6406 = vmatprep.mubr.msk.f32.mxu0 %vm6779_vm2, %v6778_v51 }
 0x68a   : > { %6400 = vmatprep.subr.mxu0 %v6778_v51 }
 0x68b   : > { %6401 = vmatpush3.msra.mxu0 %v5545_v52 }
 0x68c   : > { %6402 = vmatprep.subr.mxu0 %v6778_v51 }
 0x68d   : > { %6403 = vmatpush3.msra.mxu0 %v5544_v53 }
 0x68e   : > { %6404 = vmatprep.subr.mxu0 %v6778_v51 }
 0x68f   : > { %6405 = vmatpush3.msra.mxu0 %v5543_v54 }
 0x690   : > { %6407 = vmatmul.mubr.msk.f32.vlgmr.msra.gmra.mxu0 %vm955_vm1, %v3382_v26  ;;  %6409 = vmatprep.subr.mxu0 %v5534_v57 }
 0x691   : > { %6410 = vmatpush3.msra.mxu0 %v5534_v57  ;;  %6417 = vmatprep.mubr.msk.f32.mxu0 %vm955_vm1, %v3455_v50 }
 0x692   : > { %6411 = vmatprep.subr.mxu0 %v5533_v38 }
 0x693   : > { %6412 = vmatpush3.msra.mxu0 %v5533_v38 }
 0x694   : > { %6413 = vmatprep.subr.mxu0 %v5532_v2 }
 0x695   : > { %6414 = vmatpush3.msra.mxu0 %v5532_v2 }
 0x696   : > { %6415 = vmatprep.subr.mxu0 %v5531_v21 }
 0x697   : > { %6416 = vmatpush3.msra.mxu0 %v5531_v21 }
 0x698   : > { %6418 = vmatmul.mubr.msk.f32.vlgmr.msra.gmra.mxu0 %vm955_vm1, %v3456_v15  ;;  %6473 = vmatprep.subr.mxu0 %v5542_v3 }
 0x699   : > { %6420 = vmatprep.mubr.msk.f32.mxu0 %vm955_vm1, %v3457_v23  ;;  %6474 = vmatpush3.msra.mxu0 %v5542_v3 }
 0x69a   : > { %6475 = vmatprep.subr.mxu0 %v5541_v30 }
 0x69b   : > { %6476 = vmatpush3.msra.mxu0 %v5541_v30 }
 0x69c   : > { %6421 = vmatmul.mubr.msk.f32.gmra.mxu0 %vm955_vm1, %v3458_v22  ;;  %6477 = vmatprep.subr.mxu0 %v5540_v16 }
 0x69d   : > { %6423 = vmatprep.mubr.msk.f32.mxu0 %vm955_vm1, %v3459_v24  ;;  %6478 = vmatpush3.msra.mxu0 %v5540_v16 }
 0x69e   : > { %6479 = vmatprep.subr.mxu0 %v5539_v25 }
 0x69f   : > { %6480 = vmatpush3.msra.mxu0 %v5539_v25 }
 0x6a0   : > { %6424 = vmatmul.mubr.msk.f32.gmra.mxu0 %vm955_vm1, %v3460_v39 }
 0x6a1   : > { %6426 = vmatprep.mubr.msk.f32.mxu0 %vm955_vm1, %v3461_v43 }
 0x6a4   : > { %6427 = vmatmul.mubr.msk.f32.gmra.mxu0 %vm955_vm1, %v3462_v5 }
 0x6a5   : > { %6429 = vmatprep.mubr.msk.f32.mxu0 %vm955_vm1, %v3463_v61 }
 0x6a8   : > { %6430 = vmatmul.mubr.msk.f32.gmra.mxu0 %vm955_vm1, %v3464_v63 }
 0x6a9   : > { %6432 = vmatprep.mubr.msk.f32.mxu0 %vm955_vm1, %v3465_v6 }
 0x6ac   : > { %6433 = vmatmul.mubr.msk.f32.gmra.mxu0 %vm955_vm1, %v3466_v8 }
 0x6ad   : > { %6435 = vmatprep.mubr.msk.f32.mxu0 %vm955_vm1, %v3467_v4 }
 0x6b0   : > { %6436 = vmatmul.mubr.msk.f32.gmra.mxu0 %vm955_vm1, %v3468_v12 }
 0x6b1   : > { %6438 = vmatprep.mubr.msk.f32.mxu0 %vm955_vm1, %v3469_v10 }
 0x6b4   : > { %6439 = vmatmul.mubr.msk.f32.gmra.mxu0 %vm955_vm1, %v3470_v34 }
 0x6b5   : > { %6481 = vmatprep.mubr.msk.f32.mxu0 %vm955_vm1, %v7786_v13 }
 0x6b8   : > { %6482 = vmatmul.mubr.msk.f32.vlgmr.msra.gmra.mxu0 %vm955_vm1, %v7788_v19  ;;  %v5548_v19 = vld [vmem:[%s8374_s4 + $0x3] ss:$0 sm:$0xff] }
 0x6b9   : > { %6484 = vmatprep.mubr.msk.f32.mxu0 %vm955_vm1, %v7781_v9  ;;  %v5568_v9 = vld [vmem:[%s8375_s5 + $0x68] sm:$0xff] }
 0x6ba   : > { %6445 = vmatprep.subr.mxu1 %v5568_v9 }
 0x6bb   : > { %6446 = vmatpush3.msra.mxu1 %v5568_v9 }
 0x6bc   : > { %6485 = vmatmul.mubr.msk.f32.gmra.mxu0 %vm955_vm1, %v7783_v35  ;;  %v5567_v35 = vld [vmem:[%s8375_s5 + $0x60] sm:$0xff] }
 0x6bd   : > { %6487 = vmatprep.mubr.msk.f32.mxu0 %vm955_vm1, %v7790_v20  ;;  %6447 = vmatprep.subr.mxu1 %v5567_v35 }
 0x6be   : > { %6448 = vmatpush3.msra.mxu1 %v5567_v35  ;;  %v5612_v35 = vld [vmem:[%s8373_s3 + $0x138] sm:$0xff] }
 0x6bf   : > { %6505 = vmatprep.subr.mxu1 %v6778_v51 }
 0x6c0   : > { %6488 = vmatmul.mubr.msk.f32.gmra.mxu0 %vm955_vm1, %v7794_v27 }
 0x6c1   : > { %6490 = vmatprep.mubr.msk.f32.mxu0 %vm955_vm1, %v7811_v11 }
 0x6c4   : > { %6491 = vmatmul.mubr.msk.f32.gmra.mxu0 %vm955_vm1, %v7805_v60 }
 0x6c5   : > { %6493 = vmatprep.mubr.msk.f32.mxu0 %vm955_vm1, %v7832_v32 }
 0x6c8   : > { %6494 = vmatmul.mubr.msk.f32.gmra.mxu0 %vm955_vm1, %v7830_v0 }
 0x6c9   : > { %6496 = vmatprep.mubr.msk.f32.mxu0 %vm955_vm1, %v7828_v49 }
 0x6cc   : > { %6497 = vmatmul.mubr.msk.f32.gmra.mxu0 %vm955_vm1, %v7826_v41 }
 0x6cd   : > { %6499 = vmatprep.mubr.msk.f32.mxu0 %vm955_vm1, %v7837_v58 }
 0x6d0   : > { %6500 = vmatmul.mubr.msk.f32.gmra.mxu0 %vm955_vm1, %v7835_v17 }
 0x6d1   : > { %6502 = vmatprep.mubr.msk.f32.mxu0 %vm955_vm1, %v7856_v14 }
 0x6d4   : > { %6503 = vmatmul.mubr.msk.f32.gmra.mxu0 %vm955_vm1, %v7852_v7 }
 0x748   : > { %v3376_v13 = vpop.f32.mrf.mxu0 }
 0x749   : > { %v3377_v27 = vadd.f32 %v5548_v19, %v3376_v13  ;;  %v5611_v13 = vld [vmem:[%s8373_s3 + $0x130] sm:$0xff]  ;;  %v5610_v19 = vld [vmem:[%s8373_s3 + $0x128] sm:$0xff] }
 0x74a   : > { %v6397_v20 = vpop.f32.mrf.mxu0 }
 0x74b   : > { %v3671_v60 = vrot.slane %v3377_v27, %v7447_v56  ;;  %v5609_v20 = vld [vmem:[%s8373_s3 + $0x120] sm:$0xff] }
 0x74d   : > { %v3679_v49 = vrot.slane %v3671_v60, %v7447_v56  ;;  %v3672_v59 = vcombine.high %v3671_v60, %v3671_v60 }
 0x74f   : > { %v3690_v0 = vrot.slane %v3679_v49, %v6960_v29  ;;  %v3686_v44 = vrot.slane %v3672_v59, %v7447_v56 }
 0x750   : > { %v7980_v11 = vpop.f32.mrf.mxu0 }
 0x751   : > { %v3694_v54 = vrot.slane %v3686_v44, %v6960_v29 }
 0x752   : > { %v6408_v41 = vpop.f32.mrf.mxu0 }
 0x758   : > { %v6419_v32 = vpop.f32.mrf.mxu0 }
 0x759   : > { %v3698_v17 = vadd.f32 %v6419_v32, %v3690_v0 }
 0x75a   : > { %v3585_v58 = vpop.f32.mrf.mxu0 }
 0x75b   : > { %v3697_v7 = vadd.f32 %v3690_v0, %v3585_v58  ;;  %v3714_v28 = vmax.f32 %v3698_v17, 0.0 }
 0x75c   : > { %v6422_v14 = vpop.f32.mrf.mxu0 }
 0x75d   : > { %v3713_v62 = vmax.f32 %v3697_v7, 0.0  ;;  %v3700_v36 = vadd.f32 %v6422_v14, %v3690_v0  ;;  %v4135_v14 = vrot.slane %v7980_v11, %v7447_v56  ;;  %v5644_v11 = vld [vmem:[%s8375_s5 + $0x98] sm:$0xff] }
 0x75e   : > { %v3595_v55 = vpop.f32.mrf.mxu0  ;;  %6559 = vmatprep.subr.mxu0 %v5644_v11 }
 0x75f   : > { %v3699_v18 = vadd.f32 %v3690_v0, %v3595_v55  ;;  %6449 = vmatprep.mubr.msk.f32.mxu1 %vm955_vm1, %v3713_v62  ;;  %v3716_v33 = vmax.f32 %v3700_v36, 0.0  ;;  %v4143_v59 = vrot.slane %v4135_v14, %v7447_v56  ;;  %6560 = vmatpush3.msra.mxu0 %v5644_v11 }
 0x760   : > { %v6425_v1 = vpop.f32.mrf.mxu0  ;;  %6450 = vmatmul.mubr.msk.f32.vlgmr.msra.gmra.mxu1 %vm955_vm1, %v3714_v28  ;;  %v8025_v28 = vld [vmem:[%s8376_s6 + $0x3] ss:$0 sm:$0xff] }
 0x761   : > { %v3715_v31 = vmax.f32 %v3699_v18, 0.0  ;;  %v3702_v40 = vadd.f32 %v6425_v1, %v3690_v0  ;;  %6506 = vmatpush3.msra.mxu1 %v5612_v35 }
 0x762   : > { %v3605_v37 = vpop.f32.mrf.mxu0  ;;  %6507 = vmatprep.subr.mxu1 %v6778_v51 }
 0x763   : > { %v3701_v42 = vadd.f32 %v3690_v0, %v3605_v37  ;;  %6452 = vmatprep.mubr.msk.f32.mxu1 %vm955_vm1, %v3715_v31  ;;  %v3718_v47 = vmax.f32 %v3702_v40, 0.0  ;;  %6508 = vmatpush3.msra.mxu1 %v5611_v13 }
 0x764   : > { %v6428_v45 = vpop.f32.mrf.mxu0  ;;  %6453 = vmatmul.mubr.msk.f32.gmra.mxu1 %vm955_vm1, %v3716_v33  ;;  %6509 = vmatprep.subr.mxu1 %v6778_v51  ;;  %v5643_v33 = vld [vmem:[%s8375_s5 + $0x90] sm:$0xff] }
 0x765   : > { %v3717_v46 = vmax.f32 %v3701_v42, 0.0  ;;  %v3704_v48 = vadd.f32 %v6428_v45, %v3690_v0  ;;  %6510 = vmatpush3.msra.mxu1 %v5610_v19  ;;  %6561 = vmatprep.subr.mxu0 %v5643_v33 }
 0x766   : > { %v3615_v52 = vpop.f32.mrf.mxu0  ;;  %6511 = vmatprep.subr.mxu1 %v6778_v51  ;;  %6562 = vmatpush3.msra.mxu0 %v5643_v33 }
 0x767   : > { %v3703_v53 = vadd.f32 %v3690_v0, %v3615_v52  ;;  %6455 = vmatprep.mubr.msk.f32.mxu1 %vm955_vm1, %v3717_v46  ;;  %v3720_v50 = vmax.f32 %v3704_v48, 0.0  ;;  %6512 = vmatpush3.msra.mxu1 %v5609_v20 }
 0x768   : > { %v6431_v57 = vpop.f32.mrf.mxu0  ;;  %6456 = vmatmul.mubr.msk.f32.gmra.mxu1 %vm955_vm1, %v3718_v47  ;;  %6516 = vmatprep.subr.mxu1 %v6778_v51  ;;  %v4154_v47 = vrot.slane %v4143_v59, %v6960_v29 }
 0x769   : > { %v3719_v26 = vmax.f32 %v3703_v53, 0.0  ;;  %v3706_v38 = vadd.f32 %v6431_v57, %v3694_v54 }
 0x76a   : > { %v3625_v2 = vpop.f32.mrf.mxu0 }
 0x76b   : > { %v3705_v21 = vadd.f32 %v3694_v54, %v3625_v2  ;;  %6458 = vmatprep.mubr.msk.f32.mxu1 %vm955_vm1, %v3719_v26  ;;  %v3722_v23 = vmax.f32 %v3706_v38, 0.0 }
 0x76c   : > { %v6434_v3 = vpop.f32.mrf.mxu0  ;;  %6459 = vmatmul.mubr.msk.f32.gmra.mxu1 %vm955_vm1, %v3720_v50 }
 0x76d   : > { %v3721_v15 = vmax.f32 %v3705_v21, 0.0  ;;  %v3708_v30 = vadd.f32 %v6434_v3, %v3694_v54 }
 0x76e   : > { %v3635_v16 = vpop.f32.mrf.mxu0 }
 0x76f   : > { %v3707_v22 = vadd.f32 %v3694_v54, %v3635_v16  ;;  %6461 = vmatprep.mubr.msk.f32.mxu1 %vm955_vm1, %v3721_v15  ;;  %v3724_v39 = vmax.f32 %v3708_v30, 0.0 }
 0x770   : > { %v6437_v24 = vpop.f32.mrf.mxu0  ;;  %6462 = vmatmul.mubr.msk.f32.gmra.mxu1 %vm955_vm1, %v3722_v23 }
 0x771   : > { %v3723_v25 = vmax.f32 %v3707_v22, 0.0  ;;  %v3710_v43 = vadd.f32 %v6437_v24, %v3694_v54 }
 0x772   : > { %v3645_v5 = vpop.f32.mrf.mxu0 }
 0x773   : > { %v3709_v61 = vadd.f32 %v3694_v54, %v3645_v5  ;;  %6464 = vmatprep.mubr.msk.f32.mxu1 %vm955_vm1, %v3723_v25  ;;  %v3726_v8 = vmax.f32 %v3710_v43, 0.0  ;;  %v4136_v25 = vcombine.high %v4135_v14, %v4135_v14 }
 0x774   : > { %v6440_v63 = vpop.f32.mrf.mxu0  ;;  %6465 = vmatmul.mubr.msk.f32.gmra.mxu1 %vm955_vm1, %v3724_v39 }
 0x775   : > { %v3725_v6 = vmax.f32 %v3709_v61, 0.0  ;;  %v3712_v4 = vadd.f32 %v6440_v63, %v3694_v54  ;;  %v4150_v13 = vrot.slane %v4136_v25, %v7447_v56 }
 0x776   : > { %v3655_v12 = vpop.f32.mrf.mxu0 }
 0x777   : > { %v3711_v10 = vadd.f32 %v3694_v54, %v3655_v12  ;;  %6467 = vmatprep.mubr.msk.f32.mxu1 %vm955_vm1, %v3725_v6  ;;  %v3728_v9 = vmax.f32 %v3712_v4, 0.0  ;;  %v4158_v59 = vrot.slane %v4150_v13, %v6960_v29 }
 0x778   : > { %6468 = vmatmul.mubr.msk.f32.gmra.mxu1 %vm955_vm1, %v3726_v8  ;;  %v6483_v27 = vpop.f32.mrf.mxu0 }
 0x779   : > { %v3727_v34 = vmax.f32 %v3711_v10, 0.0 }
 0x77a   : > { %v4049_v60 = vpop.f32.mrf.mxu0 }
 0x77b   : > { %6470 = vmatprep.mubr.msk.f32.mxu1 %vm955_vm1, %v3727_v34 }
 0x77c   : > { %6471 = vmatmul.mubr.msk.f32.gmra.mxu1 %vm955_vm1, %v3728_v9  ;;  %v6486_v41 = vpop.f32.mrf.mxu0 }
 0x77d   : > { %6513 = vmatprep.mubr.msk.f32.mxu1 %vm6779_vm2, %v6778_v51 }
 0x77e   : > { %v4059_v49 = vpop.f32.mrf.mxu0 }
 0x780   : > { %v6489_v0 = vpop.f32.mrf.mxu0 }
 0x782   : > { %v4069_v32 = vpop.f32.mrf.mxu0 }
 0x784   : > { %v6492_v17 = vpop.f32.mrf.mxu0 }
 0x786   : > { %v4079_v7 = vpop.f32.mrf.mxu0 }
 0x788   : > { %v8027_v55 = vpop.f32.mrf.mxu0 }
 0x78a   : > { %v4089_v44 = vpop.f32.mrf.mxu0 }
 0x78c   : > { %v6498_v2 = vpop.f32.mrf.mxu0 }
 0x78e   : > { %v4099_v63 = vpop.f32.mrf.mxu0 }
 0x820   : > { %v6451_v58 = vpop.f32.mrf.mxu1 }
 0x821   : > { %v3862_v40 = vadd.f32 %v6451_v58, %v8025_v28 }
 0x822   : > { %v3856_v62 = vpop.f32.mrf.mxu1 }
 0x823   : > { %v3857_v1 = vadd.f32 %v8025_v28, %v3856_v62  ;;  %v4055_v54 = vadd.f32 %v6483_v27, %v3862_v40 }
 0x824   : > { %v6454_v36 = vpop.f32.mrf.mxu1 }
 0x825   : > { %v3872_v18 = vadd.f32 %v6454_v36, %v8025_v28  ;;  %v4050_v48 = vadd.f32 %v4049_v60, %v3857_v1  ;;  %v8050_v16 = vadd.f32 %v4154_v47, %v4055_v54 }
 0x826   : > { %v3866_v31 = vpop.f32.mrf.mxu1 }
 0x827   : > { %v3867_v37 = vadd.f32 %v8025_v28, %v3866_v31  ;;  %v4065_v45 = vadd.f32 %v6486_v41, %v3872_v18  ;;  %v8048_v23 = vadd.f32 %v4154_v47, %v4050_v48  ;;  %v4178_v9 = vsel %vm955_vm1, %v8050_v16, -inf  ;;  %v6501_v41 = vpop.f32.mrf.mxu0 }
 0x828   : > { %v6457_v42 = vpop.f32.mrf.mxu1 }
 0x829   : > { %v3882_v46 = vadd.f32 %v6457_v42, %v8025_v28  ;;  %v4060_v52 = vadd.f32 %v4059_v49, %v3867_v37  ;;  %v8045_v21 = vadd.f32 %v4154_v47, %v4065_v45  ;;  %v4177_v8 = vsel %vm955_vm1, %v8048_v23, -inf  ;;  %v4109_v11 = vpop.f32.mrf.mxu0 }
 0x82a   : > { %v3876_v53 = vpop.f32.mrf.mxu1 }
 0x82b   : > { %v3877_v57 = vadd.f32 %v8025_v28, %v3876_v53  ;;  %v8043_v26 = vadd.f32 %v4154_v47, %v4060_v52  ;;  %v4075_v50 = vadd.f32 %v6489_v0, %v3882_v46  ;;  %v4181_v6 = vsel %vm955_vm1, %v8045_v21, -inf }
 0x82c   : > { %v6460_v38 = vpop.f32.mrf.mxu1  ;;  %v4182_v19 = vmax.f32 %v4178_v9, %v4181_v6 }
 0x82d   : > { %v4070_v3 = vadd.f32 %v4069_v32, %v3877_v57  ;;  %v3892_v15 = vadd.f32 %v6460_v38, %v8025_v28  ;;  %v4179_v39 = vsel %vm955_vm1, %v8043_v26, -inf  ;;  %v8056_v43 = vadd.f32 %v4154_v47, %v4075_v50  ;;  %v6504_v50 = vpop.f32.mrf.mxu0 }
 0x82e   : > { %v3886_v30 = vpop.f32.mrf.mxu1  ;;  %v4180_v35 = vmax.f32 %v4177_v8, %v4179_v39 }
 0x82f   : > { %v8052_v22 = vadd.f32 %v4154_v47, %v4070_v3  ;;  %v4085_v24 = vadd.f32 %v6492_v17, %v3892_v15  ;;  %v3887_v5 = vadd.f32 %v8025_v28, %v3886_v30  ;;  %v4185_v20 = vsel %vm955_vm1, %v8056_v43, -inf }
 0x830   : > { %v6463_v61 = vpop.f32.mrf.mxu1  ;;  %v4186_v62 = vmax.f32 %v4182_v19, %v4185_v20 }
 0x831   : > { %v4183_v4 = vsel %vm955_vm1, %v8052_v22, -inf  ;;  %v8065_v12 = vadd.f32 %v4154_v47, %v4085_v24  ;;  %v4080_v10 = vadd.f32 %v4079_v7, %v3887_v5  ;;  %v3902_v0 = vadd.f32 %v6463_v61, %v8025_v28 }
 0x832   : > { %v3896_v34 = vpop.f32.mrf.mxu1  ;;  %v4184_v49 = vmax.f32 %v4180_v35, %v4183_v4 }
 0x833   : > { %v8072_v27 = vadd.f32 %v4154_v47, %v4080_v10  ;;  %v3897_v32 = vadd.f32 %v8025_v28, %v3896_v34  ;;  %v4189_v58 = vsel %vm955_vm1, %v8065_v12, -inf  ;;  %v4095_v40 = vadd.f32 %v8027_v55, %v3902_v0 }
 0x834   : > { %v6466_v60 = vpop.f32.mrf.mxu1  ;;  %v4190_v33 = vmax.f32 %v4186_v62, %v4189_v58 }
 0x835   : > { %v3912_v17 = vadd.f32 %v6466_v60, %v8025_v28  ;;  %v4187_v7 = vsel %vm955_vm1, %v8072_v27, -inf  ;;  %v4090_v37 = vadd.f32 %v4089_v44, %v3897_v32  ;;  %v8090_v38 = vadd.f32 %v4158_v59, %v4095_v40 }
 0x836   : > { %v3906_v14 = vpop.f32.mrf.mxu1  ;;  %v4188_v36 = vmax.f32 %v4184_v49, %v4187_v7 }
 0x837   : > { %v4105_v18 = vadd.f32 %v6498_v2, %v3912_v17  ;;  %v3907_v1 = vadd.f32 %v8025_v28, %v3906_v14  ;;  %v8092_v2 = vadd.f32 %v4158_v59, %v4090_v37  ;;  %v4199_v6 = vsel %vm955_vm1, %v8090_v38, -inf  ;;  %v5620_v37 = vld [vmem:[%s8377_s7 + $0x138] sm:$0xff] }
 0x838   : > { %v6469_v31 = vpop.f32.mrf.mxu1  ;;  %v4191_v47 = vmax.f32 %v4188_v36, %v4190_v33 }
 0x839   : > { %v3922_v42 = vadd.f32 %v6469_v31, %v8025_v28  ;;  %v4100_v45 = vadd.f32 %v4099_v63, %v3907_v1  ;;  %v8085_v48 = vadd.f32 %v4158_v59, %v4105_v18  ;;  %v4119_v63 = vpop.f32.mrf.mxu0  ;;  %v4198_v8 = vsel %vm955_vm1, %v8092_v2, -inf }
 0x83a   : > { %v3916_v46 = vpop.f32.mrf.mxu1  ;;  %v4192_v30 = vrot.slane %v4191_v47, 4 }
 0x83b   : > { %v4115_v52 = vadd.f32 %v6501_v41, %v3922_v42  ;;  %v3917_v53 = vadd.f32 %v8025_v28, %v3916_v46  ;;  %v8088_v54 = vadd.f32 %v4158_v59, %v4100_v45  ;;  %v4202_v24 = vsel %vm955_vm1, %v8085_v48, -inf  ;;  %v5619_v45 = vld [vmem:[%s8377_s7 + $0x130] sm:$0xff]  ;;  %v5618_v46 = vld [vmem:[%s8377_s7 + $0x128] sm:$0xff] }
 0x83c   : > { %v6472_v57 = vpop.f32.mrf.mxu1  ;;  %v4193_v35 = vmax.f32 %v4191_v47, %v4192_v30  ;;  %v4203_v13 = vmax.f32 %v4199_v6, %v4202_v24  ;;  %v5617_v47 = vld [vmem:[%s8377_s7 + $0x120] sm:$0xff]  ;;  %v4398_v30 = vmax.f32 %v8050_v16, 0.0  ;;  %v4399_v24 = vmax.f32 %v8043_v26, 0.0 }
 0x83d   : > { %v4110_v55 = vadd.f32 %v4109_v11, %v3917_v53  ;;  %v3932_v44 = vadd.f32 %v6472_v57, %v8025_v28  ;;  %v8095_v3 = vadd.f32 %v4158_v59, %v4115_v52  ;;  %v4200_v25 = vsel %vm955_vm1, %v8088_v54, -inf  ;;  %v5608_v52 = vld [vmem:[%s8373_s3 + $0x118] sm:$0xff]  ;;  %v5613_v6 = vld [vmem:[%s8377_s7 + $0x100] sm:$0xff] }
 0x83e   : > { %v3926_v15 = vpop.f32.mrf.mxu1  ;;  %v4201_v19 = vmax.f32 %v4198_v8, %v4200_v25  ;;  %v4194_v0 = vrot.slane %v4193_v35, 2  ;;  %v4397_v57 = vmax.f32 %v8048_v23, 0.0  ;;  %v5615_v25 = vld [vmem:[%s8377_s7 + $0x110] sm:$0xff]  ;;  %v4402_v8 = vmax.f32 %v8056_v43, 0.0 }
 0x83f   : > { %v8101_v39 = vadd.f32 %v4158_v59, %v4110_v55  ;;  %v4125_v5 = vadd.f32 %v6504_v50, %v3932_v44  ;;  %v3927_v61 = vadd.f32 %v8025_v28, %v3926_v15  ;;  %v4206_v4 = vsel %vm955_vm1, %v8095_v3, -inf  ;;  %v5607_v50 = vld [vmem:[%s8373_s3 + $0x110] sm:$0xff]  ;;  %v5606_v55 = vld [vmem:[%s8373_s3 + $0x108] sm:$0xff]  ;;  %v5605_v44 = vld [vmem:[%s8373_s3 + $0x100] sm:$0xff] }
 0x840   : > { %v4207_v60 = vmax.f32 %v4203_v13, %v4206_v4  ;;  %v4195_v7 = vmax.f32 %v4193_v35, %v4194_v0  ;;  %v5616_v15 = vld [vmem:[%s8377_s7 + $0x118] sm:$0xff]  ;;  %v4403_v4 = vmax.f32 %v8072_v27, 0.0  ;;  %v4406_v35 = vmax.f32 %v8090_v38, 0.0 }
 0x841   : > { %v4204_v10 = vsel %vm955_vm1, %v8101_v39, -inf  ;;  %v8112_v34 = vadd.f32 %v4158_v59, %v4125_v5  ;;  %v4120_v9 = vadd.f32 %v4119_v63, %v3927_v61  ;;  %v5614_v5 = vld [vmem:[%s8377_s7 + $0x108] sm:$0xff]  ;;  %v4400_v61 = vmax.f32 %v8045_v21, 0.0 }
 0x842   : > { %v4205_v41 = vmax.f32 %v4201_v19, %v4204_v10  ;;  %v4196_v18 = vrot.slane %v4195_v7, 1  ;;  %v4401_v63 = vmax.f32 %v8052_v22, 0.0  ;;  %v4404_v10 = vmax.f32 %v8065_v12, 0.0 }
 0x843   : > { %v4210_v28 = vsel %vm955_vm1, %v8112_v34, -inf  ;;  %v8116_v20 = vadd.f32 %v4158_v59, %v4120_v9  ;;  %v4405_v9 = vmax.f32 %v8092_v2, 0.0  ;;  %v4407_v13 = vmax.f32 %v8088_v54, 0.0 }
 0x844   : > { %v4211_v32 = vmax.f32 %v4207_v60, %v4210_v28  ;;  %v4197_v31 = vmax.f32 %v4195_v7, %v4196_v18  ;;  %v4408_v19 = vmax.f32 %v8085_v48, 0.0  ;;  %v4409_v28 = vmax.f32 %v8101_v39, 0.0 }
 0x845   : > { %v4208_v49 = vsel %vm955_vm1, %v8116_v20, -inf  ;;  %v4410_v60 = vmax.f32 %v8095_v3, 0.0 }
 0x846   : > { %v4209_v17 = vmax.f32 %v4205_v41, %v4208_v49  ;;  %v4237_v59 = vmax.f32 %v4197_v31, 0.0  ;;  %v4411_v41 = vmax.f32 %v8116_v20, 0.0  ;;  %v4412_v49 = vmax.f32 %v8112_v34, 0.0 }
 0x848   : > { %v4212_v58 = vmax.f32 %v4209_v17, %v4211_v32 }
 0x84a   : > { %v4213_v14 = vrot.slane %v4212_v58, 4 }
 0x84c   : > { %v4214_v62 = vmax.f32 %v4212_v58, %v4213_v14 }
 0x84e   : > { %v4215_v36 = vrot.slane %v4214_v62, 2 }
 0x850   : > { %v4216_v1 = vmax.f32 %v4214_v62, %v4215_v36 }
 0x852   : > { %v4217_v11 = vrot.slane %v4216_v1, 1 }
 0x854   : > { %v4218_v33 = vmax.f32 %v4216_v1, %v4217_v11 }
 0x856   : > { %v4238_v40 = vmax.f32 %v4218_v33, 0.0  ;;  %v4324_v53 = vsel %vm1422_vm3, %v4218_v33, %v4197_v31 }
 0x858   : > { %v4249_v42 = vsel %vm1422_vm3, %v4238_v40, %v4237_v59 }
 0x859   : > { %6514 = vmatmul.mubr.msk.f32.vlgmr.msra.gmra.mxu1 %vm955_vm1, %v4249_v42 }
 0x85a   : > { %6517 = vmatpush3.msra.mxu1 %v5620_v37  ;;  %6524 = vmatprep.mubr.msk.f32.mxu1 %vm6779_vm2, %v6778_v51 }
 0x85b   : > { %6518 = vmatprep.subr.mxu1 %v6778_v51 }
 0x85c   : > { %6519 = vmatpush3.msra.mxu1 %v5619_v45 }
 0x85d   : > { %6520 = vmatprep.subr.mxu1 %v6778_v51 }
 0x85e   : > { %6521 = vmatpush3.msra.mxu1 %v5618_v46 }
 0x85f   : > { %6522 = vmatprep.subr.mxu1 %v6778_v51 }
 0x860   : > { %6523 = vmatpush3.msra.mxu1 %v5617_v47 }
 0x861   : > { %6525 = vmatmul.mubr.msk.f32.vlgmr.msra.gmra.mxu1 %vm955_vm1, %v4324_v53  ;;  %6527 = vmatprep.subr.mxu1 %v5608_v52 }
 0x862   : > { %6528 = vmatpush3.msra.mxu1 %v5608_v52  ;;  %6535 = vmatprep.mubr.msk.f32.mxu1 %vm955_vm1, %v4397_v57 }
 0x863   : > { %6529 = vmatprep.subr.mxu1 %v5607_v50 }
 0x864   : > { %6530 = vmatpush3.msra.mxu1 %v5607_v50 }
 0x865   : > { %6531 = vmatprep.subr.mxu1 %v5606_v55 }
 0x866   : > { %6532 = vmatpush3.msra.mxu1 %v5606_v55 }
 0x867   : > { %6533 = vmatprep.subr.mxu1 %v5605_v44 }
 0x868   : > { %6534 = vmatpush3.msra.mxu1 %v5605_v44 }
 0x869   : > { %6536 = vmatmul.mubr.msk.f32.vlgmr.msra.gmra.mxu1 %vm955_vm1, %v4398_v30  ;;  %6591 = vmatprep.subr.mxu1 %v5616_v15 }
 0x86a   : > { %6538 = vmatprep.mubr.msk.f32.mxu1 %vm955_vm1, %v4399_v24  ;;  %6592 = vmatpush3.msra.mxu1 %v5616_v15 }
 0x86b   : > { %6593 = vmatprep.subr.mxu1 %v5615_v25 }
 0x86c   : > { %6594 = vmatpush3.msra.mxu1 %v5615_v25 }
 0x86d   : > { %6539 = vmatmul.mubr.msk.f32.gmra.mxu1 %vm955_vm1, %v4400_v61  ;;  %6595 = vmatprep.subr.mxu1 %v5614_v5 }
 0x86e   : > { %6541 = vmatprep.mubr.msk.f32.mxu1 %vm955_vm1, %v4401_v63  ;;  %6596 = vmatpush3.msra.mxu1 %v5614_v5 }
 0x86f   : > { %6597 = vmatprep.subr.mxu1 %v5613_v6 }
 0x870   : > { %6598 = vmatpush3.msra.mxu1 %v5613_v6 }
 0x871   : > { %6542 = vmatmul.mubr.msk.f32.gmra.mxu1 %vm955_vm1, %v4402_v8 }
 0x872   : > { %6544 = vmatprep.mubr.msk.f32.mxu1 %vm955_vm1, %v4403_v4 }
 0x875   : > { %6545 = vmatmul.mubr.msk.f32.gmra.mxu1 %vm955_vm1, %v4404_v10 }
 0x876   : > { %6547 = vmatprep.mubr.msk.f32.mxu1 %vm955_vm1, %v4405_v9 }
 0x879   : > { %6548 = vmatmul.mubr.msk.f32.gmra.mxu1 %vm955_vm1, %v4406_v35 }
 0x87a   : > { %6550 = vmatprep.mubr.msk.f32.mxu1 %vm955_vm1, %v4407_v13 }
 0x87d   : > { %6551 = vmatmul.mubr.msk.f32.gmra.mxu1 %vm955_vm1, %v4408_v19 }
 0x87e   : > { %6553 = vmatprep.mubr.msk.f32.mxu1 %vm955_vm1, %v4409_v28 }
 0x881   : > { %6554 = vmatmul.mubr.msk.f32.gmra.mxu1 %vm955_vm1, %v4410_v60 }
 0x882   : > { %6556 = vmatprep.mubr.msk.f32.mxu1 %vm955_vm1, %v4411_v41 }
 0x885   : > { %6557 = vmatmul.mubr.msk.f32.gmra.mxu1 %vm955_vm1, %v4412_v49 }
 0x886   : > { %6599 = vmatprep.mubr.msk.f32.mxu1 %vm955_vm1, %v8048_v23 }
 0x889   : > { %6600 = vmatmul.mubr.msk.f32.vlgmr.msra.gmra.mxu1 %vm955_vm1, %v8050_v16  ;;  %v5622_v16 = vld [vmem:[%s8374_s4 + $0x4] ss:$0 sm:$0xff] }
 0x88a   : > { %6602 = vmatprep.mubr.msk.f32.mxu1 %vm955_vm1, %v8043_v26  ;;  %v5642_v26 = vld [vmem:[%s8375_s5 + $0x88] sm:$0xff] }
 0x88b   : > { %6563 = vmatprep.subr.mxu0 %v5642_v26 }
 0x88c   : > { %6564 = vmatpush3.msra.mxu0 %v5642_v26 }
 0x88d   : > { %6603 = vmatmul.mubr.msk.f32.gmra.mxu1 %vm955_vm1, %v8045_v21  ;;  %v5641_v21 = vld [vmem:[%s8375_s5 + $0x80] sm:$0xff] }
 0x88e   : > { %6605 = vmatprep.mubr.msk.f32.mxu1 %vm955_vm1, %v8052_v22  ;;  %6565 = vmatprep.subr.mxu0 %v5641_v21 }
 0x88f   : > { %6566 = vmatpush3.msra.mxu0 %v5641_v21  ;;  %v5166_v21 = vld [vmem:[%s8378_s8 + $0x18] sm:$0xff] }
 0x890   : > { %6623 = vmatprep.subr.mxu0 %v6778_v51 }
 0x891   : > { %6606 = vmatmul.mubr.msk.f32.gmra.mxu1 %vm955_vm1, %v8056_v43 }
 0x892   : > { %6608 = vmatprep.mubr.msk.f32.mxu1 %vm955_vm1, %v8072_v27 }
 0x895   : > { %6609 = vmatmul.mubr.msk.f32.gmra.mxu1 %vm955_vm1, %v8065_v12 }
 0x896   : > { %6611 = vmatprep.mubr.msk.f32.mxu1 %vm955_vm1, %v8092_v2 }
 0x899   : > { %6612 = vmatmul.mubr.msk.f32.gmra.mxu1 %vm955_vm1, %v8090_v38 }
 0x89a   : > { %6614 = vmatprep.mubr.msk.f32.mxu1 %vm955_vm1, %v8088_v54 }
 0x89d   : > { %6615 = vmatmul.mubr.msk.f32.gmra.mxu1 %vm955_vm1, %v8085_v48 }
 0x89e   : > { %6617 = vmatprep.mubr.msk.f32.mxu1 %vm955_vm1, %v8101_v39 }
 0x8a1   : > { %6618 = vmatmul.mubr.msk.f32.gmra.mxu1 %vm955_vm1, %v8095_v3 }
 0x8a2   : > { %6620 = vmatprep.mubr.msk.f32.mxu1 %vm955_vm1, %v8116_v20 }
 0x8a5   : > { %6621 = vmatmul.mubr.msk.f32.gmra.mxu1 %vm955_vm1, %v8112_v34 }
 0x919   : > { %v4318_v23 = vpop.f32.mrf.mxu1 }
 0x91a   : > { %v4319_v43 = vadd.f32 %v5622_v16, %v4318_v23  ;;  %v5165_v23 = vld [vmem:[%s8378_s8 + $0x10] sm:$0xff]  ;;  %v5164_v16 = vld [vmem:[%s8378_s8 + $0x8] sm:$0xff] }
 0x91b   : > { %v6515_v22 = vpop.f32.mrf.mxu1 }
 0x91c   : > { %v4613_v12 = vrot.slane %v4319_v43, %v7447_v56  ;;  %v5163_v22 = vld [vmem:[%s8378_s8] sm:$0xff] }
 0x91e   : > { %v4621_v54 = vrot.slane %v4613_v12, %v7447_v56  ;;  %v4614_v14 = vcombine.high %v4613_v12, %v4613_v12 }
 0x920   : > { %v4632_v38 = vrot.slane %v4621_v54, %v6960_v29  ;;  %v4628_v33 = vrot.slane %v4614_v14, %v7447_v56 }
 0x921   : > { %v8240_v27 = vpop.f32.mrf.mxu1 }
 0x922   : > { %v4636_v47 = vrot.slane %v4628_v33, %v6960_v29 }
 0x923   : > { %v6526_v48 = vpop.f32.mrf.mxu1 }
 0x929   : > { %v6537_v2 = vpop.f32.mrf.mxu1 }
 0x92a   : > { %v4640_v3 = vadd.f32 %v6537_v2, %v4632_v38 }
 0x92b   : > { %v4527_v39 = vpop.f32.mrf.mxu1 }
 0x92c   : > { %v4639_v34 = vadd.f32 %v4632_v38, %v4527_v39  ;;  %v4656_v32 = vmax.f32 %v4640_v3, 0.0 }
 0x92d   : > { %v6540_v20 = vpop.f32.mrf.mxu1 }
 0x92e   : > { %v4655_v0 = vmax.f32 %v4639_v34, 0.0  ;;  %v4642_v17 = vadd.f32 %v6540_v20, %v4632_v38  ;;  %v5077_v20 = vrot.slane %v8240_v27, %v7447_v56 }
 0x92f   : > { %v4537_v58 = vpop.f32.mrf.mxu1 }
 0x930   : > { %v4641_v7 = vadd.f32 %v4632_v38, %v4537_v58  ;;  %6567 = vmatprep.mubr.msk.f32.mxu0 %vm955_vm1, %v4655_v0  ;;  %v4658_v18 = vmax.f32 %v4642_v17, 0.0 }
 0x931   : > { %v6543_v62 = vpop.f32.mrf.mxu1  ;;  %6568 = vmatmul.mubr.msk.f32.vlgmr.msra.gmra.mxu0 %vm955_vm1, %v4656_v32  ;;  %v8284_v32 = vld [vmem:[%s8376_s6 + $0x4] ss:$0 sm:$0xff] }
 0x932   : > { %v4657_v36 = vmax.f32 %v4641_v7, 0.0  ;;  %v4644_v1 = vadd.f32 %v6543_v62, %v4632_v38  ;;  %6624 = vmatpush3.msra.mxu0 %v5166_v21  ;;  %v5085_v7 = vrot.slane %v5077_v20, %v7447_v56 }
 0x933   : > { %v4547_v31 = vpop.f32.mrf.mxu1  ;;  %6625 = vmatprep.subr.mxu0 %v6778_v51 }
 0x934   : > { %v4643_v11 = vadd.f32 %v4632_v38, %v4547_v31  ;;  %6570 = vmatprep.mubr.msk.f32.mxu0 %vm955_vm1, %v4657_v36  ;;  %v4660_v37 = vmax.f32 %v4644_v1, 0.0  ;;  %6626 = vmatpush3.msra.mxu0 %v5165_v23 }
 0x935   : > { %v6546_v59 = vpop.f32.mrf.mxu1  ;;  %6571 = vmatmul.mubr.msk.f32.gmra.mxu0 %vm955_vm1, %v4658_v18  ;;  %6627 = vmatprep.subr.mxu0 %v6778_v51 }
 0x936   : > { %v4659_v40 = vmax.f32 %v4643_v11, 0.0  ;;  %v4646_v42 = vadd.f32 %v6546_v59, %v4632_v38  ;;  %6628 = vmatpush3.msra.mxu0 %v5164_v16  ;;  %v5096_v11 = vrot.slane %v5085_v7, %v6960_v29 }
 0x937   : > { %v4557_v45 = vpop.f32.mrf.mxu1  ;;  %6629 = vmatprep.subr.mxu0 %v6778_v51 }
 0x938   : > { %v4645_v46 = vadd.f32 %v4632_v38, %v4557_v45  ;;  %6573 = vmatprep.mubr.msk.f32.mxu0 %vm955_vm1, %v4659_v40  ;;  %v4662_v57 = vmax.f32 %v4646_v42, 0.0  ;;  %6630 = vmatpush3.msra.mxu0 %v5163_v22 }
 0x939   : > { %v6549_v52 = vpop.f32.mrf.mxu1  ;;  %6574 = vmatmul.mubr.msk.f32.gmra.mxu0 %vm955_vm1, %v4660_v37 }
 0x93a   : > { %v4661_v53 = vmax.f32 %v4645_v46, 0.0  ;;  %v4648_v50 = vadd.f32 %v6549_v52, %v4636_v47 }
 0x93b   : > { %v4567_v55 = vpop.f32.mrf.mxu1 }
 0x93c   : > { %v4647_v44 = vadd.f32 %v4636_v47, %v4567_v55  ;;  %6576 = vmatprep.mubr.msk.f32.mxu0 %vm955_vm1, %v4661_v53  ;;  %v4664_v24 = vmax.f32 %v4648_v50, 0.0 }
 0x93d   : > { %v6552_v15 = vpop.f32.mrf.mxu1  ;;  %6577 = vmatmul.mubr.msk.f32.gmra.mxu0 %vm955_vm1, %v4662_v57 }
 0x93e   : > { %v4663_v30 = vmax.f32 %v4647_v44, 0.0  ;;  %v4650_v25 = vadd.f32 %v6552_v15, %v4636_v47  ;;  %v5078_v15 = vcombine.high %v5077_v20, %v5077_v20 }
 0x93f   : > { %v4577_v5 = vpop.f32.mrf.mxu1 }
 0x940   : > { %v4649_v61 = vadd.f32 %v4636_v47, %v4577_v5  ;;  %6579 = vmatprep.mubr.msk.f32.mxu0 %vm955_vm1, %v4663_v30  ;;  %v4666_v8 = vmax.f32 %v4650_v25, 0.0 }
 0x941   : > { %v6555_v63 = vpop.f32.mrf.mxu1  ;;  %6580 = vmatmul.mubr.msk.f32.gmra.mxu0 %vm955_vm1, %v4664_v24 }
 0x942   : > { %v4665_v6 = vmax.f32 %v4649_v61, 0.0  ;;  %v4652_v4 = vadd.f32 %v6555_v63, %v4636_v47 }
 0x943   : > { %v4587_v10 = vpop.f32.mrf.mxu1 }
 0x944   : > { %v4651_v9 = vadd.f32 %v4636_v47, %v4587_v10  ;;  %6582 = vmatprep.mubr.msk.f32.mxu0 %vm955_vm1, %v4665_v6  ;;  %v4668_v19 = vmax.f32 %v4652_v4, 0.0 }
 0x945   : > { %v6558_v35 = vpop.f32.mrf.mxu1  ;;  %6583 = vmatmul.mubr.msk.f32.gmra.mxu0 %vm955_vm1, %v4666_v8 }
 0x946   : > { %v4667_v13 = vmax.f32 %v4651_v9, 0.0  ;;  %v4654_v28 = vadd.f32 %v6558_v35, %v4636_v47 }
 0x947   : > { %v4597_v60 = vpop.f32.mrf.mxu1 }
 0x948   : > { %v4653_v41 = vadd.f32 %v4636_v47, %v4597_v60  ;;  %6585 = vmatprep.mubr.msk.f32.mxu0 %vm955_vm1, %v4667_v13  ;;  %v4670_v26 = vmax.f32 %v4654_v28, 0.0 }
 0x949   : > { %6586 = vmatmul.mubr.msk.f32.gmra.mxu0 %vm955_vm1, %v4668_v19  ;;  %v6601_v43 = vpop.f32.mrf.mxu1 }
 0x94a   : > { %v4669_v49 = vmax.f32 %v4653_v41, 0.0  ;;  %v5092_v41 = vrot.slane %v5078_v15, %v7447_v56 }
 0x94b   : > { %v4991_v12 = vpop.f32.mrf.mxu1 }
 0x94c   : > { %6588 = vmatprep.mubr.msk.f32.mxu0 %vm955_vm1, %v4669_v49 }
 0x94d   : > { %6589 = vmatmul.mubr.msk.f32.gmra.mxu0 %vm955_vm1, %v4670_v26  ;;  %v6604_v48 = vpop.f32.mrf.mxu1 }
 0x94e   : > { %6631 = vmatprep.mubr.msk.f32.mxu0 %vm6779_vm2, %v6778_v51 }
 0x94f   : > { %v5001_v54 = vpop.f32.mrf.mxu1 }
 0x951   : > { %v6607_v38 = vpop.f32.mrf.mxu1 }
 0x953   : > { %v5011_v2 = vpop.f32.mrf.mxu1 }
 0x955   : > { %v6610_v3 = vpop.f32.mrf.mxu1 }
 0x957   : > { %v5021_v39 = vpop.f32.mrf.mxu1 }
 0x959   : > { %v8286_v51 = vpop.f32.mrf.mxu1 }
 0x95b   : > { %v5031_v18 = vpop.f32.mrf.mxu1 }
 0x95d   : > { %v6616_v52 = vpop.f32.mrf.mxu1 }
 0x95f   : > { %v5041_v8 = vpop.f32.mrf.mxu1 }
 0x961   : > { %v6619_v23 = vpop.f32.mrf.mxu1 }
 0x9f1   : > { %v6569_v34 = vpop.f32.mrf.mxu0 }
 0x9f2   : > { %v4804_v62 = vadd.f32 %v6569_v34, %v8284_v32 }
 0x9f3   : > { %v4798_v0 = vpop.f32.mrf.mxu0 }
 0x9f4   : > { %v4799_v17 = vadd.f32 %v8284_v32, %v4798_v0  ;;  %v4997_v37 = vadd.f32 %v6601_v43, %v4804_v62  ;;  %v5100_v0 = vrot.slane %v5092_v41, %v6960_v29 }
 0x9f5   : > { %v6572_v58 = vpop.f32.mrf.mxu0 }
 0x9f6   : > { %v4814_v14 = vadd.f32 %v6572_v58, %v8284_v32  ;;  %v4992_v1 = vadd.f32 %v4991_v12, %v4799_v17  ;;  %v5104_v30 = vadd.f32 %v5096_v11, %v4997_v37  ;;  %v5051_v17 = vpop.f32.mrf.mxu1 }
 0x9f7   : > { %v4808_v36 = vpop.f32.mrf.mxu0 }
 0x9f8   : > { %v4809_v27 = vadd.f32 %v8284_v32, %v4808_v36  ;;  %v5007_v33 = vadd.f32 %v6604_v48, %v4814_v14  ;;  %v5103_v53 = vadd.f32 %v5096_v11, %v4992_v1  ;;  %v5120_v49 = vsel %vm955_vm1, %v5104_v30, -inf  ;;  %v6622_v37 = vpop.f32.mrf.mxu1 }
 0x9f9   : > { %v6575_v31 = vpop.f32.mrf.mxu0 }
 0x9fa   : > { %v5002_v59 = vadd.f32 %v5001_v54, %v4809_v27  ;;  %v4824_v40 = vadd.f32 %v6575_v31, %v8284_v32  ;;  %v5106_v50 = vadd.f32 %v5096_v11, %v5007_v33  ;;  %v5119_v4 = vsel %vm955_vm1, %v5103_v53, -inf  ;;  %v5061_v15 = vpop.f32.mrf.mxu1 }
 0x9fb   : > { %v4818_v42 = vpop.f32.mrf.mxu0 }
 0x9fc   : > { %v5105_v45 = vadd.f32 %v5096_v11, %v5002_v59  ;;  %v5017_v46 = vadd.f32 %v6607_v38, %v4824_v40  ;;  %v4819_v47 = vadd.f32 %v8284_v32, %v4818_v42  ;;  %v5123_v9 = vsel %vm955_vm1, %v5106_v50, -inf }
 0x9fd   : > { %v6578_v57 = vpop.f32.mrf.mxu0  ;;  %v5124_v16 = vmax.f32 %v5120_v49, %v5123_v9 }
 0x9fe   : > { %v5012_v55 = vadd.f32 %v5011_v2, %v4819_v47  ;;  %v4834_v44 = vadd.f32 %v6578_v57, %v8284_v32  ;;  %v5121_v24 = vsel %vm955_vm1, %v5105_v45, -inf  ;;  %v5108_v5 = vadd.f32 %v5096_v11, %v5017_v46 }
 0x9ff   : > { %v4828_v25 = vpop.f32.mrf.mxu0  ;;  %v5122_v28 = vmax.f32 %v5119_v4, %v5121_v24 }
 0xa00   : > { %v5107_v61 = vadd.f32 %v5096_v11, %v5012_v55  ;;  %v5027_v63 = vadd.f32 %v6610_v3, %v4834_v44  ;;  %v4829_v6 = vadd.f32 %v8284_v32, %v4828_v25  ;;  %v5127_v26 = vsel %vm955_vm1, %v5108_v5, -inf }
 0xa01   : > { %v6581_v10 = vpop.f32.mrf.mxu0  ;;  %v5128_v56 = vmax.f32 %v5124_v16, %v5127_v26 }
 0xa02   : > { %v5125_v35 = vsel %vm955_vm1, %v5107_v61, -inf  ;;  %v5110_v13 = vadd.f32 %v5096_v11, %v5027_v63  ;;  %v5022_v19 = vadd.f32 %v5021_v39, %v4829_v6  ;;  %v4844_v43 = vadd.f32 %v6581_v10, %v8284_v32 }
 0xa03   : > { %v4838_v60 = vpop.f32.mrf.mxu0  ;;  %v5126_v22 = vmax.f32 %v5122_v28, %v5125_v35 }
 0xa04   : > { %v5109_v21 = vadd.f32 %v5096_v11, %v5022_v19  ;;  %v4839_v12 = vadd.f32 %v8284_v32, %v4838_v60  ;;  %v5131_v54 = vsel %vm955_vm1, %v5110_v13, -inf  ;;  %v5037_v7 = vadd.f32 %v8286_v51, %v4844_v43 }
 0xa05   : > { %v6584_v48 = vpop.f32.mrf.mxu0  ;;  %v5132_v58 = vmax.f32 %v5128_v56, %v5131_v54  ;;  %v5679_v56 = vld [vmem:[%s8379_s9] ss:$0 sm:$0xff] }
 0xa06   : > { %v5129_v38 = vsel %vm955_vm1, %v5109_v21, -inf  ;;  %v4854_v2 = vadd.f32 %v6584_v48, %v8284_v32  ;;  %v5032_v14 = vadd.f32 %v5031_v18, %v4839_v12  ;;  %v5112_v42 = vadd.f32 %v5100_v0, %v5037_v7 }
 0xa07   : > { %v5130_v3 = vmax.f32 %v5126_v22, %v5129_v38  ;;  %v4848_v39 = vpop.f32.mrf.mxu0 }
 0xa08   : > { %v5047_v34 = vadd.f32 %v6616_v52, %v4854_v2  ;;  %v4849_v20 = vadd.f32 %v8284_v32, %v4848_v39  ;;  %v5111_v45 = vadd.f32 %v5100_v0, %v5032_v14  ;;  %v5141_v30 = vsel %vm955_vm1, %v5112_v42, -inf }
 0xa09   : > { %v6587_v62 = vpop.f32.mrf.mxu0  ;;  %v5133_v1 = vmax.f32 %v5130_v3, %v5132_v58 }
 0xa0a   : > { %v5042_v36 = vadd.f32 %v5041_v8, %v4849_v20  ;;  %v4864_v27 = vadd.f32 %v6587_v62, %v8284_v32  ;;  %v5114_v31 = vadd.f32 %v5100_v0, %v5047_v34  ;;  %v5140_v24 = vsel %vm955_vm1, %v5111_v45, -inf }
 0xa0b   : > { %v4858_v11 = vpop.f32.mrf.mxu0  ;;  %v5134_v18 = vrot.slane %v5133_v1, 4 }
 0xa0c   : > { %v5113_v33 = vadd.f32 %v5100_v0, %v5042_v36  ;;  %v5057_v59 = vadd.f32 %v6619_v23, %v4864_v27  ;;  %v4859_v40 = vadd.f32 %v8284_v32, %v4858_v11  ;;  %v5144_v52 = vsel %vm955_vm1, %v5114_v31, -inf }
 0xa0d   : > { %v6590_v29 = vpop.f32.mrf.mxu0  ;;  %v5135_v6 = vmax.f32 %v5133_v1, %v5134_v18  ;;  %v5145_v8 = vmax.f32 %v5141_v30, %v5144_v52 }
 0xa0e   : > { %v5116_v46 = vadd.f32 %v5100_v0, %v5057_v59  ;;  %v5052_v47 = vadd.f32 %v5051_v17, %v4859_v40  ;;  %v4874_v51 = vadd.f32 %v6590_v29, %v8284_v32  ;;  %v5142_v57 = vsel %vm955_vm1, %v5113_v33, -inf }
 0xa0f   : > { %v4868_v53 = vpop.f32.mrf.mxu0  ;;  %v5143_v4 = vmax.f32 %v5140_v24, %v5142_v57  ;;  %v5136_v19 = vrot.slane %v5135_v6, 2 }
 0xa10   : > { %v5115_v50 = vadd.f32 %v5100_v0, %v5052_v47  ;;  %v5067_v55 = vadd.f32 %v6622_v37, %v4874_v51  ;;  %v4869_v44 = vadd.f32 %v8284_v32, %v4868_v53  ;;  %v5148_v25 = vsel %vm955_vm1, %v5116_v46, -inf }
 0xa11   : > { %v5149_v35 = vmax.f32 %v5145_v8, %v5148_v25  ;;  %v5137_v49 = vmax.f32 %v5135_v6, %v5136_v19 }
 0xa12   : > { %v5146_v5 = vsel %vm955_vm1, %v5115_v50, -inf  ;;  %v5118_v61 = vadd.f32 %v5100_v0, %v5067_v55  ;;  %v5062_v63 = vadd.f32 %v5061_v15, %v4869_v44 }
 0xa13   : > { %v5147_v13 = vmax.f32 %v5143_v4, %v5146_v5  ;;  %v5138_v23 = vrot.slane %v5137_v49, 1 }
 0xa14   : > { %v5152_v10 = vsel %vm955_vm1, %v5118_v61, -inf  ;;  %v5117_v9 = vadd.f32 %v5100_v0, %v5062_v63 }
 0xa15   : > { %v5153_v28 = vmax.f32 %v5149_v35, %v5152_v10  ;;  %v5139_v43 = vmax.f32 %v5137_v49, %v5138_v23 }
 0xa16   : > { %v5150_v32 = vsel %vm955_vm1, %v5117_v9, -inf }
 0xa17   : > { %v5151_v60 = vmax.f32 %v5147_v13, %v5150_v32  ;;  %v5161_v54 = vmax.f32 %v5139_v43, 0.0 }
 0xa19   : > { %v5154_v41 = vmax.f32 %v5151_v60, %v5153_v28 }
 0xa1b   : > { %v5155_v26 = vrot.slane %v5154_v41, 4 }
 0xa1d   : > { %v5156_v21 = vmax.f32 %v5154_v41, %v5155_v26 }
 0xa1f   : > { %v5157_v16 = vrot.slane %v5156_v21, 2 }
 0xa21   : > { %v5158_v22 = vmax.f32 %v5156_v21, %v5157_v16 }
 0xa23   : > { %v5159_v12 = vrot.slane %v5158_v22, 1 }
 0xa25   : > { %v5160_v48 = vmax.f32 %v5158_v22, %v5159_v12 }
 0xa27   : > { %v5162_v38 = vmax.f32 %v5160_v48, 0.0 }
 0xa29   : > { %v5176_v2 = vsel %vm1422_vm3, %v5162_v38, %v5161_v54 }
 0xa2a   : > { %6632 = vmatmul.mubr.msk.f32.vlgmr.msra.gmra.mxu0 %vm955_vm1, %v5176_v2 }
 0xaea   : > { %v5245_v3 = vpop.f32.mrf.mxu0 }
 0xaeb   : > { %v5246_v39 = vadd.f32 %v5679_v56, %v5245_v3 }
 0xaec   : > { %v6633_v34 = vpop.f32.mrf.mxu0 }
 0xaed   : > { %5250 = vst.msk [vmem:[%s355_s26] sm:$0x3] %vm5249_vm4, %v5246_v39 }
 0xaee   : > { %6726 = shalt.err (!%p6723_p3)
}
 0xaef   : > { %s6727_s21 = scalar_lea.hbm %s8335_s30, 32  ;;  %s6731_s26 = scalar_lea.hbm %s8380_s10, 64 }
 0xaf0   : > { %p6728_p4 = scmp.ne.s32.totalorder %s8335_s30, %s6727_s21  ;;  %p6732_p9 = scmp.lt.s32.totalorder %s8335_s30, %s8380_s10 }
 0xaf1   : > { %p6733_p10 = scmp.lt.s32.totalorder %s6731_s26, %s6727_s21 }
 0xaf2   : > { %p6729_p7 = pnand %p6728_p4, %p6875_p5 }
 0xaf3   : > { %p6734_p11 = por %p6733_p10, %p6732_p9 }
 0xaf4   : > { %p6730_p8 = pneg %p6729_p7 }
 0xaf6   : > { %p6735_p12 = pnand %p6734_p11, %p6730_p8 }
 0xaf8   : > { %6738 = shalt.err (!%p6735_p12)
}
 0xaf9   : > { %6642 = dma.vmem_to_hbm [thread:$0]  (%p6875_p5), %s5266_s29, 32, %s8335_s30, %s5252_s11  }
 0xafa PF: > { %p6648_p13 = scmp.ge.s32.totalorder %s6773_s16, 2  ;;  %s5277_s0 = sand.u32 1, %s6761_s13  }
 0xafb   : > { %s5278_s17 = scalar_lea.sflag [#allocation3], %s5277_s0 }
 0xafc   : > { %p6645_p0 = pnand %p6648_p13, %p6879_p6 }
 0xafe   : > { %p6646_p1 = pneg %p6645_p0 }
 0xb00   : > { %6756 = dma.done.wait (%p6646_p1), %s5278_s17, 32  }
 0xb01   : > { %6758 = vsyncadd (%p6646_p1), %s5278_s17, 4294967264  ;;  %p20_p2 = scmp.ge.s32.totalorder %s6862_s19, 4   ;;  %s8385_s13 = smov %s6765_s14 }
 0xb02   : > { %s8386_s14 = smov %s6769_s15  ;;  %s8387_s15 = smov %s6873_s22 }
 0xb03   : > { %s8388_s16 = smov %s6862_s19  ;;  %22 = sbr.rel (!%p20_p2) target bundleno = 5 (0x5), region = 115 }
 0xb08   :  { %5283 = vsyncpa [#allocation3], 1 }
 0xb09   :  { %5285 = vsyncpa [#allocation3 + $0x1], 1 }

</bundles_post_ra>
